<compile_context>
chip_gen: v7x
topology: tpu7x:2x2x1
jax: 0.10.0
libtpu: 0.0.40
codegen_flags: <defaults>
</compile_context>

<pallas_src>
import functools

import jax
import jax.numpy as jnp
import numpy as np
from jax import lax
from jax.experimental import pallas as pl
from jax.experimental.pallas import tpu as pltpu

# ---------------- small deterministic configuration ----------------
D_MODEL = 32
D_STATE = 16
VOCAB = 64
D_HID = 32           # d_adapt_hid
N_PERSIST = 4
BATCH = 2
SEQ = 8
LN_EPS = 1e-5        # PyTorch nn.LayerNorm default eps
D_CTRL = D_STATE + D_MODEL          # 48
A_DIM = D_STATE * D_STATE           # 256 (flat adaptive A)
B_DIM = D_STATE * D_MODEL           # 512 (flat adaptive B)


# ---------------------------- Pallas kernel ----------------------------
def rasm_kernel(xpre_ref, xmom_ref, xtile_ref,
                w1h_ref, w1cs_ref, b1f_ref,
                w2a_ref, b2a_ref, w2b_ref, b2b_ref,
                w2sm_ref, b2sm_ref,
                sela_ref, selb_ref,
                ct_ref, lnsg_ref, lnsb_ref,
                woutf_ref, woutcs_ref, boutf_ref,
                aba0_ref, abb0_ref,
                logits_ref, hfin_ref,
                hbuf_ref):
    total_len, bsz, _ = xpre_ref.shape
    f32 = jnp.float32

    # per-step constants hoisted out of the recurrence
    w1h = w1h_ref[...]          # (16, 192)  h-rows of folded W1
    w1cs = w1cs_ref[...]        # (1, 192)   column sums of folded W1
    b1f = b1f_ref[...]          # (1, 192)   folded bias
    w2a = w2a_ref[...]          # (32, 256)  hypernet dA second layer
    b2a = b2a_ref[...]
    w2b = w2b_ref[...]          # (32, 512)  hypernet dB second layer
    b2b = b2b_ref[...]
    w2sm = w2sm_ref[...]        # (128, 34)  [forget|update|router|rate] heads
    b2sm = b2sm_ref[...]
    sela = sela_ref[...]        # (256, 16)  0/1 selection: (A_flat*rep(h)) -> A@h
    selb = selb_ref[...]        # (512, 16)  0/1 selection: (B_flat*rep(x)) -> B@x
    lns_g = lnsg_ref[...]       # (1, 16)
    lns_b = lnsb_ref[...]

    inv_dc = 1.0 / float(D_CTRL)

    h = jnp.zeros((bsz, D_STATE), f32)
    abA = jnp.broadcast_to(aba0_ref[...], (bsz, A_DIM))   # flat adaptive A (eye)
    abB = jnp.broadcast_to(abb0_ref[...], (bsz, B_DIM))   # flat adaptive B (zeros)

    # Fully-unrolled 12-step recurrence (total_len is static).  Carried state
    # is only h (1 vreg) + abA (2) + abB (4); per-step hidden states go to the
    # hbuf scratch so vreg pressure stays well below 64.
    for t in range(total_len):
        xpre_t = xpre_ref[t]            # (B, 192)  x_t @ W1_x (gamma folded), hoisted
        xmom_t = xmom_ref[t]            # (B, 2)    [sum(x)/48, sum(x^2)/48], hoisted
        xtile_t = xtile_ref[t]          # (B, 512)  x_t lane-replicated 16x, hoisted

        # ---- norm_control folded into the fused first layer ----
        mu = jnp.sum(h, -1, keepdims=True) * inv_dc + xmom_t[:, 0:1]
        msq = jnp.sum(h * h, -1, keepdims=True) * inv_dc + xmom_t[:, 1:2]
        inv_std = lax.rsqrt(msq - mu * mu + LN_EPS)
        pre = jnp.dot(h, w1h, preferred_element_type=f32) + xpre_t
        zp = inv_std * (pre - mu * w1cs) + b1f
        z = zp * jax.nn.sigmoid(zp)                          # SiLU, (B, 192)

        # ---- hypernet / gate heads: three independent dense dots ----
        d_a = jnp.dot(z[:, :D_HID], w2a, preferred_element_type=f32) + b2a        # (B, 256)
        d_b = jnp.dot(z[:, D_HID:2 * D_HID], w2b, preferred_element_type=f32) + b2b  # (B, 512)
        sm = jax.nn.sigmoid(
            jnp.dot(z[:, 2 * D_HID:], w2sm, preferred_element_type=f32) + b2sm)       # (B, 34)
        fg = sm[:, :D_STATE]                                   # forget gate
        ug = sm[:, D_STATE:2 * D_STATE]                        # update gate
        rate = (sm[:, 2 * D_STATE:2 * D_STATE + 1]             # sigmoid(router)
                * sm[:, 2 * D_STATE + 1:2 * D_STATE + 2])      # * sigmoid(rate)

        abA = abA + rate * d_a
        abB = abB + rate * d_b

        # ---- A@h and B@x via flat layout + 0/1 selection dots ----
        # jnp.tile proved to lower cleanly here; a pltpu.roll log-doubling
        # scheme (XLU slot) is the fallback if this ever shows on the VALU
        # critical path.  The x-side replication is precomputed (xtile_t).
        hrep = jnp.tile(h, (1, D_STATE))                                  # (B, 256)
        ah = jnp.dot(abA * hrep, sela, preferred_element_type=f32)        # (B, 16)
        bx = jnp.dot(abB * xtile_t, selb, preferred_element_type=f32)     # (B, 16)

        h_pre = fg * ah + ug * bx
        mu_s = jnp.mean(h_pre, -1, keepdims=True)
        var_s = jnp.mean((h_pre - mu_s) ** 2, -1, keepdims=True)
        h = (h_pre - mu_s) * lax.rsqrt(var_s + LN_EPS) * lns_g + lns_b

        hbuf_ref[t * bsz:(t + 1) * bsz, :] = h        # stash for batched output path

    hfin_ref[...] = h

    # ---- output path hoisted out of the recurrence: one batched pass ----
    hall = hbuf_ref[...]                                                  # (L*B, 16)
    y = jnp.dot(hall, ct_ref[...], preferred_element_type=f32)            # (L*B, 32)
    mu_o = jnp.mean(y, -1, keepdims=True)
    var_o = jnp.mean(y * y, -1, keepdims=True) - mu_o * mu_o
    inv_o = lax.rsqrt(var_o + LN_EPS)
    # norm_out affine folded into the output projection weights
    logits_ref[...] = (inv_o * (jnp.dot(y, woutf_ref[...], preferred_element_type=f32)
                                - mu_o * woutcs_ref[...])
                       + boutf_ref[...])
    # TODO(synk): nn.Dropout is stochastic; implemented as eval-mode identity.


# ---------------------------- parameters ----------------------------
def init_params(key):
    d_ctrl = D_STATE + D_MODEL
    keys = iter(jax.random.split(key, 32))

    def xavier(shape):
        lim = float(np.sqrt(6.0 / (shape[0] + shape[1])))
        return jax.random.uniform(next(keys), shape, jnp.float32, -lim, lim)

    def mlp_params(d_in, d_out):
        return (xavier((d_in, D_HID)), jnp.zeros((1, D_HID), jnp.float32),
                xavier((D_HID, d_out)), jnp.zeros((1, d_out), jnp.float32))

    emb = jax.random.normal(next(keys), (VOCAB, D_MODEL), jnp.float32) * (D_MODEL ** -0.5)
    emb = emb.at[0].set(0.0)          # padding_idx = 0

    return dict(
        embedding=emb,
        persist=jax.random.normal(next(keys), (N_PERSIST, D_MODEL), jnp.float32)
                * (D_MODEL ** -0.5),
        lnc_g=jnp.ones((1, d_ctrl), jnp.float32), lnc_b=jnp.zeros((1, d_ctrl), jnp.float32),
        rtr=mlp_params(d_ctrl, 1),
        hA=mlp_params(d_ctrl, D_STATE * D_STATE),
        hB=mlp_params(d_ctrl, D_STATE * D_MODEL),
        rate=mlp_params(d_ctrl, 1),
        fg=mlp_params(d_ctrl, D_STATE),
        ug=mlp_params(d_ctrl, D_STATE),
        c_t=xavier((D_STATE, D_MODEL)),               # == C.T ; y = h @ C.T
        lns_g=jnp.ones((1, D_STATE), jnp.float32), lns_b=jnp.zeros((1, D_STATE), jnp.float32),
        lno_g=jnp.ones((1, D_MODEL), jnp.float32), lno_b=jnp.zeros((1, D_MODEL), jnp.float32),
        w_out=xavier((D_MODEL, VOCAB)), b_out=jnp.zeros((1, VOCAB), jnp.float32),
    )


def pack_weights(p):
    """Host-side fusion / folding of the per-step weights for the kernel."""
    f32 = jnp.float32
    g = p["lnc_g"][0]                 # (48,) norm_control gamma
    beta = p["lnc_b"][0]              # (48,) norm_control beta

    # Fused first layer, head order: [hA, hB, rtr, rate, fg, ug]  -> (48, 192)
    w1 = jnp.concatenate([p["hA"][0], p["hB"][0], p["rtr"][0],
                          p["rate"][0], p["fg"][0], p["ug"][0]], axis=1)
    b1 = jnp.concatenate([p["hA"][1], p["hB"][1], p["rtr"][1],
                          p["rate"][1], p["fg"][1], p["ug"][1]], axis=1)
    w1p = w1 * g[:, None]             # fold gamma into W1
    w1h = w1p[:D_STATE]               # (16, 192): h rows   (per-step, in kernel)
    w1x = w1p[D_STATE:]               # (32, 192): x rows   (hoisted to wrapper)
    w1cs = g[None, :] @ w1            # (1, 192): column sums of folded W1
    b1f = beta[None, :] @ w1 + b1     # (1, 192): folded bias

    # Hypernet second layers kept dense per head (no zero padding -> no
    # structural zeros streamed through the MXU).
    w2a, b2a = p["hA"][2], p["hA"][3]             # (32, 256), (1, 256)
    w2b, b2b = p["hB"][2], p["hB"][3]             # (32, 512), (1, 512)

    # Small gate heads, trimmed to the z columns they actually read
    # (z[:, 64:192] = [rtr | rate | fg | ug] hidden activations).
    # Output columns: [forget(16) | update(16) | router(1) | rate(1)]
    w2sm = jnp.zeros((4 * D_HID, 2 * D_STATE + 2), f32)
    w2sm = w2sm.at[0 * D_HID:1 * D_HID, 2 * D_STATE:2 * D_STATE + 1].set(p["rtr"][2])
    w2sm = w2sm.at[1 * D_HID:2 * D_HID, 2 * D_STATE + 1:2 * D_STATE + 2].set(p["rate"][2])
    w2sm = w2sm.at[2 * D_HID:3 * D_HID, :D_STATE].set(p["fg"][2])
    w2sm = w2sm.at[3 * D_HID:4 * D_HID, D_STATE:2 * D_STATE].set(p["ug"][2])
    b2sm = jnp.concatenate([p["fg"][3], p["ug"][3], p["rtr"][3], p["rate"][3]], axis=1)

    # Split 0/1 selection matrices (kept f32; see header note on bf16).
    sela = np.zeros((A_DIM, D_STATE), np.float32)
    ra = np.arange(A_DIM)
    sela[ra, ra // D_STATE] = 1.0
    selb = np.zeros((B_DIM, D_STATE), np.float32)
    rb = np.arange(B_DIM)
    selb[rb, rb // D_MODEL] = 1.0

    # Fold norm_out affine into the output projection
    og = p["lno_g"][0]
    ob = p["lno_b"][0]
    woutf = p["w_out"] * og[:, None]          # (32, 64)
    woutcs = og[None, :] @ p["w_out"]         # (1, 64)
    boutf = ob[None, :] @ p["w_out"] + p["b_out"]

    # Initial flat A (= eye) and flat B (= zeros)
    aba0 = jnp.eye(D_STATE, dtype=f32).reshape(1, A_DIM)
    abb0 = jnp.zeros((1, B_DIM), f32)

    return dict(w1h=w1h, w1x=w1x, w1cs=w1cs, b1f=b1f,
                w2a=w2a, b2a=b2a, w2b=w2b, b2b=b2b,
                w2sm=w2sm, b2sm=b2sm,
                sela=jnp.asarray(sela), selb=jnp.asarray(selb),
                ct=p["c_t"], lns_g=p["lns_g"], lns_b=p["lns_b"],
                woutf=woutf, woutcs=woutcs, boutf=boutf,
                aba0=aba0, abb0=abb0)


# ---------------------------- wrapper ----------------------------
def rasm_forward(input_ids, params):
    b, l = input_ids.shape
    emb = params["embedding"][input_ids]                                    # (B, l, D)
    persist = jnp.broadcast_to(params["persist"][None], (b, N_PERSIST, D_MODEL))
    x = jnp.concatenate([persist, emb], axis=1)                             # (B, L, D)
    total_len = l + N_PERSIST
    x_tm = jnp.transpose(x, (1, 0, 2))                                      # (L, B, D)

    w = pack_weights(params)

    # x-only precomputes, hoisted out of the kernel's serial 12-step chain and
    # batched over all (t, b) rows (perf-review items 1-2):
    xpre = jnp.einsum("lbd,dk->lbk", x_tm, w["w1x"])                        # (L, B, 192)
    xmom = jnp.stack([jnp.sum(x_tm, -1), jnp.sum(x_tm * x_tm, -1)],
                     axis=-1) * (1.0 / D_CTRL)                              # (L, B, 2)
    xtile = jnp.tile(x_tm, (1, 1, D_STATE))                                 # (L, B, 512)

    operands = (xpre, xmom, xtile,
                w["w1h"], w["w1cs"], w["b1f"],
                w["w2a"], w["b2a"], w["w2b"], w["b2b"],
                w["w2sm"], w["b2sm"],
                w["sela"], w["selb"],
                w["ct"], w["lns_g"], w["lns_b"],
                w["woutf"], w["woutcs"], w["boutf"],
                w["aba0"], w["abb0"])

    # Explicit VMEM placement for every operand / output (total < 0.5 MiB).
    vmem = pl.BlockSpec(memory_space=pltpu.MemorySpace.VMEM)

    logits_flat, h_fin = pl.pallas_call(
        rasm_kernel,
        out_shape=(jax.ShapeDtypeStruct((total_len * b, VOCAB), jnp.float32),
                   jax.ShapeDtypeStruct((b, D_STATE), jnp.float32)),
        in_specs=[vmem] * len(operands),
        out_specs=(vmem, vmem),
        scratch_shapes=[pltpu.VMEM((total_len * b, D_STATE), jnp.float32)],
    )(*operands)

    logits = logits_flat.reshape(total_len, b, VOCAB)
    logits = jnp.transpose(logits, (1, 0, 2))[:, N_PERSIST:, :]             # (B, l, VOCAB)
    return logits, h_fin


# ---------------------------- pure-JAX reference ----------------------------
def rasm_reference(input_ids, p):
    b, l = input_ids.shape
    emb = p["embedding"][input_ids]
    x = jnp.concatenate(
        [jnp.broadcast_to(p["persist"][None], (b, N_PERSIST, D_MODEL)), emb], axis=1)
    total_len = l + N_PERSIST

    def ln(v, g, be):
        mu = v.mean(-1, keepdims=True)
        var = ((v - mu) ** 2).mean(-1, keepdims=True)
        return (v - mu) / jnp.sqrt(var + LN_EPS) * g + be

    def mlp(v, w1, b1, w2, b2):
        z = v @ w1 + b1
        z = z * jax.nn.sigmoid(z)
        return z @ w2 + b2

    h = jnp.zeros((b, D_STATE), jnp.float32)
    A = jnp.broadcast_to(jnp.eye(D_STATE, dtype=jnp.float32)[None], (b, D_STATE, D_STATE))
    B = jnp.zeros((b, D_STATE, D_MODEL), jnp.float32)
    outs = []
    for t in range(total_len):
        xt = x[:, t]
        ctrl = ln(jnp.concatenate([h, xt], -1), p["lnc_g"], p["lnc_b"])
        ap = jax.nn.sigmoid(mlp(ctrl, *p["rtr"]))
        dA = mlp(ctrl, *p["hA"]).reshape(b, D_STATE, D_STATE)
        dB = mlp(ctrl, *p["hB"]).reshape(b, D_STATE, D_MODEL)
        rate = jax.nn.sigmoid(mlp(ctrl, *p["rate"])) * ap
        A = A + rate[..., None] * dA
        B = B + rate[..., None] * dB
        fg = jax.nn.sigmoid(mlp(ctrl, *p["fg"]))
        ug = jax.nn.sigmoid(mlp(ctrl, *p["ug"]))
        Ah = jnp.einsum('bij,bj->bi', A, h)
        Bx = jnp.einsum('bij,bj->bi', B, xt)
        h = ln(fg * Ah + ug * Bx, p["lns_g"], p["lns_b"])
        y = ln(h @ p["c_t"], p["lno_g"], p["lno_b"])
        outs.append(y @ p["w_out"] + p["b_out"])
    logits = jnp.stack(outs, axis=1)[:, N_PERSIST:, :]
    return logits, h


# ---------------------------- main ----------------------------
if __name__ == "__main__":
    key = jax.random.PRNGKey(0)
    pkey, dkey = jax.random.split(key)
    params = init_params(pkey)
    input_ids = jax.random.randint(dkey, (BATCH, SEQ), 1, VOCAB)

    fwd = jax.jit(functools.partial(rasm_forward, params=params))
    logits, h_fin = fwd(input_ids)
    jax.block_until_ready((logits, h_fin))

    assert logits.shape == (BATCH, SEQ, VOCAB)
    assert h_fin.shape == (BATCH, D_STATE)

    ref_logits, ref_h = rasm_reference(input_ids, params)
    np.testing.assert_allclose(np.asarray(logits), np.asarray(ref_logits),
                               atol=2e-3, rtol=2e-3)
    np.testing.assert_allclose(np.asarray(h_fin), np.asarray(ref_h),
                               atol=2e-3, rtol=2e-3)

    print("KERNEL_OK")
</pallas_src>

<mosaic_0001>
module attributes {stable_mosaic.version = 11 : i64} {
  func.func @rasm_kernel(%arg0: memref<12x2x192xf32, #tpu.memory_space<vmem>>, %arg1: memref<12x2x2xf32, #tpu.memory_space<vmem>>, %arg2: memref<12x2x512xf32, #tpu.memory_space<vmem>>, %arg3: memref<16x192xf32, #tpu.memory_space<vmem>>, %arg4: memref<1x192xf32, #tpu.memory_space<vmem>>, %arg5: memref<1x192xf32, #tpu.memory_space<vmem>>, %arg6: memref<32x256xf32, #tpu.memory_space<vmem>>, %arg7: memref<1x256xf32, #tpu.memory_space<vmem>>, %arg8: memref<32x512xf32, #tpu.memory_space<vmem>>, %arg9: memref<1x512xf32, #tpu.memory_space<vmem>>, %arg10: memref<128x34xf32, #tpu.memory_space<vmem>>, %arg11: memref<1x34xf32, #tpu.memory_space<vmem>>, %arg12: memref<256x16xf32, #tpu.memory_space<vmem>>, %arg13: memref<512x16xf32, #tpu.memory_space<vmem>>, %arg14: memref<16x32xf32, #tpu.memory_space<vmem>>, %arg15: memref<1x16xf32, #tpu.memory_space<vmem>>, %arg16: memref<1x16xf32, #tpu.memory_space<vmem>>, %arg17: memref<32x64xf32, #tpu.memory_space<vmem>>, %arg18: memref<1x64xf32, #tpu.memory_space<vmem>>, %arg19: memref<1x64xf32, #tpu.memory_space<vmem>>, %arg20: memref<1x256xf32, #tpu.memory_space<vmem>>, %arg21: memref<1x512xf32, #tpu.memory_space<vmem>>, %arg22: memref<24x64xf32, #tpu.memory_space<vmem>>, %arg23: memref<2x16xf32, #tpu.memory_space<vmem>>, %arg24: memref<24x16xf32, #tpu.memory_space<vmem>>) attributes {dimension_semantics = [], scalar_prefetch = 0 : i64, scratch_operands = 1 : i64, tpu.core_type = #tpu.core_type<tc>} {
    %c0 = arith.constant 0 : index
    %c0_0 = arith.constant 0 : index
    %0 = vector.load %arg3[%c0, %c0_0] : memref<16x192xf32, #tpu.memory_space<vmem>>, vector<16x192xf32>
    %c0_1 = arith.constant 0 : index
    %c0_2 = arith.constant 0 : index
    %1 = vector.load %arg4[%c0_1, %c0_2] : memref<1x192xf32, #tpu.memory_space<vmem>>, vector<1x192xf32>
    %c0_3 = arith.constant 0 : index
    %c0_4 = arith.constant 0 : index
    %2 = vector.load %arg5[%c0_3, %c0_4] : memref<1x192xf32, #tpu.memory_space<vmem>>, vector<1x192xf32>
    %c0_5 = arith.constant 0 : index
    %c0_6 = arith.constant 0 : index
    %3 = vector.load %arg6[%c0_5, %c0_6] : memref<32x256xf32, #tpu.memory_space<vmem>>, vector<32x256xf32>
    %c0_7 = arith.constant 0 : index
    %c0_8 = arith.constant 0 : index
    %4 = vector.load %arg7[%c0_7, %c0_8] : memref<1x256xf32, #tpu.memory_space<vmem>>, vector<1x256xf32>
    %c0_9 = arith.constant 0 : index
    %c0_10 = arith.constant 0 : index
    %5 = vector.load %arg8[%c0_9, %c0_10] : memref<32x512xf32, #tpu.memory_space<vmem>>, vector<32x512xf32>
    %c0_11 = arith.constant 0 : index
    %c0_12 = arith.constant 0 : index
    %6 = vector.load %arg9[%c0_11, %c0_12] : memref<1x512xf32, #tpu.memory_space<vmem>>, vector<1x512xf32>
    %c0_13 = arith.constant 0 : index
    %c0_14 = arith.constant 0 : index
    %7 = vector.load %arg10[%c0_13, %c0_14] : memref<128x34xf32, #tpu.memory_space<vmem>>, vector<128x34xf32>
    %c0_15 = arith.constant 0 : index
    %c0_16 = arith.constant 0 : index
    %8 = vector.load %arg11[%c0_15, %c0_16] : memref<1x34xf32, #tpu.memory_space<vmem>>, vector<1x34xf32>
    %c0_17 = arith.constant 0 : index
    %c0_18 = arith.constant 0 : index
    %9 = vector.load %arg12[%c0_17, %c0_18] : memref<256x16xf32, #tpu.memory_space<vmem>>, vector<256x16xf32>
    %c0_19 = arith.constant 0 : index
    %c0_20 = arith.constant 0 : index
    %10 = vector.load %arg13[%c0_19, %c0_20] : memref<512x16xf32, #tpu.memory_space<vmem>>, vector<512x16xf32>
    %c0_21 = arith.constant 0 : index
    %c0_22 = arith.constant 0 : index
    %11 = vector.load %arg15[%c0_21, %c0_22] : memref<1x16xf32, #tpu.memory_space<vmem>>, vector<1x16xf32>
    %c0_23 = arith.constant 0 : index
    %c0_24 = arith.constant 0 : index
    %12 = vector.load %arg16[%c0_23, %c0_24] : memref<1x16xf32, #tpu.memory_space<vmem>>, vector<1x16xf32>
    %cst = arith.constant 0.000000e+00 : f32
    %13 = vector.broadcast %cst : f32 to vector<2x16xf32>
    %c0_25 = arith.constant 0 : index
    %c0_26 = arith.constant 0 : index
    %14 = vector.load %arg20[%c0_25, %c0_26] : memref<1x256xf32, #tpu.memory_space<vmem>>, vector<1x256xf32>
    %15 = vector.shape_cast %14 : vector<1x256xf32> to vector<1x256xf32>
    %16 = vector.broadcast %15 : vector<1x256xf32> to vector<2x256xf32>
    %c0_27 = arith.constant 0 : index
    %c0_28 = arith.constant 0 : index
    %17 = vector.load %arg21[%c0_27, %c0_28] : memref<1x512xf32, #tpu.memory_space<vmem>>, vector<1x512xf32>
    %18 = vector.shape_cast %17 : vector<1x512xf32> to vector<1x512xf32>
    %19 = vector.broadcast %18 : vector<1x512xf32> to vector<2x512xf32>
    %c0_29 = arith.constant 0 : index
    %c0_30 = arith.constant 0 : index
    %c0_31 = arith.constant 0 : index
    %20 = vector.load %arg0[%c0_29, %c0_30, %c0_31] : memref<12x2x192xf32, #tpu.memory_space<vmem>>, vector<1x2x192xf32>
    %21 = vector.shape_cast %20 : vector<1x2x192xf32> to vector<2x192xf32>
    %c0_32 = arith.constant 0 : index
    %c0_33 = arith.constant 0 : index
    %c0_34 = arith.constant 0 : index
    %22 = vector.load %arg1[%c0_32, %c0_33, %c0_34] : memref<12x2x2xf32, #tpu.memory_space<vmem>>, vector<1x2x2xf32>
    %23 = vector.shape_cast %22 : vector<1x2x2xf32> to vector<2x2xf32>
    %c0_35 = arith.constant 0 : index
    %c0_36 = arith.constant 0 : index
    %c0_37 = arith.constant 0 : index
    %24 = vector.load %arg2[%c0_35, %c0_36, %c0_37] : memref<12x2x512xf32, #tpu.memory_space<vmem>>, vector<1x2x512xf32>
    %25 = vector.shape_cast %24 : vector<1x2x512xf32> to vector<2x512xf32>
    %cst_38 = arith.constant dense<0.000000e+00> : vector<2xf32>
    %26 = vector.multi_reduction <add>, %13, %cst_38 [1] : vector<2x16xf32> to vector<2xf32>
    %27 = vector.shape_cast %26 : vector<2xf32> to vector<2x1xf32>
    %cst_39 = arith.constant 0.020833334 : f32
    %28 = vector.broadcast %cst_39 : f32 to vector<2x1xf32>
    %29 = arith.mulf %27, %28 : vector<2x1xf32>
    %30 = vector.extract_strided_slice %23 {offsets = [0, 0], sizes = [2, 1], strides = [1, 1]} : vector<2x2xf32> to vector<2x1xf32>
    %31 = arith.addf %29, %30 : vector<2x1xf32>
    %32 = arith.mulf %13, %13 : vector<2x16xf32>
    %cst_40 = arith.constant dense<0.000000e+00> : vector<2xf32>
    %33 = vector.multi_reduction <add>, %32, %cst_40 [1] : vector<2x16xf32> to vector<2xf32>
    %34 = vector.shape_cast %33 : vector<2xf32> to vector<2x1xf32>
    %cst_41 = arith.constant 0.020833334 : f32
    %35 = vector.broadcast %cst_41 : f32 to vector<2x1xf32>
    %36 = arith.mulf %34, %35 : vector<2x1xf32>
    %37 = vector.extract_strided_slice %23 {offsets = [0, 1], sizes = [2, 1], strides = [1, 1]} : vector<2x2xf32> to vector<2x1xf32>
    %38 = arith.addf %36, %37 : vector<2x1xf32>
    %39 = arith.mulf %31, %31 : vector<2x1xf32>
    %40 = arith.subf %38, %39 : vector<2x1xf32>
    %cst_42 = arith.constant 9.99999974E-6 : f32
    %41 = vector.broadcast %cst_42 : f32 to vector<2x1xf32>
    %42 = arith.addf %40, %41 : vector<2x1xf32>
    %43 = math.rsqrt %42 : vector<2x1xf32>
    %cst_43 = arith.constant dense<0.000000e+00> : vector<2x192xf32>
    %44 = tpu.matmul %13, %0, %cst_43 {dimension_numbers = #tpu.dot_dimension_numbers<[1], [0], [0], [1], [0, 0, 1, 1], [], []>} : vector<2x16xf32>, vector<16x192xf32>, vector<2x192xf32> -> vector<2x192xf32>
    %45 = arith.addf %44, %21 : vector<2x192xf32>
    %46 = vector.broadcast %31 : vector<2x1xf32> to vector<2x192xf32>
    %47 = vector.broadcast %1 : vector<1x192xf32> to vector<2x192xf32>
    %48 = arith.mulf %46, %47 : vector<2x192xf32>
    %49 = arith.subf %45, %48 : vector<2x192xf32>
    %50 = vector.broadcast %43 : vector<2x1xf32> to vector<2x192xf32>
    %51 = arith.mulf %50, %49 : vector<2x192xf32>
    %52 = vector.broadcast %2 : vector<1x192xf32> to vector<2x192xf32>
    %53 = arith.addf %51, %52 : vector<2x192xf32>
    %54 = arith.negf %53 : vector<2x192xf32>
    %55 = math.exp %54 : vector<2x192xf32>
    %cst_44 = arith.constant 1.000000e+00 : f32
    %56 = vector.broadcast %cst_44 : f32 to vector<2x192xf32>
    %57 = arith.addf %56, %55 : vector<2x192xf32>
    %58 = arith.divf %56, %57 : vector<2x192xf32>
    %59 = arith.mulf %53, %58 : vector<2x192xf32>
    %60 = vector.extract_strided_slice %59 {offsets = [0, 0], sizes = [2, 32], strides = [1, 1]} : vector<2x192xf32> to vector<2x32xf32>
    %cst_45 = arith.constant dense<0.000000e+00> : vector<2x256xf32>
    %61 = tpu.matmul %60, %3, %cst_45 {dimension_numbers = #tpu.dot_dimension_numbers<[1], [0], [0], [1], [0, 0, 1, 1], [], []>} : vector<2x32xf32>, vector<32x256xf32>, vector<2x256xf32> -> vector<2x256xf32>
    %62 = vector.broadcast %4 : vector<1x256xf32> to vector<2x256xf32>
    %63 = arith.addf %61, %62 : vector<2x256xf32>
    %64 = vector.extract_strided_slice %59 {offsets = [0, 32], sizes = [2, 32], strides = [1, 1]} : vector<2x192xf32> to vector<2x32xf32>
    %cst_46 = arith.constant dense<0.000000e+00> : vector<2x512xf32>
    %65 = tpu.matmul %64, %5, %cst_46 {dimension_numbers = #tpu.dot_dimension_numbers<[1], [0], [0], [1], [0, 0, 1, 1], [], []>} : vector<2x32xf32>, vector<32x512xf32>, vector<2x512xf32> -> vector<2x512xf32>
    %66 = vector.broadcast %6 : vector<1x512xf32> to vector<2x512xf32>
    %67 = arith.addf %65, %66 : vector<2x512xf32>
    %68 = vector.extract_strided_slice %59 {offsets = [0, 64], sizes = [2, 128], strides = [1, 1]} : vector<2x192xf32> to vector<2x128xf32>
    %cst_47 = arith.constant dense<0.000000e+00> : vector<2x34xf32>
    %69 = tpu.matmul %68, %7, %cst_47 {dimension_numbers = #tpu.dot_dimension_numbers<[1], [0], [0], [1], [0, 0, 1, 1], [], []>} : vector<2x128xf32>, vector<128x34xf32>, vector<2x34xf32> -> vector<2x34xf32>
    %70 = vector.broadcast %8 : vector<1x34xf32> to vector<2x34xf32>
    %71 = arith.addf %69, %70 : vector<2x34xf32>
    %72 = arith.negf %71 : vector<2x34xf32>
    %73 = math.exp %72 : vector<2x34xf32>
    %cst_48 = arith.constant 1.000000e+00 : f32
    %74 = vector.broadcast %cst_48 : f32 to vector<2x34xf32>
    %75 = arith.addf %74, %73 : vector<2x34xf32>
    %76 = arith.divf %74, %75 : vector<2x34xf32>
    %77 = vector.extract_strided_slice %76 {offsets = [0, 0], sizes = [2, 16], strides = [1, 1]} : vector<2x34xf32> to vector<2x16xf32>
    %78 = vector.extract_strided_slice %76 {offsets = [0, 16], sizes = [2, 16], strides = [1, 1]} : vector<2x34xf32> to vector<2x16xf32>
    %79 = vector.extract_strided_slice %76 {offsets = [0, 32], sizes = [2, 1], strides = [1, 1]} : vector<2x34xf32> to vector<2x1xf32>
    %80 = vector.extract_strided_slice %76 {offsets = [0, 33], sizes = [2, 1], strides = [1, 1]} : vector<2x34xf32> to vector<2x1xf32>
    %81 = arith.mulf %79, %80 : vector<2x1xf32>
    %82 = vector.broadcast %81 : vector<2x1xf32> to vector<2x256xf32>
    %83 = arith.mulf %82, %63 : vector<2x256xf32>
    %84 = arith.addf %16, %83 : vector<2x256xf32>
    %85 = vector.broadcast %81 : vector<2x1xf32> to vector<2x512xf32>
    %86 = arith.mulf %85, %67 : vector<2x512xf32>
    %87 = arith.addf %19, %86 : vector<2x512xf32>
    %88 = tpu.concatenate %13, %13, %13, %13, %13, %13, %13, %13, %13, %13, %13, %13, %13, %13, %13, %13 in 1 : vector<2x16xf32>, vector<2x16xf32>, vector<2x16xf32>, vector<2x16xf32>, vector<2x16xf32>, vector<2x16xf32>, vector<2x16xf32>, vector<2x16xf32>, vector<2x16xf32>, vector<2x16xf32>, vector<2x16xf32>, vector<2x16xf32>, vector<2x16xf32>, vector<2x16xf32>, vector<2x16xf32>, vector<2x16xf32> -> vector<2x256xf32>
    %89 = arith.mulf %84, %88 : vector<2x256xf32>
    %cst_49 = arith.constant dense<0.000000e+00> : vector<2x16xf32>
    %90 = tpu.matmul %89, %9, %cst_49 {dimension_numbers = #tpu.dot_dimension_numbers<[1], [0], [0], [1], [0, 0, 1, 1], [], []>} : vector<2x256xf32>, vector<256x16xf32>, vector<2x16xf32> -> vector<2x16xf32>
    %91 = arith.mulf %87, %25 : vector<2x512xf32>
    %cst_50 = arith.constant dense<0.000000e+00> : vector<2x16xf32>
    %92 = tpu.matmul %91, %10, %cst_50 {dimension_numbers = #tpu.dot_dimension_numbers<[1], [0], [0], [1], [0, 0, 1, 1], [], []>} : vector<2x512xf32>, vector<512x16xf32>, vector<2x16xf32> -> vector<2x16xf32>
    %93 = arith.mulf %77, %90 : vector<2x16xf32>
    %94 = arith.mulf %78, %92 : vector<2x16xf32>
    %95 = arith.addf %93, %94 : vector<2x16xf32>
    %cst_51 = arith.constant dense<0.000000e+00> : vector<2xf32>
    %96 = vector.multi_reduction <add>, %95, %cst_51 [1] : vector<2x16xf32> to vector<2xf32>
    %97 = vector.shape_cast %96 : vector<2xf32> to vector<2x1xf32>
    %cst_52 = arith.constant 1.600000e+01 : f32
    %98 = vector.broadcast %cst_52 : f32 to vector<2x1xf32>
    %99 = arith.divf %97, %98 : vector<2x1xf32>
    %100 = vector.broadcast %99 : vector<2x1xf32> to vector<2x16xf32>
    %101 = arith.subf %95, %100 : vector<2x16xf32>
    %102 = arith.mulf %101, %101 : vector<2x16xf32>
    %cst_53 = arith.constant dense<0.000000e+00> : vector<2xf32>
    %103 = vector.multi_reduction <add>, %102, %cst_53 [1] : vector<2x16xf32> to vector<2xf32>
    %104 = vector.shape_cast %103 : vector<2xf32> to vector<2x1xf32>
    %cst_54 = arith.constant 1.600000e+01 : f32
    %105 = vector.broadcast %cst_54 : f32 to vector<2x1xf32>
    %106 = arith.divf %104, %105 : vector<2x1xf32>
    %107 = vector.broadcast %99 : vector<2x1xf32> to vector<2x16xf32>
    %108 = arith.subf %95, %107 : vector<2x16xf32>
    %cst_55 = arith.constant 9.99999974E-6 : f32
    %109 = vector.broadcast %cst_55 : f32 to vector<2x1xf32>
    %110 = arith.addf %106, %109 : vector<2x1xf32>
    %111 = math.rsqrt %110 : vector<2x1xf32>
    %112 = vector.broadcast %111 : vector<2x1xf32> to vector<2x16xf32>
    %113 = arith.mulf %108, %112 : vector<2x16xf32>
    %114 = vector.broadcast %11 : vector<1x16xf32> to vector<2x16xf32>
    %115 = arith.mulf %113, %114 : vector<2x16xf32>
    %116 = vector.broadcast %12 : vector<1x16xf32> to vector<2x16xf32>
    %117 = arith.addf %115, %116 : vector<2x16xf32>
    %c0_56 = arith.constant 0 : index
    %c0_57 = arith.constant 0 : index
    %118 = vector.load %arg24[%c0_56, %c0_57] : memref<24x16xf32, #tpu.memory_space<vmem>>, vector<2x16xf32>
    tpu.vector_store %arg24[%c0_56, %c0_57], %117 {strides = array<i32>} : memref<24x16xf32, #tpu.memory_space<vmem>>, vector<2x16xf32>,
    %c1 = arith.constant 1 : index
    %c0_58 = arith.constant 0 : index
    %c0_59 = arith.constant 0 : index
    %119 = vector.load %arg0[%c1, %c0_58, %c0_59] : memref<12x2x192xf32, #tpu.memory_space<vmem>>, vector<1x2x192xf32>
    %120 = vector.shape_cast %119 : vector<1x2x192xf32> to vector<2x192xf32>
    %c1_60 = arith.constant 1 : index
    %c0_61 = arith.constant 0 : index
    %c0_62 = arith.constant 0 : index
    %121 = vector.load %arg1[%c1_60, %c0_61, %c0_62] : memref<12x2x2xf32, #tpu.memory_space<vmem>>, vector<1x2x2xf32>
    %122 = vector.shape_cast %121 : vector<1x2x2xf32> to vector<2x2xf32>
    %c1_63 = arith.constant 1 : index
    %c0_64 = arith.constant 0 : index
    %c0_65 = arith.constant 0 : index
    %123 = vector.load %arg2[%c1_63, %c0_64, %c0_65] : memref<12x2x512xf32, #tpu.memory_space<vmem>>, vector<1x2x512xf32>
    %124 = vector.shape_cast %123 : vector<1x2x512xf32> to vector<2x512xf32>
    %cst_66 = arith.constant dense<0.000000e+00> : vector<2xf32>
    %125 = vector.multi_reduction <add>, %117, %cst_66 [1] : vector<2x16xf32> to vector<2xf32>
    %126 = vector.shape_cast %125 : vector<2xf32> to vector<2x1xf32>
    %cst_67 = arith.constant 0.020833334 : f32
    %127 = vector.broadcast %cst_67 : f32 to vector<2x1xf32>
    %128 = arith.mulf %126, %127 : vector<2x1xf32>
    %129 = vector.extract_strided_slice %122 {offsets = [0, 0], sizes = [2, 1], strides = [1, 1]} : vector<2x2xf32> to vector<2x1xf32>
    %130 = arith.addf %128, %129 : vector<2x1xf32>
    %131 = arith.mulf %117, %117 : vector<2x16xf32>
    %cst_68 = arith.constant dense<0.000000e+00> : vector<2xf32>
    %132 = vector.multi_reduction <add>, %131, %cst_68 [1] : vector<2x16xf32> to vector<2xf32>
    %133 = vector.shape_cast %132 : vector<2xf32> to vector<2x1xf32>
    %cst_69 = arith.constant 0.020833334 : f32
    %134 = vector.broadcast %cst_69 : f32 to vector<2x1xf32>
    %135 = arith.mulf %133, %134 : vector<2x1xf32>
    %136 = vector.extract_strided_slice %122 {offsets = [0, 1], sizes = [2, 1], strides = [1, 1]} : vector<2x2xf32> to vector<2x1xf32>
    %137 = arith.addf %135, %136 : vector<2x1xf32>
    %138 = arith.mulf %130, %130 : vector<2x1xf32>
    %139 = arith.subf %137, %138 : vector<2x1xf32>
    %cst_70 = arith.constant 9.99999974E-6 : f32
    %140 = vector.broadcast %cst_70 : f32 to vector<2x1xf32>
    %141 = arith.addf %139, %140 : vector<2x1xf32>
    %142 = math.rsqrt %141 : vector<2x1xf32>
    %cst_71 = arith.constant dense<0.000000e+00> : vector<2x192xf32>
    %143 = tpu.matmul %117, %0, %cst_71 {dimension_numbers = #tpu.dot_dimension_numbers<[1], [0], [0], [1], [0, 0, 1, 1], [], []>} : vector<2x16xf32>, vector<16x192xf32>, vector<2x192xf32> -> vector<2x192xf32>
    %144 = arith.addf %143, %120 : vector<2x192xf32>
    %145 = vector.broadcast %130 : vector<2x1xf32> to vector<2x192xf32>
    %146 = vector.broadcast %1 : vector<1x192xf32> to vector<2x192xf32>
    %147 = arith.mulf %145, %146 : vector<2x192xf32>
    %148 = arith.subf %144, %147 : vector<2x192xf32>
    %149 = vector.broadcast %142 : vector<2x1xf32> to vector<2x192xf32>
    %150 = arith.mulf %149, %148 : vector<2x192xf32>
    %151 = vector.broadcast %2 : vector<1x192xf32> to vector<2x192xf32>
    %152 = arith.addf %150, %151 : vector<2x192xf32>
    %153 = arith.negf %152 : vector<2x192xf32>
    %154 = math.exp %153 : vector<2x192xf32>
    %cst_72 = arith.constant 1.000000e+00 : f32
    %155 = vector.broadcast %cst_72 : f32 to vector<2x192xf32>
    %156 = arith.addf %155, %154 : vector<2x192xf32>
    %157 = arith.divf %155, %156 : vector<2x192xf32>
    %158 = arith.mulf %152, %157 : vector<2x192xf32>
    %159 = vector.extract_strided_slice %158 {offsets = [0, 0], sizes = [2, 32], strides = [1, 1]} : vector<2x192xf32> to vector<2x32xf32>
    %cst_73 = arith.constant dense<0.000000e+00> : vector<2x256xf32>
    %160 = tpu.matmul %159, %3, %cst_73 {dimension_numbers = #tpu.dot_dimension_numbers<[1], [0], [0], [1], [0, 0, 1, 1], [], []>} : vector<2x32xf32>, vector<32x256xf32>, vector<2x256xf32> -> vector<2x256xf32>
    %161 = vector.broadcast %4 : vector<1x256xf32> to vector<2x256xf32>
    %162 = arith.addf %160, %161 : vector<2x256xf32>
    %163 = vector.extract_strided_slice %158 {offsets = [0, 32], sizes = [2, 32], strides = [1, 1]} : vector<2x192xf32> to vector<2x32xf32>
    %cst_74 = arith.constant dense<0.000000e+00> : vector<2x512xf32>
    %164 = tpu.matmul %163, %5, %cst_74 {dimension_numbers = #tpu.dot_dimension_numbers<[1], [0], [0], [1], [0, 0, 1, 1], [], []>} : vector<2x32xf32>, vector<32x512xf32>, vector<2x512xf32> -> vector<2x512xf32>
    %165 = vector.broadcast %6 : vector<1x512xf32> to vector<2x512xf32>
    %166 = arith.addf %164, %165 : vector<2x512xf32>
    %167 = vector.extract_strided_slice %158 {offsets = [0, 64], sizes = [2, 128], strides = [1, 1]} : vector<2x192xf32> to vector<2x128xf32>
    %cst_75 = arith.constant dense<0.000000e+00> : vector<2x34xf32>
    %168 = tpu.matmul %167, %7, %cst_75 {dimension_numbers = #tpu.dot_dimension_numbers<[1], [0], [0], [1], [0, 0, 1, 1], [], []>} : vector<2x128xf32>, vector<128x34xf32>, vector<2x34xf32> -> vector<2x34xf32>
    %169 = vector.broadcast %8 : vector<1x34xf32> to vector<2x34xf32>
    %170 = arith.addf %168, %169 : vector<2x34xf32>
    %171 = arith.negf %170 : vector<2x34xf32>
    %172 = math.exp %171 : vector<2x34xf32>
    %cst_76 = arith.constant 1.000000e+00 : f32
    %173 = vector.broadcast %cst_76 : f32 to vector<2x34xf32>
    %174 = arith.addf %173, %172 : vector<2x34xf32>
    %175 = arith.divf %173, %174 : vector<2x34xf32>
    %176 = vector.extract_strided_slice %175 {offsets = [0, 0], sizes = [2, 16], strides = [1, 1]} : vector<2x34xf32> to vector<2x16xf32>
    %177 = vector.extract_strided_slice %175 {offsets = [0, 16], sizes = [2, 16], strides = [1, 1]} : vector<2x34xf32> to vector<2x16xf32>
    %178 = vector.extract_strided_slice %175 {offsets = [0, 32], sizes = [2, 1], strides = [1, 1]} : vector<2x34xf32> to vector<2x1xf32>
    %179 = vector.extract_strided_slice %175 {offsets = [0, 33], sizes = [2, 1], strides = [1, 1]} : vector<2x34xf32> to vector<2x1xf32>
    %180 = arith.mulf %178, %179 : vector<2x1xf32>
    %181 = vector.broadcast %180 : vector<2x1xf32> to vector<2x256xf32>
    %182 = arith.mulf %181, %162 : vector<2x256xf32>
    %183 = arith.addf %84, %182 : vector<2x256xf32>
    %184 = vector.broadcast %180 : vector<2x1xf32> to vector<2x512xf32>
    %185 = arith.mulf %184, %166 : vector<2x512xf32>
    %186 = arith.addf %87, %185 : vector<2x512xf32>
    %187 = tpu.concatenate %117, %117, %117, %117, %117, %117, %117, %117, %117, %117, %117, %117, %117, %117, %117, %117 in 1 : vector<2x16xf32>, vector<2x16xf32>, vector<2x16xf32>, vector<2x16xf32>, vector<2x16xf32>, vector<2x16xf32>, vector<2x16xf32>, vector<2x16xf32>, vector<2x16xf32>, vector<2x16xf32>, vector<2x16xf32>, vector<2x16xf32>, vector<2x16xf32>, vector<2x16xf32>, vector<2x16xf32>, vector<2x16xf32> -> vector<2x256xf32>
    %188 = arith.mulf %183, %187 : vector<2x256xf32>
    %cst_77 = arith.constant dense<0.000000e+00> : vector<2x16xf32>
    %189 = tpu.matmul %188, %9, %cst_77 {dimension_numbers = #tpu.dot_dimension_numbers<[1], [0], [0], [1], [0, 0, 1, 1], [], []>} : vector<2x256xf32>, vector<256x16xf32>, vector<2x16xf32> -> vector<2x16xf32>
    %190 = arith.mulf %186, %124 : vector<2x512xf32>
    %cst_78 = arith.constant dense<0.000000e+00> : vector<2x16xf32>
    %191 = tpu.matmul %190, %10, %cst_78 {dimension_numbers = #tpu.dot_dimension_numbers<[1], [0], [0], [1], [0, 0, 1, 1], [], []>} : vector<2x512xf32>, vector<512x16xf32>, vector<2x16xf32> -> vector<2x16xf32>
    %192 = arith.mulf %176, %189 : vector<2x16xf32>
    %193 = arith.mulf %177, %191 : vector<2x16xf32>
    %194 = arith.addf %192, %193 : vector<2x16xf32>
    %cst_79 = arith.constant dense<0.000000e+00> : vector<2xf32>
    %195 = vector.multi_reduction <add>, %194, %cst_79 [1] : vector<2x16xf32> to vector<2xf32>
    %196 = vector.shape_cast %195 : vector<2xf32> to vector<2x1xf32>
    %cst_80 = arith.constant 1.600000e+01 : f32
    %197 = vector.broadcast %cst_80 : f32 to vector<2x1xf32>
    %198 = arith.divf %196, %197 : vector<2x1xf32>
    %199 = vector.broadcast %198 : vector<2x1xf32> to vector<2x16xf32>
    %200 = arith.subf %194, %199 : vector<2x16xf32>
    %201 = arith.mulf %200, %200 : vector<2x16xf32>
    %cst_81 = arith.constant dense<0.000000e+00> : vector<2xf32>
    %202 = vector.multi_reduction <add>, %201, %cst_81 [1] : vector<2x16xf32> to vector<2xf32>
    %203 = vector.shape_cast %202 : vector<2xf32> to vector<2x1xf32>
    %cst_82 = arith.constant 1.600000e+01 : f32
    %204 = vector.broadcast %cst_82 : f32 to vector<2x1xf32>
    %205 = arith.divf %203, %204 : vector<2x1xf32>
    %206 = vector.broadcast %198 : vector<2x1xf32> to vector<2x16xf32>
    %207 = arith.subf %194, %206 : vector<2x16xf32>
    %cst_83 = arith.constant 9.99999974E-6 : f32
    %208 = vector.broadcast %cst_83 : f32 to vector<2x1xf32>
    %209 = arith.addf %205, %208 : vector<2x1xf32>
    %210 = math.rsqrt %209 : vector<2x1xf32>
    %211 = vector.broadcast %210 : vector<2x1xf32> to vector<2x16xf32>
    %212 = arith.mulf %207, %211 : vector<2x16xf32>
    %213 = vector.broadcast %11 : vector<1x16xf32> to vector<2x16xf32>
    %214 = arith.mulf %212, %213 : vector<2x16xf32>
    %215 = vector.broadcast %12 : vector<1x16xf32> to vector<2x16xf32>
    %216 = arith.addf %214, %215 : vector<2x16xf32>
    %c2 = arith.constant 2 : index
    %c0_84 = arith.constant 0 : index
    %217 = vector.load %arg24[%c2, %c0_84] : memref<24x16xf32, #tpu.memory_space<vmem>>, vector<2x16xf32>
    tpu.vector_store %arg24[%c2, %c0_84], %216 {strides = array<i32>} : memref<24x16xf32, #tpu.memory_space<vmem>>, vector<2x16xf32>,
    %c2_85 = arith.constant 2 : index
    %c0_86 = arith.constant 0 : index
    %c0_87 = arith.constant 0 : index
    %218 = vector.load %arg0[%c2_85, %c0_86, %c0_87] : memref<12x2x192xf32, #tpu.memory_space<vmem>>, vector<1x2x192xf32>
    %219 = vector.shape_cast %218 : vector<1x2x192xf32> to vector<2x192xf32>
    %c2_88 = arith.constant 2 : index
    %c0_89 = arith.constant 0 : index
    %c0_90 = arith.constant 0 : index
    %220 = vector.load %arg1[%c2_88, %c0_89, %c0_90] : memref<12x2x2xf32, #tpu.memory_space<vmem>>, vector<1x2x2xf32>
    %221 = vector.shape_cast %220 : vector<1x2x2xf32> to vector<2x2xf32>
    %c2_91 = arith.constant 2 : index
    %c0_92 = arith.constant 0 : index
    %c0_93 = arith.constant 0 : index
    %222 = vector.load %arg2[%c2_91, %c0_92, %c0_93] : memref<12x2x512xf32, #tpu.memory_space<vmem>>, vector<1x2x512xf32>
    %223 = vector.shape_cast %222 : vector<1x2x512xf32> to vector<2x512xf32>
    %cst_94 = arith.constant dense<0.000000e+00> : vector<2xf32>
    %224 = vector.multi_reduction <add>, %216, %cst_94 [1] : vector<2x16xf32> to vector<2xf32>
    %225 = vector.shape_cast %224 : vector<2xf32> to vector<2x1xf32>
    %cst_95 = arith.constant 0.020833334 : f32
    %226 = vector.broadcast %cst_95 : f32 to vector<2x1xf32>
    %227 = arith.mulf %225, %226 : vector<2x1xf32>
    %228 = vector.extract_strided_slice %221 {offsets = [0, 0], sizes = [2, 1], strides = [1, 1]} : vector<2x2xf32> to vector<2x1xf32>
    %229 = arith.addf %227, %228 : vector<2x1xf32>
    %230 = arith.mulf %216, %216 : vector<2x16xf32>
    %cst_96 = arith.constant dense<0.000000e+00> : vector<2xf32>
    %231 = vector.multi_reduction <add>, %230, %cst_96 [1] : vector<2x16xf32> to vector<2xf32>
    %232 = vector.shape_cast %231 : vector<2xf32> to vector<2x1xf32>
    %cst_97 = arith.constant 0.020833334 : f32
    %233 = vector.broadcast %cst_97 : f32 to vector<2x1xf32>
    %234 = arith.mulf %232, %233 : vector<2x1xf32>
    %235 = vector.extract_strided_slice %221 {offsets = [0, 1], sizes = [2, 1], strides = [1, 1]} : vector<2x2xf32> to vector<2x1xf32>
    %236 = arith.addf %234, %235 : vector<2x1xf32>
    %237 = arith.mulf %229, %229 : vector<2x1xf32>
    %238 = arith.subf %236, %237 : vector<2x1xf32>
    %cst_98 = arith.constant 9.99999974E-6 : f32
    %239 = vector.broadcast %cst_98 : f32 to vector<2x1xf32>
    %240 = arith.addf %238, %239 : vector<2x1xf32>
    %241 = math.rsqrt %240 : vector<2x1xf32>
    %cst_99 = arith.constant dense<0.000000e+00> : vector<2x192xf32>
    %242 = tpu.matmul %216, %0, %cst_99 {dimension_numbers = #tpu.dot_dimension_numbers<[1], [0], [0], [1], [0, 0, 1, 1], [], []>} : vector<2x16xf32>, vector<16x192xf32>, vector<2x192xf32> -> vector<2x192xf32>
    %243 = arith.addf %242, %219 : vector<2x192xf32>
    %244 = vector.broadcast %229 : vector<2x1xf32> to vector<2x192xf32>
    %245 = vector.broadcast %1 : vector<1x192xf32> to vector<2x192xf32>
    %246 = arith.mulf %244, %245 : vector<2x192xf32>
    %247 = arith.subf %243, %246 : vector<2x192xf32>
    %248 = vector.broadcast %241 : vector<2x1xf32> to vector<2x192xf32>
    %249 = arith.mulf %248, %247 : vector<2x192xf32>
    %250 = vector.broadcast %2 : vector<1x192xf32> to vector<2x192xf32>
    %251 = arith.addf %249, %250 : vector<2x192xf32>
    %252 = arith.negf %251 : vector<2x192xf32>
    %253 = math.exp %252 : vector<2x192xf32>
    %cst_100 = arith.constant 1.000000e+00 : f32
    %254 = vector.broadcast %cst_100 : f32 to vector<2x192xf32>
    %255 = arith.addf %254, %253 : vector<2x192xf32>
    %256 = arith.divf %254, %255 : vector<2x192xf32>
    %257 = arith.mulf %251, %256 : vector<2x192xf32>
    %258 = vector.extract_strided_slice %257 {offsets = [0, 0], sizes = [2, 32], strides = [1, 1]} : vector<2x192xf32> to vector<2x32xf32>
    %cst_101 = arith.constant dense<0.000000e+00> : vector<2x256xf32>
    %259 = tpu.matmul %258, %3, %cst_101 {dimension_numbers = #tpu.dot_dimension_numbers<[1], [0], [0], [1], [0, 0, 1, 1], [], []>} : vector<2x32xf32>, vector<32x256xf32>, vector<2x256xf32> -> vector<2x256xf32>
    %260 = vector.broadcast %4 : vector<1x256xf32> to vector<2x256xf32>
    %261 = arith.addf %259, %260 : vector<2x256xf32>
    %262 = vector.extract_strided_slice %257 {offsets = [0, 32], sizes = [2, 32], strides = [1, 1]} : vector<2x192xf32> to vector<2x32xf32>
    %cst_102 = arith.constant dense<0.000000e+00> : vector<2x512xf32>
    %263 = tpu.matmul %262, %5, %cst_102 {dimension_numbers = #tpu.dot_dimension_numbers<[1], [0], [0], [1], [0, 0, 1, 1], [], []>} : vector<2x32xf32>, vector<32x512xf32>, vector<2x512xf32> -> vector<2x512xf32>
    %264 = vector.broadcast %6 : vector<1x512xf32> to vector<2x512xf32>
    %265 = arith.addf %263, %264 : vector<2x512xf32>
    %266 = vector.extract_strided_slice %257 {offsets = [0, 64], sizes = [2, 128], strides = [1, 1]} : vector<2x192xf32> to vector<2x128xf32>
    %cst_103 = arith.constant dense<0.000000e+00> : vector<2x34xf32>
    %267 = tpu.matmul %266, %7, %cst_103 {dimension_numbers = #tpu.dot_dimension_numbers<[1], [0], [0], [1], [0, 0, 1, 1], [], []>} : vector<2x128xf32>, vector<128x34xf32>, vector<2x34xf32> -> vector<2x34xf32>
    %268 = vector.broadcast %8 : vector<1x34xf32> to vector<2x34xf32>
    %269 = arith.addf %267, %268 : vector<2x34xf32>
    %270 = arith.negf %269 : vector<2x34xf32>
    %271 = math.exp %270 : vector<2x34xf32>
    %cst_104 = arith.constant 1.000000e+00 : f32
    %272 = vector.broadcast %cst_104 : f32 to vector<2x34xf32>
    %273 = arith.addf %272, %271 : vector<2x34xf32>
    %274 = arith.divf %272, %273 : vector<2x34xf32>
    %275 = vector.extract_strided_slice %274 {offsets = [0, 0], sizes = [2, 16], strides = [1, 1]} : vector<2x34xf32> to vector<2x16xf32>
    %276 = vector.extract_strided_slice %274 {offsets = [0, 16], sizes = [2, 16], strides = [1, 1]} : vector<2x34xf32> to vector<2x16xf32>
    %277 = vector.extract_strided_slice %274 {offsets = [0, 32], sizes = [2, 1], strides = [1, 1]} : vector<2x34xf32> to vector<2x1xf32>
    %278 = vector.extract_strided_slice %274 {offsets = [0, 33], sizes = [2, 1], strides = [1, 1]} : vector<2x34xf32> to vector<2x1xf32>
    %279 = arith.mulf %277, %278 : vector<2x1xf32>
    %280 = vector.broadcast %279 : vector<2x1xf32> to vector<2x256xf32>
    %281 = arith.mulf %280, %261 : vector<2x256xf32>
    %282 = arith.addf %183, %281 : vector<2x256xf32>
    %283 = vector.broadcast %279 : vector<2x1xf32> to vector<2x512xf32>
    %284 = arith.mulf %283, %265 : vector<2x512xf32>
    %285 = arith.addf %186, %284 : vector<2x512xf32>
    %286 = tpu.concatenate %216, %216, %216, %216, %216, %216, %216, %216, %216, %216, %216, %216, %216, %216, %216, %216 in 1 : vector<2x16xf32>, vector<2x16xf32>, vector<2x16xf32>, vector<2x16xf32>, vector<2x16xf32>, vector<2x16xf32>, vector<2x16xf32>, vector<2x16xf32>, vector<2x16xf32>, vector<2x16xf32>, vector<2x16xf32>, vector<2x16xf32>, vector<2x16xf32>, vector<2x16xf32>, vector<2x16xf32>, vector<2x16xf32> -> vector<2x256xf32>
    %287 = arith.mulf %282, %286 : vector<2x256xf32>
    %cst_105 = arith.constant dense<0.000000e+00> : vector<2x16xf32>
    %288 = tpu.matmul %287, %9, %cst_105 {dimension_numbers = #tpu.dot_dimension_numbers<[1], [0], [0], [1], [0, 0, 1, 1], [], []>} : vector<2x256xf32>, vector<256x16xf32>, vector<2x16xf32> -> vector<2x16xf32>
    %289 = arith.mulf %285, %223 : vector<2x512xf32>
    %cst_106 = arith.constant dense<0.000000e+00> : vector<2x16xf32>
    %290 = tpu.matmul %289, %10, %cst_106 {dimension_numbers = #tpu.dot_dimension_numbers<[1], [0], [0], [1], [0, 0, 1, 1], [], []>} : vector<2x512xf32>, vector<512x16xf32>, vector<2x16xf32> -> vector<2x16xf32>
    %291 = arith.mulf %275, %288 : vector<2x16xf32>
    %292 = arith.mulf %276, %290 : vector<2x16xf32>
    %293 = arith.addf %291, %292 : vector<2x16xf32>
    %cst_107 = arith.constant dense<0.000000e+00> : vector<2xf32>
    %294 = vector.multi_reduction <add>, %293, %cst_107 [1] : vector<2x16xf32> to vector<2xf32>
    %295 = vector.shape_cast %294 : vector<2xf32> to vector<2x1xf32>
    %cst_108 = arith.constant 1.600000e+01 : f32
    %296 = vector.broadcast %cst_108 : f32 to vector<2x1xf32>
    %297 = arith.divf %295, %296 : vector<2x1xf32>
    %298 = vector.broadcast %297 : vector<2x1xf32> to vector<2x16xf32>
    %299 = arith.subf %293, %298 : vector<2x16xf32>
    %300 = arith.mulf %299, %299 : vector<2x16xf32>
    %cst_109 = arith.constant dense<0.000000e+00> : vector<2xf32>
    %301 = vector.multi_reduction <add>, %300, %cst_109 [1] : vector<2x16xf32> to vector<2xf32>
    %302 = vector.shape_cast %301 : vector<2xf32> to vector<2x1xf32>
    %cst_110 = arith.constant 1.600000e+01 : f32
    %303 = vector.broadcast %cst_110 : f32 to vector<2x1xf32>
    %304 = arith.divf %302, %303 : vector<2x1xf32>
    %305 = vector.broadcast %297 : vector<2x1xf32> to vector<2x16xf32>
    %306 = arith.subf %293, %305 : vector<2x16xf32>
    %cst_111 = arith.constant 9.99999974E-6 : f32
    %307 = vector.broadcast %cst_111 : f32 to vector<2x1xf32>
    %308 = arith.addf %304, %307 : vector<2x1xf32>
    %309 = math.rsqrt %308 : vector<2x1xf32>
    %310 = vector.broadcast %309 : vector<2x1xf32> to vector<2x16xf32>
    %311 = arith.mulf %306, %310 : vector<2x16xf32>
    %312 = vector.broadcast %11 : vector<1x16xf32> to vector<2x16xf32>
    %313 = arith.mulf %311, %312 : vector<2x16xf32>
    %314 = vector.broadcast %12 : vector<1x16xf32> to vector<2x16xf32>
    %315 = arith.addf %313, %314 : vector<2x16xf32>
    %c4 = arith.constant 4 : index
    %c0_112 = arith.constant 0 : index
    %316 = vector.load %arg24[%c4, %c0_112] : memref<24x16xf32, #tpu.memory_space<vmem>>, vector<2x16xf32>
    tpu.vector_store %arg24[%c4, %c0_112], %315 {strides = array<i32>} : memref<24x16xf32, #tpu.memory_space<vmem>>, vector<2x16xf32>,
    %c3 = arith.constant 3 : index
    %c0_113 = arith.constant 0 : index
    %c0_114 = arith.constant 0 : index
    %317 = vector.load %arg0[%c3, %c0_113, %c0_114] : memref<12x2x192xf32, #tpu.memory_space<vmem>>, vector<1x2x192xf32>
    %318 = vector.shape_cast %317 : vector<1x2x192xf32> to vector<2x192xf32>
    %c3_115 = arith.constant 3 : index
    %c0_116 = arith.constant 0 : index
    %c0_117 = arith.constant 0 : index
    %319 = vector.load %arg1[%c3_115, %c0_116, %c0_117] : memref<12x2x2xf32, #tpu.memory_space<vmem>>, vector<1x2x2xf32>
    %320 = vector.shape_cast %319 : vector<1x2x2xf32> to vector<2x2xf32>
    %c3_118 = arith.constant 3 : index
    %c0_119 = arith.constant 0 : index
    %c0_120 = arith.constant 0 : index
    %321 = vector.load %arg2[%c3_118, %c0_119, %c0_120] : memref<12x2x512xf32, #tpu.memory_space<vmem>>, vector<1x2x512xf32>
    %322 = vector.shape_cast %321 : vector<1x2x512xf32> to vector<2x512xf32>
    %cst_121 = arith.constant dense<0.000000e+00> : vector<2xf32>
    %323 = vector.multi_reduction <add>, %315, %cst_121 [1] : vector<2x16xf32> to vector<2xf32>
    %324 = vector.shape_cast %323 : vector<2xf32> to vector<2x1xf32>
    %cst_122 = arith.constant 0.020833334 : f32
    %325 = vector.broadcast %cst_122 : f32 to vector<2x1xf32>
    %326 = arith.mulf %324, %325 : vector<2x1xf32>
    %327 = vector.extract_strided_slice %320 {offsets = [0, 0], sizes = [2, 1], strides = [1, 1]} : vector<2x2xf32> to vector<2x1xf32>
    %328 = arith.addf %326, %327 : vector<2x1xf32>
    %329 = arith.mulf %315, %315 : vector<2x16xf32>
    %cst_123 = arith.constant dense<0.000000e+00> : vector<2xf32>
    %330 = vector.multi_reduction <add>, %329, %cst_123 [1] : vector<2x16xf32> to vector<2xf32>
    %331 = vector.shape_cast %330 : vector<2xf32> to vector<2x1xf32>
    %cst_124 = arith.constant 0.020833334 : f32
    %332 = vector.broadcast %cst_124 : f32 to vector<2x1xf32>
    %333 = arith.mulf %331, %332 : vector<2x1xf32>
    %334 = vector.extract_strided_slice %320 {offsets = [0, 1], sizes = [2, 1], strides = [1, 1]} : vector<2x2xf32> to vector<2x1xf32>
    %335 = arith.addf %333, %334 : vector<2x1xf32>
    %336 = arith.mulf %328, %328 : vector<2x1xf32>
    %337 = arith.subf %335, %336 : vector<2x1xf32>
    %cst_125 = arith.constant 9.99999974E-6 : f32
    %338 = vector.broadcast %cst_125 : f32 to vector<2x1xf32>
    %339 = arith.addf %337, %338 : vector<2x1xf32>
    %340 = math.rsqrt %339 : vector<2x1xf32>
    %cst_126 = arith.constant dense<0.000000e+00> : vector<2x192xf32>
    %341 = tpu.matmul %315, %0, %cst_126 {dimension_numbers = #tpu.dot_dimension_numbers<[1], [0], [0], [1], [0, 0, 1, 1], [], []>} : vector<2x16xf32>, vector<16x192xf32>, vector<2x192xf32> -> vector<2x192xf32>
    %342 = arith.addf %341, %318 : vector<2x192xf32>
    %343 = vector.broadcast %328 : vector<2x1xf32> to vector<2x192xf32>
    %344 = vector.broadcast %1 : vector<1x192xf32> to vector<2x192xf32>
    %345 = arith.mulf %343, %344 : vector<2x192xf32>
    %346 = arith.subf %342, %345 : vector<2x192xf32>
    %347 = vector.broadcast %340 : vector<2x1xf32> to vector<2x192xf32>
    %348 = arith.mulf %347, %346 : vector<2x192xf32>
    %349 = vector.broadcast %2 : vector<1x192xf32> to vector<2x192xf32>
    %350 = arith.addf %348, %349 : vector<2x192xf32>
    %351 = arith.negf %350 : vector<2x192xf32>
    %352 = math.exp %351 : vector<2x192xf32>
    %cst_127 = arith.constant 1.000000e+00 : f32
    %353 = vector.broadcast %cst_127 : f32 to vector<2x192xf32>
    %354 = arith.addf %353, %352 : vector<2x192xf32>
    %355 = arith.divf %353, %354 : vector<2x192xf32>
    %356 = arith.mulf %350, %355 : vector<2x192xf32>
    %357 = vector.extract_strided_slice %356 {offsets = [0, 0], sizes = [2, 32], strides = [1, 1]} : vector<2x192xf32> to vector<2x32xf32>
    %cst_128 = arith.constant dense<0.000000e+00> : vector<2x256xf32>
    %358 = tpu.matmul %357, %3, %cst_128 {dimension_numbers = #tpu.dot_dimension_numbers<[1], [0], [0], [1], [0, 0, 1, 1], [], []>} : vector<2x32xf32>, vector<32x256xf32>, vector<2x256xf32> -> vector<2x256xf32>
    %359 = vector.broadcast %4 : vector<1x256xf32> to vector<2x256xf32>
    %360 = arith.addf %358, %359 : vector<2x256xf32>
    %361 = vector.extract_strided_slice %356 {offsets = [0, 32], sizes = [2, 32], strides = [1, 1]} : vector<2x192xf32> to vector<2x32xf32>
    %cst_129 = arith.constant dense<0.000000e+00> : vector<2x512xf32>
    %362 = tpu.matmul %361, %5, %cst_129 {dimension_numbers = #tpu.dot_dimension_numbers<[1], [0], [0], [1], [0, 0, 1, 1], [], []>} : vector<2x32xf32>, vector<32x512xf32>, vector<2x512xf32> -> vector<2x512xf32>
    %363 = vector.broadcast %6 : vector<1x512xf32> to vector<2x512xf32>
    %364 = arith.addf %362, %363 : vector<2x512xf32>
    %365 = vector.extract_strided_slice %356 {offsets = [0, 64], sizes = [2, 128], strides = [1, 1]} : vector<2x192xf32> to vector<2x128xf32>
    %cst_130 = arith.constant dense<0.000000e+00> : vector<2x34xf32>
    %366 = tpu.matmul %365, %7, %cst_130 {dimension_numbers = #tpu.dot_dimension_numbers<[1], [0], [0], [1], [0, 0, 1, 1], [], []>} : vector<2x128xf32>, vector<128x34xf32>, vector<2x34xf32> -> vector<2x34xf32>
    %367 = vector.broadcast %8 : vector<1x34xf32> to vector<2x34xf32>
    %368 = arith.addf %366, %367 : vector<2x34xf32>
    %369 = arith.negf %368 : vector<2x34xf32>
    %370 = math.exp %369 : vector<2x34xf32>
    %cst_131 = arith.constant 1.000000e+00 : f32
    %371 = vector.broadcast %cst_131 : f32 to vector<2x34xf32>
    %372 = arith.addf %371, %370 : vector<2x34xf32>
    %373 = arith.divf %371, %372 : vector<2x34xf32>
    %374 = vector.extract_strided_slice %373 {offsets = [0, 0], sizes = [2, 16], strides = [1, 1]} : vector<2x34xf32> to vector<2x16xf32>
    %375 = vector.extract_strided_slice %373 {offsets = [0, 16], sizes = [2, 16], strides = [1, 1]} : vector<2x34xf32> to vector<2x16xf32>
    %376 = vector.extract_strided_slice %373 {offsets = [0, 32], sizes = [2, 1], strides = [1, 1]} : vector<2x34xf32> to vector<2x1xf32>
    %377 = vector.extract_strided_slice %373 {offsets = [0, 33], sizes = [2, 1], strides = [1, 1]} : vector<2x34xf32> to vector<2x1xf32>
    %378 = arith.mulf %376, %377 : vector<2x1xf32>
    %379 = vector.broadcast %378 : vector<2x1xf32> to vector<2x256xf32>
    %380 = arith.mulf %379, %360 : vector<2x256xf32>
    %381 = arith.addf %282, %380 : vector<2x256xf32>
    %382 = vector.broadcast %378 : vector<2x1xf32> to vector<2x512xf32>
    %383 = arith.mulf %382, %364 : vector<2x512xf32>
    %384 = arith.addf %285, %383 : vector<2x512xf32>
    %385 = tpu.concatenate %315, %315, %315, %315, %315, %315, %315, %315, %315, %315, %315, %315, %315, %315, %315, %315 in 1 : vector<2x16xf32>, vector<2x16xf32>, vector<2x16xf32>, vector<2x16xf32>, vector<2x16xf32>, vector<2x16xf32>, vector<2x16xf32>, vector<2x16xf32>, vector<2x16xf32>, vector<2x16xf32>, vector<2x16xf32>, vector<2x16xf32>, vector<2x16xf32>, vector<2x16xf32>, vector<2x16xf32>, vector<2x16xf32> -> vector<2x256xf32>
    %386 = arith.mulf %381, %385 : vector<2x256xf32>
    %cst_132 = arith.constant dense<0.000000e+00> : vector<2x16xf32>
    %387 = tpu.matmul %386, %9, %cst_132 {dimension_numbers = #tpu.dot_dimension_numbers<[1], [0], [0], [1], [0, 0, 1, 1], [], []>} : vector<2x256xf32>, vector<256x16xf32>, vector<2x16xf32> -> vector<2x16xf32>
    %388 = arith.mulf %384, %322 : vector<2x512xf32>
    %cst_133 = arith.constant dense<0.000000e+00> : vector<2x16xf32>
    %389 = tpu.matmul %388, %10, %cst_133 {dimension_numbers = #tpu.dot_dimension_numbers<[1], [0], [0], [1], [0, 0, 1, 1], [], []>} : vector<2x512xf32>, vector<512x16xf32>, vector<2x16xf32> -> vector<2x16xf32>
    %390 = arith.mulf %374, %387 : vector<2x16xf32>
    %391 = arith.mulf %375, %389 : vector<2x16xf32>
    %392 = arith.addf %390, %391 : vector<2x16xf32>
    %cst_134 = arith.constant dense<0.000000e+00> : vector<2xf32>
    %393 = vector.multi_reduction <add>, %392, %cst_134 [1] : vector<2x16xf32> to vector<2xf32>
    %394 = vector.shape_cast %393 : vector<2xf32> to vector<2x1xf32>
    %cst_135 = arith.constant 1.600000e+01 : f32
    %395 = vector.broadcast %cst_135 : f32 to vector<2x1xf32>
    %396 = arith.divf %394, %395 : vector<2x1xf32>
    %397 = vector.broadcast %396 : vector<2x1xf32> to vector<2x16xf32>
    %398 = arith.subf %392, %397 : vector<2x16xf32>
    %399 = arith.mulf %398, %398 : vector<2x16xf32>
    %cst_136 = arith.constant dense<0.000000e+00> : vector<2xf32>
    %400 = vector.multi_reduction <add>, %399, %cst_136 [1] : vector<2x16xf32> to vector<2xf32>
    %401 = vector.shape_cast %400 : vector<2xf32> to vector<2x1xf32>
    %cst_137 = arith.constant 1.600000e+01 : f32
    %402 = vector.broadcast %cst_137 : f32 to vector<2x1xf32>
    %403 = arith.divf %401, %402 : vector<2x1xf32>
    %404 = vector.broadcast %396 : vector<2x1xf32> to vector<2x16xf32>
    %405 = arith.subf %392, %404 : vector<2x16xf32>
    %cst_138 = arith.constant 9.99999974E-6 : f32
    %406 = vector.broadcast %cst_138 : f32 to vector<2x1xf32>
    %407 = arith.addf %403, %406 : vector<2x1xf32>
    %408 = math.rsqrt %407 : vector<2x1xf32>
    %409 = vector.broadcast %408 : vector<2x1xf32> to vector<2x16xf32>
    %410 = arith.mulf %405, %409 : vector<2x16xf32>
    %411 = vector.broadcast %11 : vector<1x16xf32> to vector<2x16xf32>
    %412 = arith.mulf %410, %411 : vector<2x16xf32>
    %413 = vector.broadcast %12 : vector<1x16xf32> to vector<2x16xf32>
    %414 = arith.addf %412, %413 : vector<2x16xf32>
    %c6 = arith.constant 6 : index
    %c0_139 = arith.constant 0 : index
    %415 = vector.load %arg24[%c6, %c0_139] : memref<24x16xf32, #tpu.memory_space<vmem>>, vector<2x16xf32>
    tpu.vector_store %arg24[%c6, %c0_139], %414 {strides = array<i32>} : memref<24x16xf32, #tpu.memory_space<vmem>>, vector<2x16xf32>,
    %c4_140 = arith.constant 4 : index
    %c0_141 = arith.constant 0 : index
    %c0_142 = arith.constant 0 : index
    %416 = vector.load %arg0[%c4_140, %c0_141, %c0_142] : memref<12x2x192xf32, #tpu.memory_space<vmem>>, vector<1x2x192xf32>
    %417 = vector.shape_cast %416 : vector<1x2x192xf32> to vector<2x192xf32>
    %c4_143 = arith.constant 4 : index
    %c0_144 = arith.constant 0 : index
    %c0_145 = arith.constant 0 : index
    %418 = vector.load %arg1[%c4_143, %c0_144, %c0_145] : memref<12x2x2xf32, #tpu.memory_space<vmem>>, vector<1x2x2xf32>
    %419 = vector.shape_cast %418 : vector<1x2x2xf32> to vector<2x2xf32>
    %c4_146 = arith.constant 4 : index
    %c0_147 = arith.constant 0 : index
    %c0_148 = arith.constant 0 : index
    %420 = vector.load %arg2[%c4_146, %c0_147, %c0_148] : memref<12x2x512xf32, #tpu.memory_space<vmem>>, vector<1x2x512xf32>
    %421 = vector.shape_cast %420 : vector<1x2x512xf32> to vector<2x512xf32>
    %cst_149 = arith.constant dense<0.000000e+00> : vector<2xf32>
    %422 = vector.multi_reduction <add>, %414, %cst_149 [1] : vector<2x16xf32> to vector<2xf32>
    %423 = vector.shape_cast %422 : vector<2xf32> to vector<2x1xf32>
    %cst_150 = arith.constant 0.020833334 : f32
    %424 = vector.broadcast %cst_150 : f32 to vector<2x1xf32>
    %425 = arith.mulf %423, %424 : vector<2x1xf32>
    %426 = vector.extract_strided_slice %419 {offsets = [0, 0], sizes = [2, 1], strides = [1, 1]} : vector<2x2xf32> to vector<2x1xf32>
    %427 = arith.addf %425, %426 : vector<2x1xf32>
    %428 = arith.mulf %414, %414 : vector<2x16xf32>
    %cst_151 = arith.constant dense<0.000000e+00> : vector<2xf32>
    %429 = vector.multi_reduction <add>, %428, %cst_151 [1] : vector<2x16xf32> to vector<2xf32>
    %430 = vector.shape_cast %429 : vector<2xf32> to vector<2x1xf32>
    %cst_152 = arith.constant 0.020833334 : f32
    %431 = vector.broadcast %cst_152 : f32 to vector<2x1xf32>
    %432 = arith.mulf %430, %431 : vector<2x1xf32>
    %433 = vector.extract_strided_slice %419 {offsets = [0, 1], sizes = [2, 1], strides = [1, 1]} : vector<2x2xf32> to vector<2x1xf32>
    %434 = arith.addf %432, %433 : vector<2x1xf32>
    %435 = arith.mulf %427, %427 : vector<2x1xf32>
    %436 = arith.subf %434, %435 : vector<2x1xf32>
    %cst_153 = arith.constant 9.99999974E-6 : f32
    %437 = vector.broadcast %cst_153 : f32 to vector<2x1xf32>
    %438 = arith.addf %436, %437 : vector<2x1xf32>
    %439 = math.rsqrt %438 : vector<2x1xf32>
    %cst_154 = arith.constant dense<0.000000e+00> : vector<2x192xf32>
    %440 = tpu.matmul %414, %0, %cst_154 {dimension_numbers = #tpu.dot_dimension_numbers<[1], [0], [0], [1], [0, 0, 1, 1], [], []>} : vector<2x16xf32>, vector<16x192xf32>, vector<2x192xf32> -> vector<2x192xf32>
    %441 = arith.addf %440, %417 : vector<2x192xf32>
    %442 = vector.broadcast %427 : vector<2x1xf32> to vector<2x192xf32>
    %443 = vector.broadcast %1 : vector<1x192xf32> to vector<2x192xf32>
    %444 = arith.mulf %442, %443 : vector<2x192xf32>
    %445 = arith.subf %441, %444 : vector<2x192xf32>
    %446 = vector.broadcast %439 : vector<2x1xf32> to vector<2x192xf32>
    %447 = arith.mulf %446, %445 : vector<2x192xf32>
    %448 = vector.broadcast %2 : vector<1x192xf32> to vector<2x192xf32>
    %449 = arith.addf %447, %448 : vector<2x192xf32>
    %450 = arith.negf %449 : vector<2x192xf32>
    %451 = math.exp %450 : vector<2x192xf32>
    %cst_155 = arith.constant 1.000000e+00 : f32
    %452 = vector.broadcast %cst_155 : f32 to vector<2x192xf32>
    %453 = arith.addf %452, %451 : vector<2x192xf32>
    %454 = arith.divf %452, %453 : vector<2x192xf32>
    %455 = arith.mulf %449, %454 : vector<2x192xf32>
    %456 = vector.extract_strided_slice %455 {offsets = [0, 0], sizes = [2, 32], strides = [1, 1]} : vector<2x192xf32> to vector<2x32xf32>
    %cst_156 = arith.constant dense<0.000000e+00> : vector<2x256xf32>
    %457 = tpu.matmul %456, %3, %cst_156 {dimension_numbers = #tpu.dot_dimension_numbers<[1], [0], [0], [1], [0, 0, 1, 1], [], []>} : vector<2x32xf32>, vector<32x256xf32>, vector<2x256xf32> -> vector<2x256xf32>
    %458 = vector.broadcast %4 : vector<1x256xf32> to vector<2x256xf32>
    %459 = arith.addf %457, %458 : vector<2x256xf32>
    %460 = vector.extract_strided_slice %455 {offsets = [0, 32], sizes = [2, 32], strides = [1, 1]} : vector<2x192xf32> to vector<2x32xf32>
    %cst_157 = arith.constant dense<0.000000e+00> : vector<2x512xf32>
    %461 = tpu.matmul %460, %5, %cst_157 {dimension_numbers = #tpu.dot_dimension_numbers<[1], [0], [0], [1], [0, 0, 1, 1], [], []>} : vector<2x32xf32>, vector<32x512xf32>, vector<2x512xf32> -> vector<2x512xf32>
    %462 = vector.broadcast %6 : vector<1x512xf32> to vector<2x512xf32>
    %463 = arith.addf %461, %462 : vector<2x512xf32>
    %464 = vector.extract_strided_slice %455 {offsets = [0, 64], sizes = [2, 128], strides = [1, 1]} : vector<2x192xf32> to vector<2x128xf32>
    %cst_158 = arith.constant dense<0.000000e+00> : vector<2x34xf32>
    %465 = tpu.matmul %464, %7, %cst_158 {dimension_numbers = #tpu.dot_dimension_numbers<[1], [0], [0], [1], [0, 0, 1, 1], [], []>} : vector<2x128xf32>, vector<128x34xf32>, vector<2x34xf32> -> vector<2x34xf32>
    %466 = vector.broadcast %8 : vector<1x34xf32> to vector<2x34xf32>
    %467 = arith.addf %465, %466 : vector<2x34xf32>
    %468 = arith.negf %467 : vector<2x34xf32>
    %469 = math.exp %468 : vector<2x34xf32>
    %cst_159 = arith.constant 1.000000e+00 : f32
    %470 = vector.broadcast %cst_159 : f32 to vector<2x34xf32>
    %471 = arith.addf %470, %469 : vector<2x34xf32>
    %472 = arith.divf %470, %471 : vector<2x34xf32>
    %473 = vector.extract_strided_slice %472 {offsets = [0, 0], sizes = [2, 16], strides = [1, 1]} : vector<2x34xf32> to vector<2x16xf32>
    %474 = vector.extract_strided_slice %472 {offsets = [0, 16], sizes = [2, 16], strides = [1, 1]} : vector<2x34xf32> to vector<2x16xf32>
    %475 = vector.extract_strided_slice %472 {offsets = [0, 32], sizes = [2, 1], strides = [1, 1]} : vector<2x34xf32> to vector<2x1xf32>
    %476 = vector.extract_strided_slice %472 {offsets = [0, 33], sizes = [2, 1], strides = [1, 1]} : vector<2x34xf32> to vector<2x1xf32>
    %477 = arith.mulf %475, %476 : vector<2x1xf32>
    %478 = vector.broadcast %477 : vector<2x1xf32> to vector<2x256xf32>
    %479 = arith.mulf %478, %459 : vector<2x256xf32>
    %480 = arith.addf %381, %479 : vector<2x256xf32>
    %481 = vector.broadcast %477 : vector<2x1xf32> to vector<2x512xf32>
    %482 = arith.mulf %481, %463 : vector<2x512xf32>
    %483 = arith.addf %384, %482 : vector<2x512xf32>
    %484 = tpu.concatenate %414, %414, %414, %414, %414, %414, %414, %414, %414, %414, %414, %414, %414, %414, %414, %414 in 1 : vector<2x16xf32>, vector<2x16xf32>, vector<2x16xf32>, vector<2x16xf32>, vector<2x16xf32>, vector<2x16xf32>, vector<2x16xf32>, vector<2x16xf32>, vector<2x16xf32>, vector<2x16xf32>, vector<2x16xf32>, vector<2x16xf32>, vector<2x16xf32>, vector<2x16xf32>, vector<2x16xf32>, vector<2x16xf32> -> vector<2x256xf32>
    %485 = arith.mulf %480, %484 : vector<2x256xf32>
    %cst_160 = arith.constant dense<0.000000e+00> : vector<2x16xf32>
    %486 = tpu.matmul %485, %9, %cst_160 {dimension_numbers = #tpu.dot_dimension_numbers<[1], [0], [0], [1], [0, 0, 1, 1], [], []>} : vector<2x256xf32>, vector<256x16xf32>, vector<2x16xf32> -> vector<2x16xf32>
    %487 = arith.mulf %483, %421 : vector<2x512xf32>
    %cst_161 = arith.constant dense<0.000000e+00> : vector<2x16xf32>
    %488 = tpu.matmul %487, %10, %cst_161 {dimension_numbers = #tpu.dot_dimension_numbers<[1], [0], [0], [1], [0, 0, 1, 1], [], []>} : vector<2x512xf32>, vector<512x16xf32>, vector<2x16xf32> -> vector<2x16xf32>
    %489 = arith.mulf %473, %486 : vector<2x16xf32>
    %490 = arith.mulf %474, %488 : vector<2x16xf32>
    %491 = arith.addf %489, %490 : vector<2x16xf32>
    %cst_162 = arith.constant dense<0.000000e+00> : vector<2xf32>
    %492 = vector.multi_reduction <add>, %491, %cst_162 [1] : vector<2x16xf32> to vector<2xf32>
    %493 = vector.shape_cast %492 : vector<2xf32> to vector<2x1xf32>
    %cst_163 = arith.constant 1.600000e+01 : f32
    %494 = vector.broadcast %cst_163 : f32 to vector<2x1xf32>
    %495 = arith.divf %493, %494 : vector<2x1xf32>
    %496 = vector.broadcast %495 : vector<2x1xf32> to vector<2x16xf32>
    %497 = arith.subf %491, %496 : vector<2x16xf32>
    %498 = arith.mulf %497, %497 : vector<2x16xf32>
    %cst_164 = arith.constant dense<0.000000e+00> : vector<2xf32>
    %499 = vector.multi_reduction <add>, %498, %cst_164 [1] : vector<2x16xf32> to vector<2xf32>
    %500 = vector.shape_cast %499 : vector<2xf32> to vector<2x1xf32>
    %cst_165 = arith.constant 1.600000e+01 : f32
    %501 = vector.broadcast %cst_165 : f32 to vector<2x1xf32>
    %502 = arith.divf %500, %501 : vector<2x1xf32>
    %503 = vector.broadcast %495 : vector<2x1xf32> to vector<2x16xf32>
    %504 = arith.subf %491, %503 : vector<2x16xf32>
    %cst_166 = arith.constant 9.99999974E-6 : f32
    %505 = vector.broadcast %cst_166 : f32 to vector<2x1xf32>
    %506 = arith.addf %502, %505 : vector<2x1xf32>
    %507 = math.rsqrt %506 : vector<2x1xf32>
    %508 = vector.broadcast %507 : vector<2x1xf32> to vector<2x16xf32>
    %509 = arith.mulf %504, %508 : vector<2x16xf32>
    %510 = vector.broadcast %11 : vector<1x16xf32> to vector<2x16xf32>
    %511 = arith.mulf %509, %510 : vector<2x16xf32>
    %512 = vector.broadcast %12 : vector<1x16xf32> to vector<2x16xf32>
    %513 = arith.addf %511, %512 : vector<2x16xf32>
    %c8 = arith.constant 8 : index
    %c0_167 = arith.constant 0 : index
    %514 = vector.load %arg24[%c8, %c0_167] : memref<24x16xf32, #tpu.memory_space<vmem>>, vector<2x16xf32>
    tpu.vector_store %arg24[%c8, %c0_167], %513 {strides = array<i32>} : memref<24x16xf32, #tpu.memory_space<vmem>>, vector<2x16xf32>,
    %c5 = arith.constant 5 : index
    %c0_168 = arith.constant 0 : index
    %c0_169 = arith.constant 0 : index
    %515 = vector.load %arg0[%c5, %c0_168, %c0_169] : memref<12x2x192xf32, #tpu.memory_space<vmem>>, vector<1x2x192xf32>
    %516 = vector.shape_cast %515 : vector<1x2x192xf32> to vector<2x192xf32>
    %c5_170 = arith.constant 5 : index
    %c0_171 = arith.constant 0 : index
    %c0_172 = arith.constant 0 : index
    %517 = vector.load %arg1[%c5_170, %c0_171, %c0_172] : memref<12x2x2xf32, #tpu.memory_space<vmem>>, vector<1x2x2xf32>
    %518 = vector.shape_cast %517 : vector<1x2x2xf32> to vector<2x2xf32>
    %c5_173 = arith.constant 5 : index
    %c0_174 = arith.constant 0 : index
    %c0_175 = arith.constant 0 : index
    %519 = vector.load %arg2[%c5_173, %c0_174, %c0_175] : memref<12x2x512xf32, #tpu.memory_space<vmem>>, vector<1x2x512xf32>
    %520 = vector.shape_cast %519 : vector<1x2x512xf32> to vector<2x512xf32>
    %cst_176 = arith.constant dense<0.000000e+00> : vector<2xf32>
    %521 = vector.multi_reduction <add>, %513, %cst_176 [1] : vector<2x16xf32> to vector<2xf32>
    %522 = vector.shape_cast %521 : vector<2xf32> to vector<2x1xf32>
    %cst_177 = arith.constant 0.020833334 : f32
    %523 = vector.broadcast %cst_177 : f32 to vector<2x1xf32>
    %524 = arith.mulf %522, %523 : vector<2x1xf32>
    %525 = vector.extract_strided_slice %518 {offsets = [0, 0], sizes = [2, 1], strides = [1, 1]} : vector<2x2xf32> to vector<2x1xf32>
    %526 = arith.addf %524, %525 : vector<2x1xf32>
    %527 = arith.mulf %513, %513 : vector<2x16xf32>
    %cst_178 = arith.constant dense<0.000000e+00> : vector<2xf32>
    %528 = vector.multi_reduction <add>, %527, %cst_178 [1] : vector<2x16xf32> to vector<2xf32>
    %529 = vector.shape_cast %528 : vector<2xf32> to vector<2x1xf32>
    %cst_179 = arith.constant 0.020833334 : f32
    %530 = vector.broadcast %cst_179 : f32 to vector<2x1xf32>
    %531 = arith.mulf %529, %530 : vector<2x1xf32>
    %532 = vector.extract_strided_slice %518 {offsets = [0, 1], sizes = [2, 1], strides = [1, 1]} : vector<2x2xf32> to vector<2x1xf32>
    %533 = arith.addf %531, %532 : vector<2x1xf32>
    %534 = arith.mulf %526, %526 : vector<2x1xf32>
    %535 = arith.subf %533, %534 : vector<2x1xf32>
    %cst_180 = arith.constant 9.99999974E-6 : f32
    %536 = vector.broadcast %cst_180 : f32 to vector<2x1xf32>
    %537 = arith.addf %535, %536 : vector<2x1xf32>
    %538 = math.rsqrt %537 : vector<2x1xf32>
    %cst_181 = arith.constant dense<0.000000e+00> : vector<2x192xf32>
    %539 = tpu.matmul %513, %0, %cst_181 {dimension_numbers = #tpu.dot_dimension_numbers<[1], [0], [0], [1], [0, 0, 1, 1], [], []>} : vector<2x16xf32>, vector<16x192xf32>, vector<2x192xf32> -> vector<2x192xf32>
    %540 = arith.addf %539, %516 : vector<2x192xf32>
    %541 = vector.broadcast %526 : vector<2x1xf32> to vector<2x192xf32>
    %542 = vector.broadcast %1 : vector<1x192xf32> to vector<2x192xf32>
    %543 = arith.mulf %541, %542 : vector<2x192xf32>
    %544 = arith.subf %540, %543 : vector<2x192xf32>
    %545 = vector.broadcast %538 : vector<2x1xf32> to vector<2x192xf32>
    %546 = arith.mulf %545, %544 : vector<2x192xf32>
    %547 = vector.broadcast %2 : vector<1x192xf32> to vector<2x192xf32>
    %548 = arith.addf %546, %547 : vector<2x192xf32>
    %549 = arith.negf %548 : vector<2x192xf32>
    %550 = math.exp %549 : vector<2x192xf32>
    %cst_182 = arith.constant 1.000000e+00 : f32
    %551 = vector.broadcast %cst_182 : f32 to vector<2x192xf32>
    %552 = arith.addf %551, %550 : vector<2x192xf32>
    %553 = arith.divf %551, %552 : vector<2x192xf32>
    %554 = arith.mulf %548, %553 : vector<2x192xf32>
    %555 = vector.extract_strided_slice %554 {offsets = [0, 0], sizes = [2, 32], strides = [1, 1]} : vector<2x192xf32> to vector<2x32xf32>
    %cst_183 = arith.constant dense<0.000000e+00> : vector<2x256xf32>
    %556 = tpu.matmul %555, %3, %cst_183 {dimension_numbers = #tpu.dot_dimension_numbers<[1], [0], [0], [1], [0, 0, 1, 1], [], []>} : vector<2x32xf32>, vector<32x256xf32>, vector<2x256xf32> -> vector<2x256xf32>
    %557 = vector.broadcast %4 : vector<1x256xf32> to vector<2x256xf32>
    %558 = arith.addf %556, %557 : vector<2x256xf32>
    %559 = vector.extract_strided_slice %554 {offsets = [0, 32], sizes = [2, 32], strides = [1, 1]} : vector<2x192xf32> to vector<2x32xf32>
    %cst_184 = arith.constant dense<0.000000e+00> : vector<2x512xf32>
    %560 = tpu.matmul %559, %5, %cst_184 {dimension_numbers = #tpu.dot_dimension_numbers<[1], [0], [0], [1], [0, 0, 1, 1], [], []>} : vector<2x32xf32>, vector<32x512xf32>, vector<2x512xf32> -> vector<2x512xf32>
    %561 = vector.broadcast %6 : vector<1x512xf32> to vector<2x512xf32>
    %562 = arith.addf %560, %561 : vector<2x512xf32>
    %563 = vector.extract_strided_slice %554 {offsets = [0, 64], sizes = [2, 128], strides = [1, 1]} : vector<2x192xf32> to vector<2x128xf32>
    %cst_185 = arith.constant dense<0.000000e+00> : vector<2x34xf32>
    %564 = tpu.matmul %563, %7, %cst_185 {dimension_numbers = #tpu.dot_dimension_numbers<[1], [0], [0], [1], [0, 0, 1, 1], [], []>} : vector<2x128xf32>, vector<128x34xf32>, vector<2x34xf32> -> vector<2x34xf32>
    %565 = vector.broadcast %8 : vector<1x34xf32> to vector<2x34xf32>
    %566 = arith.addf %564, %565 : vector<2x34xf32>
    %567 = arith.negf %566 : vector<2x34xf32>
    %568 = math.exp %567 : vector<2x34xf32>
    %cst_186 = arith.constant 1.000000e+00 : f32
    %569 = vector.broadcast %cst_186 : f32 to vector<2x34xf32>
    %570 = arith.addf %569, %568 : vector<2x34xf32>
    %571 = arith.divf %569, %570 : vector<2x34xf32>
    %572 = vector.extract_strided_slice %571 {offsets = [0, 0], sizes = [2, 16], strides = [1, 1]} : vector<2x34xf32> to vector<2x16xf32>
    %573 = vector.extract_strided_slice %571 {offsets = [0, 16], sizes = [2, 16], strides = [1, 1]} : vector<2x34xf32> to vector<2x16xf32>
    %574 = vector.extract_strided_slice %571 {offsets = [0, 32], sizes = [2, 1], strides = [1, 1]} : vector<2x34xf32> to vector<2x1xf32>
    %575 = vector.extract_strided_slice %571 {offsets = [0, 33], sizes = [2, 1], strides = [1, 1]} : vector<2x34xf32> to vector<2x1xf32>
    %576 = arith.mulf %574, %575 : vector<2x1xf32>
    %577 = vector.broadcast %576 : vector<2x1xf32> to vector<2x256xf32>
    %578 = arith.mulf %577, %558 : vector<2x256xf32>
    %579 = arith.addf %480, %578 : vector<2x256xf32>
    %580 = vector.broadcast %576 : vector<2x1xf32> to vector<2x512xf32>
    %581 = arith.mulf %580, %562 : vector<2x512xf32>
    %582 = arith.addf %483, %581 : vector<2x512xf32>
    %583 = tpu.concatenate %513, %513, %513, %513, %513, %513, %513, %513, %513, %513, %513, %513, %513, %513, %513, %513 in 1 : vector<2x16xf32>, vector<2x16xf32>, vector<2x16xf32>, vector<2x16xf32>, vector<2x16xf32>, vector<2x16xf32>, vector<2x16xf32>, vector<2x16xf32>, vector<2x16xf32>, vector<2x16xf32>, vector<2x16xf32>, vector<2x16xf32>, vector<2x16xf32>, vector<2x16xf32>, vector<2x16xf32>, vector<2x16xf32> -> vector<2x256xf32>
    %584 = arith.mulf %579, %583 : vector<2x256xf32>
    %cst_187 = arith.constant dense<0.000000e+00> : vector<2x16xf32>
    %585 = tpu.matmul %584, %9, %cst_187 {dimension_numbers = #tpu.dot_dimension_numbers<[1], [0], [0], [1], [0, 0, 1, 1], [], []>} : vector<2x256xf32>, vector<256x16xf32>, vector<2x16xf32> -> vector<2x16xf32>
    %586 = arith.mulf %582, %520 : vector<2x512xf32>
    %cst_188 = arith.constant dense<0.000000e+00> : vector<2x16xf32>
    %587 = tpu.matmul %586, %10, %cst_188 {dimension_numbers = #tpu.dot_dimension_numbers<[1], [0], [0], [1], [0, 0, 1, 1], [], []>} : vector<2x512xf32>, vector<512x16xf32>, vector<2x16xf32> -> vector<2x16xf32>
    %588 = arith.mulf %572, %585 : vector<2x16xf32>
    %589 = arith.mulf %573, %587 : vector<2x16xf32>
    %590 = arith.addf %588, %589 : vector<2x16xf32>
    %cst_189 = arith.constant dense<0.000000e+00> : vector<2xf32>
    %591 = vector.multi_reduction <add>, %590, %cst_189 [1] : vector<2x16xf32> to vector<2xf32>
    %592 = vector.shape_cast %591 : vector<2xf32> to vector<2x1xf32>
    %cst_190 = arith.constant 1.600000e+01 : f32
    %593 = vector.broadcast %cst_190 : f32 to vector<2x1xf32>
    %594 = arith.divf %592, %593 : vector<2x1xf32>
    %595 = vector.broadcast %594 : vector<2x1xf32> to vector<2x16xf32>
    %596 = arith.subf %590, %595 : vector<2x16xf32>
    %597 = arith.mulf %596, %596 : vector<2x16xf32>
    %cst_191 = arith.constant dense<0.000000e+00> : vector<2xf32>
    %598 = vector.multi_reduction <add>, %597, %cst_191 [1] : vector<2x16xf32> to vector<2xf32>
    %599 = vector.shape_cast %598 : vector<2xf32> to vector<2x1xf32>
    %cst_192 = arith.constant 1.600000e+01 : f32
    %600 = vector.broadcast %cst_192 : f32 to vector<2x1xf32>
    %601 = arith.divf %599, %600 : vector<2x1xf32>
    %602 = vector.broadcast %594 : vector<2x1xf32> to vector<2x16xf32>
    %603 = arith.subf %590, %602 : vector<2x16xf32>
    %cst_193 = arith.constant 9.99999974E-6 : f32
    %604 = vector.broadcast %cst_193 : f32 to vector<2x1xf32>
    %605 = arith.addf %601, %604 : vector<2x1xf32>
    %606 = math.rsqrt %605 : vector<2x1xf32>
    %607 = vector.broadcast %606 : vector<2x1xf32> to vector<2x16xf32>
    %608 = arith.mulf %603, %607 : vector<2x16xf32>
    %609 = vector.broadcast %11 : vector<1x16xf32> to vector<2x16xf32>
    %610 = arith.mulf %608, %609 : vector<2x16xf32>
    %611 = vector.broadcast %12 : vector<1x16xf32> to vector<2x16xf32>
    %612 = arith.addf %610, %611 : vector<2x16xf32>
    %c10 = arith.constant 10 : index
    %c0_194 = arith.constant 0 : index
    %613 = vector.load %arg24[%c10, %c0_194] : memref<24x16xf32, #tpu.memory_space<vmem>>, vector<2x16xf32>
    tpu.vector_store %arg24[%c10, %c0_194], %612 {strides = array<i32>} : memref<24x16xf32, #tpu.memory_space<vmem>>, vector<2x16xf32>,
    %c6_195 = arith.constant 6 : index
    %c0_196 = arith.constant 0 : index
    %c0_197 = arith.constant 0 : index
    %614 = vector.load %arg0[%c6_195, %c0_196, %c0_197] : memref<12x2x192xf32, #tpu.memory_space<vmem>>, vector<1x2x192xf32>
    %615 = vector.shape_cast %614 : vector<1x2x192xf32> to vector<2x192xf32>
    %c6_198 = arith.constant 6 : index
    %c0_199 = arith.constant 0 : index
    %c0_200 = arith.constant 0 : index
    %616 = vector.load %arg1[%c6_198, %c0_199, %c0_200] : memref<12x2x2xf32, #tpu.memory_space<vmem>>, vector<1x2x2xf32>
    %617 = vector.shape_cast %616 : vector<1x2x2xf32> to vector<2x2xf32>
    %c6_201 = arith.constant 6 : index
    %c0_202 = arith.constant 0 : index
    %c0_203 = arith.constant 0 : index
    %618 = vector.load %arg2[%c6_201, %c0_202, %c0_203] : memref<12x2x512xf32, #tpu.memory_space<vmem>>, vector<1x2x512xf32>
    %619 = vector.shape_cast %618 : vector<1x2x512xf32> to vector<2x512xf32>
    %cst_204 = arith.constant dense<0.000000e+00> : vector<2xf32>
    %620 = vector.multi_reduction <add>, %612, %cst_204 [1] : vector<2x16xf32> to vector<2xf32>
    %621 = vector.shape_cast %620 : vector<2xf32> to vector<2x1xf32>
    %cst_205 = arith.constant 0.020833334 : f32
    %622 = vector.broadcast %cst_205 : f32 to vector<2x1xf32>
    %623 = arith.mulf %621, %622 : vector<2x1xf32>
    %624 = vector.extract_strided_slice %617 {offsets = [0, 0], sizes = [2, 1], strides = [1, 1]} : vector<2x2xf32> to vector<2x1xf32>
    %625 = arith.addf %623, %624 : vector<2x1xf32>
    %626 = arith.mulf %612, %612 : vector<2x16xf32>
    %cst_206 = arith.constant dense<0.000000e+00> : vector<2xf32>
    %627 = vector.multi_reduction <add>, %626, %cst_206 [1] : vector<2x16xf32> to vector<2xf32>
    %628 = vector.shape_cast %627 : vector<2xf32> to vector<2x1xf32>
    %cst_207 = arith.constant 0.020833334 : f32
    %629 = vector.broadcast %cst_207 : f32 to vector<2x1xf32>
    %630 = arith.mulf %628, %629 : vector<2x1xf32>
    %631 = vector.extract_strided_slice %617 {offsets = [0, 1], sizes = [2, 1], strides = [1, 1]} : vector<2x2xf32> to vector<2x1xf32>
    %632 = arith.addf %630, %631 : vector<2x1xf32>
    %633 = arith.mulf %625, %625 : vector<2x1xf32>
    %634 = arith.subf %632, %633 : vector<2x1xf32>
    %cst_208 = arith.constant 9.99999974E-6 : f32
    %635 = vector.broadcast %cst_208 : f32 to vector<2x1xf32>
    %636 = arith.addf %634, %635 : vector<2x1xf32>
    %637 = math.rsqrt %636 : vector<2x1xf32>
    %cst_209 = arith.constant dense<0.000000e+00> : vector<2x192xf32>
    %638 = tpu.matmul %612, %0, %cst_209 {dimension_numbers = #tpu.dot_dimension_numbers<[1], [0], [0], [1], [0, 0, 1, 1], [], []>} : vector<2x16xf32>, vector<16x192xf32>, vector<2x192xf32> -> vector<2x192xf32>
    %639 = arith.addf %638, %615 : vector<2x192xf32>
    %640 = vector.broadcast %625 : vector<2x1xf32> to vector<2x192xf32>
    %641 = vector.broadcast %1 : vector<1x192xf32> to vector<2x192xf32>
    %642 = arith.mulf %640, %641 : vector<2x192xf32>
    %643 = arith.subf %639, %642 : vector<2x192xf32>
    %644 = vector.broadcast %637 : vector<2x1xf32> to vector<2x192xf32>
    %645 = arith.mulf %644, %643 : vector<2x192xf32>
    %646 = vector.broadcast %2 : vector<1x192xf32> to vector<2x192xf32>
    %647 = arith.addf %645, %646 : vector<2x192xf32>
    %648 = arith.negf %647 : vector<2x192xf32>
    %649 = math.exp %648 : vector<2x192xf32>
    %cst_210 = arith.constant 1.000000e+00 : f32
    %650 = vector.broadcast %cst_210 : f32 to vector<2x192xf32>
    %651 = arith.addf %650, %649 : vector<2x192xf32>
    %652 = arith.divf %650, %651 : vector<2x192xf32>
    %653 = arith.mulf %647, %652 : vector<2x192xf32>
    %654 = vector.extract_strided_slice %653 {offsets = [0, 0], sizes = [2, 32], strides = [1, 1]} : vector<2x192xf32> to vector<2x32xf32>
    %cst_211 = arith.constant dense<0.000000e+00> : vector<2x256xf32>
    %655 = tpu.matmul %654, %3, %cst_211 {dimension_numbers = #tpu.dot_dimension_numbers<[1], [0], [0], [1], [0, 0, 1, 1], [], []>} : vector<2x32xf32>, vector<32x256xf32>, vector<2x256xf32> -> vector<2x256xf32>
    %656 = vector.broadcast %4 : vector<1x256xf32> to vector<2x256xf32>
    %657 = arith.addf %655, %656 : vector<2x256xf32>
    %658 = vector.extract_strided_slice %653 {offsets = [0, 32], sizes = [2, 32], strides = [1, 1]} : vector<2x192xf32> to vector<2x32xf32>
    %cst_212 = arith.constant dense<0.000000e+00> : vector<2x512xf32>
    %659 = tpu.matmul %658, %5, %cst_212 {dimension_numbers = #tpu.dot_dimension_numbers<[1], [0], [0], [1], [0, 0, 1, 1], [], []>} : vector<2x32xf32>, vector<32x512xf32>, vector<2x512xf32> -> vector<2x512xf32>
    %660 = vector.broadcast %6 : vector<1x512xf32> to vector<2x512xf32>
    %661 = arith.addf %659, %660 : vector<2x512xf32>
    %662 = vector.extract_strided_slice %653 {offsets = [0, 64], sizes = [2, 128], strides = [1, 1]} : vector<2x192xf32> to vector<2x128xf32>
    %cst_213 = arith.constant dense<0.000000e+00> : vector<2x34xf32>
    %663 = tpu.matmul %662, %7, %cst_213 {dimension_numbers = #tpu.dot_dimension_numbers<[1], [0], [0], [1], [0, 0, 1, 1], [], []>} : vector<2x128xf32>, vector<128x34xf32>, vector<2x34xf32> -> vector<2x34xf32>
    %664 = vector.broadcast %8 : vector<1x34xf32> to vector<2x34xf32>
    %665 = arith.addf %663, %664 : vector<2x34xf32>
    %666 = arith.negf %665 : vector<2x34xf32>
    %667 = math.exp %666 : vector<2x34xf32>
    %cst_214 = arith.constant 1.000000e+00 : f32
    %668 = vector.broadcast %cst_214 : f32 to vector<2x34xf32>
    %669 = arith.addf %668, %667 : vector<2x34xf32>
    %670 = arith.divf %668, %669 : vector<2x34xf32>
    %671 = vector.extract_strided_slice %670 {offsets = [0, 0], sizes = [2, 16], strides = [1, 1]} : vector<2x34xf32> to vector<2x16xf32>
    %672 = vector.extract_strided_slice %670 {offsets = [0, 16], sizes = [2, 16], strides = [1, 1]} : vector<2x34xf32> to vector<2x16xf32>
    %673 = vector.extract_strided_slice %670 {offsets = [0, 32], sizes = [2, 1], strides = [1, 1]} : vector<2x34xf32> to vector<2x1xf32>
    %674 = vector.extract_strided_slice %670 {offsets = [0, 33], sizes = [2, 1], strides = [1, 1]} : vector<2x34xf32> to vector<2x1xf32>
    %675 = arith.mulf %673, %674 : vector<2x1xf32>
    %676 = vector.broadcast %675 : vector<2x1xf32> to vector<2x256xf32>
    %677 = arith.mulf %676, %657 : vector<2x256xf32>
    %678 = arith.addf %579, %677 : vector<2x256xf32>
    %679 = vector.broadcast %675 : vector<2x1xf32> to vector<2x512xf32>
    %680 = arith.mulf %679, %661 : vector<2x512xf32>
    %681 = arith.addf %582, %680 : vector<2x512xf32>
    %682 = tpu.concatenate %612, %612, %612, %612, %612, %612, %612, %612, %612, %612, %612, %612, %612, %612, %612, %612 in 1 : vector<2x16xf32>, vector<2x16xf32>, vector<2x16xf32>, vector<2x16xf32>, vector<2x16xf32>, vector<2x16xf32>, vector<2x16xf32>, vector<2x16xf32>, vector<2x16xf32>, vector<2x16xf32>, vector<2x16xf32>, vector<2x16xf32>, vector<2x16xf32>, vector<2x16xf32>, vector<2x16xf32>, vector<2x16xf32> -> vector<2x256xf32>
    %683 = arith.mulf %678, %682 : vector<2x256xf32>
    %cst_215 = arith.constant dense<0.000000e+00> : vector<2x16xf32>
    %684 = tpu.matmul %683, %9, %cst_215 {dimension_numbers = #tpu.dot_dimension_numbers<[1], [0], [0], [1], [0, 0, 1, 1], [], []>} : vector<2x256xf32>, vector<256x16xf32>, vector<2x16xf32> -> vector<2x16xf32>
    %685 = arith.mulf %681, %619 : vector<2x512xf32>
    %cst_216 = arith.constant dense<0.000000e+00> : vector<2x16xf32>
    %686 = tpu.matmul %685, %10, %cst_216 {dimension_numbers = #tpu.dot_dimension_numbers<[1], [0], [0], [1], [0, 0, 1, 1], [], []>} : vector<2x512xf32>, vector<512x16xf32>, vector<2x16xf32> -> vector<2x16xf32>
    %687 = arith.mulf %671, %684 : vector<2x16xf32>
    %688 = arith.mulf %672, %686 : vector<2x16xf32>
    %689 = arith.addf %687, %688 : vector<2x16xf32>
    %cst_217 = arith.constant dense<0.000000e+00> : vector<2xf32>
    %690 = vector.multi_reduction <add>, %689, %cst_217 [1] : vector<2x16xf32> to vector<2xf32>
    %691 = vector.shape_cast %690 : vector<2xf32> to vector<2x1xf32>
    %cst_218 = arith.constant 1.600000e+01 : f32
    %692 = vector.broadcast %cst_218 : f32 to vector<2x1xf32>
    %693 = arith.divf %691, %692 : vector<2x1xf32>
    %694 = vector.broadcast %693 : vector<2x1xf32> to vector<2x16xf32>
    %695 = arith.subf %689, %694 : vector<2x16xf32>
    %696 = arith.mulf %695, %695 : vector<2x16xf32>
    %cst_219 = arith.constant dense<0.000000e+00> : vector<2xf32>
    %697 = vector.multi_reduction <add>, %696, %cst_219 [1] : vector<2x16xf32> to vector<2xf32>
    %698 = vector.shape_cast %697 : vector<2xf32> to vector<2x1xf32>
    %cst_220 = arith.constant 1.600000e+01 : f32
    %699 = vector.broadcast %cst_220 : f32 to vector<2x1xf32>
    %700 = arith.divf %698, %699 : vector<2x1xf32>
    %701 = vector.broadcast %693 : vector<2x1xf32> to vector<2x16xf32>
    %702 = arith.subf %689, %701 : vector<2x16xf32>
    %cst_221 = arith.constant 9.99999974E-6 : f32
    %703 = vector.broadcast %cst_221 : f32 to vector<2x1xf32>
    %704 = arith.addf %700, %703 : vector<2x1xf32>
    %705 = math.rsqrt %704 : vector<2x1xf32>
    %706 = vector.broadcast %705 : vector<2x1xf32> to vector<2x16xf32>
    %707 = arith.mulf %702, %706 : vector<2x16xf32>
    %708 = vector.broadcast %11 : vector<1x16xf32> to vector<2x16xf32>
    %709 = arith.mulf %707, %708 : vector<2x16xf32>
    %710 = vector.broadcast %12 : vector<1x16xf32> to vector<2x16xf32>
    %711 = arith.addf %709, %710 : vector<2x16xf32>
    %c12 = arith.constant 12 : index
    %c0_222 = arith.constant 0 : index
    %712 = vector.load %arg24[%c12, %c0_222] : memref<24x16xf32, #tpu.memory_space<vmem>>, vector<2x16xf32>
    tpu.vector_store %arg24[%c12, %c0_222], %711 {strides = array<i32>} : memref<24x16xf32, #tpu.memory_space<vmem>>, vector<2x16xf32>,
    %c7 = arith.constant 7 : index
    %c0_223 = arith.constant 0 : index
    %c0_224 = arith.constant 0 : index
    %713 = vector.load %arg0[%c7, %c0_223, %c0_224] : memref<12x2x192xf32, #tpu.memory_space<vmem>>, vector<1x2x192xf32>
    %714 = vector.shape_cast %713 : vector<1x2x192xf32> to vector<2x192xf32>
    %c7_225 = arith.constant 7 : index
    %c0_226 = arith.constant 0 : index
    %c0_227 = arith.constant 0 : index
    %715 = vector.load %arg1[%c7_225, %c0_226, %c0_227] : memref<12x2x2xf32, #tpu.memory_space<vmem>>, vector<1x2x2xf32>
    %716 = vector.shape_cast %715 : vector<1x2x2xf32> to vector<2x2xf32>
    %c7_228 = arith.constant 7 : index
    %c0_229 = arith.constant 0 : index
    %c0_230 = arith.constant 0 : index
    %717 = vector.load %arg2[%c7_228, %c0_229, %c0_230] : memref<12x2x512xf32, #tpu.memory_space<vmem>>, vector<1x2x512xf32>
    %718 = vector.shape_cast %717 : vector<1x2x512xf32> to vector<2x512xf32>
    %cst_231 = arith.constant dense<0.000000e+00> : vector<2xf32>
    %719 = vector.multi_reduction <add>, %711, %cst_231 [1] : vector<2x16xf32> to vector<2xf32>
    %720 = vector.shape_cast %719 : vector<2xf32> to vector<2x1xf32>
    %cst_232 = arith.constant 0.020833334 : f32
    %721 = vector.broadcast %cst_232 : f32 to vector<2x1xf32>
    %722 = arith.mulf %720, %721 : vector<2x1xf32>
    %723 = vector.extract_strided_slice %716 {offsets = [0, 0], sizes = [2, 1], strides = [1, 1]} : vector<2x2xf32> to vector<2x1xf32>
    %724 = arith.addf %722, %723 : vector<2x1xf32>
    %725 = arith.mulf %711, %711 : vector<2x16xf32>
    %cst_233 = arith.constant dense<0.000000e+00> : vector<2xf32>
    %726 = vector.multi_reduction <add>, %725, %cst_233 [1] : vector<2x16xf32> to vector<2xf32>
    %727 = vector.shape_cast %726 : vector<2xf32> to vector<2x1xf32>
    %cst_234 = arith.constant 0.020833334 : f32
    %728 = vector.broadcast %cst_234 : f32 to vector<2x1xf32>
    %729 = arith.mulf %727, %728 : vector<2x1xf32>
    %730 = vector.extract_strided_slice %716 {offsets = [0, 1], sizes = [2, 1], strides = [1, 1]} : vector<2x2xf32> to vector<2x1xf32>
    %731 = arith.addf %729, %730 : vector<2x1xf32>
    %732 = arith.mulf %724, %724 : vector<2x1xf32>
    %733 = arith.subf %731, %732 : vector<2x1xf32>
    %cst_235 = arith.constant 9.99999974E-6 : f32
    %734 = vector.broadcast %cst_235 : f32 to vector<2x1xf32>
    %735 = arith.addf %733, %734 : vector<2x1xf32>
    %736 = math.rsqrt %735 : vector<2x1xf32>
    %cst_236 = arith.constant dense<0.000000e+00> : vector<2x192xf32>
    %737 = tpu.matmul %711, %0, %cst_236 {dimension_numbers = #tpu.dot_dimension_numbers<[1], [0], [0], [1], [0, 0, 1, 1], [], []>} : vector<2x16xf32>, vector<16x192xf32>, vector<2x192xf32> -> vector<2x192xf32>
    %738 = arith.addf %737, %714 : vector<2x192xf32>
    %739 = vector.broadcast %724 : vector<2x1xf32> to vector<2x192xf32>
    %740 = vector.broadcast %1 : vector<1x192xf32> to vector<2x192xf32>
    %741 = arith.mulf %739, %740 : vector<2x192xf32>
    %742 = arith.subf %738, %741 : vector<2x192xf32>
    %743 = vector.broadcast %736 : vector<2x1xf32> to vector<2x192xf32>
    %744 = arith.mulf %743, %742 : vector<2x192xf32>
    %745 = vector.broadcast %2 : vector<1x192xf32> to vector<2x192xf32>
    %746 = arith.addf %744, %745 : vector<2x192xf32>
    %747 = arith.negf %746 : vector<2x192xf32>
    %748 = math.exp %747 : vector<2x192xf32>
    %cst_237 = arith.constant 1.000000e+00 : f32
    %749 = vector.broadcast %cst_237 : f32 to vector<2x192xf32>
    %750 = arith.addf %749, %748 : vector<2x192xf32>
    %751 = arith.divf %749, %750 : vector<2x192xf32>
    %752 = arith.mulf %746, %751 : vector<2x192xf32>
    %753 = vector.extract_strided_slice %752 {offsets = [0, 0], sizes = [2, 32], strides = [1, 1]} : vector<2x192xf32> to vector<2x32xf32>
    %cst_238 = arith.constant dense<0.000000e+00> : vector<2x256xf32>
    %754 = tpu.matmul %753, %3, %cst_238 {dimension_numbers = #tpu.dot_dimension_numbers<[1], [0], [0], [1], [0, 0, 1, 1], [], []>} : vector<2x32xf32>, vector<32x256xf32>, vector<2x256xf32> -> vector<2x256xf32>
    %755 = vector.broadcast %4 : vector<1x256xf32> to vector<2x256xf32>
    %756 = arith.addf %754, %755 : vector<2x256xf32>
    %757 = vector.extract_strided_slice %752 {offsets = [0, 32], sizes = [2, 32], strides = [1, 1]} : vector<2x192xf32> to vector<2x32xf32>
    %cst_239 = arith.constant dense<0.000000e+00> : vector<2x512xf32>
    %758 = tpu.matmul %757, %5, %cst_239 {dimension_numbers = #tpu.dot_dimension_numbers<[1], [0], [0], [1], [0, 0, 1, 1], [], []>} : vector<2x32xf32>, vector<32x512xf32>, vector<2x512xf32> -> vector<2x512xf32>
    %759 = vector.broadcast %6 : vector<1x512xf32> to vector<2x512xf32>
    %760 = arith.addf %758, %759 : vector<2x512xf32>
    %761 = vector.extract_strided_slice %752 {offsets = [0, 64], sizes = [2, 128], strides = [1, 1]} : vector<2x192xf32> to vector<2x128xf32>
    %cst_240 = arith.constant dense<0.000000e+00> : vector<2x34xf32>
    %762 = tpu.matmul %761, %7, %cst_240 {dimension_numbers = #tpu.dot_dimension_numbers<[1], [0], [0], [1], [0, 0, 1, 1], [], []>} : vector<2x128xf32>, vector<128x34xf32>, vector<2x34xf32> -> vector<2x34xf32>
    %763 = vector.broadcast %8 : vector<1x34xf32> to vector<2x34xf32>
    %764 = arith.addf %762, %763 : vector<2x34xf32>
    %765 = arith.negf %764 : vector<2x34xf32>
    %766 = math.exp %765 : vector<2x34xf32>
    %cst_241 = arith.constant 1.000000e+00 : f32
    %767 = vector.broadcast %cst_241 : f32 to vector<2x34xf32>
    %768 = arith.addf %767, %766 : vector<2x34xf32>
    %769 = arith.divf %767, %768 : vector<2x34xf32>
    %770 = vector.extract_strided_slice %769 {offsets = [0, 0], sizes = [2, 16], strides = [1, 1]} : vector<2x34xf32> to vector<2x16xf32>
    %771 = vector.extract_strided_slice %769 {offsets = [0, 16], sizes = [2, 16], strides = [1, 1]} : vector<2x34xf32> to vector<2x16xf32>
    %772 = vector.extract_strided_slice %769 {offsets = [0, 32], sizes = [2, 1], strides = [1, 1]} : vector<2x34xf32> to vector<2x1xf32>
    %773 = vector.extract_strided_slice %769 {offsets = [0, 33], sizes = [2, 1], strides = [1, 1]} : vector<2x34xf32> to vector<2x1xf32>
    %774 = arith.mulf %772, %773 : vector<2x1xf32>
    %775 = vector.broadcast %774 : vector<2x1xf32> to vector<2x256xf32>
    %776 = arith.mulf %775, %756 : vector<2x256xf32>
    %777 = arith.addf %678, %776 : vector<2x256xf32>
    %778 = vector.broadcast %774 : vector<2x1xf32> to vector<2x512xf32>
    %779 = arith.mulf %778, %760 : vector<2x512xf32>
    %780 = arith.addf %681, %779 : vector<2x512xf32>
    %781 = tpu.concatenate %711, %711, %711, %711, %711, %711, %711, %711, %711, %711, %711, %711, %711, %711, %711, %711 in 1 : vector<2x16xf32>, vector<2x16xf32>, vector<2x16xf32>, vector<2x16xf32>, vector<2x16xf32>, vector<2x16xf32>, vector<2x16xf32>, vector<2x16xf32>, vector<2x16xf32>, vector<2x16xf32>, vector<2x16xf32>, vector<2x16xf32>, vector<2x16xf32>, vector<2x16xf32>, vector<2x16xf32>, vector<2x16xf32> -> vector<2x256xf32>
    %782 = arith.mulf %777, %781 : vector<2x256xf32>
    %cst_242 = arith.constant dense<0.000000e+00> : vector<2x16xf32>
    %783 = tpu.matmul %782, %9, %cst_242 {dimension_numbers = #tpu.dot_dimension_numbers<[1], [0], [0], [1], [0, 0, 1, 1], [], []>} : vector<2x256xf32>, vector<256x16xf32>, vector<2x16xf32> -> vector<2x16xf32>
    %784 = arith.mulf %780, %718 : vector<2x512xf32>
    %cst_243 = arith.constant dense<0.000000e+00> : vector<2x16xf32>
    %785 = tpu.matmul %784, %10, %cst_243 {dimension_numbers = #tpu.dot_dimension_numbers<[1], [0], [0], [1], [0, 0, 1, 1], [], []>} : vector<2x512xf32>, vector<512x16xf32>, vector<2x16xf32> -> vector<2x16xf32>
    %786 = arith.mulf %770, %783 : vector<2x16xf32>
    %787 = arith.mulf %771, %785 : vector<2x16xf32>
    %788 = arith.addf %786, %787 : vector<2x16xf32>
    %cst_244 = arith.constant dense<0.000000e+00> : vector<2xf32>
    %789 = vector.multi_reduction <add>, %788, %cst_244 [1] : vector<2x16xf32> to vector<2xf32>
    %790 = vector.shape_cast %789 : vector<2xf32> to vector<2x1xf32>
    %cst_245 = arith.constant 1.600000e+01 : f32
    %791 = vector.broadcast %cst_245 : f32 to vector<2x1xf32>
    %792 = arith.divf %790, %791 : vector<2x1xf32>
    %793 = vector.broadcast %792 : vector<2x1xf32> to vector<2x16xf32>
    %794 = arith.subf %788, %793 : vector<2x16xf32>
    %795 = arith.mulf %794, %794 : vector<2x16xf32>
    %cst_246 = arith.constant dense<0.000000e+00> : vector<2xf32>
    %796 = vector.multi_reduction <add>, %795, %cst_246 [1] : vector<2x16xf32> to vector<2xf32>
    %797 = vector.shape_cast %796 : vector<2xf32> to vector<2x1xf32>
    %cst_247 = arith.constant 1.600000e+01 : f32
    %798 = vector.broadcast %cst_247 : f32 to vector<2x1xf32>
    %799 = arith.divf %797, %798 : vector<2x1xf32>
    %800 = vector.broadcast %792 : vector<2x1xf32> to vector<2x16xf32>
    %801 = arith.subf %788, %800 : vector<2x16xf32>
    %cst_248 = arith.constant 9.99999974E-6 : f32
    %802 = vector.broadcast %cst_248 : f32 to vector<2x1xf32>
    %803 = arith.addf %799, %802 : vector<2x1xf32>
    %804 = math.rsqrt %803 : vector<2x1xf32>
    %805 = vector.broadcast %804 : vector<2x1xf32> to vector<2x16xf32>
    %806 = arith.mulf %801, %805 : vector<2x16xf32>
    %807 = vector.broadcast %11 : vector<1x16xf32> to vector<2x16xf32>
    %808 = arith.mulf %806, %807 : vector<2x16xf32>
    %809 = vector.broadcast %12 : vector<1x16xf32> to vector<2x16xf32>
    %810 = arith.addf %808, %809 : vector<2x16xf32>
    %c14 = arith.constant 14 : index
    %c0_249 = arith.constant 0 : index
    %811 = vector.load %arg24[%c14, %c0_249] : memref<24x16xf32, #tpu.memory_space<vmem>>, vector<2x16xf32>
    tpu.vector_store %arg24[%c14, %c0_249], %810 {strides = array<i32>} : memref<24x16xf32, #tpu.memory_space<vmem>>, vector<2x16xf32>,
    %c8_250 = arith.constant 8 : index
    %c0_251 = arith.constant 0 : index
    %c0_252 = arith.constant 0 : index
    %812 = vector.load %arg0[%c8_250, %c0_251, %c0_252] : memref<12x2x192xf32, #tpu.memory_space<vmem>>, vector<1x2x192xf32>
    %813 = vector.shape_cast %812 : vector<1x2x192xf32> to vector<2x192xf32>
    %c8_253 = arith.constant 8 : index
    %c0_254 = arith.constant 0 : index
    %c0_255 = arith.constant 0 : index
    %814 = vector.load %arg1[%c8_253, %c0_254, %c0_255] : memref<12x2x2xf32, #tpu.memory_space<vmem>>, vector<1x2x2xf32>
    %815 = vector.shape_cast %814 : vector<1x2x2xf32> to vector<2x2xf32>
    %c8_256 = arith.constant 8 : index
    %c0_257 = arith.constant 0 : index
    %c0_258 = arith.constant 0 : index
    %816 = vector.load %arg2[%c8_256, %c0_257, %c0_258] : memref<12x2x512xf32, #tpu.memory_space<vmem>>, vector<1x2x512xf32>
    %817 = vector.shape_cast %816 : vector<1x2x512xf32> to vector<2x512xf32>
    %cst_259 = arith.constant dense<0.000000e+00> : vector<2xf32>
    %818 = vector.multi_reduction <add>, %810, %cst_259 [1] : vector<2x16xf32> to vector<2xf32>
    %819 = vector.shape_cast %818 : vector<2xf32> to vector<2x1xf32>
    %cst_260 = arith.constant 0.020833334 : f32
    %820 = vector.broadcast %cst_260 : f32 to vector<2x1xf32>
    %821 = arith.mulf %819, %820 : vector<2x1xf32>
    %822 = vector.extract_strided_slice %815 {offsets = [0, 0], sizes = [2, 1], strides = [1, 1]} : vector<2x2xf32> to vector<2x1xf32>
    %823 = arith.addf %821, %822 : vector<2x1xf32>
    %824 = arith.mulf %810, %810 : vector<2x16xf32>
    %cst_261 = arith.constant dense<0.000000e+00> : vector<2xf32>
    %825 = vector.multi_reduction <add>, %824, %cst_261 [1] : vector<2x16xf32> to vector<2xf32>
    %826 = vector.shape_cast %825 : vector<2xf32> to vector<2x1xf32>
    %cst_262 = arith.constant 0.020833334 : f32
    %827 = vector.broadcast %cst_262 : f32 to vector<2x1xf32>
    %828 = arith.mulf %826, %827 : vector<2x1xf32>
    %829 = vector.extract_strided_slice %815 {offsets = [0, 1], sizes = [2, 1], strides = [1, 1]} : vector<2x2xf32> to vector<2x1xf32>
    %830 = arith.addf %828, %829 : vector<2x1xf32>
    %831 = arith.mulf %823, %823 : vector<2x1xf32>
    %832 = arith.subf %830, %831 : vector<2x1xf32>
    %cst_263 = arith.constant 9.99999974E-6 : f32
    %833 = vector.broadcast %cst_263 : f32 to vector<2x1xf32>
    %834 = arith.addf %832, %833 : vector<2x1xf32>
    %835 = math.rsqrt %834 : vector<2x1xf32>
    %cst_264 = arith.constant dense<0.000000e+00> : vector<2x192xf32>
    %836 = tpu.matmul %810, %0, %cst_264 {dimension_numbers = #tpu.dot_dimension_numbers<[1], [0], [0], [1], [0, 0, 1, 1], [], []>} : vector<2x16xf32>, vector<16x192xf32>, vector<2x192xf32> -> vector<2x192xf32>
    %837 = arith.addf %836, %813 : vector<2x192xf32>
    %838 = vector.broadcast %823 : vector<2x1xf32> to vector<2x192xf32>
    %839 = vector.broadcast %1 : vector<1x192xf32> to vector<2x192xf32>
    %840 = arith.mulf %838, %839 : vector<2x192xf32>
    %841 = arith.subf %837, %840 : vector<2x192xf32>
    %842 = vector.broadcast %835 : vector<2x1xf32> to vector<2x192xf32>
    %843 = arith.mulf %842, %841 : vector<2x192xf32>
    %844 = vector.broadcast %2 : vector<1x192xf32> to vector<2x192xf32>
    %845 = arith.addf %843, %844 : vector<2x192xf32>
    %846 = arith.negf %845 : vector<2x192xf32>
    %847 = math.exp %846 : vector<2x192xf32>
    %cst_265 = arith.constant 1.000000e+00 : f32
    %848 = vector.broadcast %cst_265 : f32 to vector<2x192xf32>
    %849 = arith.addf %848, %847 : vector<2x192xf32>
    %850 = arith.divf %848, %849 : vector<2x192xf32>
    %851 = arith.mulf %845, %850 : vector<2x192xf32>
    %852 = vector.extract_strided_slice %851 {offsets = [0, 0], sizes = [2, 32], strides = [1, 1]} : vector<2x192xf32> to vector<2x32xf32>
    %cst_266 = arith.constant dense<0.000000e+00> : vector<2x256xf32>
    %853 = tpu.matmul %852, %3, %cst_266 {dimension_numbers = #tpu.dot_dimension_numbers<[1], [0], [0], [1], [0, 0, 1, 1], [], []>} : vector<2x32xf32>, vector<32x256xf32>, vector<2x256xf32> -> vector<2x256xf32>
    %854 = vector.broadcast %4 : vector<1x256xf32> to vector<2x256xf32>
    %855 = arith.addf %853, %854 : vector<2x256xf32>
    %856 = vector.extract_strided_slice %851 {offsets = [0, 32], sizes = [2, 32], strides = [1, 1]} : vector<2x192xf32> to vector<2x32xf32>
    %cst_267 = arith.constant dense<0.000000e+00> : vector<2x512xf32>
    %857 = tpu.matmul %856, %5, %cst_267 {dimension_numbers = #tpu.dot_dimension_numbers<[1], [0], [0], [1], [0, 0, 1, 1], [], []>} : vector<2x32xf32>, vector<32x512xf32>, vector<2x512xf32> -> vector<2x512xf32>
    %858 = vector.broadcast %6 : vector<1x512xf32> to vector<2x512xf32>
    %859 = arith.addf %857, %858 : vector<2x512xf32>
    %860 = vector.extract_strided_slice %851 {offsets = [0, 64], sizes = [2, 128], strides = [1, 1]} : vector<2x192xf32> to vector<2x128xf32>
    %cst_268 = arith.constant dense<0.000000e+00> : vector<2x34xf32>
    %861 = tpu.matmul %860, %7, %cst_268 {dimension_numbers = #tpu.dot_dimension_numbers<[1], [0], [0], [1], [0, 0, 1, 1], [], []>} : vector<2x128xf32>, vector<128x34xf32>, vector<2x34xf32> -> vector<2x34xf32>
    %862 = vector.broadcast %8 : vector<1x34xf32> to vector<2x34xf32>
    %863 = arith.addf %861, %862 : vector<2x34xf32>
    %864 = arith.negf %863 : vector<2x34xf32>
    %865 = math.exp %864 : vector<2x34xf32>
    %cst_269 = arith.constant 1.000000e+00 : f32
    %866 = vector.broadcast %cst_269 : f32 to vector<2x34xf32>
    %867 = arith.addf %866, %865 : vector<2x34xf32>
    %868 = arith.divf %866, %867 : vector<2x34xf32>
    %869 = vector.extract_strided_slice %868 {offsets = [0, 0], sizes = [2, 16], strides = [1, 1]} : vector<2x34xf32> to vector<2x16xf32>
    %870 = vector.extract_strided_slice %868 {offsets = [0, 16], sizes = [2, 16], strides = [1, 1]} : vector<2x34xf32> to vector<2x16xf32>
    %871 = vector.extract_strided_slice %868 {offsets = [0, 32], sizes = [2, 1], strides = [1, 1]} : vector<2x34xf32> to vector<2x1xf32>
    %872 = vector.extract_strided_slice %868 {offsets = [0, 33], sizes = [2, 1], strides = [1, 1]} : vector<2x34xf32> to vector<2x1xf32>
    %873 = arith.mulf %871, %872 : vector<2x1xf32>
    %874 = vector.broadcast %873 : vector<2x1xf32> to vector<2x256xf32>
    %875 = arith.mulf %874, %855 : vector<2x256xf32>
    %876 = arith.addf %777, %875 : vector<2x256xf32>
    %877 = vector.broadcast %873 : vector<2x1xf32> to vector<2x512xf32>
    %878 = arith.mulf %877, %859 : vector<2x512xf32>
    %879 = arith.addf %780, %878 : vector<2x512xf32>
    %880 = tpu.concatenate %810, %810, %810, %810, %810, %810, %810, %810, %810, %810, %810, %810, %810, %810, %810, %810 in 1 : vector<2x16xf32>, vector<2x16xf32>, vector<2x16xf32>, vector<2x16xf32>, vector<2x16xf32>, vector<2x16xf32>, vector<2x16xf32>, vector<2x16xf32>, vector<2x16xf32>, vector<2x16xf32>, vector<2x16xf32>, vector<2x16xf32>, vector<2x16xf32>, vector<2x16xf32>, vector<2x16xf32>, vector<2x16xf32> -> vector<2x256xf32>
    %881 = arith.mulf %876, %880 : vector<2x256xf32>
    %cst_270 = arith.constant dense<0.000000e+00> : vector<2x16xf32>
    %882 = tpu.matmul %881, %9, %cst_270 {dimension_numbers = #tpu.dot_dimension_numbers<[1], [0], [0], [1], [0, 0, 1, 1], [], []>} : vector<2x256xf32>, vector<256x16xf32>, vector<2x16xf32> -> vector<2x16xf32>
    %883 = arith.mulf %879, %817 : vector<2x512xf32>
    %cst_271 = arith.constant dense<0.000000e+00> : vector<2x16xf32>
    %884 = tpu.matmul %883, %10, %cst_271 {dimension_numbers = #tpu.dot_dimension_numbers<[1], [0], [0], [1], [0, 0, 1, 1], [], []>} : vector<2x512xf32>, vector<512x16xf32>, vector<2x16xf32> -> vector<2x16xf32>
    %885 = arith.mulf %869, %882 : vector<2x16xf32>
    %886 = arith.mulf %870, %884 : vector<2x16xf32>
    %887 = arith.addf %885, %886 : vector<2x16xf32>
    %cst_272 = arith.constant dense<0.000000e+00> : vector<2xf32>
    %888 = vector.multi_reduction <add>, %887, %cst_272 [1] : vector<2x16xf32> to vector<2xf32>
    %889 = vector.shape_cast %888 : vector<2xf32> to vector<2x1xf32>
    %cst_273 = arith.constant 1.600000e+01 : f32
    %890 = vector.broadcast %cst_273 : f32 to vector<2x1xf32>
    %891 = arith.divf %889, %890 : vector<2x1xf32>
    %892 = vector.broadcast %891 : vector<2x1xf32> to vector<2x16xf32>
    %893 = arith.subf %887, %892 : vector<2x16xf32>
    %894 = arith.mulf %893, %893 : vector<2x16xf32>
    %cst_274 = arith.constant dense<0.000000e+00> : vector<2xf32>
    %895 = vector.multi_reduction <add>, %894, %cst_274 [1] : vector<2x16xf32> to vector<2xf32>
    %896 = vector.shape_cast %895 : vector<2xf32> to vector<2x1xf32>
    %cst_275 = arith.constant 1.600000e+01 : f32
    %897 = vector.broadcast %cst_275 : f32 to vector<2x1xf32>
    %898 = arith.divf %896, %897 : vector<2x1xf32>
    %899 = vector.broadcast %891 : vector<2x1xf32> to vector<2x16xf32>
    %900 = arith.subf %887, %899 : vector<2x16xf32>
    %cst_276 = arith.constant 9.99999974E-6 : f32
    %901 = vector.broadcast %cst_276 : f32 to vector<2x1xf32>
    %902 = arith.addf %898, %901 : vector<2x1xf32>
    %903 = math.rsqrt %902 : vector<2x1xf32>
    %904 = vector.broadcast %903 : vector<2x1xf32> to vector<2x16xf32>
    %905 = arith.mulf %900, %904 : vector<2x16xf32>
    %906 = vector.broadcast %11 : vector<1x16xf32> to vector<2x16xf32>
    %907 = arith.mulf %905, %906 : vector<2x16xf32>
    %908 = vector.broadcast %12 : vector<1x16xf32> to vector<2x16xf32>
    %909 = arith.addf %907, %908 : vector<2x16xf32>
    %c16 = arith.constant 16 : index
    %c0_277 = arith.constant 0 : index
    %910 = vector.load %arg24[%c16, %c0_277] : memref<24x16xf32, #tpu.memory_space<vmem>>, vector<2x16xf32>
    tpu.vector_store %arg24[%c16, %c0_277], %909 {strides = array<i32>} : memref<24x16xf32, #tpu.memory_space<vmem>>, vector<2x16xf32>,
    %c9 = arith.constant 9 : index
    %c0_278 = arith.constant 0 : index
    %c0_279 = arith.constant 0 : index
    %911 = vector.load %arg0[%c9, %c0_278, %c0_279] : memref<12x2x192xf32, #tpu.memory_space<vmem>>, vector<1x2x192xf32>
    %912 = vector.shape_cast %911 : vector<1x2x192xf32> to vector<2x192xf32>
    %c9_280 = arith.constant 9 : index
    %c0_281 = arith.constant 0 : index
    %c0_282 = arith.constant 0 : index
    %913 = vector.load %arg1[%c9_280, %c0_281, %c0_282] : memref<12x2x2xf32, #tpu.memory_space<vmem>>, vector<1x2x2xf32>
    %914 = vector.shape_cast %913 : vector<1x2x2xf32> to vector<2x2xf32>
    %c9_283 = arith.constant 9 : index
    %c0_284 = arith.constant 0 : index
    %c0_285 = arith.constant 0 : index
    %915 = vector.load %arg2[%c9_283, %c0_284, %c0_285] : memref<12x2x512xf32, #tpu.memory_space<vmem>>, vector<1x2x512xf32>
    %916 = vector.shape_cast %915 : vector<1x2x512xf32> to vector<2x512xf32>
    %cst_286 = arith.constant dense<0.000000e+00> : vector<2xf32>
    %917 = vector.multi_reduction <add>, %909, %cst_286 [1] : vector<2x16xf32> to vector<2xf32>
    %918 = vector.shape_cast %917 : vector<2xf32> to vector<2x1xf32>
    %cst_287 = arith.constant 0.020833334 : f32
    %919 = vector.broadcast %cst_287 : f32 to vector<2x1xf32>
    %920 = arith.mulf %918, %919 : vector<2x1xf32>
    %921 = vector.extract_strided_slice %914 {offsets = [0, 0], sizes = [2, 1], strides = [1, 1]} : vector<2x2xf32> to vector<2x1xf32>
    %922 = arith.addf %920, %921 : vector<2x1xf32>
    %923 = arith.mulf %909, %909 : vector<2x16xf32>
    %cst_288 = arith.constant dense<0.000000e+00> : vector<2xf32>
    %924 = vector.multi_reduction <add>, %923, %cst_288 [1] : vector<2x16xf32> to vector<2xf32>
    %925 = vector.shape_cast %924 : vector<2xf32> to vector<2x1xf32>
    %cst_289 = arith.constant 0.020833334 : f32
    %926 = vector.broadcast %cst_289 : f32 to vector<2x1xf32>
    %927 = arith.mulf %925, %926 : vector<2x1xf32>
    %928 = vector.extract_strided_slice %914 {offsets = [0, 1], sizes = [2, 1], strides = [1, 1]} : vector<2x2xf32> to vector<2x1xf32>
    %929 = arith.addf %927, %928 : vector<2x1xf32>
    %930 = arith.mulf %922, %922 : vector<2x1xf32>
    %931 = arith.subf %929, %930 : vector<2x1xf32>
    %cst_290 = arith.constant 9.99999974E-6 : f32
    %932 = vector.broadcast %cst_290 : f32 to vector<2x1xf32>
    %933 = arith.addf %931, %932 : vector<2x1xf32>
    %934 = math.rsqrt %933 : vector<2x1xf32>
    %cst_291 = arith.constant dense<0.000000e+00> : vector<2x192xf32>
    %935 = tpu.matmul %909, %0, %cst_291 {dimension_numbers = #tpu.dot_dimension_numbers<[1], [0], [0], [1], [0, 0, 1, 1], [], []>} : vector<2x16xf32>, vector<16x192xf32>, vector<2x192xf32> -> vector<2x192xf32>
    %936 = arith.addf %935, %912 : vector<2x192xf32>
    %937 = vector.broadcast %922 : vector<2x1xf32> to vector<2x192xf32>
    %938 = vector.broadcast %1 : vector<1x192xf32> to vector<2x192xf32>
    %939 = arith.mulf %937, %938 : vector<2x192xf32>
    %940 = arith.subf %936, %939 : vector<2x192xf32>
    %941 = vector.broadcast %934 : vector<2x1xf32> to vector<2x192xf32>
    %942 = arith.mulf %941, %940 : vector<2x192xf32>
    %943 = vector.broadcast %2 : vector<1x192xf32> to vector<2x192xf32>
    %944 = arith.addf %942, %943 : vector<2x192xf32>
    %945 = arith.negf %944 : vector<2x192xf32>
    %946 = math.exp %945 : vector<2x192xf32>
    %cst_292 = arith.constant 1.000000e+00 : f32
    %947 = vector.broadcast %cst_292 : f32 to vector<2x192xf32>
    %948 = arith.addf %947, %946 : vector<2x192xf32>
    %949 = arith.divf %947, %948 : vector<2x192xf32>
    %950 = arith.mulf %944, %949 : vector<2x192xf32>
    %951 = vector.extract_strided_slice %950 {offsets = [0, 0], sizes = [2, 32], strides = [1, 1]} : vector<2x192xf32> to vector<2x32xf32>
    %cst_293 = arith.constant dense<0.000000e+00> : vector<2x256xf32>
    %952 = tpu.matmul %951, %3, %cst_293 {dimension_numbers = #tpu.dot_dimension_numbers<[1], [0], [0], [1], [0, 0, 1, 1], [], []>} : vector<2x32xf32>, vector<32x256xf32>, vector<2x256xf32> -> vector<2x256xf32>
    %953 = vector.broadcast %4 : vector<1x256xf32> to vector<2x256xf32>
    %954 = arith.addf %952, %953 : vector<2x256xf32>
    %955 = vector.extract_strided_slice %950 {offsets = [0, 32], sizes = [2, 32], strides = [1, 1]} : vector<2x192xf32> to vector<2x32xf32>
    %cst_294 = arith.constant dense<0.000000e+00> : vector<2x512xf32>
    %956 = tpu.matmul %955, %5, %cst_294 {dimension_numbers = #tpu.dot_dimension_numbers<[1], [0], [0], [1], [0, 0, 1, 1], [], []>} : vector<2x32xf32>, vector<32x512xf32>, vector<2x512xf32> -> vector<2x512xf32>
    %957 = vector.broadcast %6 : vector<1x512xf32> to vector<2x512xf32>
    %958 = arith.addf %956, %957 : vector<2x512xf32>
    %959 = vector.extract_strided_slice %950 {offsets = [0, 64], sizes = [2, 128], strides = [1, 1]} : vector<2x192xf32> to vector<2x128xf32>
    %cst_295 = arith.constant dense<0.000000e+00> : vector<2x34xf32>
    %960 = tpu.matmul %959, %7, %cst_295 {dimension_numbers = #tpu.dot_dimension_numbers<[1], [0], [0], [1], [0, 0, 1, 1], [], []>} : vector<2x128xf32>, vector<128x34xf32>, vector<2x34xf32> -> vector<2x34xf32>
    %961 = vector.broadcast %8 : vector<1x34xf32> to vector<2x34xf32>
    %962 = arith.addf %960, %961 : vector<2x34xf32>
    %963 = arith.negf %962 : vector<2x34xf32>
    %964 = math.exp %963 : vector<2x34xf32>
    %cst_296 = arith.constant 1.000000e+00 : f32
    %965 = vector.broadcast %cst_296 : f32 to vector<2x34xf32>
    %966 = arith.addf %965, %964 : vector<2x34xf32>
    %967 = arith.divf %965, %966 : vector<2x34xf32>
    %968 = vector.extract_strided_slice %967 {offsets = [0, 0], sizes = [2, 16], strides = [1, 1]} : vector<2x34xf32> to vector<2x16xf32>
    %969 = vector.extract_strided_slice %967 {offsets = [0, 16], sizes = [2, 16], strides = [1, 1]} : vector<2x34xf32> to vector<2x16xf32>
    %970 = vector.extract_strided_slice %967 {offsets = [0, 32], sizes = [2, 1], strides = [1, 1]} : vector<2x34xf32> to vector<2x1xf32>
    %971 = vector.extract_strided_slice %967 {offsets = [0, 33], sizes = [2, 1], strides = [1, 1]} : vector<2x34xf32> to vector<2x1xf32>
    %972 = arith.mulf %970, %971 : vector<2x1xf32>
    %973 = vector.broadcast %972 : vector<2x1xf32> to vector<2x256xf32>
    %974 = arith.mulf %973, %954 : vector<2x256xf32>
    %975 = arith.addf %876, %974 : vector<2x256xf32>
    %976 = vector.broadcast %972 : vector<2x1xf32> to vector<2x512xf32>
    %977 = arith.mulf %976, %958 : vector<2x512xf32>
    %978 = arith.addf %879, %977 : vector<2x512xf32>
    %979 = tpu.concatenate %909, %909, %909, %909, %909, %909, %909, %909, %909, %909, %909, %909, %909, %909, %909, %909 in 1 : vector<2x16xf32>, vector<2x16xf32>, vector<2x16xf32>, vector<2x16xf32>, vector<2x16xf32>, vector<2x16xf32>, vector<2x16xf32>, vector<2x16xf32>, vector<2x16xf32>, vector<2x16xf32>, vector<2x16xf32>, vector<2x16xf32>, vector<2x16xf32>, vector<2x16xf32>, vector<2x16xf32>, vector<2x16xf32> -> vector<2x256xf32>
    %980 = arith.mulf %975, %979 : vector<2x256xf32>
    %cst_297 = arith.constant dense<0.000000e+00> : vector<2x16xf32>
    %981 = tpu.matmul %980, %9, %cst_297 {dimension_numbers = #tpu.dot_dimension_numbers<[1], [0], [0], [1], [0, 0, 1, 1], [], []>} : vector<2x256xf32>, vector<256x16xf32>, vector<2x16xf32> -> vector<2x16xf32>
    %982 = arith.mulf %978, %916 : vector<2x512xf32>
    %cst_298 = arith.constant dense<0.000000e+00> : vector<2x16xf32>
    %983 = tpu.matmul %982, %10, %cst_298 {dimension_numbers = #tpu.dot_dimension_numbers<[1], [0], [0], [1], [0, 0, 1, 1], [], []>} : vector<2x512xf32>, vector<512x16xf32>, vector<2x16xf32> -> vector<2x16xf32>
    %984 = arith.mulf %968, %981 : vector<2x16xf32>
    %985 = arith.mulf %969, %983 : vector<2x16xf32>
    %986 = arith.addf %984, %985 : vector<2x16xf32>
    %cst_299 = arith.constant dense<0.000000e+00> : vector<2xf32>
    %987 = vector.multi_reduction <add>, %986, %cst_299 [1] : vector<2x16xf32> to vector<2xf32>
    %988 = vector.shape_cast %987 : vector<2xf32> to vector<2x1xf32>
    %cst_300 = arith.constant 1.600000e+01 : f32
    %989 = vector.broadcast %cst_300 : f32 to vector<2x1xf32>
    %990 = arith.divf %988, %989 : vector<2x1xf32>
    %991 = vector.broadcast %990 : vector<2x1xf32> to vector<2x16xf32>
    %992 = arith.subf %986, %991 : vector<2x16xf32>
    %993 = arith.mulf %992, %992 : vector<2x16xf32>
    %cst_301 = arith.constant dense<0.000000e+00> : vector<2xf32>
    %994 = vector.multi_reduction <add>, %993, %cst_301 [1] : vector<2x16xf32> to vector<2xf32>
    %995 = vector.shape_cast %994 : vector<2xf32> to vector<2x1xf32>
    %cst_302 = arith.constant 1.600000e+01 : f32
    %996 = vector.broadcast %cst_302 : f32 to vector<2x1xf32>
    %997 = arith.divf %995, %996 : vector<2x1xf32>
    %998 = vector.broadcast %990 : vector<2x1xf32> to vector<2x16xf32>
    %999 = arith.subf %986, %998 : vector<2x16xf32>
    %cst_303 = arith.constant 9.99999974E-6 : f32
    %1000 = vector.broadcast %cst_303 : f32 to vector<2x1xf32>
    %1001 = arith.addf %997, %1000 : vector<2x1xf32>
    %1002 = math.rsqrt %1001 : vector<2x1xf32>
    %1003 = vector.broadcast %1002 : vector<2x1xf32> to vector<2x16xf32>
    %1004 = arith.mulf %999, %1003 : vector<2x16xf32>
    %1005 = vector.broadcast %11 : vector<1x16xf32> to vector<2x16xf32>
    %1006 = arith.mulf %1004, %1005 : vector<2x16xf32>
    %1007 = vector.broadcast %12 : vector<1x16xf32> to vector<2x16xf32>
    %1008 = arith.addf %1006, %1007 : vector<2x16xf32>
    %c18 = arith.constant 18 : index
    %c0_304 = arith.constant 0 : index
    %1009 = vector.load %arg24[%c18, %c0_304] : memref<24x16xf32, #tpu.memory_space<vmem>>, vector<2x16xf32>
    tpu.vector_store %arg24[%c18, %c0_304], %1008 {strides = array<i32>} : memref<24x16xf32, #tpu.memory_space<vmem>>, vector<2x16xf32>,
    %c10_305 = arith.constant 10 : index
    %c0_306 = arith.constant 0 : index
    %c0_307 = arith.constant 0 : index
    %1010 = vector.load %arg0[%c10_305, %c0_306, %c0_307] : memref<12x2x192xf32, #tpu.memory_space<vmem>>, vector<1x2x192xf32>
    %1011 = vector.shape_cast %1010 : vector<1x2x192xf32> to vector<2x192xf32>
    %c10_308 = arith.constant 10 : index
    %c0_309 = arith.constant 0 : index
    %c0_310 = arith.constant 0 : index
    %1012 = vector.load %arg1[%c10_308, %c0_309, %c0_310] : memref<12x2x2xf32, #tpu.memory_space<vmem>>, vector<1x2x2xf32>
    %1013 = vector.shape_cast %1012 : vector<1x2x2xf32> to vector<2x2xf32>
    %c10_311 = arith.constant 10 : index
    %c0_312 = arith.constant 0 : index
    %c0_313 = arith.constant 0 : index
    %1014 = vector.load %arg2[%c10_311, %c0_312, %c0_313] : memref<12x2x512xf32, #tpu.memory_space<vmem>>, vector<1x2x512xf32>
    %1015 = vector.shape_cast %1014 : vector<1x2x512xf32> to vector<2x512xf32>
    %cst_314 = arith.constant dense<0.000000e+00> : vector<2xf32>
    %1016 = vector.multi_reduction <add>, %1008, %cst_314 [1] : vector<2x16xf32> to vector<2xf32>
    %1017 = vector.shape_cast %1016 : vector<2xf32> to vector<2x1xf32>
    %cst_315 = arith.constant 0.020833334 : f32
    %1018 = vector.broadcast %cst_315 : f32 to vector<2x1xf32>
    %1019 = arith.mulf %1017, %1018 : vector<2x1xf32>
    %1020 = vector.extract_strided_slice %1013 {offsets = [0, 0], sizes = [2, 1], strides = [1, 1]} : vector<2x2xf32> to vector<2x1xf32>
    %1021 = arith.addf %1019, %1020 : vector<2x1xf32>
    %1022 = arith.mulf %1008, %1008 : vector<2x16xf32>
    %cst_316 = arith.constant dense<0.000000e+00> : vector<2xf32>
    %1023 = vector.multi_reduction <add>, %1022, %cst_316 [1] : vector<2x16xf32> to vector<2xf32>
    %1024 = vector.shape_cast %1023 : vector<2xf32> to vector<2x1xf32>
    %cst_317 = arith.constant 0.020833334 : f32
    %1025 = vector.broadcast %cst_317 : f32 to vector<2x1xf32>
    %1026 = arith.mulf %1024, %1025 : vector<2x1xf32>
    %1027 = vector.extract_strided_slice %1013 {offsets = [0, 1], sizes = [2, 1], strides = [1, 1]} : vector<2x2xf32> to vector<2x1xf32>
    %1028 = arith.addf %1026, %1027 : vector<2x1xf32>
    %1029 = arith.mulf %1021, %1021 : vector<2x1xf32>
    %1030 = arith.subf %1028, %1029 : vector<2x1xf32>
    %cst_318 = arith.constant 9.99999974E-6 : f32
    %1031 = vector.broadcast %cst_318 : f32 to vector<2x1xf32>
    %1032 = arith.addf %1030, %1031 : vector<2x1xf32>
    %1033 = math.rsqrt %1032 : vector<2x1xf32>
    %cst_319 = arith.constant dense<0.000000e+00> : vector<2x192xf32>
    %1034 = tpu.matmul %1008, %0, %cst_319 {dimension_numbers = #tpu.dot_dimension_numbers<[1], [0], [0], [1], [0, 0, 1, 1], [], []>} : vector<2x16xf32>, vector<16x192xf32>, vector<2x192xf32> -> vector<2x192xf32>
    %1035 = arith.addf %1034, %1011 : vector<2x192xf32>
    %1036 = vector.broadcast %1021 : vector<2x1xf32> to vector<2x192xf32>
    %1037 = vector.broadcast %1 : vector<1x192xf32> to vector<2x192xf32>
    %1038 = arith.mulf %1036, %1037 : vector<2x192xf32>
    %1039 = arith.subf %1035, %1038 : vector<2x192xf32>
    %1040 = vector.broadcast %1033 : vector<2x1xf32> to vector<2x192xf32>
    %1041 = arith.mulf %1040, %1039 : vector<2x192xf32>
    %1042 = vector.broadcast %2 : vector<1x192xf32> to vector<2x192xf32>
    %1043 = arith.addf %1041, %1042 : vector<2x192xf32>
    %1044 = arith.negf %1043 : vector<2x192xf32>
    %1045 = math.exp %1044 : vector<2x192xf32>
    %cst_320 = arith.constant 1.000000e+00 : f32
    %1046 = vector.broadcast %cst_320 : f32 to vector<2x192xf32>
    %1047 = arith.addf %1046, %1045 : vector<2x192xf32>
    %1048 = arith.divf %1046, %1047 : vector<2x192xf32>
    %1049 = arith.mulf %1043, %1048 : vector<2x192xf32>
    %1050 = vector.extract_strided_slice %1049 {offsets = [0, 0], sizes = [2, 32], strides = [1, 1]} : vector<2x192xf32> to vector<2x32xf32>
    %cst_321 = arith.constant dense<0.000000e+00> : vector<2x256xf32>
    %1051 = tpu.matmul %1050, %3, %cst_321 {dimension_numbers = #tpu.dot_dimension_numbers<[1], [0], [0], [1], [0, 0, 1, 1], [], []>} : vector<2x32xf32>, vector<32x256xf32>, vector<2x256xf32> -> vector<2x256xf32>
    %1052 = vector.broadcast %4 : vector<1x256xf32> to vector<2x256xf32>
    %1053 = arith.addf %1051, %1052 : vector<2x256xf32>
    %1054 = vector.extract_strided_slice %1049 {offsets = [0, 32], sizes = [2, 32], strides = [1, 1]} : vector<2x192xf32> to vector<2x32xf32>
    %cst_322 = arith.constant dense<0.000000e+00> : vector<2x512xf32>
    %1055 = tpu.matmul %1054, %5, %cst_322 {dimension_numbers = #tpu.dot_dimension_numbers<[1], [0], [0], [1], [0, 0, 1, 1], [], []>} : vector<2x32xf32>, vector<32x512xf32>, vector<2x512xf32> -> vector<2x512xf32>
    %1056 = vector.broadcast %6 : vector<1x512xf32> to vector<2x512xf32>
    %1057 = arith.addf %1055, %1056 : vector<2x512xf32>
    %1058 = vector.extract_strided_slice %1049 {offsets = [0, 64], sizes = [2, 128], strides = [1, 1]} : vector<2x192xf32> to vector<2x128xf32>
    %cst_323 = arith.constant dense<0.000000e+00> : vector<2x34xf32>
    %1059 = tpu.matmul %1058, %7, %cst_323 {dimension_numbers = #tpu.dot_dimension_numbers<[1], [0], [0], [1], [0, 0, 1, 1], [], []>} : vector<2x128xf32>, vector<128x34xf32>, vector<2x34xf32> -> vector<2x34xf32>
    %1060 = vector.broadcast %8 : vector<1x34xf32> to vector<2x34xf32>
    %1061 = arith.addf %1059, %1060 : vector<2x34xf32>
    %1062 = arith.negf %1061 : vector<2x34xf32>
    %1063 = math.exp %1062 : vector<2x34xf32>
    %cst_324 = arith.constant 1.000000e+00 : f32
    %1064 = vector.broadcast %cst_324 : f32 to vector<2x34xf32>
    %1065 = arith.addf %1064, %1063 : vector<2x34xf32>
    %1066 = arith.divf %1064, %1065 : vector<2x34xf32>
    %1067 = vector.extract_strided_slice %1066 {offsets = [0, 0], sizes = [2, 16], strides = [1, 1]} : vector<2x34xf32> to vector<2x16xf32>
    %1068 = vector.extract_strided_slice %1066 {offsets = [0, 16], sizes = [2, 16], strides = [1, 1]} : vector<2x34xf32> to vector<2x16xf32>
    %1069 = vector.extract_strided_slice %1066 {offsets = [0, 32], sizes = [2, 1], strides = [1, 1]} : vector<2x34xf32> to vector<2x1xf32>
    %1070 = vector.extract_strided_slice %1066 {offsets = [0, 33], sizes = [2, 1], strides = [1, 1]} : vector<2x34xf32> to vector<2x1xf32>
    %1071 = arith.mulf %1069, %1070 : vector<2x1xf32>
    %1072 = vector.broadcast %1071 : vector<2x1xf32> to vector<2x256xf32>
    %1073 = arith.mulf %1072, %1053 : vector<2x256xf32>
    %1074 = arith.addf %975, %1073 : vector<2x256xf32>
    %1075 = vector.broadcast %1071 : vector<2x1xf32> to vector<2x512xf32>
    %1076 = arith.mulf %1075, %1057 : vector<2x512xf32>
    %1077 = arith.addf %978, %1076 : vector<2x512xf32>
    %1078 = tpu.concatenate %1008, %1008, %1008, %1008, %1008, %1008, %1008, %1008, %1008, %1008, %1008, %1008, %1008, %1008, %1008, %1008 in 1 : vector<2x16xf32>, vector<2x16xf32>, vector<2x16xf32>, vector<2x16xf32>, vector<2x16xf32>, vector<2x16xf32>, vector<2x16xf32>, vector<2x16xf32>, vector<2x16xf32>, vector<2x16xf32>, vector<2x16xf32>, vector<2x16xf32>, vector<2x16xf32>, vector<2x16xf32>, vector<2x16xf32>, vector<2x16xf32> -> vector<2x256xf32>
    %1079 = arith.mulf %1074, %1078 : vector<2x256xf32>
    %cst_325 = arith.constant dense<0.000000e+00> : vector<2x16xf32>
    %1080 = tpu.matmul %1079, %9, %cst_325 {dimension_numbers = #tpu.dot_dimension_numbers<[1], [0], [0], [1], [0, 0, 1, 1], [], []>} : vector<2x256xf32>, vector<256x16xf32>, vector<2x16xf32> -> vector<2x16xf32>
    %1081 = arith.mulf %1077, %1015 : vector<2x512xf32>
    %cst_326 = arith.constant dense<0.000000e+00> : vector<2x16xf32>
    %1082 = tpu.matmul %1081, %10, %cst_326 {dimension_numbers = #tpu.dot_dimension_numbers<[1], [0], [0], [1], [0, 0, 1, 1], [], []>} : vector<2x512xf32>, vector<512x16xf32>, vector<2x16xf32> -> vector<2x16xf32>
    %1083 = arith.mulf %1067, %1080 : vector<2x16xf32>
    %1084 = arith.mulf %1068, %1082 : vector<2x16xf32>
    %1085 = arith.addf %1083, %1084 : vector<2x16xf32>
    %cst_327 = arith.constant dense<0.000000e+00> : vector<2xf32>
    %1086 = vector.multi_reduction <add>, %1085, %cst_327 [1] : vector<2x16xf32> to vector<2xf32>
    %1087 = vector.shape_cast %1086 : vector<2xf32> to vector<2x1xf32>
    %cst_328 = arith.constant 1.600000e+01 : f32
    %1088 = vector.broadcast %cst_328 : f32 to vector<2x1xf32>
    %1089 = arith.divf %1087, %1088 : vector<2x1xf32>
    %1090 = vector.broadcast %1089 : vector<2x1xf32> to vector<2x16xf32>
    %1091 = arith.subf %1085, %1090 : vector<2x16xf32>
    %1092 = arith.mulf %1091, %1091 : vector<2x16xf32>
    %cst_329 = arith.constant dense<0.000000e+00> : vector<2xf32>
    %1093 = vector.multi_reduction <add>, %1092, %cst_329 [1] : vector<2x16xf32> to vector<2xf32>
    %1094 = vector.shape_cast %1093 : vector<2xf32> to vector<2x1xf32>
    %cst_330 = arith.constant 1.600000e+01 : f32
    %1095 = vector.broadcast %cst_330 : f32 to vector<2x1xf32>
    %1096 = arith.divf %1094, %1095 : vector<2x1xf32>
    %1097 = vector.broadcast %1089 : vector<2x1xf32> to vector<2x16xf32>
    %1098 = arith.subf %1085, %1097 : vector<2x16xf32>
    %cst_331 = arith.constant 9.99999974E-6 : f32
    %1099 = vector.broadcast %cst_331 : f32 to vector<2x1xf32>
    %1100 = arith.addf %1096, %1099 : vector<2x1xf32>
    %1101 = math.rsqrt %1100 : vector<2x1xf32>
    %1102 = vector.broadcast %1101 : vector<2x1xf32> to vector<2x16xf32>
    %1103 = arith.mulf %1098, %1102 : vector<2x16xf32>
    %1104 = vector.broadcast %11 : vector<1x16xf32> to vector<2x16xf32>
    %1105 = arith.mulf %1103, %1104 : vector<2x16xf32>
    %1106 = vector.broadcast %12 : vector<1x16xf32> to vector<2x16xf32>
    %1107 = arith.addf %1105, %1106 : vector<2x16xf32>
    %c20 = arith.constant 20 : index
    %c0_332 = arith.constant 0 : index
    %1108 = vector.load %arg24[%c20, %c0_332] : memref<24x16xf32, #tpu.memory_space<vmem>>, vector<2x16xf32>
    tpu.vector_store %arg24[%c20, %c0_332], %1107 {strides = array<i32>} : memref<24x16xf32, #tpu.memory_space<vmem>>, vector<2x16xf32>,
    %c11 = arith.constant 11 : index
    %c0_333 = arith.constant 0 : index
    %c0_334 = arith.constant 0 : index
    %1109 = vector.load %arg0[%c11, %c0_333, %c0_334] : memref<12x2x192xf32, #tpu.memory_space<vmem>>, vector<1x2x192xf32>
    %1110 = vector.shape_cast %1109 : vector<1x2x192xf32> to vector<2x192xf32>
    %c11_335 = arith.constant 11 : index
    %c0_336 = arith.constant 0 : index
    %c0_337 = arith.constant 0 : index
    %1111 = vector.load %arg1[%c11_335, %c0_336, %c0_337] : memref<12x2x2xf32, #tpu.memory_space<vmem>>, vector<1x2x2xf32>
    %1112 = vector.shape_cast %1111 : vector<1x2x2xf32> to vector<2x2xf32>
    %c11_338 = arith.constant 11 : index
    %c0_339 = arith.constant 0 : index
    %c0_340 = arith.constant 0 : index
    %1113 = vector.load %arg2[%c11_338, %c0_339, %c0_340] : memref<12x2x512xf32, #tpu.memory_space<vmem>>, vector<1x2x512xf32>
    %1114 = vector.shape_cast %1113 : vector<1x2x512xf32> to vector<2x512xf32>
    %cst_341 = arith.constant dense<0.000000e+00> : vector<2xf32>
    %1115 = vector.multi_reduction <add>, %1107, %cst_341 [1] : vector<2x16xf32> to vector<2xf32>
    %1116 = vector.shape_cast %1115 : vector<2xf32> to vector<2x1xf32>
    %cst_342 = arith.constant 0.020833334 : f32
    %1117 = vector.broadcast %cst_342 : f32 to vector<2x1xf32>
    %1118 = arith.mulf %1116, %1117 : vector<2x1xf32>
    %1119 = vector.extract_strided_slice %1112 {offsets = [0, 0], sizes = [2, 1], strides = [1, 1]} : vector<2x2xf32> to vector<2x1xf32>
    %1120 = arith.addf %1118, %1119 : vector<2x1xf32>
    %1121 = arith.mulf %1107, %1107 : vector<2x16xf32>
    %cst_343 = arith.constant dense<0.000000e+00> : vector<2xf32>
    %1122 = vector.multi_reduction <add>, %1121, %cst_343 [1] : vector<2x16xf32> to vector<2xf32>
    %1123 = vector.shape_cast %1122 : vector<2xf32> to vector<2x1xf32>
    %cst_344 = arith.constant 0.020833334 : f32
    %1124 = vector.broadcast %cst_344 : f32 to vector<2x1xf32>
    %1125 = arith.mulf %1123, %1124 : vector<2x1xf32>
    %1126 = vector.extract_strided_slice %1112 {offsets = [0, 1], sizes = [2, 1], strides = [1, 1]} : vector<2x2xf32> to vector<2x1xf32>
    %1127 = arith.addf %1125, %1126 : vector<2x1xf32>
    %1128 = arith.mulf %1120, %1120 : vector<2x1xf32>
    %1129 = arith.subf %1127, %1128 : vector<2x1xf32>
    %cst_345 = arith.constant 9.99999974E-6 : f32
    %1130 = vector.broadcast %cst_345 : f32 to vector<2x1xf32>
    %1131 = arith.addf %1129, %1130 : vector<2x1xf32>
    %1132 = math.rsqrt %1131 : vector<2x1xf32>
    %cst_346 = arith.constant dense<0.000000e+00> : vector<2x192xf32>
    %1133 = tpu.matmul %1107, %0, %cst_346 {dimension_numbers = #tpu.dot_dimension_numbers<[1], [0], [0], [1], [0, 0, 1, 1], [], []>} : vector<2x16xf32>, vector<16x192xf32>, vector<2x192xf32> -> vector<2x192xf32>
    %1134 = arith.addf %1133, %1110 : vector<2x192xf32>
    %1135 = vector.broadcast %1120 : vector<2x1xf32> to vector<2x192xf32>
    %1136 = vector.broadcast %1 : vector<1x192xf32> to vector<2x192xf32>
    %1137 = arith.mulf %1135, %1136 : vector<2x192xf32>
    %1138 = arith.subf %1134, %1137 : vector<2x192xf32>
    %1139 = vector.broadcast %1132 : vector<2x1xf32> to vector<2x192xf32>
    %1140 = arith.mulf %1139, %1138 : vector<2x192xf32>
    %1141 = vector.broadcast %2 : vector<1x192xf32> to vector<2x192xf32>
    %1142 = arith.addf %1140, %1141 : vector<2x192xf32>
    %1143 = arith.negf %1142 : vector<2x192xf32>
    %1144 = math.exp %1143 : vector<2x192xf32>
    %cst_347 = arith.constant 1.000000e+00 : f32
    %1145 = vector.broadcast %cst_347 : f32 to vector<2x192xf32>
    %1146 = arith.addf %1145, %1144 : vector<2x192xf32>
    %1147 = arith.divf %1145, %1146 : vector<2x192xf32>
    %1148 = arith.mulf %1142, %1147 : vector<2x192xf32>
    %1149 = vector.extract_strided_slice %1148 {offsets = [0, 0], sizes = [2, 32], strides = [1, 1]} : vector<2x192xf32> to vector<2x32xf32>
    %cst_348 = arith.constant dense<0.000000e+00> : vector<2x256xf32>
    %1150 = tpu.matmul %1149, %3, %cst_348 {dimension_numbers = #tpu.dot_dimension_numbers<[1], [0], [0], [1], [0, 0, 1, 1], [], []>} : vector<2x32xf32>, vector<32x256xf32>, vector<2x256xf32> -> vector<2x256xf32>
    %1151 = vector.broadcast %4 : vector<1x256xf32> to vector<2x256xf32>
    %1152 = arith.addf %1150, %1151 : vector<2x256xf32>
    %1153 = vector.extract_strided_slice %1148 {offsets = [0, 32], sizes = [2, 32], strides = [1, 1]} : vector<2x192xf32> to vector<2x32xf32>
    %cst_349 = arith.constant dense<0.000000e+00> : vector<2x512xf32>
    %1154 = tpu.matmul %1153, %5, %cst_349 {dimension_numbers = #tpu.dot_dimension_numbers<[1], [0], [0], [1], [0, 0, 1, 1], [], []>} : vector<2x32xf32>, vector<32x512xf32>, vector<2x512xf32> -> vector<2x512xf32>
    %1155 = vector.broadcast %6 : vector<1x512xf32> to vector<2x512xf32>
    %1156 = arith.addf %1154, %1155 : vector<2x512xf32>
    %1157 = vector.extract_strided_slice %1148 {offsets = [0, 64], sizes = [2, 128], strides = [1, 1]} : vector<2x192xf32> to vector<2x128xf32>
    %cst_350 = arith.constant dense<0.000000e+00> : vector<2x34xf32>
    %1158 = tpu.matmul %1157, %7, %cst_350 {dimension_numbers = #tpu.dot_dimension_numbers<[1], [0], [0], [1], [0, 0, 1, 1], [], []>} : vector<2x128xf32>, vector<128x34xf32>, vector<2x34xf32> -> vector<2x34xf32>
    %1159 = vector.broadcast %8 : vector<1x34xf32> to vector<2x34xf32>
    %1160 = arith.addf %1158, %1159 : vector<2x34xf32>
    %1161 = arith.negf %1160 : vector<2x34xf32>
    %1162 = math.exp %1161 : vector<2x34xf32>
    %cst_351 = arith.constant 1.000000e+00 : f32
    %1163 = vector.broadcast %cst_351 : f32 to vector<2x34xf32>
    %1164 = arith.addf %1163, %1162 : vector<2x34xf32>
    %1165 = arith.divf %1163, %1164 : vector<2x34xf32>
    %1166 = vector.extract_strided_slice %1165 {offsets = [0, 0], sizes = [2, 16], strides = [1, 1]} : vector<2x34xf32> to vector<2x16xf32>
    %1167 = vector.extract_strided_slice %1165 {offsets = [0, 16], sizes = [2, 16], strides = [1, 1]} : vector<2x34xf32> to vector<2x16xf32>
    %1168 = vector.extract_strided_slice %1165 {offsets = [0, 32], sizes = [2, 1], strides = [1, 1]} : vector<2x34xf32> to vector<2x1xf32>
    %1169 = vector.extract_strided_slice %1165 {offsets = [0, 33], sizes = [2, 1], strides = [1, 1]} : vector<2x34xf32> to vector<2x1xf32>
    %1170 = arith.mulf %1168, %1169 : vector<2x1xf32>
    %1171 = vector.broadcast %1170 : vector<2x1xf32> to vector<2x256xf32>
    %1172 = arith.mulf %1171, %1152 : vector<2x256xf32>
    %1173 = arith.addf %1074, %1172 : vector<2x256xf32>
    %1174 = vector.broadcast %1170 : vector<2x1xf32> to vector<2x512xf32>
    %1175 = arith.mulf %1174, %1156 : vector<2x512xf32>
    %1176 = arith.addf %1077, %1175 : vector<2x512xf32>
    %1177 = tpu.concatenate %1107, %1107, %1107, %1107, %1107, %1107, %1107, %1107, %1107, %1107, %1107, %1107, %1107, %1107, %1107, %1107 in 1 : vector<2x16xf32>, vector<2x16xf32>, vector<2x16xf32>, vector<2x16xf32>, vector<2x16xf32>, vector<2x16xf32>, vector<2x16xf32>, vector<2x16xf32>, vector<2x16xf32>, vector<2x16xf32>, vector<2x16xf32>, vector<2x16xf32>, vector<2x16xf32>, vector<2x16xf32>, vector<2x16xf32>, vector<2x16xf32> -> vector<2x256xf32>
    %1178 = arith.mulf %1173, %1177 : vector<2x256xf32>
    %cst_352 = arith.constant dense<0.000000e+00> : vector<2x16xf32>
    %1179 = tpu.matmul %1178, %9, %cst_352 {dimension_numbers = #tpu.dot_dimension_numbers<[1], [0], [0], [1], [0, 0, 1, 1], [], []>} : vector<2x256xf32>, vector<256x16xf32>, vector<2x16xf32> -> vector<2x16xf32>
    %1180 = arith.mulf %1176, %1114 : vector<2x512xf32>
    %cst_353 = arith.constant dense<0.000000e+00> : vector<2x16xf32>
    %1181 = tpu.matmul %1180, %10, %cst_353 {dimension_numbers = #tpu.dot_dimension_numbers<[1], [0], [0], [1], [0, 0, 1, 1], [], []>} : vector<2x512xf32>, vector<512x16xf32>, vector<2x16xf32> -> vector<2x16xf32>
    %1182 = arith.mulf %1166, %1179 : vector<2x16xf32>
    %1183 = arith.mulf %1167, %1181 : vector<2x16xf32>
    %1184 = arith.addf %1182, %1183 : vector<2x16xf32>
    %cst_354 = arith.constant dense<0.000000e+00> : vector<2xf32>
    %1185 = vector.multi_reduction <add>, %1184, %cst_354 [1] : vector<2x16xf32> to vector<2xf32>
    %1186 = vector.shape_cast %1185 : vector<2xf32> to vector<2x1xf32>
    %cst_355 = arith.constant 1.600000e+01 : f32
    %1187 = vector.broadcast %cst_355 : f32 to vector<2x1xf32>
    %1188 = arith.divf %1186, %1187 : vector<2x1xf32>
    %1189 = vector.broadcast %1188 : vector<2x1xf32> to vector<2x16xf32>
    %1190 = arith.subf %1184, %1189 : vector<2x16xf32>
    %1191 = arith.mulf %1190, %1190 : vector<2x16xf32>
    %cst_356 = arith.constant dense<0.000000e+00> : vector<2xf32>
    %1192 = vector.multi_reduction <add>, %1191, %cst_356 [1] : vector<2x16xf32> to vector<2xf32>
    %1193 = vector.shape_cast %1192 : vector<2xf32> to vector<2x1xf32>
    %cst_357 = arith.constant 1.600000e+01 : f32
    %1194 = vector.broadcast %cst_357 : f32 to vector<2x1xf32>
    %1195 = arith.divf %1193, %1194 : vector<2x1xf32>
    %1196 = vector.broadcast %1188 : vector<2x1xf32> to vector<2x16xf32>
    %1197 = arith.subf %1184, %1196 : vector<2x16xf32>
    %cst_358 = arith.constant 9.99999974E-6 : f32
    %1198 = vector.broadcast %cst_358 : f32 to vector<2x1xf32>
    %1199 = arith.addf %1195, %1198 : vector<2x1xf32>
    %1200 = math.rsqrt %1199 : vector<2x1xf32>
    %1201 = vector.broadcast %1200 : vector<2x1xf32> to vector<2x16xf32>
    %1202 = arith.mulf %1197, %1201 : vector<2x16xf32>
    %1203 = vector.broadcast %11 : vector<1x16xf32> to vector<2x16xf32>
    %1204 = arith.mulf %1202, %1203 : vector<2x16xf32>
    %1205 = vector.broadcast %12 : vector<1x16xf32> to vector<2x16xf32>
    %1206 = arith.addf %1204, %1205 : vector<2x16xf32>
    %c22 = arith.constant 22 : index
    %c0_359 = arith.constant 0 : index
    %1207 = vector.load %arg24[%c22, %c0_359] : memref<24x16xf32, #tpu.memory_space<vmem>>, vector<2x16xf32>
    tpu.vector_store %arg24[%c22, %c0_359], %1206 {strides = array<i32>} : memref<24x16xf32, #tpu.memory_space<vmem>>, vector<2x16xf32>,
    %c0_360 = arith.constant 0 : index
    %c0_361 = arith.constant 0 : index
    %1208 = vector.load %arg23[%c0_360, %c0_361] : memref<2x16xf32, #tpu.memory_space<vmem>>, vector<2x16xf32>
    tpu.vector_store %arg23[%c0_360, %c0_361], %1206 {strides = array<i32>} : memref<2x16xf32, #tpu.memory_space<vmem>>, vector<2x16xf32>,
    %c0_362 = arith.constant 0 : index
    %c0_363 = arith.constant 0 : index
    %1209 = vector.load %arg24[%c0_362, %c0_363] : memref<24x16xf32, #tpu.memory_space<vmem>>, vector<24x16xf32>
    %c0_364 = arith.constant 0 : index
    %c0_365 = arith.constant 0 : index
    %1210 = vector.load %arg14[%c0_364, %c0_365] : memref<16x32xf32, #tpu.memory_space<vmem>>, vector<16x32xf32>
    %cst_366 = arith.constant dense<0.000000e+00> : vector<24x32xf32>
    %1211 = tpu.matmul %1209, %1210, %cst_366 {dimension_numbers = #tpu.dot_dimension_numbers<[1], [0], [0], [1], [0, 0, 1, 1], [], []>} : vector<24x16xf32>, vector<16x32xf32>, vector<24x32xf32> -> vector<24x32xf32>
    %cst_367 = arith.constant dense<0.000000e+00> : vector<24xf32>
    %1212 = vector.multi_reduction <add>, %1211, %cst_367 [1] : vector<24x32xf32> to vector<24xf32>
    %1213 = vector.shape_cast %1212 : vector<24xf32> to vector<24x1xf32>
    %cst_368 = arith.constant 3.200000e+01 : f32
    %1214 = vector.broadcast %cst_368 : f32 to vector<24x1xf32>
    %1215 = arith.divf %1213, %1214 : vector<24x1xf32>
    %1216 = arith.mulf %1211, %1211 : vector<24x32xf32>
    %cst_369 = arith.constant dense<0.000000e+00> : vector<24xf32>
    %1217 = vector.multi_reduction <add>, %1216, %cst_369 [1] : vector<24x32xf32> to vector<24xf32>
    %1218 = vector.shape_cast %1217 : vector<24xf32> to vector<24x1xf32>
    %cst_370 = arith.constant 3.200000e+01 : f32
    %1219 = vector.broadcast %cst_370 : f32 to vector<24x1xf32>
    %1220 = arith.divf %1218, %1219 : vector<24x1xf32>
    %1221 = arith.mulf %1215, %1215 : vector<24x1xf32>
    %1222 = arith.subf %1220, %1221 : vector<24x1xf32>
    %cst_371 = arith.constant 9.99999974E-6 : f32
    %1223 = vector.broadcast %cst_371 : f32 to vector<24x1xf32>
    %1224 = arith.addf %1222, %1223 : vector<24x1xf32>
    %1225 = math.rsqrt %1224 : vector<24x1xf32>
    %c0_372 = arith.constant 0 : index
    %c0_373 = arith.constant 0 : index
    %1226 = vector.load %arg17[%c0_372, %c0_373] : memref<32x64xf32, #tpu.memory_space<vmem>>, vector<32x64xf32>
    %cst_374 = arith.constant dense<0.000000e+00> : vector<24x64xf32>
    %1227 = tpu.matmul %1211, %1226, %cst_374 {dimension_numbers = #tpu.dot_dimension_numbers<[1], [0], [0], [1], [0, 0, 1, 1], [], []>} : vector<24x32xf32>, vector<32x64xf32>, vector<24x64xf32> -> vector<24x64xf32>
    %c0_375 = arith.constant 0 : index
    %c0_376 = arith.constant 0 : index
    %1228 = vector.load %arg18[%c0_375, %c0_376] : memref<1x64xf32, #tpu.memory_space<vmem>>, vector<1x64xf32>
    %1229 = vector.broadcast %1215 : vector<24x1xf32> to vector<24x64xf32>
    %1230 = vector.broadcast %1228 : vector<1x64xf32> to vector<24x64xf32>
    %1231 = arith.mulf %1229, %1230 : vector<24x64xf32>
    %1232 = arith.subf %1227, %1231 : vector<24x64xf32>
    %1233 = vector.broadcast %1225 : vector<24x1xf32> to vector<24x64xf32>
    %1234 = arith.mulf %1233, %1232 : vector<24x64xf32>
    %c0_377 = arith.constant 0 : index
    %c0_378 = arith.constant 0 : index
    %1235 = vector.load %arg19[%c0_377, %c0_378] : memref<1x64xf32, #tpu.memory_space<vmem>>, vector<1x64xf32>
    %1236 = vector.broadcast %1235 : vector<1x64xf32> to vector<24x64xf32>
    %1237 = arith.addf %1234, %1236 : vector<24x64xf32>
    %c0_379 = arith.constant 0 : index
    %c0_380 = arith.constant 0 : index
    %1238 = vector.load %arg22[%c0_379, %c0_380] : memref<24x64xf32, #tpu.memory_space<vmem>>, vector<24x64xf32>
    tpu.vector_store %arg22[%c0_379, %c0_380], %1237 {strides = array<i32>} : memref<24x64xf32, #tpu.memory_space<vmem>>, vector<24x64xf32>,
    return
  }
}

</mosaic_0001>

<bundles_post_ra>
// kernel: tile.9
= control target key start
LH: loop header
LB: loop body
LE: loop exit
PB: predicated region body
PF: predicated region fallthrough
CT: control target
= control target key end

     0   :  { %vm90_vm0 = vcmask 1043458   ;;  %vm95_vm1 = vcmask 1045508   ;;  %s142_s6 = smov 3  ;;  %vm100_vm2 = vcmask 1047558   ;;  %s145_s9 = smov 12  ;;  %vm3_vm3 = vcmask 261120   ;;  %s2600_s0 = inlined_call_operand.vmem [shape: f32[12,2,16,32], index: 0, kind: input, shape index: {}]   ;;  %s2601_s1 = inlined_call_operand.vmem [shape: f32[12,2,512], index: 1, kind: output, shape index: {}]  }
   0x1   :  { %v1477_v0 = vld [vmem:[%s2600_s0 + $0x43] ss:$16 sm:%s142_s6]   ;;  %s150_s10 = smov 48  ;;  %v1478_v1 = vld [vmem:[%s2600_s0 + $0x27] ss:$16 sm:%s145_s9]   ;;  %s155_s15 = smov 192 }
   0x2   :  { %v1479_v2 = vld [vmem:[%s2600_s0 + $0xb] ss:$16 sm:%s150_s10]   ;;  %s85_s16 = smov 3  ;;  %v148_v3 = vsel %vm90_vm0, %v1478_v1, %v1477_v0  ;;  %v1480_v4 = vld [vmem:[%s2600_s0 - $0x11] ss:$16 sm:%s155_s15]   ;;  %s88_s21 = smov 12 }
   0x3   :  { %v1469_v5 = vld [vmem:[%s2600_s0 + $0x3] ss:$16 sm:%s85_s16]   ;;  %s93_s22 = smov 48  ;;  %v153_v6 = vsel %vm95_vm1, %v1479_v2, %v148_v3  ;;  %v1470_v7 = vld [vmem:[%s2600_s0 - $0x19] ss:$16 sm:%s88_s21]   ;;  %s98_s27 = smov 192 }
   0x4   :  { %v1471_v8 = vld [vmem:[%s2600_s0 - $0x35] ss:$16 sm:%s93_s22]   ;;  %s171_s28 = smov 3  ;;  %v158_v9 = vsel %vm100_vm2, %v1480_v4, %v153_v6  ;;  %v91_v10 = vsel %vm90_vm0, %v1470_v7, %v1469_v5  ;;  %v1472_v11 = vld [vmem:[%s2600_s0 - $0x51] ss:$16 sm:%s98_s27]   ;;  %s174_s4 = smov 12 }
   0x5   :  { %v1481_v12 = vld [vmem:[%s2600_s0 + $0x63] ss:$16 sm:%s171_s28]   ;;  %s179_s5 = smov 48  ;;  %s1663_s6 = smov 96   ;;  %v96_v13 = vsel %vm95_vm1, %v1471_v8, %v91_v10  ;;  %v1482_v14 = vld [vmem:[%s2600_s0 + $0x47] ss:$16 sm:%s174_s4]  }
   0x6   :  { %159 = vrot.lane.b32.xlu1 %v158_v9, %s1663_s6  ;;  %s184_s9 = smov 192  ;;  %s113_s10 = smov 3  ;;  %v1459_v15 = vld [vmem:[%s2600_s0 + $0x40] ss:$4 sm:$0xff]   ;;  %v101_v16 = vsel %vm100_vm2, %v1472_v11, %v96_v13  ;;  %v177_v17 = vsel %vm90_vm0, %v1482_v14, %v1481_v12  ;;  %v1483_v18 = vld [vmem:[%s2600_s0 + $0x2b] ss:$16 sm:%s179_s5]  }
   0x7   :  { %v1484_v19 = vld [vmem:[%s2600_s0 + $0xf] ss:$16 sm:%s184_s9]   ;;  %s116_s17 = smov 12  ;;  %s121_s18 = smov 48  ;;  %102 = vrot.lane.b32.xlu0 %v101_v16, %s1663_s6  ;;  %v182_v20 = vsel %vm95_vm1, %v1483_v18, %v177_v17  ;;  %v2_v22 = vld [vmem:[%s2600_s0] ss:$4 sm:$0xff]  }
   0x8   :  { %18 = vst.msk [vmem:[#allocation0 + $0x40] ss:$8 sm:$0xf] %vm3_vm3, %v1459_v15   ;;  %20 = vst.msk [vmem:[#allocation0 + $0x21] ss:$8 sm:$0xf0] %vm3_vm3, %v1459_v15   ;;  %v187_v23 = vsel %vm100_vm2, %v1484_v19, %v182_v20 }
   0x9   :  { %v1473_v21 = vld [vmem:[%s2600_s0 + $0x23] ss:$16 sm:%s113_s10]   ;;  %s126_s21 = smov 192  ;;  %s229_s22 = smov 3  ;;  %v1474_v24 = vld [vmem:[%s2600_s0 + $0x7] ss:$16 sm:%s116_s17]  }
   0xa   :  { %v1475_v25 = vld [vmem:[%s2600_s0 - $0x15] ss:$16 sm:%s121_s18]   ;;  %s232_s29 = smov 12  ;;  %s237_s30 = smov 48  ;;  %188 = vrot.lane.b32.xlu1 %v187_v23, %s1663_s6  ;;  %v119_v26 = vsel %vm90_vm0, %v1474_v24, %v1473_v21  ;;  %v1460_v28 = vld [vmem:[%s2600_s0 + $0x60] ss:$4 sm:$0xff]  }
   0xb   :  { %4 = vst.msk [vmem:[#allocation0] ss:$8 sm:$0xf] %vm3_vm3, %v2_v22   ;;  %6 = vst.msk [vmem:[#allocation0 - $0x1f] ss:$8 sm:$0xf0] %vm3_vm3, %v2_v22   ;;  %v124_v29 = vsel %vm95_vm1, %v1475_v25, %v119_v26 }
   0xc   :  { %v1476_v27 = vld [vmem:[%s2600_s0 - $0x31] ss:$16 sm:%s126_s21]   ;;  %s242_s4 = smov 192  ;;  %s200_s5 = smov 3  ;;  %v1489_v30 = vld [vmem:[%s2600_s0 + $0xa3] ss:$16 sm:%s229_s22]  }
   0xd   :  { %v1490_v31 = vld [vmem:[%s2600_s0 + $0x87] ss:$16 sm:%s232_s29]   ;;  %s203_s13 = smov 12  ;;  %s208_s14 = smov 48  ;;  %v129_v32 = vsel %vm100_vm2, %v1476_v27, %v124_v29  ;;  %v1491_v34 = vld [vmem:[%s2600_s0 + $0x6b] ss:$16 sm:%s237_s30]  }
   0xe   :  { %25 = vst.msk [vmem:[#allocation0 + $0x60] ss:$8 sm:$0xf] %vm3_vm3, %v1460_v28   ;;  %27 = vst.msk [vmem:[#allocation0 + $0x41] ss:$8 sm:$0xf0] %vm3_vm3, %v1460_v28   ;;  %v235_v33 = vsel %vm90_vm0, %v1490_v31, %v1489_v30  ;;  %130 = vrot.lane.b32.xlu0 %v129_v32, %s1663_s6 }
   0xf   :  { %v1492_v35 = vld [vmem:[%s2600_s0 + $0x4f] ss:$16 sm:%s242_s4]   ;;  %s213_s19 = smov 192  ;;  %v240_v36 = vsel %vm95_vm1, %v1491_v34, %v235_v33  ;;  %v1485_v37 = vld [vmem:[%s2600_s0 + $0x83] ss:$16 sm:%s200_s5]   ;;  %s287_s22 = smov 3 }
  0x10   :  { %s290_s23 = smov 12  ;;  %v1458_v38 = vld [vmem:[%s2600_s0 + $0x20] ss:$4 sm:$0xff]   ;;  %v245_v39 = vsel %vm100_vm2, %v1492_v35, %v240_v36  ;;  %v1486_v40 = vld [vmem:[%s2600_s0 + $0x67] ss:$16 sm:%s203_s13]   ;;  %s295_s30 = smov 48 }
  0x11   :  { %v1487_v41 = vld [vmem:[%s2600_s0 + $0x4b] ss:$16 sm:%s208_s14]   ;;  %s300_s2 = smov 192  ;;  %11 = vst.msk [vmem:[#allocation0 + $0x20] ss:$8 sm:$0xf] %vm3_vm3, %v1458_v38   ;;  %246 = vrot.lane.b32.xlu1 %v245_v39, %s1663_s6  ;;  %v206_v42 = vsel %vm90_vm0, %v1486_v40, %v1485_v37 }
  0x12   :  { %13 = vst.msk [vmem:[#allocation0 + $0x1] ss:$8 sm:$0xf0] %vm3_vm3, %v1458_v38   ;;  %v1488_v43 = vld [vmem:[%s2600_s0 + $0x2f] ss:$16 sm:%s213_s19]   ;;  %s258_s5 = smov 3  ;;  %v211_v45 = vsel %vm95_vm1, %v1487_v41, %v206_v42 }
  0x13   :  { %v1462_v44 = vld [vmem:[%s2600_s0 + $0xa0] ss:$4 sm:$0xff]   ;;  %v1497_v46 = vld [vmem:[%s2600_s0 + $0xe3] ss:$16 sm:%s287_s22]   ;;  %s261_s13 = smov 12  ;;  %s266_s14 = smov 48  ;;  %v216_v48 = vsel %vm100_vm2, %v1488_v43, %v211_v45 }
  0x14   :  { %v1498_v47 = vld [vmem:[%s2600_s0 + $0xc7] ss:$16 sm:%s290_s23]   ;;  %39 = vst.msk [vmem:[#allocation0 + $0xa0] ss:$8 sm:$0xf] %vm3_vm3, %v1462_v44   ;;  %s271_s19 = smov 192  ;;  %217 = vrot.lane.b32.xlu0 %v216_v48, %s1663_s6 }
  0x15   :  { %41 = vst.msk [vmem:[#allocation0 + $0x81] ss:$8 sm:$0xf0] %vm3_vm3, %v1462_v44   ;;  %v293_v49 = vsel %vm90_vm0, %v1498_v47, %v1497_v46  ;;  %v1499_v50 = vld [vmem:[%s2600_s0 + $0xab] ss:$16 sm:%s295_s30]   ;;  %s345_s22 = smov 3 }
  0x16   :  { %v1500_v51 = vld [vmem:[%s2600_s0 + $0x8f] ss:$16 sm:%s300_s2]   ;;  %v298_v52 = vsel %vm95_vm1, %v1499_v50, %v293_v49  ;;  %v1493_v53 = vld [vmem:[%s2600_s0 + $0xc3] ss:$16 sm:%s258_s5]   ;;  %s348_s23 = smov 12  ;;  %s353_s30 = smov 48 }
  0x17   :  { %v1461_v54 = vld [vmem:[%s2600_s0 + $0x80] ss:$4 sm:$0xff]   ;;  %v303_v55 = vsel %vm100_vm2, %v1500_v51, %v298_v52  ;;  %v1494_v56 = vld [vmem:[%s2600_s0 + $0xa7] ss:$16 sm:%s261_s13]   ;;  %s358_s2 = smov 192  ;;  %s316_s5 = smov 3 }
  0x18   :  { %v1495_v57 = vld [vmem:[%s2600_s0 + $0x8b] ss:$16 sm:%s266_s14]   ;;  %32 = vst.msk [vmem:[#allocation0 + $0x80] ss:$8 sm:$0xf] %vm3_vm3, %v1461_v54   ;;  %304 = vrot.lane.b32.xlu1 %v303_v55, %s1663_s6  ;;  %v264_v58 = vsel %vm90_vm0, %v1494_v56, %v1493_v53  ;;  %s319_s13 = smov 12 }
  0x19   :  { %34 = vst.msk [vmem:[#allocation0 + $0x61] ss:$8 sm:$0xf0] %vm3_vm3, %v1461_v54   ;;  %v1496_v59 = vld [vmem:[%s2600_s0 + $0x6f] ss:$16 sm:%s271_s19]   ;;  %v269_v61 = vsel %vm95_vm1, %v1495_v57, %v264_v58  ;;  %s324_s14 = smov 48 }
  0x1a   :  { %v1464_v60 = vld [vmem:[%s2600_s0 + $0xe0] ss:$4 sm:$0xff]   ;;  %v1505_v62 = vld [vmem:[%s2600_s0 + $0x123] ss:$16 sm:%s345_s22]   ;;  %v274_v0 = vsel %vm100_vm2, %v1496_v59, %v269_v61  ;;  %s329_s19 = smov 192  ;;  %s403_s22 = smov 3 }
  0x1b   :  { %v1506_v63 = vld [vmem:[%s2600_s0 + $0x107] ss:$16 sm:%s348_s23]   ;;  %53 = vst.msk [vmem:[#allocation0 + $0xe0] ss:$8 sm:$0xf] %vm3_vm3, %v1464_v60   ;;  %275 = vrot.lane.b32.xlu0 %v274_v0, %s1663_s6  ;;  %s406_s23 = smov 12 }
  0x1c   :  { %55 = vst.msk [vmem:[#allocation0 + $0xc1] ss:$8 sm:$0xf0] %vm3_vm3, %v1464_v60   ;;  %v351_v1 = vsel %vm90_vm0, %v1506_v63, %v1505_v62  ;;  %v1507_v2 = vld [vmem:[%s2600_s0 + $0xeb] ss:$16 sm:%s353_s30]   ;;  %s411_s30 = smov 48 }
  0x1d   :  { %v1508_v3 = vld [vmem:[%s2600_s0 + $0xcf] ss:$16 sm:%s358_s2]   ;;  %v356_v4 = vsel %vm95_vm1, %v1507_v2, %v351_v1  ;;  %v1501_v5 = vld [vmem:[%s2600_s0 + $0x103] ss:$16 sm:%s316_s5]   ;;  %s416_s2 = smov 192  ;;  %s374_s5 = smov 3 }
  0x1e   :  { %v1463_v6 = vld [vmem:[%s2600_s0 + $0xc0] ss:$4 sm:$0xff]   ;;  %v361_v7 = vsel %vm100_vm2, %v1508_v3, %v356_v4  ;;  %v1502_v8 = vld [vmem:[%s2600_s0 + $0xe7] ss:$16 sm:%s319_s13]   ;;  %s377_s13 = smov 12  ;;  %s518_s21 = smov 3 }
  0x1f   :  { %v1503_v9 = vld [vmem:[%s2600_s0 + $0xcb] ss:$16 sm:%s324_s14]   ;;  %46 = vst.msk [vmem:[#allocation0 + $0xc0] ss:$8 sm:$0xf] %vm3_vm3, %v1463_v6   ;;  %362 = vrot.lane.b32.xlu1 %v361_v7, %s1663_s6  ;;  %v322_v10 = vsel %vm90_vm0, %v1502_v8, %v1501_v5  ;;  %s382_s14 = smov 48 }
  0x20   :  { %48 = vst.msk [vmem:[#allocation0 + $0xa1] ss:$8 sm:$0xf0] %vm3_vm3, %v1463_v6   ;;  %v1504_v11 = vld [vmem:[%s2600_s0 + $0xaf] ss:$16 sm:%s329_s19]   ;;  %v327_v13 = vsel %vm95_vm1, %v1503_v9, %v322_v10  ;;  %s387_s19 = smov 192 }
  0x21   :  { %v1466_v12 = vld [vmem:[%s2600_s0 + $0x120] ss:$4 sm:$0xff]   ;;  %v1513_v14 = vld [vmem:[%s2600_s0 + $0x163] ss:$16 sm:%s403_s22]   ;;  %v332_v16 = vsel %vm100_vm2, %v1504_v11, %v327_v13  ;;  %s460_s22 = smov 3  ;;  %s526_s29 = smov 48 }
  0x22   :  { %v1514_v15 = vld [vmem:[%s2600_s0 + $0x147] ss:$16 sm:%s406_s23]   ;;  %67 = vst.msk [vmem:[#allocation0 + $0x120] ss:$8 sm:$0xf] %vm3_vm3, %v1466_v12   ;;  %333 = vrot.lane.b32.xlu0 %v332_v16, %s1663_s6  ;;  %s463_s23 = smov 12 }
  0x23   :  { %69 = vst.msk [vmem:[#allocation0 + $0x101] ss:$8 sm:$0xf0] %vm3_vm3, %v1466_v12   ;;  %v409_v17 = vsel %vm90_vm0, %v1514_v15, %v1513_v14  ;;  %v1515_v18 = vld [vmem:[%s2600_s0 + $0x12b] ss:$16 sm:%s411_s30]   ;;  %s468_s30 = smov 48 }
  0x24   :  { %v1516_v19 = vld [vmem:[%s2600_s0 + $0x10f] ss:$16 sm:%s416_s2]   ;;  %v414_v20 = vsel %vm95_vm1, %v1515_v18, %v409_v17  ;;  %v1509_v21 = vld [vmem:[%s2600_s0 + $0x143] ss:$16 sm:%s374_s5]   ;;  %s473_s2 = smov 192  ;;  %s432_s5 = smov 3 }
  0x25   :  { %v1465_v22 = vld [vmem:[%s2600_s0 + $0x100] ss:$4 sm:$0xff]   ;;  %v419_v23 = vsel %vm100_vm2, %v1516_v19, %v414_v20  ;;  %v1510_v24 = vld [vmem:[%s2600_s0 + $0x127] ss:$16 sm:%s377_s13]   ;;  %s435_s13 = smov 12  ;;  %s492_s11 = smov 12 }
  0x26   :  { %v1511_v25 = vld [vmem:[%s2600_s0 + $0x10b] ss:$16 sm:%s382_s14]   ;;  %60 = vst.msk [vmem:[#allocation0 + $0x100] ss:$8 sm:$0xf] %vm3_vm3, %v1465_v22   ;;  %420 = vrot.lane.b32.xlu1 %v419_v23, %s1663_s6  ;;  %v380_v26 = vsel %vm90_vm0, %v1510_v24, %v1509_v21  ;;  %s440_s14 = smov 48 }
  0x27   :  { %62 = vst.msk [vmem:[#allocation0 + $0xe1] ss:$8 sm:$0xf0] %vm3_vm3, %v1465_v22   ;;  %v1512_v27 = vld [vmem:[%s2600_s0 + $0xef] ss:$16 sm:%s387_s19]   ;;  %v385_v29 = vsel %vm95_vm1, %v1511_v25, %v380_v26  ;;  %s445_s19 = smov 192 }
  0x28   :  { %v1468_v28 = vld [vmem:[%s2600_s0 + $0x160] ss:$4 sm:$0xff]   ;;  %v1521_v30 = vld [vmem:[%s2600_s0 + $0x22] ss:$16 sm:%s460_s22]   ;;  %v390_v32 = vsel %vm100_vm2, %v1512_v27, %v385_v29  ;;  %s521_s22 = smov 12  ;;  %s497_s12 = smov 48 }
  0x29   :  { %v1522_v31 = vld [vmem:[%s2600_s0 + $0x6] ss:$16 sm:%s463_s23]   ;;  %81 = vst.msk [vmem:[#allocation0 + $0x160] ss:$8 sm:$0xf] %vm3_vm3, %v1468_v28   ;;  %391 = vrot.lane.b32.xlu0 %v390_v32, %s1663_s6  ;;  %s502_s17 = smov 192 }
  0x2a   :  { %83 = vst.msk [vmem:[#allocation0 + $0x141] ss:$8 sm:$0xf0] %vm3_vm3, %v1468_v28   ;;  %v466_v33 = vsel %vm90_vm0, %v1522_v31, %v1521_v30  ;;  %v1523_v34 = vld [vmem:[%s2600_s0 - $0x16] ss:$16 sm:%s468_s30]   ;;  %s531_s30 = smov 192 }
  0x2b   :  { %v1524_v35 = vld [vmem:[%s2600_s0 - $0x32] ss:$16 sm:%s473_s2]   ;;  %v471_v36 = vsel %vm95_vm1, %v1523_v34, %v466_v33  ;;  %v1517_v37 = vld [vmem:[%s2600_s0 + $0x2] ss:$16 sm:%s432_s5]   ;;  %s1664_s2 = smov 64   ;;  %s489_s5 = smov 3 }
  0x2c   :  { %v1467_v38 = vld [vmem:[%s2600_s0 + $0x140] ss:$4 sm:$0xff]   ;;  %v476_v39 = vsel %vm100_vm2, %v1524_v35, %v471_v36  ;;  %v1518_v40 = vld [vmem:[%s2600_s0 - $0x1a] ss:$16 sm:%s435_s13]   ;;  %s576_s6 = smov 3  ;;  %s579_s20 = smov 12 }
  0x2d   :  { %v1519_v41 = vld [vmem:[%s2600_s0 - $0x36] ss:$16 sm:%s440_s14]   ;;  %74 = vst.msk [vmem:[#allocation0 + $0x140] ss:$8 sm:$0xf] %vm3_vm3, %v1467_v38   ;;  %477 = vrot.lane.b32.xlu1 %v476_v39, %s1664_s2  ;;  %v438_v42 = vsel %vm90_vm0, %v1518_v40, %v1517_v37  ;;  %s584_s25 = smov 48 }
  0x2e   :  { %76 = vst.msk [vmem:[#allocation0 + $0x121] ss:$8 sm:$0xf0] %vm3_vm3, %v1467_v38   ;;  %v1520_v43 = vld [vmem:[%s2600_s0 - $0x52] ss:$16 sm:%s445_s19]   ;;  %v443_v44 = vsel %vm95_vm1, %v1519_v41, %v438_v42  ;;  %s589_s26 = smov 192 }
  0x2f   :  { %v1529_v45 = vld [vmem:[%s2600_s0 + $0x62] ss:$16 sm:%s518_s21]   ;;  %v1530_v46 = vld [vmem:[%s2600_s0 + $0x46] ss:$16 sm:%s521_s22]   ;;  %v448_v47 = vsel %vm100_vm2, %v1520_v43, %v443_v44  ;;  %s550_s7 = smov 12  ;;  %s555_s8 = smov 48 }
  0x30   :  { %v524_v48 = vsel %vm90_vm0, %v1530_v46, %v1529_v45  ;;  %v1531_v49 = vld [vmem:[%s2600_s0 + $0x2a] ss:$16 sm:%s526_s29]   ;;  %v1532_v50 = vld [vmem:[%s2600_s0 + $0xe] ss:$16 sm:%s531_s30]   ;;  %s547_s29 = smov 3  ;;  %s560_s13 = smov 192 }
  0x31   :  { %449 = vrot.lane.b32.xlu0 %v448_v47, %s1664_s2  ;;  %v529_v51 = vsel %vm95_vm1, %v1531_v49, %v524_v48  ;;  %v1525_v52 = vld [vmem:[%s2600_s0 + $0x42] ss:$16 sm:%s489_s5]   ;;  %s634_s16 = smov 3  ;;  %s642_s21 = smov 48  ;;  %vm104_vm4 = vcmask 1048320   ;;  %vm451_vm5 = vcmask 785920  }
  0x32   :  { %v534_v53 = vsel %vm100_vm2, %v1532_v50, %v529_v51  ;;  %v1526_v54 = vld [vmem:[%s2600_s0 + $0x26] ss:$16 sm:%s492_s11]   ;;  %v1527_v55 = vld [vmem:[%s2600_s0 + $0xa] ss:$16 sm:%s497_s12]   ;;  %s647_s22 = smov 192  ;;  %s608_s30 = smov 12 }
  0x33   :  { %535 = vrot.lane.b32.xlu1 %v534_v53, %s1664_s2  ;;  %v495_v56 = vsel %vm90_vm0, %v1526_v54, %v1525_v52  ;;  %v1528_v57 = vld [vmem:[%s2600_s0 - $0x12] ss:$16 sm:%s502_s17]   ;;  %s637_s17 = smov 12  ;;  %s613_s3 = smov 48  ;;  %vm798_vm6 = vcmask 523520  }
  0x34   :  { %v500_v58 = vsel %vm95_vm1, %v1527_v55, %v495_v56  ;;  %v1537_v59 = vld [vmem:[%s2600_s0 + $0xa2] ss:$16 sm:%s576_s6]   ;;  %v1538_v60 = vld [vmem:[%s2600_s0 + $0x86] ss:$16 sm:%s579_s20]   ;;  %s618_s9 = smov 192  ;;  %s692_s12 = smov 3 }
  0x35   :  { %v505_v61 = vsel %vm100_vm2, %v1528_v57, %v500_v58  ;;  %v582_v62 = vsel %vm90_vm0, %v1538_v60, %v1537_v59  ;;  %v1539_v63 = vld [vmem:[%s2600_s0 + $0x6a] ss:$16 sm:%s584_s25]   ;;  %v1540_v0 = vld [vmem:[%s2600_s0 + $0x4e] ss:$16 sm:%s589_s26]   ;;  %s605_s25 = smov 3  ;;  %s700_s18 = smov 48 }
  0x36   :  { %506 = vrot.lane.b32.xlu0 %v505_v61, %s1664_s2  ;;  %v587_v1 = vsel %vm95_vm1, %v1539_v63, %v582_v62  ;;  %v1533_v2 = vld [vmem:[%s2600_s0 + $0x82] ss:$16 sm:%s547_s29]   ;;  %s705_s19 = smov 192  ;;  %s666_s26 = smov 12 }
  0x37   :  { %v592_v3 = vsel %vm100_vm2, %v1540_v0, %v587_v1  ;;  %v1534_v4 = vld [vmem:[%s2600_s0 + $0x66] ss:$16 sm:%s550_s7]   ;;  %v1535_v5 = vld [vmem:[%s2600_s0 + $0x4a] ss:$16 sm:%s555_s8]   ;;  %s671_s27 = smov 48  ;;  %s676_s4 = smov 192 }
  0x38   :  { %593 = vrot.lane.b32.xlu1 %v592_v3, %s1664_s2  ;;  %v553_v6 = vsel %vm90_vm0, %v1534_v4, %v1533_v2  ;;  %v1536_v7 = vld [vmem:[%s2600_s0 + $0x2e] ss:$16 sm:%s560_s13]   ;;  %s695_s13 = smov 12  ;;  %s750_s8 = smov 3 }
  0x39   :  { %v558_v8 = vsel %vm95_vm1, %v1535_v5, %v553_v6  ;;  %v1545_v9 = vld [vmem:[%s2600_s0 + $0xe2] ss:$16 sm:%s634_s16]   ;;  %v1546_v10 = vld [vmem:[%s2600_s0 + $0xc6] ss:$16 sm:%s637_s17]   ;;  %s758_s14 = smov 48  ;;  %s763_s15 = smov 192 }
  0x3a   :  { %v563_v11 = vsel %vm100_vm2, %v1536_v7, %v558_v8  ;;  %v640_v12 = vsel %vm90_vm0, %v1546_v10, %v1545_v9  ;;  %v1547_v13 = vld [vmem:[%s2600_s0 + $0xaa] ss:$16 sm:%s642_s21]   ;;  %v1548_v14 = vld [vmem:[%s2600_s0 + $0x8e] ss:$16 sm:%s647_s22]   ;;  %s663_s21 = smov 3  ;;  %s724_s22 = smov 12 }
  0x3b   :  { %564 = vrot.lane.b32.xlu0 %v563_v11, %s1664_s2  ;;  %v645_v15 = vsel %vm95_vm1, %v1547_v13, %v640_v12  ;;  %v1541_v16 = vld [vmem:[%s2600_s0 + $0xc2] ss:$16 sm:%s605_s25]   ;;  %s729_s23 = smov 48  ;;  %s734_s28 = smov 192 }
  0x3c   :  { %v650_v17 = vsel %vm100_vm2, %v1548_v14, %v645_v15  ;;  %v1542_v18 = vld [vmem:[%s2600_s0 + $0xa6] ss:$16 sm:%s608_s30]   ;;  %v1543_v19 = vld [vmem:[%s2600_s0 + $0x8a] ss:$16 sm:%s613_s3]   ;;  %s807_s3 = smov 3  ;;  %s815_s10 = smov 48 }
  0x3d   :  { %651 = vrot.lane.b32.xlu1 %v650_v17, %s1664_s2  ;;  %v611_v20 = vsel %vm90_vm0, %v1542_v18, %v1541_v16  ;;  %v1544_v21 = vld [vmem:[%s2600_s0 + $0x6e] ss:$16 sm:%s618_s9]   ;;  %s753_s9 = smov 12  ;;  %s820_s11 = smov 192 }
  0x3e   :  { %v616_v22 = vsel %vm95_vm1, %v1543_v19, %v611_v20  ;;  %v1553_v23 = vld [vmem:[%s2600_s0 + $0x122] ss:$16 sm:%s692_s12]   ;;  %v1554_v24 = vld [vmem:[%s2600_s0 + $0x106] ss:$16 sm:%s695_s13]   ;;  %s787_s6 = smov 48  ;;  %s792_s24 = smov 192 }
  0x3f   :  { %v621_v25 = vsel %vm100_vm2, %v1544_v21, %v616_v22  ;;  %v698_v26 = vsel %vm90_vm0, %v1554_v24, %v1553_v23  ;;  %v1555_v27 = vld [vmem:[%s2600_s0 + $0xea] ss:$16 sm:%s700_s18]   ;;  %v1556_v28 = vld [vmem:[%s2600_s0 + $0xce] ss:$16 sm:%s705_s19]   ;;  %s721_s18 = smov 3  ;;  %s782_s19 = smov 12 }
  0x40   :  { %622 = vrot.lane.b32.xlu0 %v621_v25, %s1664_s2  ;;  %v703_v29 = vsel %vm95_vm1, %v1555_v27, %v698_v26  ;;  %v1549_v30 = vld [vmem:[%s2600_s0 + $0x102] ss:$16 sm:%s663_s21]   ;;  %s878_s5 = smov 192  ;;  %s1665_s7 = smov 32  }
  0x41   :  { %v708_v31 = vsel %vm100_vm2, %v1556_v28, %v703_v29  ;;  %v1550_v32 = vld [vmem:[%s2600_s0 + $0xe6] ss:$16 sm:%s666_s26]   ;;  %v1551_v33 = vld [vmem:[%s2600_s0 + $0xca] ss:$16 sm:%s671_s27]   ;;  %s865_s26 = smov 3  ;;  %s868_s27 = smov 12 }
  0x42   :  { %709 = vrot.lane.b32.xlu1 %v708_v31, %s1664_s2  ;;  %v669_v34 = vsel %vm90_vm0, %v1550_v32, %v1549_v30  ;;  %v1552_v35 = vld [vmem:[%s2600_s0 + $0xae] ss:$16 sm:%s676_s4]   ;;  %s810_s4 = smov 12  ;;  %s844_s16 = smov 48 }
  0x43   :  { %v674_v36 = vsel %vm95_vm1, %v1551_v33, %v669_v34  ;;  %v1561_v37 = vld [vmem:[%s2600_s0 + $0x162] ss:$16 sm:%s750_s8]   ;;  %v1562_v38 = vld [vmem:[%s2600_s0 + $0x146] ss:$16 sm:%s753_s9]   ;;  %s849_s20 = smov 192  ;;  %s936_s29 = smov 192 }
  0x44   :  { %v679_v39 = vsel %vm100_vm2, %v1552_v35, %v674_v36  ;;  %v756_v40 = vsel %vm90_vm0, %v1562_v38, %v1561_v37  ;;  %v1563_v41 = vld [vmem:[%s2600_s0 + $0x12a] ss:$16 sm:%s758_s14]   ;;  %v1564_v42 = vld [vmem:[%s2600_s0 + $0x10e] ss:$16 sm:%s763_s15]   ;;  %s779_s14 = smov 3  ;;  %s839_s15 = smov 12 }
  0x45   :  { %680 = vrot.lane.b32.xlu0 %v679_v39, %s1664_s2  ;;  %v761_v43 = vsel %vm95_vm1, %v1563_v41, %v756_v40  ;;  %v1557_v44 = vld [vmem:[%s2600_s0 + $0x142] ss:$16 sm:%s721_s18]   ;;  %s902_s12 = smov 48  ;;  %s907_s17 = smov 192 }
  0x46   :  { %v766_v45 = vsel %vm100_vm2, %v1564_v42, %v761_v43  ;;  %v1558_v46 = vld [vmem:[%s2600_s0 + $0x126] ss:$16 sm:%s724_s22]   ;;  %v1559_v47 = vld [vmem:[%s2600_s0 + $0x10a] ss:$16 sm:%s729_s23]   ;;  %s923_s23 = smov 3  ;;  %s994_s25 = smov 192 }
  0x47   :  { %767 = vrot.lane.b32.xlu1 %v766_v45, %s1664_s2  ;;  %v727_v48 = vsel %vm90_vm0, %v1558_v46, %v1557_v44  ;;  %v1560_v49 = vld [vmem:[%s2600_s0 + $0xee] ss:$16 sm:%s734_s28]   ;;  %s931_s28 = smov 48  ;;  %s960_s8 = smov 48 }
  0x48   :  { %v732_v50 = vsel %vm95_vm1, %v1559_v47, %v727_v48  ;;  %v1569_v51 = vld [vmem:[%s2600_s0 + $0x21] ss:$16 sm:%s807_s3]   ;;  %v1570_v52 = vld [vmem:[%s2600_s0 + $0x5] ss:$16 sm:%s810_s4]   ;;  %s873_s4 = smov 48  ;;  %s965_s13 = smov 192 }
  0x49   :  { %v737_v53 = vsel %vm100_vm2, %v1560_v49, %v732_v50  ;;  %v813_v54 = vsel %vm90_vm0, %v1570_v52, %v1569_v51  ;;  %v1571_v55 = vld [vmem:[%s2600_s0 - $0x17] ss:$16 sm:%s815_s10]   ;;  %v1572_v56 = vld [vmem:[%s2600_s0 - $0x33] ss:$16 sm:%s820_s11]   ;;  %s836_s10 = smov 3  ;;  %s897_s11 = smov 12 }
  0x4a   :  { %738 = vrot.lane.b32.xlu0 %v737_v53, %s1664_s2  ;;  %v818_v57 = vsel %vm95_vm1, %v1571_v55, %v813_v54  ;;  %v1565_v58 = vld [vmem:[%s2600_s0 + $0x1] ss:$16 sm:%s779_s14]   ;;  %s989_s2 = smov 48  ;;  %s1047_s21 = smov 48 }
  0x4b   :  { %v823_v59 = vsel %vm100_vm2, %v1572_v56, %v818_v57  ;;  %v1566_v60 = vld [vmem:[%s2600_s0 - $0x1b] ss:$16 sm:%s782_s19]   ;;  %v1567_v61 = vld [vmem:[%s2600_s0 - $0x37] ss:$16 sm:%s787_s6]   ;;  %s981_s6 = smov 3  ;;  %s1052_s22 = smov 192 }
  0x4c   :  { %824 = vrot.lane.b32.xlu1 %v823_v59, %s1665_s7  ;;  %v785_v62 = vsel %vm90_vm0, %v1566_v60, %v1565_v58  ;;  %v1568_v63 = vld [vmem:[%s2600_s0 - $0x53] ss:$16 sm:%s792_s24]   ;;  %s926_s24 = smov 12  ;;  %s1018_s30 = smov 48 }
  0x4d   :  { %v790_v0 = vsel %vm95_vm1, %v1567_v61, %v785_v62  ;;  %v1577_v1 = vld [vmem:[%s2600_s0 + $0x61] ss:$16 sm:%s865_s26]   ;;  %v1578_v2 = vld [vmem:[%s2600_s0 + $0x45] ss:$16 sm:%s868_s27]   ;;  %s1023_s9 = smov 192  ;;  %s1105_s18 = smov 48 }
  0x4e   :  { %v795_v3 = vsel %vm100_vm2, %v1568_v63, %v790_v0  ;;  %v871_v4 = vsel %vm90_vm0, %v1578_v2, %v1577_v1  ;;  %v1579_v5 = vld [vmem:[%s2600_s0 + $0x29] ss:$16 sm:%s873_s4]   ;;  %v1580_v6 = vld [vmem:[%s2600_s0 + $0xd] ss:$16 sm:%s878_s5]   ;;  %s894_s4 = smov 3  ;;  %s955_s5 = smov 12 }
  0x4f   :  { %796 = vrot.lane.b32.xlu0 %v795_v3, %s1665_s7  ;;  %v876_v7 = vsel %vm95_vm1, %v1579_v5, %v871_v4  ;;  %v1573_v8 = vld [vmem:[%s2600_s0 + $0x41] ss:$16 sm:%s836_s10]   ;;  %s1110_s19 = smov 192  ;;  %s1076_s26 = smov 48 }
  0x50   :  { %v881_v9 = vsel %vm100_vm2, %v1580_v6, %v876_v7  ;;  %v1574_v10 = vld [vmem:[%s2600_s0 + $0x25] ss:$16 sm:%s839_s15]   ;;  %v1575_v11 = vld [vmem:[%s2600_s0 + $0x9] ss:$16 sm:%s844_s16]   ;;  %s1039_s16 = smov 3  ;;  %s1081_s3 = smov 192 }
  0x51   :  { %882 = vrot.lane.b32.xlu1 %v881_v9, %s1665_s7  ;;  %v842_v12 = vsel %vm90_vm0, %v1574_v10, %v1573_v8  ;;  %v1576_v13 = vld [vmem:[%s2600_s0 - $0x13] ss:$16 sm:%s849_s20]   ;;  %s984_s20 = smov 12 }
  0x52   :  { %v847_v14 = vsel %vm95_vm1, %v1575_v11, %v842_v12  ;;  %v1585_v15 = vld [vmem:[%s2600_s0 + $0xa1] ss:$16 sm:%s923_s23]   ;;  %v1586_v16 = vld [vmem:[%s2600_s0 + $0x85] ss:$16 sm:%s926_s24]  }
  0x53   :  { %v852_v17 = vsel %vm100_vm2, %v1576_v13, %v847_v14  ;;  %v929_v18 = vsel %vm90_vm0, %v1586_v16, %v1585_v15  ;;  %v1587_v19 = vld [vmem:[%s2600_s0 + $0x69] ss:$16 sm:%s931_s28]   ;;  %v1588_v20 = vld [vmem:[%s2600_s0 + $0x4d] ss:$16 sm:%s936_s29]   ;;  %s952_s28 = smov 3  ;;  %s1013_s29 = smov 12 }
  0x54   :  { %853 = vrot.lane.b32.xlu0 %v852_v17, %s1665_s7  ;;  %v934_v21 = vsel %vm95_vm1, %v1587_v19, %v929_v18  ;;  %v1581_v22 = vld [vmem:[%s2600_s0 + $0x81] ss:$16 sm:%s894_s4]  }
  0x55   :  { %v939_v23 = vsel %vm100_vm2, %v1588_v20, %v934_v21  ;;  %v1582_v24 = vld [vmem:[%s2600_s0 + $0x65] ss:$16 sm:%s897_s11]   ;;  %v1583_v25 = vld [vmem:[%s2600_s0 + $0x49] ss:$16 sm:%s902_s12]   ;;  %s1097_s12 = smov 3 }
  0x56   :  { %940 = vrot.lane.b32.xlu1 %v939_v23, %s1665_s7  ;;  %v900_v26 = vsel %vm90_vm0, %v1582_v24, %v1581_v22  ;;  %v1584_v27 = vld [vmem:[%s2600_s0 + $0x2d] ss:$16 sm:%s907_s17]   ;;  %s1042_s17 = smov 12 }
  0x57   :  { %v905_v28 = vsel %vm95_vm1, %v1583_v25, %v900_v26  ;;  %v1593_v29 = vld [vmem:[%s2600_s0 + $0xe1] ss:$16 sm:%s981_s6]   ;;  %v1594_v30 = vld [vmem:[%s2600_s0 + $0xc5] ss:$16 sm:%s984_s20]  }
  0x58   :  { %v910_v31 = vsel %vm100_vm2, %v1584_v27, %v905_v28  ;;  %v987_v32 = vsel %vm90_vm0, %v1594_v30, %v1593_v29  ;;  %v1595_v33 = vld [vmem:[%s2600_s0 + $0xa9] ss:$16 sm:%s989_s2]   ;;  %v1596_v34 = vld [vmem:[%s2600_s0 + $0x8d] ss:$16 sm:%s994_s25]   ;;  %s1010_s2 = smov 3  ;;  %s1071_s25 = smov 12 }
  0x59   :  { %911 = vrot.lane.b32.xlu0 %v910_v31, %s1665_s7  ;;  %v992_v35 = vsel %vm95_vm1, %v1595_v33, %v987_v32  ;;  %v1589_v36 = vld [vmem:[%s2600_s0 + $0xc1] ss:$16 sm:%s952_s28]  }
  0x5a   :  { %v997_v37 = vsel %vm100_vm2, %v1596_v34, %v992_v35  ;;  %v1590_v38 = vld [vmem:[%s2600_s0 + $0xa5] ss:$16 sm:%s955_s5]   ;;  %v1591_v39 = vld [vmem:[%s2600_s0 + $0x89] ss:$16 sm:%s960_s8]  }
  0x5b   :  { %998 = vrot.lane.b32.xlu1 %v997_v37, %s1665_s7  ;;  %v958_v40 = vsel %vm90_vm0, %v1590_v38, %v1589_v36  ;;  %v1592_v41 = vld [vmem:[%s2600_s0 + $0x6d] ss:$16 sm:%s965_s13]   ;;  %s1100_s13 = smov 12 }
  0x5c   :  { %v963_v42 = vsel %vm95_vm1, %v1591_v39, %v958_v40  ;;  %v1601_v43 = vld [vmem:[%s2600_s0 + $0x121] ss:$16 sm:%s1039_s16]   ;;  %v1602_v44 = vld [vmem:[%s2600_s0 + $0x105] ss:$16 sm:%s1042_s17]  }
  0x5d   :  { %v968_v45 = vsel %vm100_vm2, %v1592_v41, %v963_v42  ;;  %v1045_v46 = vsel %vm90_vm0, %v1602_v44, %v1601_v43  ;;  %v1603_v47 = vld [vmem:[%s2600_s0 + $0xe9] ss:$16 sm:%s1047_s21]   ;;  %v1604_v48 = vld [vmem:[%s2600_s0 + $0xcd] ss:$16 sm:%s1052_s22]   ;;  %s1068_s21 = smov 3 }
  0x5e   :  { %969 = vrot.lane.b32.xlu0 %v968_v45, %s1665_s7  ;;  %v1050_v49 = vsel %vm95_vm1, %v1603_v47, %v1045_v46  ;;  %v1597_v50 = vld [vmem:[%s2600_s0 + $0x101] ss:$16 sm:%s1010_s2]  }
  0x5f   :  { %v1055_v51 = vsel %vm100_vm2, %v1604_v48, %v1050_v49  ;;  %v1598_v52 = vld [vmem:[%s2600_s0 + $0xe5] ss:$16 sm:%s1013_s29]   ;;  %v1599_v53 = vld [vmem:[%s2600_s0 + $0xc9] ss:$16 sm:%s1018_s30]  }
  0x60   :  { %1056 = vrot.lane.b32.xlu1 %v1055_v51, %s1665_s7  ;;  %v1016_v54 = vsel %vm90_vm0, %v1598_v52, %v1597_v50  ;;  %v1600_v55 = vld [vmem:[%s2600_s0 + $0xad] ss:$16 sm:%s1023_s9]  }
  0x61   :  { %v1021_v56 = vsel %vm95_vm1, %v1599_v53, %v1016_v54  ;;  %v1609_v57 = vld [vmem:[%s2600_s0 + $0x161] ss:$16 sm:%s1097_s12]   ;;  %v1610_v58 = vld [vmem:[%s2600_s0 + $0x145] ss:$16 sm:%s1100_s13]  }
  0x62   :  { %v1026_v59 = vsel %vm100_vm2, %v1600_v55, %v1021_v56  ;;  %v1103_v60 = vsel %vm90_vm0, %v1610_v58, %v1609_v57  ;;  %v1611_v61 = vld [vmem:[%s2600_s0 + $0x129] ss:$16 sm:%s1105_s18]   ;;  %v1612_v62 = vld [vmem:[%s2600_s0 + $0x10d] ss:$16 sm:%s1110_s19]  }
  0x63   :  { %1027 = vrot.lane.b32.xlu0 %v1026_v59, %s1665_s7  ;;  %v1108_v63 = vsel %vm95_vm1, %v1611_v61, %v1103_v60  ;;  %v1605_v0 = vld [vmem:[%s2600_s0 + $0x141] ss:$16 sm:%s1068_s21]  }
  0x64   :  { %v1113_v1 = vsel %vm100_vm2, %v1612_v62, %v1108_v63  ;;  %v1606_v2 = vld [vmem:[%s2600_s0 + $0x125] ss:$16 sm:%s1071_s25]   ;;  %v1607_v3 = vld [vmem:[%s2600_s0 + $0x109] ss:$16 sm:%s1076_s26]  }
  0x65   :  { %1114 = vrot.lane.b32.xlu1 %v1113_v1, %s1665_s7  ;;  %v1074_v4 = vsel %vm90_vm0, %v1606_v2, %v1605_v0  ;;  %v1608_v5 = vld [vmem:[%s2600_s0 + $0xed] ss:$16 sm:%s1081_s3]  }
  0x66   :  { %v1079_v6 = vsel %vm95_vm1, %v1607_v3, %v1074_v4 }
  0x67   :  { %v1084_v7 = vsel %vm100_vm2, %v1608_v5, %v1079_v6 }
  0x68   :  { %1085 = vrot.lane.b32.xlu0 %v1084_v7, %s1665_s7 }
  0x78   :  { %v160_v8 = vpop.permute.xlu1 %159  }
  0x79   :  { %163 = vst.msk [vmem:[#allocation0 + $0x40] sm:$0x3] %vm104_vm4, %v160_v8   ;;  %165 = vst.msk [vmem:[#allocation0 + $0x46] sm:$0xc] %vm104_vm4, %v160_v8   ;;  %v103_v9 = vpop.permute.xlu0 %102  }
  0x7a   :  { %167 = vst.msk [vmem:[#allocation0 + $0x4c] sm:$0x30] %vm104_vm4, %v160_v8   ;;  %169 = vst.msk [vmem:[#allocation0 + $0x52] sm:$0xc0] %vm104_vm4, %v160_v8  }
  0x7b   :  { %105 = vst.msk [vmem:[#allocation0] sm:$0x3] %vm104_vm4, %v103_v9   ;;  %107 = vst.msk [vmem:[#allocation0 + $0x6] sm:$0xc] %vm104_vm4, %v103_v9  }
  0x7c   :  { %109 = vst.msk [vmem:[#allocation0 + $0xc] sm:$0x30] %vm104_vm4, %v103_v9   ;;  %111 = vst.msk [vmem:[#allocation0 + $0x12] sm:$0xc0] %vm104_vm4, %v103_v9   ;;  %v189_v10 = vpop.permute.xlu1 %188  }
  0x7d   :  { %192 = vst.msk [vmem:[#allocation0 + $0x60] sm:$0x3] %vm104_vm4, %v189_v10   ;;  %194 = vst.msk [vmem:[#allocation0 + $0x66] sm:$0xc] %vm104_vm4, %v189_v10  }
  0x7e   :  { %196 = vst.msk [vmem:[#allocation0 + $0x6c] sm:$0x30] %vm104_vm4, %v189_v10   ;;  %198 = vst.msk [vmem:[#allocation0 + $0x72] sm:$0xc0] %vm104_vm4, %v189_v10  }
  0x80   :  { %v131_v11 = vpop.permute.xlu0 %130  }
  0x81   :  { %134 = vst.msk [vmem:[#allocation0 + $0x20] sm:$0x3] %vm104_vm4, %v131_v11   ;;  %136 = vst.msk [vmem:[#allocation0 + $0x26] sm:$0xc] %vm104_vm4, %v131_v11  }
  0x82   :  { %138 = vst.msk [vmem:[#allocation0 + $0x2c] sm:$0x30] %vm104_vm4, %v131_v11   ;;  %140 = vst.msk [vmem:[#allocation0 + $0x32] sm:$0xc0] %vm104_vm4, %v131_v11  }
  0x83   :  { %v247_v12 = vpop.permute.xlu1 %246  }
  0x84   :  { %250 = vst.msk [vmem:[#allocation0 + $0xa0] sm:$0x3] %vm104_vm4, %v247_v12   ;;  %252 = vst.msk [vmem:[#allocation0 + $0xa6] sm:$0xc] %vm104_vm4, %v247_v12  }
  0x85   :  { %254 = vst.msk [vmem:[#allocation0 + $0xac] sm:$0x30] %vm104_vm4, %v247_v12   ;;  %256 = vst.msk [vmem:[#allocation0 + $0xb2] sm:$0xc0] %vm104_vm4, %v247_v12  }
  0x86   :  { %v218_v13 = vpop.permute.xlu0 %217  }
  0x87   :  { %221 = vst.msk [vmem:[#allocation0 + $0x80] sm:$0x3] %vm104_vm4, %v218_v13   ;;  %223 = vst.msk [vmem:[#allocation0 + $0x86] sm:$0xc] %vm104_vm4, %v218_v13  }
  0x88   :  { %225 = vst.msk [vmem:[#allocation0 + $0x8c] sm:$0x30] %vm104_vm4, %v218_v13   ;;  %227 = vst.msk [vmem:[#allocation0 + $0x92] sm:$0xc0] %vm104_vm4, %v218_v13  }
  0x8a   :  { %v305_v14 = vpop.permute.xlu1 %304  }
  0x8b   :  { %308 = vst.msk [vmem:[#allocation0 + $0xe0] sm:$0x3] %vm104_vm4, %v305_v14   ;;  %310 = vst.msk [vmem:[#allocation0 + $0xe6] sm:$0xc] %vm104_vm4, %v305_v14  }
  0x8c   :  { %312 = vst.msk [vmem:[#allocation0 + $0xec] sm:$0x30] %vm104_vm4, %v305_v14   ;;  %314 = vst.msk [vmem:[#allocation0 + $0xf2] sm:$0xc0] %vm104_vm4, %v305_v14  }
  0x8d   :  { %v276_v15 = vpop.permute.xlu0 %275  }
  0x8e   :  { %279 = vst.msk [vmem:[#allocation0 + $0xc0] sm:$0x3] %vm104_vm4, %v276_v15   ;;  %281 = vst.msk [vmem:[#allocation0 + $0xc6] sm:$0xc] %vm104_vm4, %v276_v15  }
  0x8f   :  { %283 = vst.msk [vmem:[#allocation0 + $0xcc] sm:$0x30] %vm104_vm4, %v276_v15   ;;  %285 = vst.msk [vmem:[#allocation0 + $0xd2] sm:$0xc0] %vm104_vm4, %v276_v15  }
  0x91   :  { %v363_v16 = vpop.permute.xlu1 %362  }
  0x92   :  { %366 = vst.msk [vmem:[#allocation0 + $0x120] sm:$0x3] %vm104_vm4, %v363_v16   ;;  %368 = vst.msk [vmem:[#allocation0 + $0x126] sm:$0xc] %vm104_vm4, %v363_v16  }
  0x93   :  { %370 = vst.msk [vmem:[#allocation0 + $0x12c] sm:$0x30] %vm104_vm4, %v363_v16   ;;  %372 = vst.msk [vmem:[#allocation0 + $0x132] sm:$0xc0] %vm104_vm4, %v363_v16  }
  0x94   :  { %v334_v17 = vpop.permute.xlu0 %333  }
  0x95   :  { %337 = vst.msk [vmem:[#allocation0 + $0x100] sm:$0x3] %vm104_vm4, %v334_v17   ;;  %339 = vst.msk [vmem:[#allocation0 + $0x106] sm:$0xc] %vm104_vm4, %v334_v17  }
  0x96   :  { %341 = vst.msk [vmem:[#allocation0 + $0x10c] sm:$0x30] %vm104_vm4, %v334_v17   ;;  %343 = vst.msk [vmem:[#allocation0 + $0x112] sm:$0xc0] %vm104_vm4, %v334_v17  }
  0x98   :  { %v421_v18 = vpop.permute.xlu1 %420  }
  0x99   :  { %424 = vst.msk [vmem:[#allocation0 + $0x160] sm:$0x3] %vm104_vm4, %v421_v18   ;;  %426 = vst.msk [vmem:[#allocation0 + $0x166] sm:$0xc] %vm104_vm4, %v421_v18  }
  0x9a   :  { %428 = vst.msk [vmem:[#allocation0 + $0x16c] sm:$0x30] %vm104_vm4, %v421_v18   ;;  %430 = vst.msk [vmem:[#allocation0 + $0x172] sm:$0xc0] %vm104_vm4, %v421_v18  }
  0x9b   :  { %v392_v19 = vpop.permute.xlu0 %391  }
  0x9c   :  { %395 = vst.msk [vmem:[#allocation0 + $0x140] sm:$0x3] %vm104_vm4, %v392_v19   ;;  %397 = vst.msk [vmem:[#allocation0 + $0x146] sm:$0xc] %vm104_vm4, %v392_v19  }
  0x9d   :  { %399 = vst.msk [vmem:[#allocation0 + $0x14c] sm:$0x30] %vm104_vm4, %v392_v19   ;;  %401 = vst.msk [vmem:[#allocation0 + $0x152] sm:$0xc0] %vm104_vm4, %v392_v19  }
  0x9f   :  { %v478_v20 = vpop.permute.xlu1 %477  }
  0xa0   :  { %481 = vst.msk [vmem:[#allocation0 + $0x20] sm:$0x3] %vm451_vm5, %v478_v20   ;;  %483 = vst.msk [vmem:[#allocation0 + $0x26] sm:$0xc] %vm451_vm5, %v478_v20  }
  0xa1   :  { %485 = vst.msk [vmem:[#allocation0 + $0x2c] sm:$0x30] %vm451_vm5, %v478_v20   ;;  %487 = vst.msk [vmem:[#allocation0 + $0x32] sm:$0xc0] %vm451_vm5, %v478_v20  }
  0xa3   :  { %v450_v21 = vpop.permute.xlu0 %449  }
  0xa4   :  { %452 = vst.msk [vmem:[#allocation0] sm:$0x3] %vm451_vm5, %v450_v21   ;;  %454 = vst.msk [vmem:[#allocation0 + $0x6] sm:$0xc] %vm451_vm5, %v450_v21  }
  0xa5   :  { %456 = vst.msk [vmem:[#allocation0 + $0xc] sm:$0x30] %vm451_vm5, %v450_v21   ;;  %458 = vst.msk [vmem:[#allocation0 + $0x12] sm:$0xc0] %vm451_vm5, %v450_v21   ;;  %v536_v22 = vpop.permute.xlu1 %535  }
  0xa6   :  { %539 = vst.msk [vmem:[#allocation0 + $0x60] sm:$0x3] %vm451_vm5, %v536_v22   ;;  %541 = vst.msk [vmem:[#allocation0 + $0x66] sm:$0xc] %vm451_vm5, %v536_v22  }
  0xa7   :  { %543 = vst.msk [vmem:[#allocation0 + $0x6c] sm:$0x30] %vm451_vm5, %v536_v22   ;;  %545 = vst.msk [vmem:[#allocation0 + $0x72] sm:$0xc0] %vm451_vm5, %v536_v22  }
  0xa8   :  { %v507_v23 = vpop.permute.xlu0 %506  }
  0xa9   :  { %510 = vst.msk [vmem:[#allocation0 + $0x40] sm:$0x3] %vm451_vm5, %v507_v23   ;;  %512 = vst.msk [vmem:[#allocation0 + $0x46] sm:$0xc] %vm451_vm5, %v507_v23  }
  0xaa   :  { %514 = vst.msk [vmem:[#allocation0 + $0x4c] sm:$0x30] %vm451_vm5, %v507_v23   ;;  %516 = vst.msk [vmem:[#allocation0 + $0x52] sm:$0xc0] %vm451_vm5, %v507_v23   ;;  %v594_v24 = vpop.permute.xlu1 %593  }
  0xab   :  { %597 = vst.msk [vmem:[#allocation0 + $0xa0] sm:$0x3] %vm451_vm5, %v594_v24   ;;  %599 = vst.msk [vmem:[#allocation0 + $0xa6] sm:$0xc] %vm451_vm5, %v594_v24  }
  0xac   :  { %601 = vst.msk [vmem:[#allocation0 + $0xac] sm:$0x30] %vm451_vm5, %v594_v24   ;;  %603 = vst.msk [vmem:[#allocation0 + $0xb2] sm:$0xc0] %vm451_vm5, %v594_v24  }
  0xad   :  { %v565_v25 = vpop.permute.xlu0 %564  }
  0xae   :  { %568 = vst.msk [vmem:[#allocation0 + $0x80] sm:$0x3] %vm451_vm5, %v565_v25   ;;  %570 = vst.msk [vmem:[#allocation0 + $0x86] sm:$0xc] %vm451_vm5, %v565_v25  }
  0xaf   :  { %572 = vst.msk [vmem:[#allocation0 + $0x8c] sm:$0x30] %vm451_vm5, %v565_v25   ;;  %574 = vst.msk [vmem:[#allocation0 + $0x92] sm:$0xc0] %vm451_vm5, %v565_v25   ;;  %v652_v26 = vpop.permute.xlu1 %651  }
  0xb0   :  { %655 = vst.msk [vmem:[#allocation0 + $0xe0] sm:$0x3] %vm451_vm5, %v652_v26   ;;  %657 = vst.msk [vmem:[#allocation0 + $0xe6] sm:$0xc] %vm451_vm5, %v652_v26  }
  0xb1   :  { %659 = vst.msk [vmem:[#allocation0 + $0xec] sm:$0x30] %vm451_vm5, %v652_v26   ;;  %661 = vst.msk [vmem:[#allocation0 + $0xf2] sm:$0xc0] %vm451_vm5, %v652_v26  }
  0xb2   :  { %v623_v27 = vpop.permute.xlu0 %622  }
  0xb3   :  { %626 = vst.msk [vmem:[#allocation0 + $0xc0] sm:$0x3] %vm451_vm5, %v623_v27   ;;  %628 = vst.msk [vmem:[#allocation0 + $0xc6] sm:$0xc] %vm451_vm5, %v623_v27  }
  0xb4   :  { %630 = vst.msk [vmem:[#allocation0 + $0xcc] sm:$0x30] %vm451_vm5, %v623_v27   ;;  %632 = vst.msk [vmem:[#allocation0 + $0xd2] sm:$0xc0] %vm451_vm5, %v623_v27   ;;  %v710_v28 = vpop.permute.xlu1 %709  }
  0xb5   :  { %713 = vst.msk [vmem:[#allocation0 + $0x120] sm:$0x3] %vm451_vm5, %v710_v28   ;;  %715 = vst.msk [vmem:[#allocation0 + $0x126] sm:$0xc] %vm451_vm5, %v710_v28  }
  0xb6   :  { %717 = vst.msk [vmem:[#allocation0 + $0x12c] sm:$0x30] %vm451_vm5, %v710_v28   ;;  %719 = vst.msk [vmem:[#allocation0 + $0x132] sm:$0xc0] %vm451_vm5, %v710_v28  }
  0xb7   :  { %v681_v29 = vpop.permute.xlu0 %680  }
  0xb8   :  { %684 = vst.msk [vmem:[#allocation0 + $0x100] sm:$0x3] %vm451_vm5, %v681_v29   ;;  %686 = vst.msk [vmem:[#allocation0 + $0x106] sm:$0xc] %vm451_vm5, %v681_v29  }
  0xb9   :  { %688 = vst.msk [vmem:[#allocation0 + $0x10c] sm:$0x30] %vm451_vm5, %v681_v29   ;;  %690 = vst.msk [vmem:[#allocation0 + $0x112] sm:$0xc0] %vm451_vm5, %v681_v29   ;;  %v768_v30 = vpop.permute.xlu1 %767  }
  0xba   :  { %771 = vst.msk [vmem:[#allocation0 + $0x160] sm:$0x3] %vm451_vm5, %v768_v30   ;;  %773 = vst.msk [vmem:[#allocation0 + $0x166] sm:$0xc] %vm451_vm5, %v768_v30  }
  0xbb   :  { %775 = vst.msk [vmem:[#allocation0 + $0x16c] sm:$0x30] %vm451_vm5, %v768_v30   ;;  %777 = vst.msk [vmem:[#allocation0 + $0x172] sm:$0xc0] %vm451_vm5, %v768_v30  }
  0xbc   :  { %v739_v31 = vpop.permute.xlu0 %738  }
  0xbd   :  { %742 = vst.msk [vmem:[#allocation0 + $0x140] sm:$0x3] %vm451_vm5, %v739_v31   ;;  %744 = vst.msk [vmem:[#allocation0 + $0x146] sm:$0xc] %vm451_vm5, %v739_v31  }
  0xbe   :  { %746 = vst.msk [vmem:[#allocation0 + $0x14c] sm:$0x30] %vm451_vm5, %v739_v31   ;;  %748 = vst.msk [vmem:[#allocation0 + $0x152] sm:$0xc0] %vm451_vm5, %v739_v31   ;;  %v825_v32 = vpop.permute.xlu1 %824  }
  0xbf   :  { %828 = vst.msk [vmem:[#allocation0 + $0x20] sm:$0x3] %vm798_vm6, %v825_v32   ;;  %830 = vst.msk [vmem:[#allocation0 + $0x26] sm:$0xc] %vm798_vm6, %v825_v32  }
  0xc0   :  { %832 = vst.msk [vmem:[#allocation0 + $0x2c] sm:$0x30] %vm798_vm6, %v825_v32   ;;  %834 = vst.msk [vmem:[#allocation0 + $0x32] sm:$0xc0] %vm798_vm6, %v825_v32  }
  0xc1   :  { %v797_v33 = vpop.permute.xlu0 %796  }
  0xc2   :  { %799 = vst.msk [vmem:[#allocation0] sm:$0x3] %vm798_vm6, %v797_v33   ;;  %801 = vst.msk [vmem:[#allocation0 + $0x6] sm:$0xc] %vm798_vm6, %v797_v33  }
  0xc3   :  { %803 = vst.msk [vmem:[#allocation0 + $0xc] sm:$0x30] %vm798_vm6, %v797_v33   ;;  %805 = vst.msk [vmem:[#allocation0 + $0x12] sm:$0xc0] %vm798_vm6, %v797_v33   ;;  %v883_v34 = vpop.permute.xlu1 %882  }
  0xc4   :  { %886 = vst.msk [vmem:[#allocation0 + $0x60] sm:$0x3] %vm798_vm6, %v883_v34   ;;  %888 = vst.msk [vmem:[#allocation0 + $0x66] sm:$0xc] %vm798_vm6, %v883_v34  }
  0xc5   :  { %890 = vst.msk [vmem:[#allocation0 + $0x6c] sm:$0x30] %vm798_vm6, %v883_v34   ;;  %892 = vst.msk [vmem:[#allocation0 + $0x72] sm:$0xc0] %vm798_vm6, %v883_v34  }
  0xc6   :  { %v1149_v35 = vld [vmem:[#allocation0 + $0x20] sm:$0x3]  ;;  %v1155_v36 = vld [vmem:[#allocation0 + $0x28] sm:$0x3]  ;;  %v854_v38 = vpop.permute.xlu0 %853  }
  0xc7   :  { %v1161_v37 = vld [vmem:[#allocation0 + $0x30] sm:$0x3]  ;;  %1616 = vst [vmem:[%s2601_s1 + $0x8] sm:$0x3] %v1149_v35  ;;  %1617 = vst [vmem:[%s2601_s1 + $0xa] sm:$0x3] %v1155_v36 }
  0xc8   :  { %1618 = vst [vmem:[%s2601_s1 + $0xc] sm:$0x3] %v1161_v37  ;;  %v1167_v39 = vld [vmem:[#allocation0 + $0x38] sm:$0x3]  ;;  %857 = vst.msk [vmem:[#allocation0 + $0x40] sm:$0x3] %vm798_vm6, %v854_v38   ;;  %v941_v40 = vpop.permute.xlu1 %940  }
  0xc9   :  { %859 = vst.msk [vmem:[#allocation0 + $0x46] sm:$0xc] %vm798_vm6, %v854_v38   ;;  %861 = vst.msk [vmem:[#allocation0 + $0x4c] sm:$0x30] %vm798_vm6, %v854_v38   ;;  %v1128_v41 = vld [vmem:[#allocation0] sm:$0x3] }
  0xca   :  { %863 = vst.msk [vmem:[#allocation0 + $0x52] sm:$0xc0] %vm798_vm6, %v854_v38   ;;  %1619 = vst [vmem:[%s2601_s1 + $0xe] sm:$0x3] %v1167_v39  ;;  %v1132_v42 = vld [vmem:[#allocation0 + $0x8] sm:$0x3] }
  0xcb   :  { %v1137_v43 = vld [vmem:[#allocation0 + $0x10] sm:$0x3]  ;;  %944 = vst.msk [vmem:[#allocation0 + $0xa0] sm:$0x3] %vm798_vm6, %v941_v40   ;;  %946 = vst.msk [vmem:[#allocation0 + $0xa6] sm:$0xc] %vm798_vm6, %v941_v40   ;;  %v912_v48 = vpop.permute.xlu0 %911  }
  0xcc   :  { %948 = vst.msk [vmem:[#allocation0 + $0xac] sm:$0x30] %vm798_vm6, %v941_v40   ;;  %950 = vst.msk [vmem:[#allocation0 + $0xb2] sm:$0xc0] %vm798_vm6, %v941_v40   ;;  %v1143_v44 = vld [vmem:[#allocation0 + $0x18] sm:$0x3] }
  0xcd   :  { %1130 = vst [vmem:[%s2601_s1] sm:$0x3] %v1128_v41  ;;  %1613 = vst [vmem:[%s2601_s1 + $0x2] sm:$0x3] %v1132_v42  ;;  %v1197_v45 = vld [vmem:[#allocation0 + $0x60] sm:$0x3]  ;;  %v999_v50 = vpop.permute.xlu1 %998  }
  0xce   :  { %1614 = vst [vmem:[%s2601_s1 + $0x4] sm:$0x3] %v1137_v43  ;;  %1615 = vst [vmem:[%s2601_s1 + $0x6] sm:$0x3] %v1143_v44  ;;  %v1203_v46 = vld [vmem:[#allocation0 + $0x68] sm:$0x3] }
  0xcf   :  { %v1209_v47 = vld [vmem:[#allocation0 + $0x70] sm:$0x3]  ;;  %1624 = vst [vmem:[%s2601_s1 + $0x18] sm:$0x3] %v1197_v45  ;;  %1625 = vst [vmem:[%s2601_s1 + $0x1a] sm:$0x3] %v1203_v46 }
  0xd0   :  { %1626 = vst [vmem:[%s2601_s1 + $0x1c] sm:$0x3] %v1209_v47  ;;  %v1215_v49 = vld [vmem:[#allocation0 + $0x78] sm:$0x3]  ;;  %915 = vst.msk [vmem:[#allocation0 + $0x80] sm:$0x3] %vm798_vm6, %v912_v48   ;;  %v970_v58 = vpop.permute.xlu0 %969  }
  0xd1   :  { %917 = vst.msk [vmem:[#allocation0 + $0x86] sm:$0xc] %vm798_vm6, %v912_v48   ;;  %919 = vst.msk [vmem:[#allocation0 + $0x8c] sm:$0x30] %vm798_vm6, %v912_v48   ;;  %v1173_v51 = vld [vmem:[#allocation0 + $0x40] sm:$0x3] }
  0xd2   :  { %921 = vst.msk [vmem:[#allocation0 + $0x92] sm:$0xc0] %vm798_vm6, %v912_v48   ;;  %1627 = vst [vmem:[%s2601_s1 + $0x1e] sm:$0x3] %v1215_v49  ;;  %v1179_v52 = vld [vmem:[#allocation0 + $0x48] sm:$0x3]  ;;  %v1057_v60 = vpop.permute.xlu1 %1056  }
  0xd3   :  { %v1185_v53 = vld [vmem:[#allocation0 + $0x50] sm:$0x3]  ;;  %1002 = vst.msk [vmem:[#allocation0 + $0xe0] sm:$0x3] %vm798_vm6, %v999_v50   ;;  %1004 = vst.msk [vmem:[#allocation0 + $0xe6] sm:$0xc] %vm798_vm6, %v999_v50  }
  0xd4   :  { %1006 = vst.msk [vmem:[#allocation0 + $0xec] sm:$0x30] %vm798_vm6, %v999_v50   ;;  %1008 = vst.msk [vmem:[#allocation0 + $0xf2] sm:$0xc0] %vm798_vm6, %v999_v50   ;;  %v1191_v54 = vld [vmem:[#allocation0 + $0x58] sm:$0x3] }
  0xd5   :  { %1620 = vst [vmem:[%s2601_s1 + $0x10] sm:$0x3] %v1173_v51  ;;  %1621 = vst [vmem:[%s2601_s1 + $0x12] sm:$0x3] %v1179_v52  ;;  %v1245_v55 = vld [vmem:[#allocation0 + $0xa0] sm:$0x3]  ;;  %v1028_v4 = vpop.permute.xlu0 %1027  }
  0xd6   :  { %1622 = vst [vmem:[%s2601_s1 + $0x14] sm:$0x3] %v1185_v53  ;;  %1623 = vst [vmem:[%s2601_s1 + $0x16] sm:$0x3] %v1191_v54  ;;  %v1251_v56 = vld [vmem:[#allocation0 + $0xa8] sm:$0x3] }
  0xd7   :  { %v1257_v57 = vld [vmem:[#allocation0 + $0xb0] sm:$0x3]  ;;  %1632 = vst [vmem:[%s2601_s1 + $0x28] sm:$0x3] %v1245_v55  ;;  %1633 = vst [vmem:[%s2601_s1 + $0x2a] sm:$0x3] %v1251_v56  ;;  %v1115_v6 = vpop.permute.xlu1 %1114  }
  0xd8   :  { %1634 = vst [vmem:[%s2601_s1 + $0x2c] sm:$0x3] %v1257_v57  ;;  %v1263_v59 = vld [vmem:[#allocation0 + $0xb8] sm:$0x3]  ;;  %973 = vst.msk [vmem:[#allocation0 + $0xc0] sm:$0x3] %vm798_vm6, %v970_v58  }
  0xd9   :  { %975 = vst.msk [vmem:[#allocation0 + $0xc6] sm:$0xc] %vm798_vm6, %v970_v58   ;;  %977 = vst.msk [vmem:[#allocation0 + $0xcc] sm:$0x30] %vm798_vm6, %v970_v58   ;;  %v1221_v61 = vld [vmem:[#allocation0 + $0x80] sm:$0x3] }
  0xda   :  { %979 = vst.msk [vmem:[#allocation0 + $0xd2] sm:$0xc0] %vm798_vm6, %v970_v58   ;;  %1635 = vst [vmem:[%s2601_s1 + $0x2e] sm:$0x3] %v1263_v59  ;;  %v1227_v62 = vld [vmem:[#allocation0 + $0x88] sm:$0x3]  ;;  %v1086_v14 = vpop.permute.xlu0 %1085  }
  0xdb   :  { %v1233_v63 = vld [vmem:[#allocation0 + $0x90] sm:$0x3]  ;;  %1060 = vst.msk [vmem:[#allocation0 + $0x120] sm:$0x3] %vm798_vm6, %v1057_v60   ;;  %1062 = vst.msk [vmem:[#allocation0 + $0x126] sm:$0xc] %vm798_vm6, %v1057_v60  }
  0xdc   :  { %1064 = vst.msk [vmem:[#allocation0 + $0x12c] sm:$0x30] %vm798_vm6, %v1057_v60   ;;  %1066 = vst.msk [vmem:[#allocation0 + $0x132] sm:$0xc0] %vm798_vm6, %v1057_v60   ;;  %v1239_v0 = vld [vmem:[#allocation0 + $0x98] sm:$0x3] }
  0xdd   :  { %1628 = vst [vmem:[%s2601_s1 + $0x20] sm:$0x3] %v1221_v61  ;;  %1629 = vst [vmem:[%s2601_s1 + $0x22] sm:$0x3] %v1227_v62  ;;  %v1293_v1 = vld [vmem:[#allocation0 + $0xe0] sm:$0x3] }
  0xde   :  { %1630 = vst [vmem:[%s2601_s1 + $0x24] sm:$0x3] %v1233_v63  ;;  %1631 = vst [vmem:[%s2601_s1 + $0x26] sm:$0x3] %v1239_v0  ;;  %v1299_v2 = vld [vmem:[#allocation0 + $0xe8] sm:$0x3] }
  0xdf   :  { %v1305_v3 = vld [vmem:[#allocation0 + $0xf0] sm:$0x3]  ;;  %1640 = vst [vmem:[%s2601_s1 + $0x38] sm:$0x3] %v1293_v1  ;;  %1641 = vst [vmem:[%s2601_s1 + $0x3a] sm:$0x3] %v1299_v2 }
  0xe0   :  { %1642 = vst [vmem:[%s2601_s1 + $0x3c] sm:$0x3] %v1305_v3  ;;  %v1311_v5 = vld [vmem:[#allocation0 + $0xf8] sm:$0x3]  ;;  %1031 = vst.msk [vmem:[#allocation0 + $0x100] sm:$0x3] %vm798_vm6, %v1028_v4  }
  0xe1   :  { %1033 = vst.msk [vmem:[#allocation0 + $0x106] sm:$0xc] %vm798_vm6, %v1028_v4   ;;  %1035 = vst.msk [vmem:[#allocation0 + $0x10c] sm:$0x30] %vm798_vm6, %v1028_v4   ;;  %v1269_v7 = vld [vmem:[#allocation0 + $0xc0] sm:$0x3] }
  0xe2   :  { %1037 = vst.msk [vmem:[#allocation0 + $0x112] sm:$0xc0] %vm798_vm6, %v1028_v4   ;;  %1643 = vst [vmem:[%s2601_s1 + $0x3e] sm:$0x3] %v1311_v5  ;;  %v1275_v8 = vld [vmem:[#allocation0 + $0xc8] sm:$0x3] }
  0xe3   :  { %v1281_v9 = vld [vmem:[#allocation0 + $0xd0] sm:$0x3]  ;;  %1118 = vst.msk [vmem:[#allocation0 + $0x160] sm:$0x3] %vm798_vm6, %v1115_v6   ;;  %1120 = vst.msk [vmem:[#allocation0 + $0x166] sm:$0xc] %vm798_vm6, %v1115_v6  }
  0xe4   :  { %1122 = vst.msk [vmem:[#allocation0 + $0x16c] sm:$0x30] %vm798_vm6, %v1115_v6   ;;  %1124 = vst.msk [vmem:[#allocation0 + $0x172] sm:$0xc0] %vm798_vm6, %v1115_v6   ;;  %v1287_v10 = vld [vmem:[#allocation0 + $0xd8] sm:$0x3] }
  0xe5   :  { %1636 = vst [vmem:[%s2601_s1 + $0x30] sm:$0x3] %v1269_v7  ;;  %1637 = vst [vmem:[%s2601_s1 + $0x32] sm:$0x3] %v1275_v8  ;;  %v1341_v11 = vld [vmem:[#allocation0 + $0x120] sm:$0x3] }
  0xe6   :  { %1638 = vst [vmem:[%s2601_s1 + $0x34] sm:$0x3] %v1281_v9  ;;  %1639 = vst [vmem:[%s2601_s1 + $0x36] sm:$0x3] %v1287_v10  ;;  %v1347_v12 = vld [vmem:[#allocation0 + $0x128] sm:$0x3] }
  0xe7   :  { %v1353_v13 = vld [vmem:[#allocation0 + $0x130] sm:$0x3]  ;;  %1648 = vst [vmem:[%s2601_s1 + $0x48] sm:$0x3] %v1341_v11  ;;  %1649 = vst [vmem:[%s2601_s1 + $0x4a] sm:$0x3] %v1347_v12 }
  0xe8   :  { %1650 = vst [vmem:[%s2601_s1 + $0x4c] sm:$0x3] %v1353_v13  ;;  %v1359_v15 = vld [vmem:[#allocation0 + $0x138] sm:$0x3]  ;;  %1089 = vst.msk [vmem:[#allocation0 + $0x140] sm:$0x3] %vm798_vm6, %v1086_v14  }
  0xe9   :  { %1091 = vst.msk [vmem:[#allocation0 + $0x146] sm:$0xc] %vm798_vm6, %v1086_v14   ;;  %1093 = vst.msk [vmem:[#allocation0 + $0x14c] sm:$0x30] %vm798_vm6, %v1086_v14   ;;  %v1317_v16 = vld [vmem:[#allocation0 + $0x100] sm:$0x3] }
  0xea   :  { %1095 = vst.msk [vmem:[#allocation0 + $0x152] sm:$0xc0] %vm798_vm6, %v1086_v14   ;;  %1651 = vst [vmem:[%s2601_s1 + $0x4e] sm:$0x3] %v1359_v15  ;;  %v1323_v17 = vld [vmem:[#allocation0 + $0x108] sm:$0x3] }
  0xeb   :  { %v1329_v18 = vld [vmem:[#allocation0 + $0x110] sm:$0x3]  ;;  %1644 = vst [vmem:[%s2601_s1 + $0x40] sm:$0x3] %v1317_v16  ;;  %1645 = vst [vmem:[%s2601_s1 + $0x42] sm:$0x3] %v1323_v17 }
  0xec   :  { %1646 = vst [vmem:[%s2601_s1 + $0x44] sm:$0x3] %v1329_v18  ;;  %v1335_v19 = vld [vmem:[#allocation0 + $0x118] sm:$0x3]  ;;  %v1389_v20 = vld [vmem:[#allocation0 + $0x160] sm:$0x3] }
  0xed   :  { %1647 = vst [vmem:[%s2601_s1 + $0x46] sm:$0x3] %v1335_v19  ;;  %v1395_v21 = vld [vmem:[#allocation0 + $0x168] sm:$0x3]  ;;  %v1401_v22 = vld [vmem:[#allocation0 + $0x170] sm:$0x3] }
  0xee   :  { %1656 = vst [vmem:[%s2601_s1 + $0x58] sm:$0x3] %v1389_v20  ;;  %1657 = vst [vmem:[%s2601_s1 + $0x5a] sm:$0x3] %v1395_v21  ;;  %v1407_v23 = vld [vmem:[#allocation0 + $0x178] sm:$0x3] }
  0xef   :  { %1658 = vst [vmem:[%s2601_s1 + $0x5c] sm:$0x3] %v1401_v22  ;;  %1659 = vst [vmem:[%s2601_s1 + $0x5e] sm:$0x3] %v1407_v23  ;;  %v1365_v24 = vld [vmem:[#allocation0 + $0x140] sm:$0x3] }
  0xf0   :  { %v1371_v25 = vld [vmem:[#allocation0 + $0x148] sm:$0x3]  ;;  %v1377_v26 = vld [vmem:[#allocation0 + $0x150] sm:$0x3]  ;;  %1652 = vst [vmem:[%s2601_s1 + $0x50] sm:$0x3] %v1365_v24 }
  0xf1   :  { %1653 = vst [vmem:[%s2601_s1 + $0x52] sm:$0x3] %v1371_v25  ;;  %1654 = vst [vmem:[%s2601_s1 + $0x54] sm:$0x3] %v1377_v26  ;;  %v1383_v27 = vld [vmem:[#allocation0 + $0x158] sm:$0x3] }
  0xf2   :  { %1655 = vst [vmem:[%s2601_s1 + $0x56] sm:$0x3] %v1383_v27 }

// kernel: rasm_forward.1
= control target key start
LH: loop header
LB: loop body
LE: loop exit
PB: predicated region body
PF: predicated region fallthrough
CT: control target
= control target key end

     0   :  { %s17120_s0 = inlined_call_operand.vmem [shape: f32[12,2,192], index: 0, kind: input, shape index: {}]   ;;  %s17121_s1 = inlined_call_operand.vmem [shape: f32[12,2,2], index: 1, kind: input, shape index: {}]   ;;  %s17122_s2 = inlined_call_operand.vmem [shape: f32[12,2,512], index: 2, kind: input, shape index: {}]   ;;  %s17123_s3 = inlined_call_operand.vmem [shape: f32[16,192], index: 3, kind: input, shape index: {}]   ;;  %s17124_s4 = inlined_call_operand.vmem [shape: f32[1,192], index: 4, kind: input, shape index: {}]   ;;  %s17125_s5 = inlined_call_operand.vmem [shape: f32[1,192], index: 5, kind: input, shape index: {}]   ;;  %s17126_s6 = inlined_call_operand.vmem [shape: f32[32,256], index: 6, kind: input, shape index: {}]   ;;  %s17127_s7 = inlined_call_operand.vmem [shape: f32[1,256], index: 7, kind: input, shape index: {}]   ;;  %s17128_s8 = inlined_call_operand.vmem [shape: f32[32,512], index: 8, kind: input, shape index: {}]   ;;  %s17129_s9 = inlined_call_operand.vmem [shape: f32[1,512], index: 9, kind: input, shape index: {}, may-alias: {9,21}]   ;;  %s17130_s10 = inlined_call_operand.vmem [shape: f32[128,34], index: 10, kind: input, shape index: {}]   ;;  %s17131_s11 = inlined_call_operand.vmem [shape: f32[1,34], index: 11, kind: input, shape index: {}]   ;;  %s17132_s12 = inlined_call_operand.vmem [shape: f32[256,16], index: 12, kind: input, shape index: {}]   ;;  %s17133_s13 = inlined_call_operand.vmem [shape: f32[512,16], index: 13, kind: input, shape index: {}]   ;;  %s17134_s14 = inlined_call_operand.vmem [shape: f32[16,32], index: 14, kind: input, shape index: {}]   ;;  %s17135_s15 = inlined_call_operand.vmem [shape: f32[1,16], index: 15, kind: input, shape index: {}]   ;;  %s17136_s16 = inlined_call_operand.vmem [shape: f32[1,16], index: 16, kind: input, shape index: {}]   ;;  %s17137_s17 = inlined_call_operand.vmem [shape: f32[32,64], index: 17, kind: input, shape index: {}]   ;;  %s17138_s18 = inlined_call_operand.vmem [shape: f32[1,64], index: 18, kind: input, shape index: {}]   ;;  %s17139_s19 = inlined_call_operand.vmem [shape: f32[1,64], index: 19, kind: input, shape index: {}]   ;;  %s17140_s20 = inlined_call_operand.vmem [shape: f32[1,256], index: 20, kind: input, shape index: {}]   ;;  %s17141_s21 = inlined_call_operand.vmem [shape: f32[1,512], index: 21, kind: input, shape index: {}, may-alias: {9,21}]   ;;  %s17142_s22 = inlined_call_operand.vmem [shape: f32[24,64], index: 22, kind: output, shape index: {0}]   ;;  %s17143_s23 = inlined_call_operand.hbm [shape: f32[2,16], index: 23, kind: output, shape index: {1}]  }
   0x1   :  { %17312 = sst [smem:[#allocation75_spill]] %s17120_s0 }
   0x2   :  { %17313 = sst [smem:[#allocation76_spill]] %s17121_s1 }
   0x3   :  { %17314 = sst [smem:[#allocation77_spill]] %s17122_s2 }
   0x4   :  { %17315 = sst [smem:[#allocation78_spill]] %s17123_s3 }
   0x5   :  { %17316 = sst [smem:[#allocation79_spill]] %s17124_s4 }
   0x6   :  { %17317 = sst [smem:[#allocation80_spill]] %s17125_s5 }
   0x7   :  { %17318 = sst [smem:[#allocation81_spill]] %s17126_s6 }
   0x8   :  { %17319 = sst [smem:[#allocation82_spill]] %s17127_s7 }
   0x9   :  { %s17320_s24 = sld [smem:[#allocation78_spill]]  ;;  %v17155_v3 = vmov 0.0  }
   0xa   :  { %258 = vadd.xlane.f32.xlu0 %v17155_v3  ;;  %349 = vmatprep.mubr.f32.mxu1 %v17155_v3 }
   0xf   :  { %v75_v0 = vld [vmem:[%s17320_s24 + $0x8] sm:$0xff]  ;;  %v77_v1 = vld [vmem:[%s17320_s24 + $0x18] sm:$0xff]  ;;  %v74_v2 = vld [vmem:[%s17320_s24] sm:$0xff] }
  0x10   :  { %v14053_v4 = vpack.c.bf16 %v77_v1, %v75_v0  ;;  %v76_v5 = vld [vmem:[%s17320_s24 + $0x10] sm:$0xff] }
  0x12   :  { %17321 = vst [vmem:[#allocation6_spill] sm:$0xff] %v14053_v4 }
  0x13   :  { %29 = vsyncpa [#allocation4], 0  ;;  %v14059_v6 = vpack.c.bf16 %v76_v5, %v74_v2  ;;  %585 = vmatprep.mubr.f32.mxu0 %v17155_v3  ;;  %11759 = vmatprep.subr.bf16.mxu1 %v14053_v4  ;;  %v17157_v7 = vmov 0   ;;  %s17322_s28 = sld [smem:[#allocation76_spill]]  ;;  %s13908_s29 = smov 1   ;;  %v17151_v13 = vmov 1   ;;  %v223_v48 = vlaneseq }
  0x14   :  { %13560 = vset.pattern.permute.xlu1 %v17157_v7  ;;  %s17323_s4 = sld [smem:[#allocation81_spill]]  ;;  %v90_v32 = vld [vmem:[%s17128_s8 + $0x8] sm:$0xff]  ;;  %v89_v34 = vld [vmem:[%s17128_s8] sm:$0xff]  ;;  %v92_v37 = vld [vmem:[%s17128_s8 + $0x18] sm:$0xff]  ;;  %v17153_v47 = vmov 0.0|0.0   ;;  %s17332_s3 = sld [smem:[#allocation75_spill]] }
  0x15   :  { %11761 = vmatpush1.bf16.msra.mxu1 %v14059_v6  ;;  %v94_v33 = vld [vmem:[%s17128_s8 + $0x28] sm:$0xff]  ;;  %v93_v36 = vld [vmem:[%s17128_s8 + $0x20] sm:$0xff]  ;;  %v96_v38 = vld [vmem:[%s17128_s8 + $0x38] sm:$0xff]  ;;  %v14154_v49 = vshrl.u32 %v223_v48, 7  ;;  %s17333_s24 = sld [smem:[#allocation79_spill]]  ;;  %s17335_s1 = sld [smem:[#allocation80_spill]] }
  0x16   :  { %v14117_v35 = vpack.c.bf16 %v94_v33, %v90_v32  ;;  %v14128_v39 = vpack.c.bf16 %v93_v36, %v89_v34  ;;  %v14130_v40 = vpack.c.bf16 %v96_v38, %v92_v37  ;;  %v98_v41 = vld [vmem:[%s17128_s8 + $0x48] sm:$0xff]  ;;  %v97_v43 = vld [vmem:[%s17128_s8 + $0x40] sm:$0xff]  ;;  %vm421_vm0 = vcmask 261120   ;;  %v99_v32 = vld [vmem:[%s17128_s8 + $0x50] sm:$0xff]  ;;  %s13911_s26 = smov 96   ;;  %s13912_s2 = smov 64  }
  0x17   :  { %v102_v42 = vld [vmem:[%s17128_s8 + $0x68] sm:$0xff]  ;;  %v101_v44 = vld [vmem:[%s17128_s8 + $0x60] sm:$0xff]  ;;  %v14157_v50 = vsub.s32 0, %v14154_v49  ;;  %v14160_v51 = vsub.s32 1, %v14154_v49  ;;  %v103_v33 = vld [vmem:[%s17128_s8 + $0x70] sm:$0xff]  ;;  %vm13913_vm1 = vmmov 0  }
  0x18   :  { %350 = vmatmul.mubr.f32.vlgmr.msra.gmra.mrb[0].mxu1 %v17155_v3  ;;  %17327 = vst [vmem:[#allocation10_spill] sm:$0xff] %v14117_v35  ;;  %17328 = vst [vmem:[#allocation11_spill] sm:$0xff] %v14128_v39  ;;  %11771 = vmatprep.subr.bf16.mxu0 %v14117_v35  ;;  %v14147_v45 = vpack.c.bf16 %v102_v42, %v98_v41  ;;  %v14149_v46 = vpack.c.bf16 %v101_v44, %v97_v43  ;;  %v106_v38 = vld [vmem:[%s17130_s10] sm:$0xff]  ;;  %v107_v41 = vld [vmem:[%s17130_s10 + $0x8] sm:$0xff]  ;;  %vm674_vm2 = vcmask 523264   ;;  %s13915_s30 = smov 127  }
  0x19   :  { %489 = vmatprep.mubr.f32.mxu1 %v17155_v3  ;;  %v256_v9 = vld [vmem:[%s17322_s28] sm:$0x3]  ;;  %17329 = vst [vmem:[#allocation12_spill] sm:$0xff] %v14130_v40  ;;  %11773 = vmatpush1.bf16.msra.mxu0 %v14128_v39  ;;  %v14212_v37 = vpack.c.bf16 %v103_v33, %v99_v32  ;;  %v14224_v42 = vpack.c.bf16 %v107_v41, %v106_v38  ;;  %v108_v43 = vld [vmem:[%s17130_s10 + $0x10] sm:$0xff]  ;;  %v109_v44 = vld [vmem:[%s17130_s10 + $0x18] sm:$0xff]  ;;  %s17376_s25 = sld [smem:[#allocation82_spill]] }
  0x1a   :  { %v81_v20 = vld [vmem:[%s17323_s4 + $0x8] sm:$0xff]  ;;  %v83_v21 = vld [vmem:[%s17323_s4 + $0x18] sm:$0xff]  ;;  %v80_v22 = vld [vmem:[%s17323_s4] sm:$0xff]  ;;  %17330 = vst [vmem:[#allocation13_spill] sm:$0xff] %v14147_v45  ;;  %11775 = vmatprep.subr.bf16.mxu0 %v14147_v45  ;;  %vm1024_vm3 = vcmask 123904   ;;  %vm281_vm4 = vcmask 130048  }
  0x1b   :  { %v14081_v23 = vpack.c.bf16 %v83_v21, %v81_v20  ;;  %v82_v24 = vld [vmem:[%s17323_s4 + $0x10] sm:$0xff]  ;;  %v85_v25 = vld [vmem:[%s17323_s4 + $0x28] sm:$0xff]  ;;  %v87_v26 = vld [vmem:[%s17323_s4 + $0x38] sm:$0xff]  ;;  %17331 = vst [vmem:[#allocation14_spill] sm:$0xff] %v14149_v46  ;;  %s13919_s27 = smov 48   ;;  %vm1544_vm5 = vcmask 392192  }
  0x1c   :  { %v14092_v27 = vpack.c.bf16 %v82_v24, %v80_v22  ;;  %v14094_v28 = vpack.c.bf16 %v87_v26, %v85_v25  ;;  %v84_v29 = vld [vmem:[%s17323_s4 + $0x20] sm:$0xff]  ;;  %v86_v30 = vld [vmem:[%s17323_s4 + $0x30] sm:$0xff]  ;;  %v100_v21 = vld [vmem:[%s17128_s8 + $0x58] sm:$0xff]  ;;  %s17377_s4 = sld [smem:[#allocation77_spill]]  ;;  %vm1547_vm6 = vcmask 654336   ;;  %vm1549_vm7 = vcmask 785408  }
  0x1d   :  { %11763 = vmatprep.subr.bf16.mxu1 %v14081_v23  ;;  %v14104_v31 = vpack.c.bf16 %v86_v30, %v84_v29  ;;  %11777 = vmatpush1.bf16.msra.mxu0 %v14149_v46  ;;  %v9693_v52 = vld.sshfl [vmem:[%s17332_s3] sm:$0x33 pattern:$0x76325410]  ;;  %v95_v20 = vld [vmem:[%s17128_s8 + $0x30] sm:$0xff]  ;;  %v104_v22 = vld [vmem:[%s17128_s8 + $0x78] sm:$0xff] }
  0x1e   :  { %17324 = vst [vmem:[#allocation7_spill] sm:$0xff] %v14092_v27  ;;  %17325 = vst [vmem:[#allocation8_spill] sm:$0xff] %v14094_v28  ;;  %11765 = vmatpush1.bf16.msra.mxu1 %v14092_v27  ;;  %11786 = vmatprep.subr.bf16.mxu0 %v17153_v47  ;;  %v78_v53 = vld [vmem:[%s17333_s24] sm:$0x3]  ;;  %v278_v56 = vcombine.high %v9693_v52, %v9693_v52  ;;  %v14201_v30 = vpack.c.bf16 %v104_v22, %v100_v21  ;;  %s13918_s24 = smov 112   ;;  %vm1551_vm8 = vcmask 916480  }
  0x1f   :  { %17326 = vst [vmem:[#allocation9_spill] sm:$0xff] %v14104_v31  ;;  %11767 = vmatprep.subr.bf16.mxu1 %v14094_v28  ;;  %v14169_v54 = vrot.slane %v78_v53, %v14157_v50  ;;  %v14172_v55 = vrot.slane %v78_v53, %v14160_v51  ;;  %v79_v62 = vld [vmem:[%s17335_s1] sm:$0x3] }
  0x20   :  { %v14180_v1 = vrot.slane %v79_v62, %v14157_v50  ;;  %v14183_v2 = vrot.slane %v79_v62, %v14160_v51  ;;  %v110_v53 = vld [vmem:[%s17130_s10 + $0x20] sm:$0xff]  ;;  %v115_v62 = vld [vmem:[%s17130_s10 + $0x48] sm:$0xff] }
  0x21   :  { %17334 = vst [vmem:[#allocation15_spill] sm:$0xff] %v14169_v54  ;;  %v14317_v32 = vld [vmem:[%s17131_s11] ss:$0 sm:$0xff] }
  0x22   :  { %11769 = vmatpush1.bf16.msra.mxu1 %v14104_v31  ;;  %17343 = vst [vmem:[#allocation23_spill] sm:$0xff] %v14317_v32 }
  0x23   :  { %11779 = vmatprep.subr.bf16.mxu1 %v14130_v40 }
  0x97   :  { %v259_v8 = vpop.xlane.xlu0 %258 }
  0x98   :  { %v260_v10 = vmul.f32 0.020833334, %v259_v8 }
  0x9a   :  { %v261_v11 = vadd.f32 %v260_v10, %v256_v9 }
  0x9c   :  { %358 = vperm.xlu1 %13560, %v261_v11   ;;  %v262_v12 = vmul.f32 %v261_v11, %v261_v11 }
  0x9e   :  { %264 = vrot.lane.b32.xlu0 %v262_v12, %s13908_s29 }
  0xa0   :  { %13561 = vset.pattern.permute.xlu1 %v17151_v13 }
  0xeb   :  { %v351_v14 = vpop.f32.mrb[0].mxu1 }
  0xec   :  { %v353_v15 = vpop.f32.mrb[1].mxu1  ;;  %v352_v58 = vadd.f32 %v9693_v52, %v351_v14  ;;  %v14235_v52 = vpack.c.bf16 %v109_v44, %v108_v43  ;;  %v17149_v44 = vmov 32  }
  0xed   :  { %v354_v61 = vadd.f32 %v353_v15, %v278_v56  ;;  %v111_v56 = vld [vmem:[%s17130_s10 + $0x28] sm:$0xff]  ;;  %13656 = vset.pattern.permute.xlu0 %v17149_v44 }
  0xee   :  { %17336 = vst [vmem:[#allocation16_spill] sm:$0xff] %v14235_v52 }
 0x110   :  { %v265_v16 = vpop.permute.xlu0 %264 }
 0x111   :  { %v267_v17 = vsub.f32 %v261_v11, %v265_v16 }
 0x113   :  { %v268_v18 = vadd.f32 1e-05, %v267_v17 }
 0x115   :  { %13669 = vrsqrt.f32 %v268_v18 }
 0x11b   :  { %v359_v57 = vpop.permute.xlu1 %358 }
 0x11c   :  { %v372_v59 = vmul.f32 %v14169_v54, %v359_v57  ;;  %v373_v60 = vmul.f32 %v14172_v55, %v359_v57  ;;  %v14247_v57 = vpack.c.bf16 %v111_v56, %v110_v53  ;;  %v140_v53 = vld [vmem:[%s17132_s12 + $0x88] sm:$0xff]  ;;  %v123_v56 = vld [vmem:[%s17132_s12] sm:$0xff] }
 0x11e   :  { %v375_v63 = vsub.f32 %v354_v61, %v373_v60  ;;  %v374_v0 = vsub.f32 %v352_v58, %v372_v59  ;;  %17337 = vst [vmem:[#allocation17_spill] sm:$0xff] %v14247_v57  ;;  %v112_v58 = vld [vmem:[%s17130_s10 + $0x30] sm:$0xff]  ;;  %v113_v59 = vld [vmem:[%s17130_s10 + $0x38] sm:$0xff]  ;;  %v114_v61 = vld [vmem:[%s17130_s10 + $0x40] sm:$0xff] }
 0x11f   :  { %v13670_v19 = vpop.eup %13669  ;;  %v14257_v60 = vpack.c.bf16 %v113_v59, %v112_v58  ;;  %v124_v59 = vld [vmem:[%s17132_s12 + $0x8] sm:$0xff] }
 0x120   :  { %378 = vperm.xlu1 %13561, %v13670_v19   ;;  %v91_v19 = vld [vmem:[%s17128_s8 + $0x10] sm:$0xff] }
 0x121   :  { %v14199_v25 = vpack.c.bf16 %v95_v20, %v91_v19  ;;  %17338 = vst [vmem:[#allocation18_spill] sm:$0xff] %v14257_v60 }
 0x124   :  { %13567 = vset.pattern.permute.xlu1 %v17149_v44  ;;  %v180_v44 = vld [vmem:[%s17133_s13 + $0xc8] sm:$0xff] }
 0x19f   :  { %v379_v5 = vpop.permute.xlu1 %378 }
 0x1a0   :  { %v381_v8 = vmul.f32 %v379_v5, %v374_v0  ;;  %v382_v9 = vmul.f32 %v379_v5, %v375_v63  ;;  %v14267_v63 = vpack.c.bf16 %v115_v62, %v114_v61  ;;  %v116_v0 = vld [vmem:[%s17130_s10 + $0x50] sm:$0xff]  ;;  %v117_v5 = vld [vmem:[%s17130_s10 + $0x58] sm:$0xff]  ;;  %v171_v61 = vld [vmem:[%s17133_s13 + $0x80] sm:$0xff] }
 0x1a1   :  { %v172_v62 = vld [vmem:[%s17133_s13 + $0x88] sm:$0xff] }
 0x1a2   :  { %v394_v10 = vadd.f32 %v14180_v1, %v381_v8  ;;  %v395_v11 = vadd.f32 %v14183_v2, %v382_v9  ;;  %17339 = vst [vmem:[#allocation19_spill] sm:$0xff] %v14267_v63  ;;  %v14277_v8 = vpack.c.bf16 %v117_v5, %v116_v0  ;;  %v118_v9 = vld [vmem:[%s17130_s10 + $0x60] sm:$0xff]  ;;  %v14342_v0 = vpack.c.bf16 %v124_v59, %v123_v56 }
 0x1a3   :  { %v14344_v5 = vpack.c.bf16 %v172_v62, %v171_v61  ;;  %v127_v61 = vld [vmem:[%s17132_s12 + $0x20] sm:$0xff]  ;;  %v128_v62 = vld [vmem:[%s17132_s12 + $0x28] sm:$0xff] }
 0x1a4   :  { %v9694_v12 = vmul.f32 -1.442695, %v394_v10  ;;  %v9695_v14 = vmul.f32 -1.442695, %v395_v11  ;;  %17340 = vst [vmem:[#allocation20_spill] sm:$0xff] %v14277_v8 }
 0x1a5   :  { %17344 = vst [vmem:[#allocation24_spill] sm:$0xff] %v14344_v5 }
 0x1a6   :  { %13671 = vpow2.f32 %v9694_v12  ;;  %v120_v12 = vld [vmem:[%s17130_s10 + $0x70] sm:$0xff] }
 0x1a7   :  { %13673 = vpow2.f32 %v9695_v14  ;;  %v121_v14 = vld [vmem:[%s17130_s10 + $0x78] sm:$0xff] }
 0x1b0   :  { %v13672_v15 = vpop.eup %13671 }
 0x1b1   :  { %v13674_v16 = vpop.eup %13673  ;;  %v402_v17 = vadd.f32 1.0, %v13672_v15 }
 0x1b2   :  { %v403_v18 = vadd.f32 1.0, %v13674_v16  ;;  %v14297_v16 = vpack.c.bf16 %v121_v14, %v120_v12  ;;  %v141_v12 = vld [vmem:[%s17132_s12 + $0x90] sm:$0xff] }
 0x1b3   :  { %13675 = vrcp.f32 %v402_v17 }
 0x1b4   :  { %13677 = vrcp.f32 %v403_v18  ;;  %17342 = vst [vmem:[#allocation22_spill] sm:$0xff] %v14297_v16 }
 0x1bd   :  { %v13676_v24 = vpop.eup %13675 }
 0x1be   :  { %v13678_v26 = vpop.eup %13677  ;;  %v408_v29 = vmul.f32 %v13676_v24, %v394_v10  ;;  %v119_v10 = vld [vmem:[%s17130_s10 + $0x68] sm:$0xff] }
 0x1bf   :  { %v409_v34 = vmul.f32 %v13678_v26, %v395_v11  ;;  %v14287_v11 = vpack.c.bf16 %v119_v10, %v118_v9  ;;  %v155_v9 = vld [vmem:[%s17133_s13] sm:$0xff]  ;;  %v156_v10 = vld [vmem:[%s17133_s13 + $0x8] sm:$0xff] }
 0x1c0   :  { %517 = vrot.lane.b32.xlu1 %v408_v29, %s13911_s26  ;;  %9696 = vmatmul.mubr.msk.f32.vlgmr.msra.gmra.mrb[2].mxu1 %vm421_vm0, %v408_v29  ;;  %v14356_v14 = vpack.c.bf16 %v156_v10, %v155_v9  ;;  %v175_v9 = vld [vmem:[%s17133_s13 + $0xa0] sm:$0xff]  ;;  %v176_v10 = vld [vmem:[%s17133_s13 + $0xa8] sm:$0xff] }
 0x1c1   :  { %v13562_v36 = vpack.i.bf16 %v409_v34, %v408_v29  ;;  %11781 = vmatpush1.bf16.msra.mxu1 %v14199_v25  ;;  %656 = vmatprep.mubr.f32.mxu1 %v17155_v3  ;;  %17341 = vst [vmem:[#allocation21_spill] sm:$0xff] %v14287_v11 }
 0x1c2   :  { %11783 = vmatprep.subr.bf16.mxu1 %v14201_v30  ;;  %17345 = vst [vmem:[#allocation25_spill] sm:$0xff] %v14356_v14 }
 0x1c4   :  { %13563 = vrot.lane.b32.xlu1 %v13562_v36, %s13912_s2 }
 0x1c5   :  { %11785 = vmatpush1.bf16.msra.mxu1 %v14212_v37 }
 0x232   :  { %v518_v48 = vpop.permute.xlu1 %517 }
 0x233   :  { %9697 = vmatmul.mubr.msk.f32.vlgmr.msra.gmra.mrb[0].mxu0 %vm421_vm0, %v518_v48  ;;  %9698 = vmatmul.mubr.msk.f32.vlgmr.msra.gmra.mrb[4].mxu1 %vm421_vm0, %v518_v48  ;;  %v139_v48 = vld [vmem:[%s17132_s12 + $0x80] sm:$0xff] }
 0x234   :  { %11788 = vmatpush3.bf16.msra.mxu0 %v14224_v42  ;;  %11340 = vmatprep.mubr.msk.f32.mxu0 %vm13913_vm1, %v17155_v3  ;;  %v14331_v58 = vpack.c.bf16 %v140_v53, %v139_v48  ;;  %v143_v48 = vld [vmem:[%s17132_s12 + $0xa0] sm:$0xff]  ;;  %v144_v53 = vld [vmem:[%s17132_s12 + $0xa8] sm:$0xff] }
 0x235   :  { %11789 = vmatprep.subr.bf16.mxu0 %v17153_v47  ;;  %v14397_v59 = vpack.c.bf16 %v144_v53, %v143_v48  ;;  %v130_v53 = vld [vmem:[%s17132_s12 + $0x38] sm:$0xff]  ;;  %v163_v3 = vld [vmem:[%s17133_s13 + $0x40] sm:$0xff] }
 0x236   :  { %v13564_v15 = vpop.permute.xlu1 %13563  ;;  %11811 = vmatprep.subr.bf16.mxu1 %v14331_v58 }
 0x237   :  { %v13566_v17 = vunpack.i.h.bf16 %v13564_v15  ;;  %v13565_v18 = vunpack.i.l.bf16 %v13564_v15  ;;  %v142_v15 = vld [vmem:[%s17132_s12 + $0x98] sm:$0xff]  ;;  %11813 = vmatpush3.bf16.msra.mxu1 %v14342_v0  ;;  %17350 = vst [vmem:[#allocation30_spill] sm:$0xff] %v14397_v59 }
 0x238   :  { %11791 = vmatpush3.bf16.msra.mxu0 %v14235_v52 }
 0x239   :  { %11792 = vmatprep.subr.bf16.mxu0 %v17153_v47  ;;  %v675_v19 = vsel %vm674_vm2, %v13565_v18, %v13566_v17  ;;  %v125_v17 = vld [vmem:[%s17132_s12 + $0x10] sm:$0xff]  ;;  %v126_v18 = vld [vmem:[%s17132_s12 + $0x18] sm:$0xff] }
 0x23c   :  { %11794 = vmatpush3.bf16.msra.mxu0 %v14247_v57 }
 0x23d   :  { %11795 = vmatprep.subr.bf16.mxu0 %v17153_v47 }
 0x240   :  { %11797 = vmatpush3.bf16.msra.mxu0 %v14257_v60 }
 0x241   :  { %11798 = vmatprep.subr.bf16.mxu0 %v17153_v47 }
 0x244   :  { %11800 = vmatpush3.bf16.msra.mxu0 %v14267_v63 }
 0x245   :  { %11801 = vmatprep.subr.bf16.mxu0 %v17153_v47 }
 0x248   :  { %11803 = vmatpush3.bf16.msra.mxu0 %v14277_v8 }
 0x249   :  { %11804 = vmatprep.subr.bf16.mxu0 %v17153_v47 }
 0x24c   :  { %11806 = vmatpush3.bf16.msra.mxu0 %v14287_v11 }
 0x24d   :  { %11807 = vmatprep.subr.bf16.mxu0 %v17153_v47 }
 0x250   :  { %11809 = vmatpush3.bf16.msra.mxu0 %v14297_v16 }
 0x251   :  { %11843 = vmatprep.subr.bf16.mxu0 %v14344_v5 }
 0x253   :  { %11341 = vmatmul.mubr.f32.vlgmr.msra.gmra.mrb[2].mxu0 %v675_v19  ;;  %v14369_v19 = vpack.c.bf16 %v142_v15, %v141_v12  ;;  %v159_v12 = vld [vmem:[%s17133_s13 + $0x20] sm:$0xff]  ;;  %v160_v15 = vld [vmem:[%s17133_s13 + $0x28] sm:$0xff] }
 0x254   :  { %11845 = vmatpush3.bf16.msra.mxu0 %v14356_v14 }
 0x255   :  { %17346 = vst [vmem:[#allocation26_spill] sm:$0xff] %v14369_v19  ;;  %11815 = vmatprep.subr.bf16.mxu1 %v14369_v19 }
 0x293   :  { %v14302_v20 = vpop.f32.mrb[2].mxu1 }
 0x294   :  { %v14304_v21 = vpop.f32.mrb[3].mxu1 }
 0x306   :  { %v14306_v22 = vpop.f32.mrb[0].mxu0  ;;  %v14308_v24 = vpop.f32.mrb[4].mxu1 }
 0x307   :  { %v14310_v26 = vpop.f32.mrb[1].mxu0  ;;  %v14312_v29 = vpop.f32.mrb[5].mxu1 }
 0x326   :  { %v743_v33 = vpop.f32.mrb[2].mxu0 }
 0x327   :  { %v744_v34 = vadd.f32 %v14317_v32, %v743_v33  ;;  %v11342_v36 = vpop.f32.mrb[3].mxu0  ;;  %v14371_v33 = vpack.c.bf16 %v126_v18, %v125_v17  ;;  %v14419_v17 = vpack.c.bf16 %v128_v62, %v127_v61  ;;  %v14421_v18 = vpack.c.bf16 %v176_v10, %v175_v9  ;;  %v177_v61 = vld [vmem:[%s17133_s13 + $0xb0] sm:$0xff]  ;;  %v178_v62 = vld [vmem:[%s17133_s13 + $0xb8] sm:$0xff] }
 0x328   :  { %v174_v36 = vld [vmem:[%s17133_s13 + $0x98] sm:$0xff]  ;;  %v14450_v10 = vpack.c.bf16 %v178_v62, %v177_v61  ;;  %v179_v62 = vld [vmem:[%s17133_s13 + $0xc0] sm:$0xff] }
 0x329   :  { %v9700_v38 = vmul.f32 -1.442695, %v744_v34  ;;  %17347 = vst [vmem:[#allocation27_spill] sm:$0xff] %v14371_v33  ;;  %v173_v34 = vld [vmem:[%s17133_s13 + $0x90] sm:$0xff]  ;;  %11817 = vmatpush3.bf16.msra.mxu1 %v14371_v33  ;;  %17351 = vst [vmem:[#allocation31_spill] sm:$0xff] %v14419_v17  ;;  %v14491_v7 = vpack.c.bf16 %v180_v44, %v179_v62  ;;  %v182_v44 = vld [vmem:[%s17133_s13 + $0xd8] sm:$0xff] }
 0x32a   :  { %17352 = vst [vmem:[#allocation32_spill] sm:$0xff] %v14421_v18  ;;  %11819 = vmatprep.subr.bf16.mxu1 %v14397_v59  ;;  %17355 = vst [vmem:[#allocation35_spill] sm:$0xff] %v14450_v10 }
 0x32b   :  { %13679 = vpow2.f32 %v9700_v38  ;;  %v157_v38 = vld [vmem:[%s17133_s13 + $0x10] sm:$0xff]  ;;  %17359 = vst [vmem:[#allocation39_spill] sm:$0xff] %v14491_v7 }
 0x32d   :  { %11821 = vmatpush3.bf16.msra.mxu1 %v14419_v17 }
 0x335   :  { %v13680_v41 = vpop.eup %13679 }
 0x336   :  { %v750_v43 = vadd.f32 1.0, %v13680_v41  ;;  %v14383_v41 = vpack.c.bf16 %v174_v36, %v173_v34  ;;  %v145_v34 = vld [vmem:[%s17132_s12 + $0xb0] sm:$0xff]  ;;  %v146_v36 = vld [vmem:[%s17132_s12 + $0xb8] sm:$0xff] }
 0x337   :  { %v14436_v48 = vpack.c.bf16 %v146_v36, %v145_v34  ;;  %v147_v34 = vld [vmem:[%s17132_s12 + $0xc0] sm:$0xff]  ;;  %v148_v36 = vld [vmem:[%s17132_s12 + $0xc8] sm:$0xff] }
 0x338   :  { %13681 = vrcp.f32 %v750_v43  ;;  %17348 = vst [vmem:[#allocation28_spill] sm:$0xff] %v14383_v41  ;;  %v158_v43 = vld [vmem:[%s17133_s13 + $0x18] sm:$0xff]  ;;  %11847 = vmatprep.subr.bf16.mxu0 %v14383_v41  ;;  %v14479_v47 = vpack.c.bf16 %v148_v36, %v147_v34  ;;  %v181_v36 = vld [vmem:[%s17133_s13 + $0xd0] sm:$0xff]  ;;  %v14632_v41 = vld [vmem:[%s17129_s9] sm:$0xf] }
 0x339   :  { %v14395_v56 = vpack.c.bf16 %v158_v43, %v157_v38  ;;  %v129_v38 = vld [vmem:[%s17132_s12 + $0x30] sm:$0xff]  ;;  %v14434_v43 = vpack.c.bf16 %v160_v15, %v159_v12  ;;  %17354 = vst [vmem:[#allocation34_spill] sm:$0xff] %v14436_v48  ;;  %v162_v15 = vld [vmem:[%s17133_s13 + $0x38] sm:$0xff]  ;;  %11823 = vmatprep.subr.bf16.mxu1 %v14436_v48 }
 0x33a   :  { %v161_v12 = vld [vmem:[%s17133_s13 + $0x30] sm:$0xff]  ;;  %v14467_v61 = vpack.c.bf16 %v130_v53, %v129_v38  ;;  %17358 = vst [vmem:[#allocation38_spill] sm:$0xff] %v14479_v47  ;;  %v131_v38 = vld [vmem:[%s17132_s12 + $0x40] sm:$0xff]  ;;  %v132_v53 = vld [vmem:[%s17132_s12 + $0x48] sm:$0xff] }
 0x33b   :  { %17349 = vst [vmem:[#allocation29_spill] sm:$0xff] %v14395_v56  ;;  %11849 = vmatpush3.bf16.msra.mxu0 %v14395_v56  ;;  %17353 = vst [vmem:[#allocation33_spill] sm:$0xff] %v14434_v43  ;;  %v14477_v13 = vpack.c.bf16 %v162_v15, %v161_v12  ;;  %v164_v12 = vld [vmem:[%s17133_s13 + $0x48] sm:$0xff]  ;;  %v149_v15 = vld [vmem:[%s17132_s12 + $0xd0] sm:$0xff]  ;;  %v14509_v62 = vpack.c.bf16 %v132_v53, %v131_v38  ;;  %v14527_v53 = vpack.c.bf16 %v182_v44, %v181_v36 }
 0x33c   :  { %11851 = vmatprep.subr.bf16.mxu0 %v14421_v18  ;;  %17356 = vst [vmem:[#allocation36_spill] sm:$0xff] %v14467_v61  ;;  %v150_v34 = vld [vmem:[%s17132_s12 + $0xd8] sm:$0xff]  ;;  %11825 = vmatpush3.bf16.msra.mxu1 %v14467_v61  ;;  %v14513_v32 = vpack.c.bf16 %v164_v12, %v163_v3  ;;  %v165_v38 = vld [vmem:[%s17133_s13 + $0x50] sm:$0xff]  ;;  %v151_v12 = vld [vmem:[%s17132_s12 + $0xe0] sm:$0xff] }
 0x33d   :  { %17357 = vst [vmem:[#allocation37_spill] sm:$0xff] %v14477_v13  ;;  %17360 = vst [vmem:[#allocation40_spill] sm:$0xff] %v14509_v62  ;;  %11827 = vmatprep.subr.bf16.mxu1 %v14479_v47  ;;  %v134_v18 = vld [vmem:[%s17132_s12 + $0x58] sm:$0xff]  ;;  %v184_v36 = vld [vmem:[%s17133_s13 + $0xe8] sm:$0xff] }
 0x33e   :  { %17361 = vst [vmem:[#allocation41_spill] sm:$0xff] %v14513_v32  ;;  %17363 = vst [vmem:[#allocation43_spill] sm:$0xff] %v14527_v53  ;;  %v166_v3 = vld [vmem:[%s17133_s13 + $0x58] sm:$0xff] }
 0x33f   :  { %11853 = vmatpush3.bf16.msra.mxu0 %v14434_v43  ;;  %v133_v43 = vld [vmem:[%s17132_s12 + $0x50] sm:$0xff] }
 0x340   :  { %11855 = vmatprep.subr.bf16.mxu0 %v14450_v10  ;;  %v14515_v10 = vpack.c.bf16 %v150_v34, %v149_v15  ;;  %v152_v15 = vld [vmem:[%s17132_s12 + $0xe8] sm:$0xff]  ;;  %v183_v34 = vld [vmem:[%s17133_s13 + $0xe0] sm:$0xff]  ;;  %11829 = vmatpush3.bf16.msra.mxu1 %v14509_v62  ;;  %v14545_v44 = vpack.c.bf16 %v134_v18, %v133_v43 }
 0x341   :  { %v14554_v56 = vpack.c.bf16 %v184_v36, %v183_v34  ;;  %v135_v18 = vld [vmem:[%s17132_s12 + $0x60] sm:$0xff]  ;;  %v136_v43 = vld [vmem:[%s17132_s12 + $0x68] sm:$0xff] }
 0x342   :  { %v14447_v9 = vpop.eup %13681  ;;  %17362 = vst [vmem:[#allocation42_spill] sm:$0xff] %v14515_v10  ;;  %17364 = vst [vmem:[#allocation44_spill] sm:$0xff] %v14545_v44  ;;  %11831 = vmatprep.subr.bf16.mxu1 %v14515_v10 }
 0x343   :  { %754 = vrot.lane.b32.xlu1 %v14447_v9, %s13915_s30  ;;  %11857 = vmatpush3.bf16.msra.mxu0 %v14477_v13  ;;  %v14551_v13 = vpack.c.bf16 %v152_v15, %v151_v12  ;;  %17367 = vst [vmem:[#allocation47_spill] sm:$0xff] %v14554_v56  ;;  %v167_v12 = vld [vmem:[%s17133_s13 + $0x60] sm:$0xff]  ;;  %v168_v15 = vld [vmem:[%s17133_s13 + $0x68] sm:$0xff] }
 0x344   :  { %11859 = vmatprep.subr.bf16.mxu0 %v14491_v7  ;;  %v14549_v7 = vpack.c.bf16 %v166_v3, %v165_v38  ;;  %11833 = vmatpush3.bf16.msra.mxu1 %v14545_v44  ;;  %v14566_v3 = vpack.c.bf16 %v136_v43, %v135_v18  ;;  %v14575_v36 = vpack.c.bf16 %v168_v15, %v167_v12  ;;  %v154_v18 = vld [vmem:[%s17132_s12 + $0xf8] sm:$0xff]  ;;  %v137_v43 = vld [vmem:[%s17132_s12 + $0x70] sm:$0xff] }
 0x345   :  { %17366 = vst [vmem:[#allocation46_spill] sm:$0xff] %v14551_v13  ;;  %11835 = vmatprep.subr.bf16.mxu1 %v14551_v13  ;;  %v138_v12 = vld [vmem:[%s17132_s12 + $0x78] sm:$0xff]  ;;  %v185_v15 = vld [vmem:[%s17133_s13 + $0xf0] sm:$0xff] }
 0x346   :  { %17365 = vst [vmem:[#allocation45_spill] sm:$0xff] %v14549_v7  ;;  %17368 = vst [vmem:[#allocation48_spill] sm:$0xff] %v14566_v3 }
 0x347   :  { %11861 = vmatpush3.bf16.msra.mxu0 %v14513_v32  ;;  %17369 = vst [vmem:[#allocation49_spill] sm:$0xff] %v14575_v36 }
 0x348   :  { %11863 = vmatprep.subr.bf16.mxu0 %v14527_v53  ;;  %11837 = vmatpush3.bf16.msra.mxu1 %v14566_v3  ;;  %v14599_v53 = vpack.c.bf16 %v138_v12, %v137_v43  ;;  %v204_v43 = vld [vmem:[%s17133_s13 + $0x188] sm:$0xff] }
 0x34a   :  { %17371 = vst [vmem:[#allocation51_spill] sm:$0xff] %v14599_v53 }
 0x34b   :  { %11865 = vmatpush3.bf16.msra.mxu0 %v14549_v7  ;;  %v186_v7 = vld [vmem:[%s17133_s13 + $0xf8] sm:$0xff] }
 0x34c   :  { %11867 = vmatprep.subr.bf16.mxu0 %v14554_v56  ;;  %v153_v56 = vld [vmem:[%s17132_s12 + $0xf0] sm:$0xff]  ;;  %v14601_v32 = vpack.c.bf16 %v186_v7, %v185_v15  ;;  %v203_v7 = vld [vmem:[%s17133_s13 + $0x180] sm:$0xff]  ;;  %v17375_v15 = vmov 0  }
 0x34d   :  { %v14621_v12 = vpack.c.bf16 %v204_v43, %v203_v7  ;;  %v257_v7 = vld [vmem:[%s17377_s4] sm:$0xff] }
 0x34e   :  { %17372 = vst [vmem:[#allocation52_spill] sm:$0xff] %v14601_v32  ;;  %v848_v14 = vcombine.high %v257_v7, %v257_v7 }
 0x34f   :  { %11869 = vmatpush3.bf16.msra.mxu0 %v14575_v36  ;;  %17374 = vst [vmem:[#allocation54_spill] sm:$0xff] %v14621_v12  ;;  %v88_v36 = vld [vmem:[%s17376_s25] sm:$0x3] }
 0x350   :  { %11871 = vmatprep.subr.bf16.mxu0 %v14601_v32 }
 0x3b5   :  { %v755_v38 = vpop.permute.xlu1 %754 }
 0x3b6   :  { %v757_v34 = vmul.f32 %v14447_v9, %v755_v38  ;;  %v14588_v38 = vpack.c.bf16 %v154_v18, %v153_v56  ;;  %v169_v56 = vld [vmem:[%s17133_s13 + $0x70] sm:$0xff] }
 0x3b8   :  { %760 = vperm.xlu1 %13567, %v757_v34   ;;  %17370 = vst [vmem:[#allocation50_spill] sm:$0xff] %v14588_v38  ;;  %v170_v34 = vld [vmem:[%s17133_s13 + $0x78] sm:$0xff]  ;;  %11839 = vmatprep.subr.bf16.mxu1 %v14588_v38 }
 0x3b9   :  { %v14610_v18 = vpack.c.bf16 %v170_v34, %v169_v56  ;;  %11841 = vmatpush3.bf16.msra.mxu1 %v14599_v53  ;;  %v13916_v56 = vmov 1983009808  }
 0x3ba   :  { %11875 = vmatprep.subr.bf16.mxu1 %v14621_v12  ;;  %v850_v34 = vunpack.c.l.s4 %v13916_v56  ;;  %v14642_v56 = vrot.slane %v88_v36, %v14157_v50  ;;  %v221_v12 = vld [vmem:[%s17140_s20] sm:$0x3]  ;;  %s13920_s20 = smov 80  }
 0x3bb   :  { %17373 = vst [vmem:[#allocation53_spill] sm:$0xff] %v14610_v18  ;;  %11873 = vmatpush3.bf16.msra.mxu0 %v14610_v18  ;;  %v14653_v18 = vrot.slane %v14632_v41, %v14160_v51  ;;  %v226_v13 = vrot.slane %v221_v12, %v14157_v50  ;;  %v230_v44 = vrot.slane %v221_v12, %v14160_v51 }
 0x3bc   :  { %13568 = vset.pattern.permute.xlu1 %v17375_v15  ;;  %11907 = vmatprep.subr.bf16.mxu0 %v14053_v4  ;;  %v851_v32 = vunpack.c.0.s8 %v850_v34  ;;  %v249_v15 = vsub.s32 3, %v14154_v49  ;;  %17379 = vst [vmem:[#allocation56_spill] sm:$0xff] %v14642_v56  ;;  %v14645_v34 = vrot.slane %v88_v36, %v14160_v51  ;;  %v14649_v4 = vrot.slane %v14632_v41, %v14157_v50  ;;  %v14664_v36 = vld [vmem:[%s17141_s21] sm:$0xf]  ;;  %s13921_s21 = smov 32  }
 0x3bd   :  { %17382 = vst [vmem:[#allocation59_spill] sm:$0xff] %v14653_v18  ;;  %v492_v5 = vadd.f32 %v14302_v20, %v14642_v56  ;;  %v590_v3 = vadd.f32 %v14310_v26, %v14653_v18  ;;  %v238_v20 = vrot.slane %v14664_v36, %v14157_v50  ;;  %v187_v50 = vld [vmem:[%s17133_s13 + $0x100] sm:$0xff] }
 0x3be   :  { %v14638_v43 = vsub.s32 %v851_v32, %v14154_v49  ;;  %17380 = vst [vmem:[#allocation57_spill] sm:$0xff] %v14645_v34  ;;  %17381 = vst [vmem:[#allocation58_spill] sm:$0xff] %v14649_v4  ;;  %v14656_v32 = vrot.slane %v14632_v41, %v249_v15  ;;  %v494_v16 = vadd.f32 %v14304_v21, %v14645_v34 }
 0x3bf   :  { %v588_v38 = vadd.f32 %v14306_v22, %v14649_v4  ;;  %v250_v26 = vrot.slane %v14664_v36, %v249_v15  ;;  %v206_v4 = vld [vmem:[%s17133_s13 + $0x198] sm:$0xff] }
 0x3c0   :  { %17378 = vst [vmem:[#allocation55_spill] sm:$0xff] %v14638_v43  ;;  %17383 = vst [vmem:[#allocation60_spill] sm:$0xff] %v14656_v32  ;;  %v855_v53 = vrot.slane %v257_v7, %v14638_v43  ;;  %v14676_v11 = vrot.slane %v848_v14, %v14638_v43  ;;  %v242_v7 = vrot.slane %v14664_v36, %v14160_v51  ;;  %v188_v51 = vld [vmem:[%s17133_s13 + $0x108] sm:$0xff] }
 0x3c1   :  { %v661_v21 = vadd.f32 %v14312_v29, %v14656_v32  ;;  %v205_v32 = vld [vmem:[%s17133_s13 + $0x190] sm:$0xff] }
 0x3c2   :  { %v863_v34 = vcombine.high %v855_v53, %v855_v53  ;;  %v864_v15 = vcombine.high %v14676_v11, %v14676_v11 }
 0x437   :  { %v14686_v22 = vpop.permute.xlu1 %760 }
 0x438   :  { %v764_v14 = vmul.f32 %v14686_v22, %v494_v16  ;;  %v768_v56 = vmul.f32 %v14686_v22, %v590_v3  ;;  %v763_v12 = vmul.f32 %v14686_v22, %v492_v5  ;;  %v767_v18 = vmul.f32 %v14686_v22, %v588_v38 }
 0x439   :  { %v770_v29 = vmul.f32 %v14686_v22, %v661_v21  ;;  %v14716_v21 = vpack.c.bf16 %v188_v51, %v187_v50  ;;  %v192_v50 = vld [vmem:[%s17133_s13 + $0x128] sm:$0xff]  ;;  %v209_v51 = vld [vmem:[%s17133_s13 + $0x1b0] sm:$0xff] }
 0x43a   :  { %v14702_v16 = vadd.f32 %v764_v14, %v230_v44  ;;  %v14704_v3 = vadd.f32 %v768_v56, %v242_v7  ;;  %v14706_v5 = vadd.f32 %v763_v12, %v226_v13  ;;  %v14708_v38 = vadd.f32 %v767_v18, %v238_v20  ;;  %v189_v20 = vld [vmem:[%s17133_s13 + $0x110] sm:$0xff]  ;;  %v190_v14 = vld [vmem:[%s17133_s13 + $0x118] sm:$0xff]  ;;  %v191_v12 = vld [vmem:[%s17133_s13 + $0x120] sm:$0xff] }
 0x43b   :  { %v14718_v43 = vadd.f32 %v770_v29, %v250_v26  ;;  %v14724_v7 = vpack.c.bf16 %v206_v4, %v205_v32  ;;  %v208_v4 = vld [vmem:[%s17133_s13 + $0x1a8] sm:$0xff]  ;;  %v210_v29 = vld [vmem:[%s17133_s13 + $0x1b8] sm:$0xff] }
 0x43c   :  { %v776_v44 = vmul.f32 0.0, %v14702_v16  ;;  %v870_v56 = vmul.f32 %v863_v34, %v14704_v3  ;;  %v775_v13 = vmul.f32 0.0, %v14706_v5  ;;  %v869_v18 = vmul.f32 %v855_v53, %v14708_v38  ;;  %v207_v34 = vld [vmem:[%s17133_s13 + $0x1a0] sm:$0xff] }
 0x43d   :  { %v872_v26 = vmul.f32 %v864_v15, %v14718_v43  ;;  %v14740_v53 = vpack.c.bf16 %v190_v14, %v189_v20  ;;  %v14743_v32 = vpack.c.bf16 %v208_v4, %v207_v34  ;;  %v17384_v15 = vmov 0.0   ;;  %v211_v20 = vld [vmem:[%s17133_s13 + $0x1c0] sm:$0xff]  ;;  %v212_v14 = vld [vmem:[%s17133_s13 + $0x1c8] sm:$0xff] }
 0x43e   :  { %841 = vmatprep.mubr.f32.mxu1 %v776_v44  ;;  %937 = vmatprep.mubr.f32.mxu0 %v870_v56  ;;  %v14761_v44 = vpack.c.bf16 %v192_v50, %v191_v12  ;;  %v14764_v56 = vpack.c.bf16 %v210_v29, %v209_v51  ;;  %v14782_v34 = vpack.c.bf16 %v212_v14, %v211_v20  ;;  %v195_v4 = vld [vmem:[%s17133_s13 + $0x140] sm:$0xff]  ;;  %v196_v12 = vld [vmem:[%s17133_s13 + $0x148] sm:$0xff]  ;;  %v213_v50 = vld [vmem:[%s17133_s13 + $0x1d0] sm:$0xff]  ;;  %v245_v29 = vsub.s32 2, %v14154_v49 }
 0x43f   :  { %842 = vmatmul.mubr.f32.vlgmr.msra.gmra.mrb[6].mxu1 %v775_v13  ;;  %938 = vmatmul.mubr.f32.vlgmr.msra.gmra.mrb[4].mxu0 %v869_v18  ;;  %v193_v13 = vld [vmem:[%s17133_s13 + $0x130] sm:$0xff]  ;;  %v194_v18 = vld [vmem:[%s17133_s13 + $0x138] sm:$0xff]  ;;  %v215_v49 = vld [vmem:[%s17133_s13 + $0x1e0] sm:$0xff] }
 0x440   :  { %11877 = vmatpush3.bf16.msra.mxu1 %v14716_v21  ;;  %1007 = vmatprep.mubr.f32.mxu1 %v872_v26  ;;  %17385 = vst [vmem:[#allocation61_spill] sm:$0xff] %v14764_v56  ;;  %v14779_v26 = vpack.c.bf16 %v194_v18, %v193_v13  ;;  %17387 = vst [vmem:[#allocation63_spill] sm:$0xff] %v14782_v34  ;;  %v214_v51 = vld [vmem:[%s17133_s13 + $0x1d8] sm:$0xff]  ;;  %v14798_v13 = vpack.c.bf16 %v196_v12, %v195_v4  ;;  %v197_v20 = vld [vmem:[%s17133_s13 + $0x150] sm:$0xff] }
 0x441   :  { %11879 = vmatprep.subr.bf16.mxu1 %v14724_v7  ;;  %11909 = vmatpush1.bf16.msra.mxu0 %v14059_v6  ;;  %v14801_v18 = vpack.c.bf16 %v214_v51, %v213_v50  ;;  %v198_v14 = vld [vmem:[%s17133_s13 + $0x158] sm:$0xff]  ;;  %v216_v4 = vld [vmem:[%s17133_s13 + $0x1e8] sm:$0xff]  ;;  %v14816_v12 = vrot.slane %v14632_v41, %v245_v29  ;;  %v217_v41 = vld [vmem:[%s17133_s13 + $0x1f0] sm:$0xff] }
 0x442   :  { %1157 = vmatprep.mubr.f32.mxu0 %v17384_v15  ;;  %11911 = vmatprep.subr.bf16.mxu0 %v14081_v23  ;;  %17386 = vst [vmem:[#allocation62_spill] sm:$0xff] %v14779_v26  ;;  %17388 = vst [vmem:[#allocation64_spill] sm:$0xff] %v14798_v13  ;;  %v14819_v50 = vpack.c.bf16 %v198_v14, %v197_v20  ;;  %v14822_v51 = vpack.c.bf16 %v216_v4, %v215_v49  ;;  %v218_v20 = vld [vmem:[%s17133_s13 + $0x1f8] sm:$0xff] }
 0x443   :  { %17389 = vst [vmem:[#allocation65_spill] sm:$0xff] %v14801_v18  ;;  %17390 = vst [vmem:[#allocation66_spill] sm:$0xff] %v14816_v12  ;;  %v659_v14 = vadd.f32 %v14308_v24, %v14816_v12  ;;  %v14842_v4 = vpack.c.bf16 %v218_v20, %v217_v41 }
 0x444   :  { %11881 = vmatpush3.bf16.msra.mxu1 %v14740_v53  ;;  %17391 = vst [vmem:[#allocation67_spill] sm:$0xff] %v14819_v50  ;;  %17392 = vst [vmem:[#allocation68_spill] sm:$0xff] %v14822_v51 }
 0x445   :  { %11883 = vmatprep.subr.bf16.mxu1 %v14743_v32  ;;  %17394 = vst [vmem:[#allocation70_spill] sm:$0xff] %v14842_v4  ;;  %v769_v24 = vmul.f32 %v14686_v22, %v659_v14 }
 0x448   :  { %11885 = vmatpush3.bf16.msra.mxu1 %v14761_v44 }
 0x449   :  { %11887 = vmatprep.subr.bf16.mxu1 %v14764_v56  ;;  %v246_v56 = vrot.slane %v14664_v36, %v245_v29  ;;  %v17397_v36 = vmov 0.0|0.0  }
 0x44c   :  { %11889 = vmatpush3.bf16.msra.mxu1 %v14779_v26  ;;  %v200_v26 = vld [vmem:[%s17133_s13 + $0x168] sm:$0xff] }
 0x44d   :  { %11891 = vmatprep.subr.bf16.mxu1 %v14782_v34  ;;  %v199_v34 = vld [vmem:[%s17133_s13 + $0x160] sm:$0xff] }
 0x44e   :  { %v14839_v49 = vpack.c.bf16 %v200_v26, %v199_v34  ;;  %v14856_v34 = vadd.f32 %v769_v24, %v246_v56 }
 0x450   :  { %11893 = vmatpush3.bf16.msra.mxu1 %v14798_v13  ;;  %17393 = vst [vmem:[#allocation69_spill] sm:$0xff] %v14839_v49  ;;  %v202_v13 = vld [vmem:[%s17133_s13 + $0x178] sm:$0xff]  ;;  %17396 = vst [vmem:[#allocation72_spill] sm:$0xff] %v14856_v34  ;;  %v871_v41 = vmul.f32 %v14676_v11, %v14856_v34 }
 0x451   :  { %11895 = vmatprep.subr.bf16.mxu1 %v14801_v18  ;;  %v201_v18 = vld [vmem:[%s17133_s13 + $0x170] sm:$0xff]  ;;  %s13917_s13 = smov 16  }
 0x452   :  { %v14853_v26 = vpack.c.bf16 %v202_v13, %v201_v18 }
 0x454   :  { %11897 = vmatpush3.bf16.msra.mxu1 %v14819_v50  ;;  %17395 = vst [vmem:[#allocation71_spill] sm:$0xff] %v14853_v26 }
 0x455   :  { %11899 = vmatprep.subr.bf16.mxu1 %v14822_v51 }
 0x458   :  { %11901 = vmatpush3.bf16.msra.mxu1 %v14839_v49 }
 0x459   :  { %11903 = vmatprep.subr.bf16.mxu1 %v14842_v4 }
 0x45c   :  { %11905 = vmatpush3.bf16.msra.mxu1 %v14853_v26 }
 0x45d   :  { %11919 = vmatprep.subr.bf16.mxu1 %v14117_v35 }
 0x45f   :  { %1008 = vmatmul.mubr.f32.vlgmr.msra.gmra.mrb[8].mxu1 %v871_v41 }
 0x460   :  { %11921 = vmatpush1.bf16.msra.mxu1 %v14128_v39  ;;  %1338 = vmatprep.mubr.f32.mxu1 %v17384_v15 }
 0x461   :  { %11923 = vmatprep.subr.bf16.mxu1 %v14147_v45 }
 0x464   :  { %11925 = vmatpush1.bf16.msra.mxu1 %v14149_v46 }
 0x465   :  { %11934 = vmatprep.subr.bf16.mxu1 %v17397_v36 }
 0x512   :  { %v9881_v22 = vpop.f32.mrb[6].mxu1  ;;  %v9916_v56 = vpop.f32.mrb[4].mxu0 }
 0x513   :  { %v9882_v29 = vpop.f32.mrb[7].mxu1  ;;  %v9917_v13 = vpop.f32.mrb[5].mxu0 }
 0x514   :  { %v9883_v18 = vadd.f32 %v9882_v29, %v9881_v22  ;;  %v9918_v20 = vadd.f32 %v9917_v13, %v9916_v56 }
 0x516   :  { %v1013_v46 = vmul.f32 %v14447_v9, %v9883_v18 }
 0x532   :  { %v9951_v11 = vpop.f32.mrb[8].mxu1 }
 0x533   :  { %v9952_v14 = vpop.f32.mrb[9].mxu1 }
 0x534   :  { %v9953_v24 = vadd.f32 %v9952_v14, %v9951_v11 }
 0x536   :  { %v1010_v41 = vadd.f32 %v9953_v24, %v9918_v20 }
 0x538   :  { %1015 = vrot.lane.b32.xlu1 %v1010_v41, %s13917_s13 }
 0x5aa   :  { %v1016_v39 = vpop.permute.xlu1 %1015 }
 0x5ab   :  { %v1018_v45 = vmul.f32 %v14447_v9, %v1016_v39  ;;  %v14876_v9 = vld [vmem:[%s17135_s15] ss:$0 sm:$0xff] }
 0x5ac   :  { %17398 = vst [vmem:[#allocation73_spill] sm:$0xff] %v14876_v9 }
 0x5ad   :  { %1020 = vrot.lane.b32.xlu0 %v1018_v45, %s13918_s24 }
 0x61f   :  { %v1021_v35 = vpop.permute.xlu0 %1020 }
 0x620   :  { %v1023_v26 = vadd.f32 %v1021_v35, %v1013_v46  ;;  %v14881_v46 = vld [vmem:[%s17136_s16] ss:$0 sm:$0xff] }
 0x621   :  { %17399 = vst [vmem:[#allocation74_spill] sm:$0xff] %v14881_v46 }
 0x622   :  { %v1025_v22 = vsel %vm1024_vm3, %v1023_v26, 0.0 }
 0x623   :  { %1026 = vadd.xlane.f32.xlu1 %v1025_v22 }
 0x6b0   :  { %v1027_v56 = vpop.xlane.xlu1 %1026 }
 0x6b1   :  { %v1029_v29 = vmul.f32 0.0625, %v1027_v56 }
 0x6b3   :  { %v1030_v13 = vsub.f32 %v1023_v26, %v1029_v29  ;;  %v9704_v29 = vld [vmem:[%s17322_s28 + $0x2] sm:$0x3] }
 0x6b5   :  { %v1031_v20 = vmul.f32 %v1030_v13, %v1030_v13 }
 0x6b7   :  { %v1032_v11 = vsel %vm1024_vm3, %v1031_v20, 0.0 }
 0x6b8   :  { %1033 = vadd.xlane.f32.xlu0 %v1032_v11 }
 0x745   :  { %v1034_v14 = vpop.xlane.xlu0 %1033 }
 0x746   :  { %v1035_v39 = vmul.f32 0.0625, %v1034_v14 }
 0x748   :  { %v1036_v24 = vadd.f32 1e-05, %v1035_v39  ;;  %v17400_v39 = vmov 1  }
 0x74a   :  { %13683 = vrsqrt.f32 %v1036_v24 }
 0x754   :  { %v13684_v45 = vpop.eup %13683 }
 0x755   :  { %v1038_v35 = vmul.f32 %v13684_v45, %v1030_v13 }
 0x757   :  { %v1045_v26 = vmul.f32 %v14876_v9, %v1038_v35 }
 0x759   :  { %v14885_v18 = vadd.f32 %v14881_v46, %v1045_v26 }
 0x75b   :  { %1053 = vst.msk [vmem:[#allocation2] sm:$0x3] %vm1024_vm3, %v14885_v18  ;;  %9707 = vmatmul.mubr.msk.f32.vlgmr.msra.gmra.mrb[6].mxu0 %vm281_vm4, %v14885_v18  ;;  %v1060_v41 = vsel %vm1024_vm3, %v14885_v18, 0.0  ;;  %v1065_v22 = vmul.f32 %v14885_v18, %v14885_v18 }
 0x75c   :  { %1061 = vadd.xlane.f32.xlu0 %v1060_v41  ;;  %11913 = vmatpush1.bf16.msra.mxu0 %v14092_v27 }
 0x75d   :  { %v1066_v56 = vsel %vm1024_vm3, %v1065_v22, 0.0  ;;  %11915 = vmatprep.subr.bf16.mxu0 %v14094_v28  ;;  %1263 = vmatprep.mubr.f32.mxu0 %v17384_v15  ;;  %v17401_v28 = vmov 32  }
 0x75e   :  { %1067 = vadd.xlane.f32.xlu1 %v1066_v56 }
 0x760   :  { %11917 = vmatpush1.bf16.msra.mxu0 %v14104_v31 }
 0x761   :  { %11927 = vmatprep.subr.bf16.mxu0 %v14130_v40 }
 0x7e9   :  { %v1062_v13 = vpop.xlane.xlu0 %1061 }
 0x7ea   :  { %v1063_v20 = vmul.f32 0.020833334, %v1062_v13  ;;  %v9706_v13 = vld.sshfl [vmem:[%s17332_s3 + $0x4] sm:$0x33 pattern:$0x76325410] }
 0x7eb   :  { %v1068_v35 = vpop.xlane.xlu1 %1067 }
 0x7ec   :  { %v1064_v11 = vadd.f32 %v9704_v29, %v1063_v20  ;;  %v1069_v26 = vmul.f32 0.020833334, %v1068_v35 }
 0x7ee   :  { %1166 = vperm.xlu1 %13568, %v1064_v11   ;;  %v1071_v14 = vmul.f32 %v1064_v11, %v1064_v11  ;;  %v1070_v41 = vadd.f32 %v9704_v29, %v1069_v26  ;;  %v1087_v11 = vcombine.high %v9706_v13, %v9706_v13 }
 0x7f0   :  { %1073 = vrot.lane.b32.xlu0 %v1071_v14, %s13908_s29 }
 0x7f2   :  { %13569 = vset.pattern.permute.xlu1 %v17400_v39 }
 0x82e   :  { %v1159_v24 = vpop.f32.mrb[6].mxu0 }
 0x82f   :  { %v1161_v45 = vpop.f32.mrb[7].mxu0  ;;  %v1160_v35 = vadd.f32 %v9706_v13, %v1159_v24 }
 0x830   :  { %v1162_v29 = vadd.f32 %v1161_v45, %v1087_v11 }
 0x862   :  { %v1074_v22 = vpop.permute.xlu0 %1073 }
 0x863   :  { %v1076_v56 = vsub.f32 %v1070_v41, %v1074_v22 }
 0x865   :  { %v1077_v40 = vadd.f32 1e-05, %v1076_v56 }
 0x867   :  { %13685 = vrsqrt.f32 %v1077_v40 }
 0x86d   :  { %v1167_v20 = vpop.permute.xlu1 %1166 }
 0x86e   :  { %v1169_v14 = vmul.f32 %v1167_v20, %v14169_v54  ;;  %v1170_v39 = vmul.f32 %v1167_v20, %v14172_v55 }
 0x870   :  { %v1171_v26 = vsub.f32 %v1160_v35, %v1169_v14  ;;  %v1172_v41 = vsub.f32 %v1162_v29, %v1170_v39  ;;  %v17406_v14 = vld [vmem:[#allocation50_spill] sm:$0xff]  ;;  %v17408_v29 = vld [vmem:[#allocation24_spill] sm:$0xff] }
 0x871   :  { %v13686_v31 = vpop.eup %13685  ;;  %v17407_v35 = vld [vmem:[#allocation22_spill] sm:$0xff] }
 0x872   :  { %1175 = vperm.xlu1 %13569, %v13686_v31  }
 0x876   :  { %13575 = vset.pattern.permute.xlu1 %v17401_v28 }
 0x8f1   :  { %v1176_v22 = vpop.permute.xlu1 %1175 }
 0x8f2   :  { %v1178_v40 = vmul.f32 %v1176_v22, %v1171_v26  ;;  %v1179_v56 = vmul.f32 %v1176_v22, %v1172_v41  ;;  %v17409_v26 = vld [vmem:[#allocation51_spill] sm:$0xff]  ;;  %v17410_v22 = vld [vmem:[#allocation54_spill] sm:$0xff] }
 0x8f4   :  { %v1180_v31 = vadd.f32 %v1178_v40, %v14180_v1  ;;  %v1181_v28 = vadd.f32 %v1179_v56, %v14183_v2  ;;  %v17411_v40 = vld [vmem:[#allocation25_spill] sm:$0xff]  ;;  %v17412_v56 = vld [vmem:[#allocation28_spill] sm:$0xff] }
 0x8f6   :  { %v9708_v27 = vmul.f32 -1.442695, %v1180_v31  ;;  %v9709_v46 = vmul.f32 -1.442695, %v1181_v28 }
 0x8f8   :  { %13687 = vpow2.f32 %v9708_v27 }
 0x8f9   :  { %13689 = vpow2.f32 %v9709_v46 }
 0x902   :  { %v13688_v9 = vpop.eup %13687 }
 0x903   :  { %v13690_v34 = vpop.eup %13689  ;;  %v1188_v54 = vadd.f32 1.0, %v13688_v9  ;;  %v17405_v9 = vld [vmem:[#allocation48_spill] sm:$0xff] }
 0x904   :  { %v1189_v4 = vadd.f32 1.0, %v13690_v34  ;;  %v17404_v34 = vld [vmem:[#allocation21_spill] sm:$0xff] }
 0x905   :  { %13691 = vrcp.f32 %v1188_v54  ;;  %v17403_v54 = vld [vmem:[#allocation46_spill] sm:$0xff] }
 0x906   :  { %13693 = vrcp.f32 %v1189_v4 }
 0x90f   :  { %v13692_v24 = vpop.eup %13691 }
 0x910   :  { %v13694_v45 = vpop.eup %13693  ;;  %v1194_v39 = vmul.f32 %v13692_v24, %v1180_v31  ;;  %v17413_v31 = vld [vmem:[#allocation29_spill] sm:$0xff]  ;;  %v17414_v24 = vld [vmem:[#allocation32_spill] sm:$0xff] }
 0x911   :  { %v1195_v13 = vmul.f32 %v13694_v45, %v1181_v28  ;;  %v17402_v28 = vld [vmem:[#allocation44_spill] sm:$0xff]  ;;  %v17415_v45 = vld [vmem:[#allocation33_spill] sm:$0xff] }
 0x912   :  { %1270 = vrot.lane.b32.xlu0 %v1194_v39, %s13911_s26  ;;  %9710 = vmatmul.mubr.msk.f32.vlgmr.msra.gmra.mrb[8].mxu0 %vm421_vm0, %v1194_v39 }
 0x913   :  { %v13570_v20 = vpack.i.bf16 %v1195_v13, %v1194_v39  ;;  %11929 = vmatpush1.bf16.msra.mxu0 %v14199_v25  ;;  %1409 = vmatprep.mubr.f32.mxu0 %v17384_v15  ;;  %v17416_v39 = vld [vmem:[#allocation35_spill] sm:$0xff]  ;;  %v17417_v13 = vld [vmem:[#allocation37_spill] sm:$0xff] }
 0x914   :  { %11931 = vmatprep.subr.bf16.mxu0 %v14201_v30 }
 0x915   :  { %13571 = vrot.lane.b32.xlu1 %v13570_v20, %s13912_s2  ;;  %v17418_v20 = vld [vmem:[#allocation39_spill] sm:$0xff] }
 0x917   :  { %11933 = vmatpush1.bf16.msra.mxu0 %v14212_v37 }
 0x918   :  { %11959 = vmatprep.subr.bf16.mxu0 %v14331_v58 }
 0x984   :  { %v1271_v27 = vpop.permute.xlu0 %1270 }
 0x985   :  { %9711 = vmatmul.mubr.msk.f32.vlgmr.msra.gmra.mrb[10].mxu1 %vm421_vm0, %v1271_v27  ;;  %9712 = vmatmul.mubr.msk.f32.vlgmr.msra.gmra.mrb[10].mxu0 %vm421_vm0, %v1271_v27  ;;  %v17419_v27 = vld [vmem:[#allocation41_spill] sm:$0xff] }
 0x986   :  { %11936 = vmatpush3.bf16.msra.mxu1 %v14224_v42  ;;  %11375 = vmatprep.mubr.msk.f32.mxu1 %vm13913_vm1, %v17384_v15 }
 0x987   :  { %11937 = vmatprep.subr.bf16.mxu1 %v17397_v36  ;;  %11961 = vmatpush3.bf16.msra.mxu0 %v14342_v0  ;;  %v13572_v4 = vpop.permute.xlu1 %13571 }
 0x988   :  { %11963 = vmatprep.subr.bf16.mxu0 %v14369_v19  ;;  %v13574_v46 = vunpack.i.h.bf16 %v13572_v4  ;;  %v13573_v11 = vunpack.i.l.bf16 %v13572_v4  ;;  %v17420_v4 = vld [vmem:[#allocation43_spill] sm:$0xff] }
 0x98a   :  { %11939 = vmatpush3.bf16.msra.mxu1 %v14235_v52  ;;  %v1421_v41 = vsel %vm674_vm2, %v13573_v11, %v13574_v46  ;;  %v17421_v46 = vld [vmem:[#allocation45_spill] sm:$0xff]  ;;  %v17422_v11 = vld [vmem:[#allocation47_spill] sm:$0xff] }
 0x98b   :  { %11940 = vmatprep.subr.bf16.mxu1 %v17397_v36  ;;  %11965 = vmatpush3.bf16.msra.mxu0 %v14371_v33 }
 0x98c   :  { %11967 = vmatprep.subr.bf16.mxu0 %v14397_v59 }
 0x98e   :  { %11942 = vmatpush3.bf16.msra.mxu1 %v14247_v57 }
 0x98f   :  { %11943 = vmatprep.subr.bf16.mxu1 %v17397_v36  ;;  %11969 = vmatpush3.bf16.msra.mxu0 %v14419_v17 }
 0x990   :  { %11971 = vmatprep.subr.bf16.mxu0 %v14436_v48 }
 0x992   :  { %11945 = vmatpush3.bf16.msra.mxu1 %v14257_v60 }
 0x993   :  { %11946 = vmatprep.subr.bf16.mxu1 %v17397_v36  ;;  %11973 = vmatpush3.bf16.msra.mxu0 %v14467_v61 }
 0x994   :  { %11975 = vmatprep.subr.bf16.mxu0 %v14479_v47 }
 0x996   :  { %11948 = vmatpush3.bf16.msra.mxu1 %v14267_v63 }
 0x997   :  { %11949 = vmatprep.subr.bf16.mxu1 %v17397_v36  ;;  %11977 = vmatpush3.bf16.msra.mxu0 %v14509_v62 }
 0x998   :  { %11979 = vmatprep.subr.bf16.mxu0 %v14515_v10 }
 0x99a   :  { %11951 = vmatpush3.bf16.msra.mxu1 %v14277_v8 }
 0x99b   :  { %11952 = vmatprep.subr.bf16.mxu1 %v17397_v36  ;;  %11981 = vmatpush3.bf16.msra.mxu0 %v17402_v28 }
 0x99c   :  { %11983 = vmatprep.subr.bf16.mxu0 %v17403_v54 }
 0x99e   :  { %11954 = vmatpush3.bf16.msra.mxu1 %v17404_v34 }
 0x99f   :  { %11955 = vmatprep.subr.bf16.mxu1 %v17397_v36  ;;  %11985 = vmatpush3.bf16.msra.mxu0 %v17405_v9 }
 0x9a0   :  { %11987 = vmatprep.subr.bf16.mxu0 %v17406_v14 }
 0x9a2   :  { %11957 = vmatpush3.bf16.msra.mxu1 %v17407_v35 }
 0x9a3   :  { %11991 = vmatprep.subr.bf16.mxu1 %v17408_v29  ;;  %11989 = vmatpush3.bf16.msra.mxu0 %v17409_v26 }
 0x9a4   :  { %12023 = vmatprep.subr.bf16.mxu0 %v17410_v22  ;;  %v17427_v22 = vld [vmem:[#allocation23_spill] sm:$0xff] }
 0x9a5   :  { %11376 = vmatmul.mubr.f32.vlgmr.msra.gmra.mrb[12].mxu1 %v1421_v41  ;;  %v17423_v41 = vld [vmem:[#allocation49_spill] sm:$0xff] }
 0x9a6   :  { %11993 = vmatpush3.bf16.msra.mxu1 %v17411_v40 }
 0x9a7   :  { %11995 = vmatprep.subr.bf16.mxu1 %v17412_v56 }
 0x9aa   :  { %11997 = vmatpush3.bf16.msra.mxu1 %v17413_v31  ;;  %v17424_v31 = vld [vmem:[#allocation52_spill] sm:$0xff] }
 0x9ab   :  { %11999 = vmatprep.subr.bf16.mxu1 %v17414_v24  ;;  %v17425_v24 = vld [vmem:[#allocation53_spill] sm:$0xff] }
 0x9ae   :  { %12001 = vmatpush3.bf16.msra.mxu1 %v17415_v45  ;;  %v17426_v45 = vld [vmem:[#allocation6_spill] sm:$0xff] }
 0x9af   :  { %12003 = vmatprep.subr.bf16.mxu1 %v17416_v39 }
 0x9b2   :  { %12005 = vmatpush3.bf16.msra.mxu1 %v17417_v13 }
 0x9b3   :  { %12007 = vmatprep.subr.bf16.mxu1 %v17418_v20 }
 0x9b6   :  { %12009 = vmatpush3.bf16.msra.mxu1 %v17419_v27 }
 0x9b7   :  { %12011 = vmatprep.subr.bf16.mxu1 %v17420_v4 }
 0x9ba   :  { %12013 = vmatpush3.bf16.msra.mxu1 %v17421_v46 }
 0x9bb   :  { %12015 = vmatprep.subr.bf16.mxu1 %v17422_v11 }
 0x9be   :  { %12017 = vmatpush3.bf16.msra.mxu1 %v17423_v41 }
 0x9bf   :  { %12019 = vmatprep.subr.bf16.mxu1 %v17424_v31 }
 0x9c2   :  { %12021 = vmatpush3.bf16.msra.mxu1 %v17425_v24 }
 0x9c3   :  { %12055 = vmatprep.subr.bf16.mxu1 %v17426_v45  ;;  %v17431_v45 = vld [vmem:[#allocation59_spill] sm:$0xff] }
 0x9e5   :  { %v1265_v39 = vpop.f32.mrb[8].mxu0 }
 0x9e6   :  { %v1267_v13 = vpop.f32.mrb[9].mxu0 }
 0xa58   :  { %v1340_v56 = vpop.f32.mrb[10].mxu1  ;;  %v14975_v20 = vpop.f32.mrb[10].mxu0 }
 0xa59   :  { %v1342_v27 = vpop.f32.mrb[11].mxu1  ;;  %v1413_v40 = vpop.f32.mrb[11].mxu0 }
 0xa5a   :  { %v1343_v24 = vadd.f32 %v1342_v27, %v17431_v45  ;;  %v17432_v45 = vld [vmem:[#allocation56_spill] sm:$0xff] }
 0xa78   :  { %v1489_v4 = vpop.f32.mrb[12].mxu1 }
 0xa79   :  { %v1490_v46 = vadd.f32 %v17427_v22, %v1489_v4  ;;  %v11377_v26 = vpop.f32.mrb[13].mxu1  ;;  %v17428_v22 = vmov 0  }
 0xa7b   :  { %v9713_v11 = vmul.f32 -1.442695, %v1490_v46  ;;  %v9705_v46 = vld [vmem:[%s17377_s4 + $0x8] sm:$0xff] }
 0xa7c   :  { %v1626_v62 = vcombine.high %v9705_v46, %v9705_v46 }
 0xa7d   :  { %13695 = vpow2.f32 %v9713_v11  ;;  %v17429_v11 = vld [vmem:[#allocation55_spill] sm:$0xff] }
 0xa87   :  { %v13696_v41 = vpop.eup %13695 }
 0xa88   :  { %v1496_v29 = vadd.f32 1.0, %v13696_v41  ;;  %v1633_v41 = vrot.slane %v9705_v46, %v17429_v11 }
 0xa8a   :  { %13697 = vrcp.f32 %v1496_v29  ;;  %v1641_v9 = vcombine.high %v1633_v41, %v1633_v41 }
 0xa94   :  { %v14978_v31 = vpop.eup %13697 }
 0xa95   :  { %1500 = vrot.lane.b32.xlu0 %v14978_v31, %s13915_s30 }
 0xa99   :  { %1521 = vrot.lane.b32.xlu0 %v14885_v18, %s13917_s13 }
 0xa9d   :  { %1527 = vrot.lane.b32.xlu0 %v14885_v18, %s13919_s27 }
 0xaa1   :  { %1533 = vrot.lane.b32.xlu0 %v14885_v18, %s13920_s20 }
 0xaa5   :  { %1539 = vrot.lane.b32.xlu0 %v14885_v18, %s13918_s24 }
 0xb07   :  { %v1501_v29 = vpop.permute.xlu0 %1500 }
 0xb08   :  { %v1503_v26 = vmul.f32 %v14978_v31, %v1501_v29  ;;  %v17430_v29 = vld [vmem:[#allocation58_spill] sm:$0xff] }
 0xb0a   :  { %1506 = vperm.xlu1 %13575, %v1503_v26   ;;  %v1341_v26 = vadd.f32 %v1340_v56, %v17430_v29  ;;  %v17433_v29 = vld [vmem:[#allocation57_spill] sm:$0xff] }
 0xb0b   :  { %v1522_v4 = vpop.permute.xlu0 %1521 }
 0xb0c   :  { %v1542_v8 = vsel %vm281_vm4, %v14885_v18, %v1522_v4 }
 0xb0e   :  { %1524 = vrot.lane.b32.xlu1 %v14885_v18, %s13921_s21 }
 0xb0f   :  { %13576 = vset.pattern.permute.xlu1 %v17428_v22  ;;  %v1528_v14 = vpop.permute.xlu0 %1527 }
 0xb12   :  { %1530 = vrot.lane.b32.xlu1 %v14885_v18, %s13912_s2 }
 0xb16   :  { %1536 = vrot.lane.b32.xlu1 %v14885_v18, %s13911_s26 }
 0xb89   :  { %v1507_v35 = vpop.permute.xlu1 %1506 }
 0xb8a   :  { %v1514_v22 = vmul.f32 %v1507_v35, %v1343_v24  ;;  %v1513_v34 = vmul.f32 %v1507_v35, %v1341_v26  ;;  %v1266_v26 = vadd.f32 %v1265_v39, %v17432_v45 }
 0xb8c   :  { %v15005_v54 = vadd.f32 %v1514_v22, %v14704_v3  ;;  %v15008_v28 = vadd.f32 %v1513_v34, %v14708_v38  ;;  %v1268_v3 = vadd.f32 %v1267_v13, %v17433_v29  ;;  %v17434_v22 = vld [vmem:[#allocation60_spill] sm:$0xff]  ;;  %v1534_v38 = vpop.permute.xlu0 %1533  ;;  %v1509_v4 = vmul.f32 %v1507_v35, %v1266_v26 }
 0xb8d   :  { %v1525_v10 = vpop.permute.xlu1 %1524  ;;  %v1414_v63 = vadd.f32 %v1413_v40, %v17434_v22 }
 0xb8e   :  { %v1543_v56 = vsel %vm421_vm0, %v1542_v8, %v1525_v10  ;;  %v1648_v27 = vmul.f32 %v1641_v9, %v15005_v54  ;;  %v1647_v24 = vmul.f32 %v1633_v41, %v15008_v28  ;;  %v1640_v8 = vrot.slane %v1626_v62, %v17429_v11 }
 0xb8f   :  { %v1545_v18 = vsel %vm1544_vm5, %v1543_v56, %v1528_v14  ;;  %v1510_v9 = vmul.f32 %v1507_v35, %v1268_v3  ;;  %v1516_v46 = vmul.f32 %v1507_v35, %v1414_v63  ;;  %v15026_v62 = vadd.f32 %v1509_v4, %v14706_v5  ;;  %v17437_v5 = vld [vmem:[#allocation63_spill] sm:$0xff] }
 0xb90   :  { %1715 = vmatprep.mubr.f32.mxu1 %v1648_v27  ;;  %v1642_v39 = vcombine.high %v1640_v8, %v1640_v8  ;;  %v1540_v13 = vpop.permute.xlu0 %1539 }
 0xb91   :  { %v1531_v34 = vpop.permute.xlu1 %1530  ;;  %1716 = vmatmul.mubr.f32.vlgmr.msra.gmra.mrb[14].mxu1 %v1647_v24  ;;  %v15030_v63 = vadd.f32 %v1510_v9, %v14702_v16  ;;  %v15033_v56 = vadd.f32 %v1516_v46, %v14718_v43  ;;  %v17435_v43 = vld [vmem:[#allocation61_spill] sm:$0xff]  ;;  %v17436_v16 = vld [vmem:[#allocation62_spill] sm:$0xff]  ;;  %v17441_v9 = vld [vmem:[#allocation72_spill] sm:$0xff] }
 0xb92   :  { %v1546_v10 = vsel %vm674_vm2, %v1545_v18, %v1531_v34  ;;  %12057 = vmatpush1.bf16.msra.mxu1 %v14059_v6  ;;  %1921 = vmatprep.mubr.f32.mxu1 %v17384_v15  ;;  %v17439_v34 = vld [vmem:[#allocation65_spill] sm:$0xff]  ;;  %v1412_v18 = vadd.f32 %v14975_v20, %v14816_v12  ;;  %v17445_v20 = vld [vmem:[#allocation11_spill] sm:$0xff] }
 0xb93   :  { %12059 = vmatprep.subr.bf16.mxu1 %v14081_v23  ;;  %v1548_v14 = vsel %vm1547_vm6, %v1546_v10, %v1534_v38  ;;  %v1650_v3 = vmul.f32 %v1642_v39, %v15033_v56  ;;  %v17438_v38 = vld [vmem:[#allocation64_spill] sm:$0xff]  ;;  %v17440_v10 = vld [vmem:[#allocation70_spill] sm:$0xff] }
 0xb94   :  { %v1515_v4 = vmul.f32 %v1507_v35, %v1412_v18  ;;  %v17444_v39 = vld [vmem:[#allocation10_spill] sm:$0xff] }
 0xb95   :  { %v1537_v40 = vpop.permute.xlu1 %1536  ;;  %v17447_v35 = vld [vmem:[#allocation14_spill] sm:$0xff] }
 0xb96   :  { %v1550_v41 = vsel %vm1549_vm7, %v1548_v14, %v1537_v40  ;;  %v15056_v46 = vadd.f32 %v1515_v4, %v17441_v9  ;;  %v17443_v40 = vld [vmem:[#allocation71_spill] sm:$0xff] }
 0xb97   :  { %v1552_v27 = vsel %vm1551_vm8, %v1550_v41, %v1540_v13  ;;  %v17446_v13 = vld [vmem:[#allocation13_spill] sm:$0xff] }
 0xb98   :  { %v1553_v24 = vmul.f32 %v1552_v27, %v15026_v62  ;;  %v1554_v26 = vmul.f32 %v1552_v27, %v15030_v63  ;;  %17442 = vst [vmem:[#allocation23_spill] sm:$0xff] %v15056_v46  ;;  %v1649_v14 = vmul.f32 %v1640_v8, %v15056_v46 }
 0xb9a   :  { %1619 = vmatprep.mubr.f32.mxu0 %v1554_v26 }
 0xb9b   :  { %1620 = vmatmul.mubr.f32.vlgmr.msra.gmra.mrb[12].mxu0 %v1553_v24 }
 0xb9c   :  { %12025 = vmatpush3.bf16.msra.mxu0 %v14716_v21  ;;  %1785 = vmatprep.mubr.f32.mxu0 %v1650_v3 }
 0xb9d   :  { %12027 = vmatprep.subr.bf16.mxu0 %v14724_v7 }
 0xba0   :  { %12029 = vmatpush3.bf16.msra.mxu0 %v14740_v53 }
 0xba1   :  { %12031 = vmatprep.subr.bf16.mxu0 %v14743_v32 }
 0xba4   :  { %12033 = vmatpush3.bf16.msra.mxu0 %v14761_v44 }
 0xba5   :  { %12035 = vmatprep.subr.bf16.mxu0 %v17435_v43 }
 0xba8   :  { %12037 = vmatpush3.bf16.msra.mxu0 %v17436_v16 }
 0xba9   :  { %12039 = vmatprep.subr.bf16.mxu0 %v17437_v5 }
 0xbac   :  { %12041 = vmatpush3.bf16.msra.mxu0 %v17438_v38 }
 0xbad   :  { %12043 = vmatprep.subr.bf16.mxu0 %v17439_v34 }
 0xbb0   :  { %12045 = vmatpush3.bf16.msra.mxu0 %v14819_v50 }
 0xbb1   :  { %12047 = vmatprep.subr.bf16.mxu0 %v14822_v51 }
 0xbb4   :  { %12049 = vmatpush3.bf16.msra.mxu0 %v14839_v49 }
 0xbb5   :  { %12051 = vmatprep.subr.bf16.mxu0 %v17440_v10 }
 0xbb8   :  { %12053 = vmatpush3.bf16.msra.mxu0 %v17443_v40 }
 0xbb9   :  { %12067 = vmatprep.subr.bf16.mxu0 %v17444_v39 }
 0xbbb   :  { %1786 = vmatmul.mubr.f32.vlgmr.msra.gmra.mrb[14].mxu0 %v1649_v14 }
 0xbbc   :  { %12069 = vmatpush1.bf16.msra.mxu0 %v17445_v20  ;;  %2102 = vmatprep.mubr.f32.mxu0 %v17384_v15 }
 0xbbd   :  { %12071 = vmatprep.subr.bf16.mxu0 %v17446_v13 }
 0xbc0   :  { %12073 = vmatpush1.bf16.msra.mxu0 %v17447_v35 }
 0xbc1   :  { %12082 = vmatprep.subr.bf16.mxu0 %v17397_v36 }
 0xc64   :  { %v10038_v41 = vpop.f32.mrb[14].mxu1 }
 0xc65   :  { %v10039_v27 = vpop.f32.mrb[15].mxu1 }
 0xc66   :  { %v10040_v24 = vadd.f32 %v10039_v27, %v10038_v41 }
 0xc6e   :  { %v10003_v26 = vpop.f32.mrb[12].mxu0 }
 0xc6f   :  { %v10004_v3 = vpop.f32.mrb[13].mxu0 }
 0xc70   :  { %v10005_v18 = vadd.f32 %v10004_v3, %v10003_v26 }
 0xc72   :  { %v1791_v35 = vmul.f32 %v14978_v31, %v10005_v18  ;;  %v17449_v18 = vld [vmem:[#allocation74_spill] sm:$0xff] }
 0xc8e   :  { %v10073_v8 = vpop.f32.mrb[14].mxu0 }
 0xc8f   :  { %v10074_v4 = vpop.f32.mrb[15].mxu0 }
 0xc90   :  { %v10075_v9 = vadd.f32 %v10074_v4, %v10073_v8 }
 0xc92   :  { %v1788_v14 = vadd.f32 %v10075_v9, %v10040_v24 }
 0xc94   :  { %1793 = vrot.lane.b32.xlu1 %v1788_v14, %s13917_s13  ;;  %v17448_v14 = vld [vmem:[#allocation73_spill] sm:$0xff] }
 0xd06   :  { %v1794_v20 = vpop.permute.xlu1 %1793 }
 0xd07   :  { %v1796_v39 = vmul.f32 %v14978_v31, %v1794_v20 }
 0xd09   :  { %1798 = vrot.lane.b32.xlu0 %v1796_v39, %s13918_s24 }
 0xd7b   :  { %v1799_v13 = vpop.permute.xlu0 %1798 }
 0xd7c   :  { %v1801_v40 = vadd.f32 %v1799_v13, %v1791_v35  ;;  %v17450_v35 = vld [vmem:[#allocation7_spill] sm:$0xff] }
 0xd7e   :  { %v1802_v41 = vsel %vm1024_vm3, %v1801_v40, 0.0 }
 0xd7f   :  { %1803 = vadd.xlane.f32.xlu1 %v1802_v41 }
 0xe0c   :  { %v1804_v27 = vpop.xlane.xlu1 %1803 }
 0xe0d   :  { %v1805_v26 = vmul.f32 0.0625, %v1804_v27  ;;  %v17451_v27 = vld [vmem:[#allocation8_spill] sm:$0xff] }
 0xe0f   :  { %v1806_v3 = vsub.f32 %v1801_v40, %v1805_v26  ;;  %v17452_v26 = vld [vmem:[#allocation9_spill] sm:$0xff] }
 0xe11   :  { %v1807_v46 = vmul.f32 %v1806_v3, %v1806_v3 }
 0xe13   :  { %v1808_v24 = vsel %vm1024_vm3, %v1807_v46, 0.0 }
 0xe14   :  { %1809 = vadd.xlane.f32.xlu0 %v1808_v24  ;;  %v9715_v24 = vld [vmem:[%s17322_s28 + $0x4] sm:$0x3] }
 0xea1   :  { %v1810_v8 = vpop.xlane.xlu0 %1809 }
 0xea2   :  { %v1811_v4 = vmul.f32 0.0625, %v1810_v8 }
 0xea4   :  { %v1812_v9 = vadd.f32 1e-05, %v1811_v4 }
 0xea6   :  { %13699 = vrsqrt.f32 %v1812_v9 }
 0xeb0   :  { %v13700_v20 = vpop.eup %13699 }
 0xeb1   :  { %v1814_v39 = vmul.f32 %v13700_v20, %v1806_v3  ;;  %v17453_v3 = vld [vmem:[#allocation12_spill] sm:$0xff] }
 0xeb3   :  { %v1815_v31 = vmul.f32 %v17448_v14, %v1814_v39  ;;  %v17454_v39 = vmov 1  }
 0xeb5   :  { %v15074_v13 = vadd.f32 %v17449_v18, %v1815_v31 }
 0xeb7   :  { %1817 = vst.msk [vmem:[#allocation2 + $0x2] sm:$0x3] %vm1024_vm3, %v15074_v13  ;;  %9718 = vmatmul.mubr.msk.f32.vlgmr.msra.gmra.mrb[16].mxu1 %vm281_vm4, %v15074_v13  ;;  %v1824_v46 = vsel %vm1024_vm3, %v15074_v13, 0.0  ;;  %v1829_v40 = vmul.f32 %v15074_v13, %v15074_v13 }
 0xeb8   :  { %1825 = vadd.xlane.f32.xlu0 %v1824_v46  ;;  %12061 = vmatpush1.bf16.msra.mxu1 %v17450_v35  ;;  %v17455_v35 = vmov 32  }
 0xeb9   :  { %v1830_v41 = vsel %vm1024_vm3, %v1829_v40, 0.0  ;;  %12063 = vmatprep.subr.bf16.mxu1 %v17451_v27  ;;  %2027 = vmatprep.mubr.f32.mxu1 %v17384_v15 }
 0xeba   :  { %1831 = vadd.xlane.f32.xlu1 %v1830_v41 }
 0xebc   :  { %12065 = vmatpush1.bf16.msra.mxu1 %v17452_v26 }
 0xebd   :  { %12075 = vmatprep.subr.bf16.mxu1 %v17453_v3 }
 0xf45   :  { %v1826_v8 = vpop.xlane.xlu0 %1825 }
 0xf46   :  { %v1827_v4 = vmul.f32 0.020833334, %v1826_v8  ;;  %v9717_v8 = vld.sshfl [vmem:[%s17332_s3 + $0x8] sm:$0x33 pattern:$0x76325410] }
 0xf47   :  { %v1832_v18 = vpop.xlane.xlu1 %1831 }
 0xf48   :  { %v1828_v9 = vadd.f32 %v9715_v24, %v1827_v4  ;;  %v1833_v46 = vmul.f32 0.020833334, %v1832_v18 }
 0xf4a   :  { %1930 = vperm.xlu1 %13576, %v1828_v9   ;;  %v1835_v20 = vmul.f32 %v1828_v9, %v1828_v9  ;;  %v1834_v40 = vadd.f32 %v9715_v24, %v1833_v46  ;;  %v1851_v9 = vcombine.high %v9717_v8, %v9717_v8 }
 0xf4c   :  { %1837 = vrot.lane.b32.xlu0 %v1835_v20, %s13908_s29  ;;  %v17456_v20 = vld [vmem:[#allocation15_spill] sm:$0xff] }
 0xf4e   :  { %13577 = vset.pattern.permute.xlu1 %v17454_v39 }
 0xf8a   :  { %v1923_v14 = vpop.f32.mrb[16].mxu1 }
 0xf8b   :  { %v1925_v31 = vpop.f32.mrb[17].mxu1  ;;  %v1924_v18 = vadd.f32 %v9717_v8, %v1923_v14 }
 0xf8c   :  { %v1926_v24 = vadd.f32 %v1925_v31, %v1851_v9 }
 0xfbe   :  { %v1838_v41 = vpop.permute.xlu0 %1837 }
 0xfbf   :  { %v1840_v3 = vsub.f32 %v1834_v40, %v1838_v41 }
 0xfc1   :  { %v1841_v26 = vadd.f32 1e-05, %v1840_v3 }
 0xfc3   :  { %13701 = vrsqrt.f32 %v1841_v26 }
 0xfc9   :  { %v1931_v4 = vpop.permute.xlu1 %1930 }
 0xfca   :  { %v1933_v39 = vmul.f32 %v1931_v4, %v17456_v20  ;;  %v1934_v10 = vmul.f32 %v1931_v4, %v14172_v55  ;;  %v17462_v4 = vld [vmem:[#allocation46_spill] sm:$0xff] }
 0xfcc   :  { %v1935_v46 = vsub.f32 %v1924_v18, %v1933_v39  ;;  %v1936_v40 = vsub.f32 %v1926_v24, %v1934_v10  ;;  %v17464_v18 = vld [vmem:[#allocation48_spill] sm:$0xff] }
 0xfcd   :  { %v13702_v27 = vpop.eup %13701 }
 0xfce   :  { %1939 = vperm.xlu1 %13577, %v13702_v27  }
 0xfd2   :  { %13583 = vset.pattern.permute.xlu1 %v17455_v35 }
0x104d   :  { %v1940_v3 = vpop.permute.xlu1 %1939 }
0x104e   :  { %v1942_v26 = vmul.f32 %v1940_v3, %v1935_v46  ;;  %v1943_v41 = vmul.f32 %v1940_v3, %v1936_v40  ;;  %v17465_v40 = vld [vmem:[#allocation50_spill] sm:$0xff] }
0x104f   :  { %v17466_v3 = vld [vmem:[#allocation22_spill] sm:$0xff] }
0x1050   :  { %v1944_v27 = vadd.f32 %v1942_v26, %v14180_v1  ;;  %v1945_v35 = vadd.f32 %v1943_v41, %v14183_v2  ;;  %v17467_v26 = vld [vmem:[#allocation24_spill] sm:$0xff]  ;;  %v17468_v41 = vld [vmem:[#allocation51_spill] sm:$0xff] }
0x1052   :  { %v9719_v49 = vmul.f32 -1.442695, %v1944_v27  ;;  %v9720_v51 = vmul.f32 -1.442695, %v1945_v35 }
0x1054   :  { %13703 = vpow2.f32 %v9719_v49  ;;  %v17459_v49 = vld [vmem:[#allocation42_spill] sm:$0xff] }
0x1055   :  { %13705 = vpow2.f32 %v9720_v51  ;;  %v17458_v51 = vld [vmem:[#allocation40_spill] sm:$0xff] }
0x105e   :  { %v13704_v50 = vpop.eup %13703 }
0x105f   :  { %v13706_v12 = vpop.eup %13705  ;;  %v1952_v20 = vadd.f32 1.0, %v13704_v50  ;;  %v17457_v50 = vld [vmem:[#allocation19_spill] sm:$0xff] }
0x1060   :  { %v1953_v34 = vadd.f32 1.0, %v13706_v12 }
0x1061   :  { %13707 = vrcp.f32 %v1952_v20  ;;  %v17463_v20 = vld [vmem:[#allocation21_spill] sm:$0xff] }
0x1062   :  { %13709 = vrcp.f32 %v1953_v34  ;;  %v17460_v34 = vld [vmem:[#allocation20_spill] sm:$0xff] }
0x106b   :  { %v13708_v14 = vpop.eup %13707 }
0x106c   :  { %v13710_v39 = vpop.eup %13709  ;;  %v1958_v10 = vmul.f32 %v13708_v14, %v1944_v27  ;;  %v17469_v14 = vld [vmem:[#allocation54_spill] sm:$0xff] }
0x106d   :  { %v1959_v31 = vmul.f32 %v13710_v39, %v1945_v35  ;;  %v17461_v35 = vld [vmem:[#allocation44_spill] sm:$0xff]  ;;  %v17470_v39 = vld [vmem:[#allocation25_spill] sm:$0xff] }
0x106e   :  { %2034 = vrot.lane.b32.xlu0 %v1958_v10, %s13911_s26  ;;  %9721 = vmatmul.mubr.msk.f32.vlgmr.msra.gmra.mrb[18].mxu1 %vm421_vm0, %v1958_v10 }
0x106f   :  { %v13578_v8 = vpack.i.bf16 %v1959_v31, %v1958_v10  ;;  %12077 = vmatpush1.bf16.msra.mxu1 %v14199_v25  ;;  %2173 = vmatprep.mubr.f32.mxu1 %v17384_v15  ;;  %v17471_v10 = vld [vmem:[#allocation28_spill] sm:$0xff]  ;;  %v17472_v31 = vld [vmem:[#allocation29_spill] sm:$0xff] }
0x1070   :  { %12079 = vmatprep.subr.bf16.mxu1 %v14201_v30 }
0x1071   :  { %13579 = vrot.lane.b32.xlu1 %v13578_v8, %s13912_s2  ;;  %v17473_v8 = vld [vmem:[#allocation32_spill] sm:$0xff] }
0x1073   :  { %12081 = vmatpush1.bf16.msra.mxu1 %v14212_v37 }
0x1074   :  { %12107 = vmatprep.subr.bf16.mxu1 %v14331_v58 }
0x10e0   :  { %v2035_v12 = vpop.permute.xlu0 %2034 }
0x10e1   :  { %9722 = vmatmul.mubr.msk.f32.vlgmr.msra.gmra.mrb[16].mxu0 %vm421_vm0, %v2035_v12  ;;  %9723 = vmatmul.mubr.msk.f32.vlgmr.msra.gmra.mrb[20].mxu1 %vm421_vm0, %v2035_v12  ;;  %v17474_v12 = vld [vmem:[#allocation33_spill] sm:$0xff] }
0x10e2   :  { %12084 = vmatpush3.bf16.msra.mxu0 %v14224_v42  ;;  %11410 = vmatprep.mubr.msk.f32.mxu0 %vm13913_vm1, %v17384_v15 }
0x10e3   :  { %12085 = vmatprep.subr.bf16.mxu0 %v17397_v36  ;;  %12109 = vmatpush3.bf16.msra.mxu1 %v14342_v0  ;;  %v13580_v9 = vpop.permute.xlu1 %13579 }
0x10e4   :  { %12111 = vmatprep.subr.bf16.mxu1 %v14369_v19  ;;  %v13582_v24 = vunpack.i.h.bf16 %v13580_v9  ;;  %v13581_v46 = vunpack.i.l.bf16 %v13580_v9  ;;  %v17475_v9 = vld [vmem:[#allocation35_spill] sm:$0xff] }
0x10e6   :  { %12087 = vmatpush3.bf16.msra.mxu0 %v14235_v52  ;;  %v2185_v27 = vsel %vm674_vm2, %v13581_v46, %v13582_v24  ;;  %v17478_v24 = vld [vmem:[#allocation41_spill] sm:$0xff]  ;;  %v17479_v46 = vld [vmem:[#allocation43_spill] sm:$0xff] }
0x10e7   :  { %12088 = vmatprep.subr.bf16.mxu0 %v17397_v36  ;;  %12113 = vmatpush3.bf16.msra.mxu1 %v14371_v33 }
0x10e8   :  { %12115 = vmatprep.subr.bf16.mxu1 %v14397_v59 }
0x10ea   :  { %12090 = vmatpush3.bf16.msra.mxu0 %v14247_v57 }
0x10eb   :  { %12091 = vmatprep.subr.bf16.mxu0 %v17397_v36  ;;  %12117 = vmatpush3.bf16.msra.mxu1 %v14419_v17 }
0x10ec   :  { %12119 = vmatprep.subr.bf16.mxu1 %v14436_v48 }
0x10ee   :  { %12093 = vmatpush3.bf16.msra.mxu0 %v14257_v60 }
0x10ef   :  { %12094 = vmatprep.subr.bf16.mxu0 %v17397_v36  ;;  %12121 = vmatpush3.bf16.msra.mxu1 %v14467_v61 }
0x10f0   :  { %12123 = vmatprep.subr.bf16.mxu1 %v14479_v47 }
0x10f2   :  { %12096 = vmatpush3.bf16.msra.mxu0 %v17457_v50 }
0x10f3   :  { %12097 = vmatprep.subr.bf16.mxu0 %v17397_v36  ;;  %12125 = vmatpush3.bf16.msra.mxu1 %v17458_v51 }
0x10f4   :  { %12127 = vmatprep.subr.bf16.mxu1 %v17459_v49 }
0x10f6   :  { %12099 = vmatpush3.bf16.msra.mxu0 %v17460_v34 }
0x10f7   :  { %12100 = vmatprep.subr.bf16.mxu0 %v17397_v36  ;;  %12129 = vmatpush3.bf16.msra.mxu1 %v17461_v35 }
0x10f8   :  { %12131 = vmatprep.subr.bf16.mxu1 %v17462_v4 }
0x10fa   :  { %12102 = vmatpush3.bf16.msra.mxu0 %v17463_v20 }
0x10fb   :  { %12103 = vmatprep.subr.bf16.mxu0 %v17397_v36  ;;  %12133 = vmatpush3.bf16.msra.mxu1 %v17464_v18 }
0x10fc   :  { %12135 = vmatprep.subr.bf16.mxu1 %v17465_v40 }
0x10fe   :  { %12105 = vmatpush3.bf16.msra.mxu0 %v17466_v3 }
0x10ff   :  { %12139 = vmatprep.subr.bf16.mxu0 %v17467_v26  ;;  %12137 = vmatpush3.bf16.msra.mxu1 %v17468_v41  ;;  %v17476_v26 = vld [vmem:[#allocation37_spill] sm:$0xff]  ;;  %v17477_v41 = vld [vmem:[#allocation39_spill] sm:$0xff] }
0x1100   :  { %12171 = vmatprep.subr.bf16.mxu1 %v17469_v14 }
0x1101   :  { %11411 = vmatmul.mubr.f32.vlgmr.msra.gmra.mrb[18].mxu0 %v2185_v27  ;;  %v17480_v27 = vld [vmem:[#allocation45_spill] sm:$0xff] }
0x1102   :  { %12141 = vmatpush3.bf16.msra.mxu0 %v17470_v39  ;;  %v17481_v39 = vld [vmem:[#allocation47_spill] sm:$0xff] }
0x1103   :  { %12143 = vmatprep.subr.bf16.mxu0 %v17471_v10  ;;  %v17482_v10 = vld [vmem:[#allocation49_spill] sm:$0xff] }
0x1106   :  { %12145 = vmatpush3.bf16.msra.mxu0 %v17472_v31  ;;  %v17483_v31 = vld [vmem:[#allocation52_spill] sm:$0xff] }
0x1107   :  { %12147 = vmatprep.subr.bf16.mxu0 %v17473_v8  ;;  %v17484_v8 = vld [vmem:[#allocation53_spill] sm:$0xff] }
0x110a   :  { %12149 = vmatpush3.bf16.msra.mxu0 %v17474_v12  ;;  %v17485_v12 = vld [vmem:[#allocation6_spill] sm:$0xff] }
0x110b   :  { %12151 = vmatprep.subr.bf16.mxu0 %v17475_v9 }
0x110e   :  { %12153 = vmatpush3.bf16.msra.mxu0 %v17476_v26 }
0x110f   :  { %12155 = vmatprep.subr.bf16.mxu0 %v17477_v41 }
0x1112   :  { %12157 = vmatpush3.bf16.msra.mxu0 %v17478_v24 }
0x1113   :  { %12159 = vmatprep.subr.bf16.mxu0 %v17479_v46 }
0x1116   :  { %12161 = vmatpush3.bf16.msra.mxu0 %v17480_v27 }
0x1117   :  { %12163 = vmatprep.subr.bf16.mxu0 %v17481_v39  ;;  %v15169_v39 = vld [vmem:[%s17131_s11] ss:$0 sm:$0xff] }
0x1118   :  { %17486 = vst [vmem:[#allocation55_spill] sm:$0xff] %v15169_v39 }
0x111a   :  { %12165 = vmatpush3.bf16.msra.mxu0 %v17482_v10 }
0x111b   :  { %12167 = vmatprep.subr.bf16.mxu0 %v17483_v31 }
0x111e   :  { %12169 = vmatpush3.bf16.msra.mxu0 %v17484_v8 }
0x111f   :  { %12203 = vmatprep.subr.bf16.mxu0 %v17485_v12 }
0x1141   :  { %v2029_v9 = vpop.f32.mrb[18].mxu1 }
0x1142   :  { %v2031_v26 = vpop.f32.mrb[19].mxu1 }
0x11b4   :  { %v2104_v14 = vpop.f32.mrb[16].mxu0  ;;  %v15164_v41 = vpop.f32.mrb[20].mxu1 }
0x11b5   :  { %v2106_v24 = vpop.f32.mrb[17].mxu0  ;;  %v2177_v3 = vpop.f32.mrb[21].mxu1 }
0x11d4   :  { %v2253_v46 = vpop.f32.mrb[18].mxu0 }
0x11d5   :  { %v2254_v10 = vadd.f32 %v15169_v39, %v2253_v46  ;;  %v11412_v31 = vpop.f32.mrb[19].mxu0  ;;  %v9716_v46 = vld [vmem:[%s17377_s4 + $0x10] sm:$0xff]  ;;  %v17489_v39 = vld [vmem:[#allocation59_spill] sm:$0xff] }
0x11d6   :  { %v2107_v18 = vadd.f32 %v2106_v24, %v17489_v39  ;;  %v2386_v61 = vcombine.high %v9716_v46, %v9716_v46 }
0x11d7   :  { %v9724_v27 = vmul.f32 -1.442695, %v2254_v10 }
0x11d9   :  { %13711 = vpow2.f32 %v9724_v27  ;;  %v2393_v27 = vrot.slane %v9716_v46, %v17429_v11 }
0x11db   :  { %v2401_v35 = vcombine.high %v2393_v27, %v2393_v27 }
0x11e3   :  { %v13712_v8 = vpop.eup %13711 }
0x11e4   :  { %v2260_v12 = vadd.f32 1.0, %v13712_v8  ;;  %v17487_v8 = vmov 0  }
0x11e6   :  { %13713 = vrcp.f32 %v2260_v12 }
0x11f0   :  { %v15172_v40 = vpop.eup %13713 }
0x11f1   :  { %2264 = vrot.lane.b32.xlu0 %v15172_v40, %s13915_s30 }
0x11f5   :  { %2285 = vrot.lane.b32.xlu0 %v15074_v13, %s13917_s13 }
0x11f9   :  { %2291 = vrot.lane.b32.xlu0 %v15074_v13, %s13919_s27 }
0x11fd   :  { %2297 = vrot.lane.b32.xlu0 %v15074_v13, %s13920_s20 }
0x1201   :  { %2303 = vrot.lane.b32.xlu0 %v15074_v13, %s13918_s24 }
0x1263   :  { %v2265_v10 = vpop.permute.xlu0 %2264 }
0x1264   :  { %v2267_v31 = vmul.f32 %v15172_v40, %v2265_v10  ;;  %v17488_v10 = vld [vmem:[#allocation58_spill] sm:$0xff] }
0x1266   :  { %2270 = vperm.xlu1 %13583, %v2267_v31   ;;  %v2105_v31 = vadd.f32 %v2104_v14, %v17488_v10 }
0x1267   :  { %v2286_v12 = vpop.permute.xlu0 %2285 }
0x1268   :  { %v2306_v50 = vsel %vm281_vm4, %v15074_v13, %v2286_v12  ;;  %v2400_v12 = vrot.slane %v2386_v61, %v17429_v11 }
0x126a   :  { %2288 = vrot.lane.b32.xlu1 %v15074_v13, %s13921_s21 }
0x126b   :  { %13584 = vset.pattern.permute.xlu1 %v17487_v8  ;;  %v2292_v4 = vpop.permute.xlu0 %2291 }
0x126e   :  { %2294 = vrot.lane.b32.xlu1 %v15074_v13, %s13912_s2 }
0x1272   :  { %2300 = vrot.lane.b32.xlu1 %v15074_v13, %s13911_s26 }
0x12e5   :  { %v2271_v20 = vpop.permute.xlu1 %2270 }
0x12e6   :  { %v2278_v8 = vmul.f32 %v2271_v20, %v2107_v18  ;;  %v2277_v34 = vmul.f32 %v2271_v20, %v2105_v31  ;;  %v2030_v18 = vadd.f32 %v2029_v9, %v17432_v45  ;;  %v2032_v31 = vadd.f32 %v2031_v26, %v17433_v29 }
0x12e7   :  { %v2402_v9 = vcombine.high %v2400_v12, %v2400_v12 }
0x12e8   :  { %v15199_v49 = vadd.f32 %v2278_v8, %v15005_v54  ;;  %v15202_v51 = vadd.f32 %v2277_v34, %v15008_v28  ;;  %v2178_v54 = vadd.f32 %v2177_v3, %v17434_v22  ;;  %v2298_v8 = vpop.permute.xlu0 %2297  ;;  %v2273_v13 = vmul.f32 %v2271_v20, %v2030_v18 }
0x12e9   :  { %v2289_v47 = vpop.permute.xlu1 %2288 }
0x12ea   :  { %v2307_v14 = vsel %vm421_vm0, %v2306_v50, %v2289_v47  ;;  %v2408_v24 = vmul.f32 %v2401_v35, %v15199_v49  ;;  %v2407_v39 = vmul.f32 %v2393_v27, %v15202_v51  ;;  %v2274_v50 = vmul.f32 %v2271_v20, %v2032_v31 }
0x12eb   :  { %v2308_v34 = vsel %vm1544_vm5, %v2307_v14, %v2292_v4  ;;  %v2280_v35 = vmul.f32 %v2271_v20, %v2178_v54  ;;  %v15220_v4 = vadd.f32 %v2273_v13, %v15026_v62  ;;  %v17490_v62 = vld [vmem:[#allocation65_spill] sm:$0xff]  ;;  %v17492_v54 = vld [vmem:[#allocation67_spill] sm:$0xff]  ;;  %v17495_v13 = vld [vmem:[#allocation70_spill] sm:$0xff] }
0x12ec   :  { %2475 = vmatprep.mubr.f32.mxu0 %v2408_v24  ;;  %v2304_v46 = vpop.permute.xlu0 %2303 }
0x12ed   :  { %v2295_v28 = vpop.permute.xlu1 %2294  ;;  %2476 = vmatmul.mubr.f32.vlgmr.msra.gmra.mrb[20].mxu0 %v2407_v39  ;;  %v15224_v39 = vadd.f32 %v2274_v50, %v15030_v63  ;;  %v15227_v27 = vadd.f32 %v2280_v35, %v15033_v56  ;;  %v17491_v63 = vld [vmem:[#allocation66_spill] sm:$0xff]  ;;  %v17498_v35 = vld [vmem:[#allocation71_spill] sm:$0xff] }
0x12ee   :  { %v2309_v47 = vsel %vm674_vm2, %v2308_v34, %v2295_v28  ;;  %12205 = vmatpush1.bf16.msra.mxu0 %v14059_v6  ;;  %2681 = vmatprep.mubr.f32.mxu0 %v17384_v15  ;;  %v2176_v56 = vadd.f32 %v15164_v41, %v17491_v63  ;;  %v17494_v34 = vld [vmem:[#allocation69_spill] sm:$0xff]  ;;  %v17500_v41 = vld [vmem:[#allocation11_spill] sm:$0xff] }
0x12ef   :  { %12207 = vmatprep.subr.bf16.mxu0 %v14081_v23  ;;  %v2310_v26 = vsel %vm1547_vm6, %v2309_v47, %v2298_v8  ;;  %v2410_v31 = vmul.f32 %v2402_v9, %v15227_v27  ;;  %v17493_v8 = vld [vmem:[#allocation68_spill] sm:$0xff]  ;;  %v17496_v47 = vld [vmem:[#allocation23_spill] sm:$0xff]  ;;  %v17501_v9 = vld [vmem:[#allocation13_spill] sm:$0xff] }
0x12f0   :  { %v2279_v28 = vmul.f32 %v2271_v20, %v2176_v56  ;;  %v17502_v20 = vld [vmem:[#allocation14_spill] sm:$0xff] }
0x12f1   :  { %v2301_v3 = vpop.permute.xlu1 %2300 }
0x12f2   :  { %v2311_v61 = vsel %vm1549_vm7, %v2310_v26, %v2301_v3  ;;  %v15250_v50 = vadd.f32 %v2279_v28, %v17496_v47  ;;  %v17499_v26 = vld [vmem:[#allocation10_spill] sm:$0xff] }
0x12f3   :  { %v2312_v14 = vsel %vm1551_vm8, %v2311_v61, %v2304_v46 }
0x12f4   :  { %v2313_v24 = vmul.f32 %v2312_v14, %v15220_v4  ;;  %v2314_v18 = vmul.f32 %v2312_v14, %v15224_v39  ;;  %17497 = vst [vmem:[#allocation56_spill] sm:$0xff] %v15250_v50  ;;  %v2409_v3 = vmul.f32 %v2400_v12, %v15250_v50 }
0x12f6   :  { %2379 = vmatprep.mubr.f32.mxu1 %v2314_v18 }
0x12f7   :  { %2380 = vmatmul.mubr.f32.vlgmr.msra.gmra.mrb[22].mxu1 %v2313_v24 }
0x12f8   :  { %12173 = vmatpush3.bf16.msra.mxu1 %v14716_v21  ;;  %2545 = vmatprep.mubr.f32.mxu1 %v2410_v31 }
0x12f9   :  { %12175 = vmatprep.subr.bf16.mxu1 %v14724_v7 }
0x12fc   :  { %12177 = vmatpush3.bf16.msra.mxu1 %v14740_v53 }
0x12fd   :  { %12179 = vmatprep.subr.bf16.mxu1 %v14743_v32 }
0x1300   :  { %12181 = vmatpush3.bf16.msra.mxu1 %v14761_v44 }
0x1301   :  { %12183 = vmatprep.subr.bf16.mxu1 %v17435_v43 }
0x1304   :  { %12185 = vmatpush3.bf16.msra.mxu1 %v17436_v16 }
0x1305   :  { %12187 = vmatprep.subr.bf16.mxu1 %v17437_v5 }
0x1308   :  { %12189 = vmatpush3.bf16.msra.mxu1 %v17438_v38 }
0x1309   :  { %12191 = vmatprep.subr.bf16.mxu1 %v17490_v62 }
0x130c   :  { %12193 = vmatpush3.bf16.msra.mxu1 %v17492_v54 }
0x130d   :  { %12195 = vmatprep.subr.bf16.mxu1 %v17493_v8 }
0x1310   :  { %12197 = vmatpush3.bf16.msra.mxu1 %v17494_v34 }
0x1311   :  { %12199 = vmatprep.subr.bf16.mxu1 %v17495_v13 }
0x1314   :  { %12201 = vmatpush3.bf16.msra.mxu1 %v17498_v35 }
0x1315   :  { %12215 = vmatprep.subr.bf16.mxu1 %v17499_v26 }
0x1317   :  { %2546 = vmatmul.mubr.f32.vlgmr.msra.gmra.mrb[24].mxu1 %v2409_v3 }
0x1318   :  { %12217 = vmatpush1.bf16.msra.mxu1 %v17500_v41  ;;  %2862 = vmatprep.mubr.f32.mxu1 %v17384_v15 }
0x1319   :  { %12219 = vmatprep.subr.bf16.mxu1 %v17501_v9 }
0x131c   :  { %12221 = vmatpush1.bf16.msra.mxu1 %v17502_v20 }
0x131d   :  { %12230 = vmatprep.subr.bf16.mxu1 %v17397_v36 }
0x13c0   :  { %v10160_v46 = vpop.f32.mrb[20].mxu0 }
0x13c1   :  { %v10161_v61 = vpop.f32.mrb[21].mxu0 }
0x13c2   :  { %v10162_v14 = vadd.f32 %v10161_v61, %v10160_v46 }
0x13ca   :  { %v10125_v24 = vpop.f32.mrb[22].mxu1 }
0x13cb   :  { %v10126_v18 = vpop.f32.mrb[23].mxu1 }
0x13cc   :  { %v10127_v31 = vadd.f32 %v10126_v18, %v10125_v24 }
0x13ce   :  { %v2551_v20 = vmul.f32 %v15172_v40, %v10127_v31 }
0x13ea   :  { %v10195_v12 = vpop.f32.mrb[24].mxu1 }
0x13eb   :  { %v10196_v56 = vpop.f32.mrb[25].mxu1 }
0x13ec   :  { %v10197_v28 = vadd.f32 %v10196_v56, %v10195_v12 }
0x13ee   :  { %v2548_v47 = vadd.f32 %v10197_v28, %v10162_v14 }
0x13f0   :  { %2553 = vrot.lane.b32.xlu1 %v2548_v47, %s13917_s13 }
0x1462   :  { %v2554_v3 = vpop.permute.xlu1 %2553 }
0x1463   :  { %v2556_v41 = vmul.f32 %v15172_v40, %v2554_v3  ;;  %v15269_v40 = vld [vmem:[%s17135_s15] ss:$0 sm:$0xff] }
0x1464   :  { %17503 = vst [vmem:[#allocation57_spill] sm:$0xff] %v15269_v40  ;;  %v17505_v3 = vld [vmem:[#allocation7_spill] sm:$0xff] }
0x1465   :  { %2558 = vrot.lane.b32.xlu0 %v2556_v41, %s13918_s24 }
0x14d7   :  { %v2559_v9 = vpop.permute.xlu0 %2558 }
0x14d8   :  { %v2561_v26 = vadd.f32 %v2559_v9, %v2551_v20 }
0x14da   :  { %v2562_v46 = vsel %vm1024_vm3, %v2561_v26, 0.0 }
0x14db   :  { %2563 = vadd.xlane.f32.xlu1 %v2562_v46 }
0x1568   :  { %v2564_v61 = vpop.xlane.xlu1 %2563 }
0x1569   :  { %v2565_v24 = vmul.f32 0.0625, %v2564_v61  ;;  %v17506_v61 = vld [vmem:[#allocation8_spill] sm:$0xff] }
0x156b   :  { %v2566_v18 = vsub.f32 %v2561_v26, %v2565_v24  ;;  %v15275_v26 = vld [vmem:[%s17136_s16] ss:$0 sm:$0xff]  ;;  %v17507_v24 = vld [vmem:[#allocation9_spill] sm:$0xff] }
0x156c   :  { %17504 = vst [vmem:[#allocation60_spill] sm:$0xff] %v15275_v26 }
0x156d   :  { %v2567_v35 = vmul.f32 %v2566_v18, %v2566_v18 }
0x156f   :  { %v2568_v14 = vsel %vm1024_vm3, %v2567_v35, 0.0 }
0x1570   :  { %2569 = vadd.xlane.f32.xlu0 %v2568_v14  ;;  %v9726_v14 = vld [vmem:[%s17322_s28 + $0x6] sm:$0x3] }
0x15fd   :  { %v2570_v12 = vpop.xlane.xlu0 %2569 }
0x15fe   :  { %v2571_v56 = vmul.f32 0.0625, %v2570_v12 }
0x1600   :  { %v2572_v28 = vadd.f32 1e-05, %v2571_v56 }
0x1602   :  { %13715 = vrsqrt.f32 %v2572_v28 }
0x160c   :  { %v13716_v47 = vpop.eup %13715 }
0x160d   :  { %v2574_v41 = vmul.f32 %v13716_v47, %v2566_v18  ;;  %v17508_v18 = vld [vmem:[#allocation12_spill] sm:$0xff] }
0x160f   :  { %v2575_v9 = vmul.f32 %v15269_v40, %v2574_v41  ;;  %v17509_v41 = vmov 1   ;;  %v17510_v40 = vmov 32  }
0x1611   :  { %v15278_v35 = vadd.f32 %v15275_v26, %v2575_v9 }
0x1613   :  { %2577 = vst.msk [vmem:[#allocation2 + $0x4] sm:$0x3] %vm1024_vm3, %v15278_v35  ;;  %9729 = vmatmul.mubr.msk.f32.vlgmr.msra.gmra.mrb[22].mxu0 %vm281_vm4, %v15278_v35  ;;  %v2584_v20 = vsel %vm1024_vm3, %v15278_v35, 0.0  ;;  %v2589_v31 = vmul.f32 %v15278_v35, %v15278_v35 }
0x1614   :  { %2585 = vadd.xlane.f32.xlu0 %v2584_v20  ;;  %12209 = vmatpush1.bf16.msra.mxu0 %v17505_v3 }
0x1615   :  { %v2590_v46 = vsel %vm1024_vm3, %v2589_v31, 0.0  ;;  %12211 = vmatprep.subr.bf16.mxu0 %v17506_v61  ;;  %2787 = vmatprep.mubr.f32.mxu0 %v17384_v15 }
0x1616   :  { %2591 = vadd.xlane.f32.xlu1 %v2590_v46 }
0x1618   :  { %12213 = vmatpush1.bf16.msra.mxu0 %v17507_v24 }
0x1619   :  { %12223 = vmatprep.subr.bf16.mxu0 %v17508_v18 }
0x16a1   :  { %v2586_v12 = vpop.xlane.xlu0 %2585 }
0x16a2   :  { %v2587_v56 = vmul.f32 0.020833334, %v2586_v12  ;;  %v9728_v12 = vld.sshfl [vmem:[%s17332_s3 + $0xc] sm:$0x33 pattern:$0x76325410] }
0x16a3   :  { %v2592_v31 = vpop.xlane.xlu1 %2591 }
0x16a4   :  { %v2588_v28 = vadd.f32 %v9726_v14, %v2587_v56  ;;  %v2593_v46 = vmul.f32 0.020833334, %v2592_v31 }
0x16a6   :  { %2690 = vperm.xlu1 %13584, %v2588_v28   ;;  %v2595_v47 = vmul.f32 %v2588_v28, %v2588_v28  ;;  %v2594_v24 = vadd.f32 %v9726_v14, %v2593_v46  ;;  %v2611_v28 = vcombine.high %v9728_v12, %v9728_v12 }
0x16a8   :  { %2597 = vrot.lane.b32.xlu0 %v2595_v47, %s13908_s29  ;;  %v17511_v47 = vld [vmem:[#allocation15_spill] sm:$0xff] }
0x16aa   :  { %13585 = vset.pattern.permute.xlu1 %v17509_v41 }
0x16e6   :  { %v2683_v9 = vpop.f32.mrb[22].mxu0 }
0x16e7   :  { %v2685_v20 = vpop.f32.mrb[23].mxu0  ;;  %v2684_v31 = vadd.f32 %v9728_v12, %v2683_v9 }
0x16e8   :  { %v2686_v14 = vadd.f32 %v2685_v20, %v2611_v28  ;;  %v17518_v28 = vld [vmem:[#allocation44_spill] sm:$0xff] }
0x171a   :  { %v2598_v61 = vpop.permute.xlu0 %2597 }
0x171b   :  { %v2600_v18 = vsub.f32 %v2594_v24, %v2598_v61 }
0x171d   :  { %v2601_v3 = vadd.f32 1e-05, %v2600_v18 }
0x171f   :  { %13717 = vrsqrt.f32 %v2601_v3 }
0x1725   :  { %v2691_v56 = vpop.permute.xlu1 %2690 }
0x1726   :  { %v2693_v41 = vmul.f32 %v2691_v56, %v17511_v47  ;;  %v2694_v50 = vmul.f32 %v2691_v56, %v14172_v55  ;;  %v17517_v56 = vld [vmem:[#allocation20_spill] sm:$0xff] }
0x1728   :  { %v2695_v46 = vsub.f32 %v2684_v31, %v2693_v41  ;;  %v2696_v61 = vsub.f32 %v2686_v14, %v2694_v50  ;;  %v17520_v14 = vld [vmem:[#allocation21_spill] sm:$0xff] }
0x1729   :  { %v13718_v26 = vpop.eup %13717 }
0x172a   :  { %2699 = vperm.xlu1 %13585, %v13718_v26  }
0x172e   :  { %13591 = vset.pattern.permute.xlu1 %v17510_v40 }
0x17a9   :  { %v2700_v24 = vpop.permute.xlu1 %2699 }
0x17aa   :  { %v2702_v3 = vmul.f32 %v2700_v24, %v2695_v46  ;;  %v2703_v18 = vmul.f32 %v2700_v24, %v2696_v61  ;;  %v17521_v46 = vld [vmem:[#allocation48_spill] sm:$0xff] }
0x17ac   :  { %v2704_v26 = vadd.f32 %v2702_v3, %v14180_v1  ;;  %v2705_v40 = vadd.f32 %v2703_v18, %v14183_v2  ;;  %v17522_v3 = vld [vmem:[#allocation50_spill] sm:$0xff] }
0x17ad   :  { %v17523_v18 = vld [vmem:[#allocation22_spill] sm:$0xff] }
0x17ae   :  { %v9730_v13 = vmul.f32 -1.442695, %v2704_v26  ;;  %v9731_v34 = vmul.f32 -1.442695, %v2705_v40 }
0x17b0   :  { %13719 = vpow2.f32 %v9730_v13  ;;  %v17515_v13 = vld [vmem:[#allocation40_spill] sm:$0xff] }
0x17b1   :  { %13721 = vpow2.f32 %v9731_v34  ;;  %v17514_v34 = vld [vmem:[#allocation19_spill] sm:$0xff] }
0x17ba   :  { %v13720_v8 = vpop.eup %13719 }
0x17bb   :  { %v13722_v54 = vpop.eup %13721  ;;  %v2712_v47 = vadd.f32 1.0, %v13720_v8  ;;  %v17513_v8 = vld [vmem:[#allocation38_spill] sm:$0xff] }
0x17bc   :  { %v2713_v63 = vadd.f32 1.0, %v13722_v54  ;;  %v17512_v54 = vld [vmem:[#allocation36_spill] sm:$0xff] }
0x17bd   :  { %13723 = vrcp.f32 %v2712_v47  ;;  %v17519_v47 = vld [vmem:[#allocation46_spill] sm:$0xff] }
0x17be   :  { %13725 = vrcp.f32 %v2713_v63 }
0x17c7   :  { %v13724_v9 = vpop.eup %13723 }
0x17c8   :  { %v13726_v41 = vpop.eup %13725  ;;  %v2718_v50 = vmul.f32 %v13724_v9, %v2704_v26  ;;  %v17524_v26 = vld [vmem:[#allocation24_spill] sm:$0xff]  ;;  %v17525_v9 = vld [vmem:[#allocation51_spill] sm:$0xff] }
0x17c9   :  { %v2719_v20 = vmul.f32 %v13726_v41, %v2705_v40  ;;  %v17516_v40 = vld [vmem:[#allocation42_spill] sm:$0xff] }
0x17ca   :  { %2794 = vrot.lane.b32.xlu0 %v2718_v50, %s13911_s26  ;;  %9732 = vmatmul.mubr.msk.f32.vlgmr.msra.gmra.mrb[24].mxu0 %vm421_vm0, %v2718_v50 }
0x17cb   :  { %v13586_v12 = vpack.i.bf16 %v2719_v20, %v2718_v50  ;;  %12225 = vmatpush1.bf16.msra.mxu0 %v14199_v25  ;;  %2933 = vmatprep.mubr.f32.mxu0 %v17384_v15  ;;  %v17526_v50 = vld [vmem:[#allocation54_spill] sm:$0xff]  ;;  %v17527_v20 = vld [vmem:[#allocation25_spill] sm:$0xff] }
0x17cc   :  { %12227 = vmatprep.subr.bf16.mxu0 %v14201_v30 }
0x17cd   :  { %13587 = vrot.lane.b32.xlu1 %v13586_v12, %s13912_s2  ;;  %v17528_v12 = vld [vmem:[#allocation28_spill] sm:$0xff] }
0x17cf   :  { %12229 = vmatpush1.bf16.msra.mxu0 %v14212_v37 }
0x17d0   :  { %12255 = vmatprep.subr.bf16.mxu0 %v14331_v58 }
0x183c   :  { %v2795_v63 = vpop.permute.xlu0 %2794 }
0x183d   :  { %9733 = vmatmul.mubr.msk.f32.vlgmr.msra.gmra.mrb[26].mxu1 %vm421_vm0, %v2795_v63  ;;  %9734 = vmatmul.mubr.msk.f32.vlgmr.msra.gmra.mrb[26].mxu0 %vm421_vm0, %v2795_v63  ;;  %v17529_v63 = vld [vmem:[#allocation29_spill] sm:$0xff] }
0x183e   :  { %12232 = vmatpush3.bf16.msra.mxu1 %v14224_v42  ;;  %11445 = vmatprep.mubr.msk.f32.mxu1 %vm13913_vm1, %v17384_v15 }
0x183f   :  { %12233 = vmatprep.subr.bf16.mxu1 %v17397_v36  ;;  %12257 = vmatpush3.bf16.msra.mxu0 %v14342_v0  ;;  %v13588_v31 = vpop.permute.xlu1 %13587 }
0x1840   :  { %12259 = vmatprep.subr.bf16.mxu0 %v14369_v19  ;;  %v13590_v61 = vunpack.i.h.bf16 %v13588_v31  ;;  %v13589_v24 = vunpack.i.l.bf16 %v13588_v31  ;;  %v17530_v31 = vld [vmem:[#allocation32_spill] sm:$0xff] }
0x1842   :  { %12235 = vmatpush3.bf16.msra.mxu1 %v14235_v52  ;;  %v2945_v41 = vsel %vm674_vm2, %v13589_v24, %v13590_v61  ;;  %v17535_v61 = vld [vmem:[#allocation41_spill] sm:$0xff]  ;;  %v17536_v24 = vld [vmem:[#allocation43_spill] sm:$0xff] }
0x1843   :  { %12236 = vmatprep.subr.bf16.mxu1 %v17397_v36  ;;  %12261 = vmatpush3.bf16.msra.mxu0 %v14371_v33 }
0x1844   :  { %12263 = vmatprep.subr.bf16.mxu0 %v14397_v59 }
0x1846   :  { %12238 = vmatpush3.bf16.msra.mxu1 %v14247_v57 }
0x1847   :  { %12239 = vmatprep.subr.bf16.mxu1 %v17397_v36  ;;  %12265 = vmatpush3.bf16.msra.mxu0 %v14419_v17 }
0x1848   :  { %12267 = vmatprep.subr.bf16.mxu0 %v14436_v48 }
0x184a   :  { %12241 = vmatpush3.bf16.msra.mxu1 %v14257_v60 }
0x184b   :  { %12242 = vmatprep.subr.bf16.mxu1 %v17397_v36  ;;  %12269 = vmatpush3.bf16.msra.mxu0 %v17512_v54 }
0x184c   :  { %12271 = vmatprep.subr.bf16.mxu0 %v17513_v8 }
0x184e   :  { %12244 = vmatpush3.bf16.msra.mxu1 %v17514_v34 }
0x184f   :  { %12245 = vmatprep.subr.bf16.mxu1 %v17397_v36  ;;  %12273 = vmatpush3.bf16.msra.mxu0 %v17515_v13 }
0x1850   :  { %12275 = vmatprep.subr.bf16.mxu0 %v17516_v40 }
0x1852   :  { %12247 = vmatpush3.bf16.msra.mxu1 %v17517_v56 }
0x1853   :  { %12248 = vmatprep.subr.bf16.mxu1 %v17397_v36  ;;  %12277 = vmatpush3.bf16.msra.mxu0 %v17518_v28 }
0x1854   :  { %12279 = vmatprep.subr.bf16.mxu0 %v17519_v47 }
0x1856   :  { %12250 = vmatpush3.bf16.msra.mxu1 %v17520_v14  ;;  %v17543_v14 = vld [vmem:[#allocation55_spill] sm:$0xff] }
0x1857   :  { %12251 = vmatprep.subr.bf16.mxu1 %v17397_v36  ;;  %12281 = vmatpush3.bf16.msra.mxu0 %v17521_v46 }
0x1858   :  { %12283 = vmatprep.subr.bf16.mxu0 %v17522_v3  ;;  %v17531_v3 = vld [vmem:[#allocation33_spill] sm:$0xff] }
0x185a   :  { %12253 = vmatpush3.bf16.msra.mxu1 %v17523_v18  ;;  %v17532_v18 = vld [vmem:[#allocation35_spill] sm:$0xff] }
0x185b   :  { %12287 = vmatprep.subr.bf16.mxu1 %v17524_v26  ;;  %12285 = vmatpush3.bf16.msra.mxu0 %v17525_v9  ;;  %v17533_v26 = vld [vmem:[#allocation37_spill] sm:$0xff]  ;;  %v17534_v9 = vld [vmem:[#allocation39_spill] sm:$0xff] }
0x185c   :  { %12319 = vmatprep.subr.bf16.mxu0 %v17526_v50 }
0x185d   :  { %11446 = vmatmul.mubr.f32.vlgmr.msra.gmra.mrb[28].mxu1 %v2945_v41  ;;  %v17537_v41 = vld [vmem:[#allocation45_spill] sm:$0xff] }
0x185e   :  { %12289 = vmatpush3.bf16.msra.mxu1 %v17527_v20  ;;  %v17538_v20 = vld [vmem:[#allocation47_spill] sm:$0xff] }
0x185f   :  { %12291 = vmatprep.subr.bf16.mxu1 %v17528_v12  ;;  %v17539_v12 = vld [vmem:[#allocation49_spill] sm:$0xff] }
0x1862   :  { %12293 = vmatpush3.bf16.msra.mxu1 %v17529_v63  ;;  %v17540_v63 = vld [vmem:[#allocation52_spill] sm:$0xff] }
0x1863   :  { %12295 = vmatprep.subr.bf16.mxu1 %v17530_v31  ;;  %v17541_v31 = vld [vmem:[#allocation53_spill] sm:$0xff] }
0x1866   :  { %12297 = vmatpush3.bf16.msra.mxu1 %v17531_v3  ;;  %v17542_v3 = vld [vmem:[#allocation6_spill] sm:$0xff] }
0x1867   :  { %12299 = vmatprep.subr.bf16.mxu1 %v17532_v18 }
0x186a   :  { %12301 = vmatpush3.bf16.msra.mxu1 %v17533_v26 }
0x186b   :  { %12303 = vmatprep.subr.bf16.mxu1 %v17534_v9 }
0x186e   :  { %12305 = vmatpush3.bf16.msra.mxu1 %v17535_v61 }
0x186f   :  { %12307 = vmatprep.subr.bf16.mxu1 %v17536_v24 }
0x1872   :  { %12309 = vmatpush3.bf16.msra.mxu1 %v17537_v41 }
0x1873   :  { %12311 = vmatprep.subr.bf16.mxu1 %v17538_v20 }
0x1876   :  { %12313 = vmatpush3.bf16.msra.mxu1 %v17539_v12 }
0x1877   :  { %12315 = vmatprep.subr.bf16.mxu1 %v17540_v63 }
0x187a   :  { %12317 = vmatpush3.bf16.msra.mxu1 %v17541_v31 }
0x187b   :  { %12351 = vmatprep.subr.bf16.mxu1 %v17542_v3 }
0x189d   :  { %v2789_v18 = vpop.f32.mrb[24].mxu0 }
0x189e   :  { %v2791_v26 = vpop.f32.mrb[25].mxu0 }
0x1910   :  { %v2864_v50 = vpop.f32.mrb[26].mxu1  ;;  %v15368_v9 = vpop.f32.mrb[26].mxu0 }
0x1911   :  { %v2866_v61 = vpop.f32.mrb[27].mxu1  ;;  %v2937_v46 = vpop.f32.mrb[27].mxu0 }
0x1930   :  { %v3013_v24 = vpop.f32.mrb[28].mxu1 }
0x1931   :  { %v3014_v41 = vadd.f32 %v17543_v14, %v3013_v24  ;;  %v11447_v47 = vpop.f32.mrb[29].mxu1  ;;  %v17544_v14 = vmov 0  }
0x1933   :  { %v9735_v20 = vmul.f32 -1.442695, %v3014_v41  ;;  %v2865_v41 = vadd.f32 %v2864_v50, %v17488_v10 }
0x1935   :  { %13727 = vpow2.f32 %v9735_v20 }
0x193f   :  { %v13728_v12 = vpop.eup %13727 }
0x1940   :  { %v3020_v28 = vadd.f32 1.0, %v13728_v12  ;;  %v9727_v12 = vld [vmem:[%s17377_s4 + $0x18] sm:$0xff] }
0x1941   :  { %v3153_v24 = vrot.slane %v9727_v12, %v17429_v11  ;;  %v3146_v60 = vcombine.high %v9727_v12, %v9727_v12 }
0x1942   :  { %13729 = vrcp.f32 %v3020_v28 }
0x1943   :  { %v3161_v56 = vcombine.high %v3153_v24, %v3153_v24 }
0x194c   :  { %v15371_v63 = vpop.eup %13729 }
0x194d   :  { %3024 = vrot.lane.b32.xlu0 %v15371_v63, %s13915_s30 }
0x1951   :  { %3045 = vrot.lane.b32.xlu0 %v15278_v35, %s13917_s13 }
0x1955   :  { %3051 = vrot.lane.b32.xlu0 %v15278_v35, %s13919_s27 }
0x1959   :  { %3057 = vrot.lane.b32.xlu0 %v15278_v35, %s13920_s20 }
0x195d   :  { %3063 = vrot.lane.b32.xlu0 %v15278_v35, %s13918_s24 }
0x19bf   :  { %v3025_v47 = vpop.permute.xlu0 %3024 }
0x19c0   :  { %v3027_v28 = vmul.f32 %v15371_v63, %v3025_v47  ;;  %v17545_v47 = vld [vmem:[#allocation59_spill] sm:$0xff] }
0x19c2   :  { %3030 = vperm.xlu1 %13591, %v3027_v28   ;;  %v2867_v28 = vadd.f32 %v2866_v61, %v17545_v47 }
0x19c3   :  { %v3046_v20 = vpop.permute.xlu0 %3045 }
0x19c4   :  { %v3066_v8 = vsel %vm281_vm4, %v15278_v35, %v3046_v20  ;;  %v3160_v20 = vrot.slane %v3146_v60, %v17429_v11 }
0x19c6   :  { %3048 = vrot.lane.b32.xlu1 %v15278_v35, %s13921_s21 }
0x19c7   :  { %13592 = vset.pattern.permute.xlu1 %v17544_v14  ;;  %v3052_v31 = vpop.permute.xlu0 %3051 }
0x19ca   :  { %3054 = vrot.lane.b32.xlu1 %v15278_v35, %s13912_s2 }
0x19ce   :  { %3060 = vrot.lane.b32.xlu1 %v15278_v35, %s13911_s26 }
0x1a41   :  { %v3031_v3 = vpop.permute.xlu1 %3030 }
0x1a42   :  { %v3038_v14 = vmul.f32 %v3031_v3, %v2867_v28  ;;  %v3037_v40 = vmul.f32 %v3031_v3, %v2865_v41  ;;  %v2790_v28 = vadd.f32 %v2789_v18, %v17432_v45  ;;  %v2792_v41 = vadd.f32 %v2791_v26, %v17433_v29 }
0x1a43   :  { %v3162_v26 = vcombine.high %v3160_v20, %v3160_v20 }
0x1a44   :  { %v15398_v13 = vadd.f32 %v3038_v14, %v15199_v49  ;;  %v15401_v34 = vadd.f32 %v3037_v40, %v15202_v51  ;;  %v2938_v49 = vadd.f32 %v2937_v46, %v17434_v22  ;;  %v3058_v14 = vpop.permute.xlu0 %3057  ;;  %v3033_v35 = vmul.f32 %v3031_v3, %v2790_v28 }
0x1a45   :  { %v3049_v54 = vpop.permute.xlu1 %3048 }
0x1a46   :  { %v3067_v50 = vsel %vm421_vm0, %v3066_v8, %v3049_v54  ;;  %v3168_v61 = vmul.f32 %v3161_v56, %v15398_v13  ;;  %v3167_v47 = vmul.f32 %v3153_v24, %v15401_v34  ;;  %v3034_v8 = vmul.f32 %v3031_v3, %v2792_v41 }
0x1a47   :  { %v3068_v40 = vsel %vm1544_vm5, %v3067_v50, %v3052_v31  ;;  %v3040_v56 = vmul.f32 %v3031_v3, %v2938_v49  ;;  %v15419_v31 = vadd.f32 %v3033_v35, %v15220_v4  ;;  %v17546_v4 = vld [vmem:[#allocation66_spill] sm:$0xff]  ;;  %v17548_v49 = vld [vmem:[#allocation68_spill] sm:$0xff] }
0x1a48   :  { %3235 = vmatprep.mubr.f32.mxu1 %v3168_v61  ;;  %v3064_v12 = vpop.permute.xlu0 %3063  ;;  %v15423_v24 = vadd.f32 %v3034_v8, %v15224_v39  ;;  %v2936_v39 = vadd.f32 %v15368_v9, %v17546_v4  ;;  %v17551_v35 = vld [vmem:[#allocation56_spill] sm:$0xff]  ;;  %v17553_v8 = vld [vmem:[#allocation71_spill] sm:$0xff] }
0x1a49   :  { %v3055_v51 = vpop.permute.xlu1 %3054  ;;  %3236 = vmatmul.mubr.f32.vlgmr.msra.gmra.mrb[30].mxu1 %v3167_v47  ;;  %v15426_v47 = vadd.f32 %v3040_v56, %v15227_v27  ;;  %v17547_v27 = vld [vmem:[#allocation67_spill] sm:$0xff] }
0x1a4a   :  { %v3069_v54 = vsel %vm674_vm2, %v3068_v40, %v3055_v51  ;;  %12353 = vmatpush1.bf16.msra.mxu1 %v14059_v6  ;;  %3441 = vmatprep.mubr.f32.mxu1 %v17384_v15  ;;  %v17549_v51 = vld [vmem:[#allocation69_spill] sm:$0xff]  ;;  %v17550_v40 = vld [vmem:[#allocation70_spill] sm:$0xff]  ;;  %v17555_v9 = vld [vmem:[#allocation11_spill] sm:$0xff] }
0x1a4b   :  { %12355 = vmatprep.subr.bf16.mxu1 %v14081_v23  ;;  %v3070_v18 = vsel %vm1547_vm6, %v3069_v54, %v3058_v14  ;;  %v3170_v41 = vmul.f32 %v3162_v26, %v15426_v47  ;;  %v3039_v14 = vmul.f32 %v3031_v3, %v2936_v39  ;;  %v17557_v3 = vld [vmem:[#allocation14_spill] sm:$0xff] }
0x1a4d   :  { %v3061_v46 = vpop.permute.xlu1 %3060  ;;  %v15449_v54 = vadd.f32 %v3039_v14, %v17551_v35 }
0x1a4e   :  { %v3071_v60 = vsel %vm1549_vm7, %v3070_v18, %v3061_v46  ;;  %v17554_v46 = vld [vmem:[#allocation10_spill] sm:$0xff]  ;;  %v17556_v18 = vld [vmem:[#allocation13_spill] sm:$0xff] }
0x1a4f   :  { %v3072_v50 = vsel %vm1551_vm8, %v3071_v60, %v3064_v12  ;;  %17552 = vst [vmem:[#allocation61_spill] sm:$0xff] %v15449_v54  ;;  %v3169_v56 = vmul.f32 %v3160_v20, %v15449_v54 }
0x1a50   :  { %v3073_v61 = vmul.f32 %v3072_v50, %v15419_v31  ;;  %v3074_v28 = vmul.f32 %v3072_v50, %v15423_v24 }
0x1a52   :  { %3139 = vmatprep.mubr.f32.mxu0 %v3074_v28 }
0x1a53   :  { %3140 = vmatmul.mubr.f32.vlgmr.msra.gmra.mrb[28].mxu0 %v3073_v61 }
0x1a54   :  { %12321 = vmatpush3.bf16.msra.mxu0 %v14716_v21  ;;  %3305 = vmatprep.mubr.f32.mxu0 %v3170_v41 }
0x1a55   :  { %12323 = vmatprep.subr.bf16.mxu0 %v14724_v7 }
0x1a58   :  { %12325 = vmatpush3.bf16.msra.mxu0 %v14740_v53 }
0x1a59   :  { %12327 = vmatprep.subr.bf16.mxu0 %v14743_v32 }
0x1a5c   :  { %12329 = vmatpush3.bf16.msra.mxu0 %v14761_v44 }
0x1a5d   :  { %12331 = vmatprep.subr.bf16.mxu0 %v17435_v43 }
0x1a60   :  { %12333 = vmatpush3.bf16.msra.mxu0 %v17436_v16 }
0x1a61   :  { %12335 = vmatprep.subr.bf16.mxu0 %v17437_v5 }
0x1a64   :  { %12337 = vmatpush3.bf16.msra.mxu0 %v17438_v38 }
0x1a65   :  { %12339 = vmatprep.subr.bf16.mxu0 %v17490_v62 }
0x1a68   :  { %12341 = vmatpush3.bf16.msra.mxu0 %v17547_v27 }
0x1a69   :  { %12343 = vmatprep.subr.bf16.mxu0 %v17548_v49 }
0x1a6c   :  { %12345 = vmatpush3.bf16.msra.mxu0 %v17549_v51 }
0x1a6d   :  { %12347 = vmatprep.subr.bf16.mxu0 %v17550_v40 }
0x1a70   :  { %12349 = vmatpush3.bf16.msra.mxu0 %v17553_v8 }
0x1a71   :  { %12363 = vmatprep.subr.bf16.mxu0 %v17554_v46 }
0x1a73   :  { %3306 = vmatmul.mubr.f32.vlgmr.msra.gmra.mrb[30].mxu0 %v3169_v56 }
0x1a74   :  { %12365 = vmatpush1.bf16.msra.mxu0 %v17555_v9  ;;  %3622 = vmatprep.mubr.f32.mxu0 %v17384_v15 }
0x1a75   :  { %12367 = vmatprep.subr.bf16.mxu0 %v17556_v18 }
0x1a78   :  { %12369 = vmatpush1.bf16.msra.mxu0 %v17557_v3 }
0x1a79   :  { %12378 = vmatprep.subr.bf16.mxu0 %v17397_v36 }
0x1b1c   :  { %v10282_v26 = vpop.f32.mrb[30].mxu1 }
0x1b1d   :  { %v10283_v12 = vpop.f32.mrb[31].mxu1 }
0x1b1e   :  { %v10284_v60 = vadd.f32 %v10283_v12, %v10282_v26 }
0x1b26   :  { %v10247_v50 = vpop.f32.mrb[28].mxu0 }
0x1b27   :  { %v10248_v61 = vpop.f32.mrb[29].mxu0 }
0x1b28   :  { %v10249_v28 = vadd.f32 %v10248_v61, %v10247_v50 }
0x1b2a   :  { %v3311_v3 = vmul.f32 %v15371_v63, %v10249_v28  ;;  %v17559_v28 = vld [vmem:[#allocation60_spill] sm:$0xff] }
0x1b46   :  { %v10317_v20 = vpop.f32.mrb[30].mxu0 }
0x1b47   :  { %v10318_v41 = vpop.f32.mrb[31].mxu0 }
0x1b48   :  { %v10319_v39 = vadd.f32 %v10318_v41, %v10317_v20 }
0x1b4a   :  { %v3308_v14 = vadd.f32 %v10319_v39, %v10284_v60 }
0x1b4c   :  { %3313 = vrot.lane.b32.xlu1 %v3308_v14, %s13917_s13 }
0x1bbe   :  { %v3314_v35 = vpop.permute.xlu1 %3313 }
0x1bbf   :  { %v3316_v56 = vmul.f32 %v15371_v63, %v3314_v35 }
0x1bc1   :  { %3318 = vrot.lane.b32.xlu0 %v3316_v56, %s13918_s24  ;;  %v17558_v56 = vld [vmem:[#allocation57_spill] sm:$0xff] }
0x1c33   :  { %v3319_v18 = vpop.permute.xlu0 %3318 }
0x1c34   :  { %v3321_v9 = vadd.f32 %v3319_v18, %v3311_v3  ;;  %v17560_v3 = vld [vmem:[#allocation7_spill] sm:$0xff] }
0x1c36   :  { %v3322_v26 = vsel %vm1024_vm3, %v3321_v9, 0.0 }
0x1c37   :  { %3323 = vadd.xlane.f32.xlu1 %v3322_v26 }
0x1cc4   :  { %v3324_v12 = vpop.xlane.xlu1 %3323 }
0x1cc5   :  { %v3325_v50 = vmul.f32 0.0625, %v3324_v12  ;;  %v17561_v12 = vld [vmem:[#allocation8_spill] sm:$0xff] }
0x1cc7   :  { %v3326_v61 = vsub.f32 %v3321_v9, %v3325_v50  ;;  %v17562_v50 = vld [vmem:[#allocation9_spill] sm:$0xff] }
0x1cc9   :  { %v3327_v46 = vmul.f32 %v3326_v61, %v3326_v61 }
0x1ccb   :  { %v3328_v60 = vsel %vm1024_vm3, %v3327_v46, 0.0 }
0x1ccc   :  { %3329 = vadd.xlane.f32.xlu0 %v3328_v60  ;;  %v9737_v60 = vld [vmem:[%s17322_s28 + $0x8] sm:$0x3] }
0x1d59   :  { %v3330_v20 = vpop.xlane.xlu0 %3329 }
0x1d5a   :  { %v3331_v41 = vmul.f32 0.0625, %v3330_v20 }
0x1d5c   :  { %v3332_v39 = vadd.f32 1e-05, %v3331_v41 }
0x1d5e   :  { %13731 = vrsqrt.f32 %v3332_v39 }
0x1d68   :  { %v13732_v14 = vpop.eup %13731 }
0x1d69   :  { %v3334_v35 = vmul.f32 %v13732_v14, %v3326_v61  ;;  %v17563_v61 = vld [vmem:[#allocation12_spill] sm:$0xff] }
0x1d6b   :  { %v3335_v63 = vmul.f32 %v17558_v56, %v3334_v35  ;;  %v17564_v35 = vmov 1  }
0x1d6d   :  { %v15467_v18 = vadd.f32 %v17559_v28, %v3335_v63 }
0x1d6f   :  { %3337 = vst.msk [vmem:[#allocation2 + $0x6] sm:$0x3] %vm1024_vm3, %v15467_v18  ;;  %9740 = vmatmul.mubr.msk.f32.vlgmr.msra.gmra.mrb[32].mxu1 %vm281_vm4, %v15467_v18  ;;  %v3344_v46 = vsel %vm1024_vm3, %v15467_v18, 0.0  ;;  %v3349_v9 = vmul.f32 %v15467_v18, %v15467_v18 }
0x1d70   :  { %3345 = vadd.xlane.f32.xlu0 %v3344_v46  ;;  %12357 = vmatpush1.bf16.msra.mxu1 %v17560_v3  ;;  %v17565_v3 = vmov 32  }
0x1d71   :  { %v3350_v26 = vsel %vm1024_vm3, %v3349_v9, 0.0  ;;  %12359 = vmatprep.subr.bf16.mxu1 %v17561_v12  ;;  %3547 = vmatprep.mubr.f32.mxu1 %v17384_v15 }
0x1d72   :  { %3351 = vadd.xlane.f32.xlu1 %v3350_v26 }
0x1d74   :  { %12361 = vmatpush1.bf16.msra.mxu1 %v17562_v50 }
0x1d75   :  { %12371 = vmatprep.subr.bf16.mxu1 %v17563_v61 }
0x1dfd   :  { %v3346_v20 = vpop.xlane.xlu0 %3345 }
0x1dfe   :  { %v3347_v41 = vmul.f32 0.020833334, %v3346_v20  ;;  %v9739_v20 = vld.sshfl [vmem:[%s17332_s3 + $0x10] sm:$0x33 pattern:$0x76325410] }
0x1dff   :  { %v3352_v28 = vpop.xlane.xlu1 %3351 }
0x1e00   :  { %v3348_v39 = vadd.f32 %v9737_v60, %v3347_v41  ;;  %v3353_v46 = vmul.f32 0.020833334, %v3352_v28 }
0x1e02   :  { %3450 = vperm.xlu1 %13592, %v3348_v39   ;;  %v3355_v14 = vmul.f32 %v3348_v39, %v3348_v39  ;;  %v3354_v9 = vadd.f32 %v9737_v60, %v3353_v46  ;;  %v3371_v39 = vcombine.high %v9739_v20, %v9739_v20 }
0x1e04   :  { %3357 = vrot.lane.b32.xlu0 %v3355_v14, %s13908_s29  ;;  %v17566_v14 = vld [vmem:[#allocation15_spill] sm:$0xff] }
0x1e06   :  { %13593 = vset.pattern.permute.xlu1 %v17564_v35 }
0x1e42   :  { %v3443_v56 = vpop.f32.mrb[32].mxu1 }
0x1e43   :  { %v3445_v63 = vpop.f32.mrb[33].mxu1  ;;  %v3444_v28 = vadd.f32 %v9739_v20, %v3443_v56 }
0x1e44   :  { %v3446_v60 = vadd.f32 %v3445_v63, %v3371_v39  ;;  %v17573_v39 = vld [vmem:[#allocation20_spill] sm:$0xff] }
0x1e76   :  { %v3358_v26 = vpop.permute.xlu0 %3357 }
0x1e77   :  { %v3360_v61 = vsub.f32 %v3354_v9, %v3358_v26 }
0x1e79   :  { %v3361_v50 = vadd.f32 1e-05, %v3360_v61 }
0x1e7b   :  { %13733 = vrsqrt.f32 %v3361_v50 }
0x1e81   :  { %v3451_v41 = vpop.permute.xlu1 %3450 }
0x1e82   :  { %v3453_v35 = vmul.f32 %v3451_v41, %v17566_v14  ;;  %v3454_v8 = vmul.f32 %v3451_v41, %v14172_v55  ;;  %v17572_v41 = vld [vmem:[#allocation42_spill] sm:$0xff] }
0x1e84   :  { %v3455_v46 = vsub.f32 %v3444_v28, %v3453_v35  ;;  %v3456_v9 = vsub.f32 %v3446_v60, %v3454_v8  ;;  %v17575_v28 = vld [vmem:[#allocation46_spill] sm:$0xff] }
0x1e85   :  { %v13734_v12 = vpop.eup %13733 }
0x1e86   :  { %3459 = vperm.xlu1 %13593, %v13734_v12  }
0x1e8a   :  { %13599 = vset.pattern.permute.xlu1 %v17565_v3 }
0x1f05   :  { %v3460_v61 = vpop.permute.xlu1 %3459 }
0x1f06   :  { %v3462_v50 = vmul.f32 %v3460_v61, %v3455_v46  ;;  %v3463_v26 = vmul.f32 %v3460_v61, %v3456_v9  ;;  %v17576_v46 = vld [vmem:[#allocation21_spill] sm:$0xff]  ;;  %v17577_v9 = vld [vmem:[#allocation48_spill] sm:$0xff] }
0x1f08   :  { %v3464_v12 = vadd.f32 %v3462_v50, %v14180_v1  ;;  %v3465_v3 = vadd.f32 %v3463_v26, %v14183_v2  ;;  %v17578_v26 = vld [vmem:[#allocation50_spill] sm:$0xff] }
0x1f0a   :  { %v9741_v54 = vmul.f32 -1.442695, %v3464_v12  ;;  %v9742_v40 = vmul.f32 -1.442695, %v3465_v3 }
0x1f0c   :  { %13735 = vpow2.f32 %v9741_v54  ;;  %v17570_v54 = vld [vmem:[#allocation19_spill] sm:$0xff] }
0x1f0d   :  { %13737 = vpow2.f32 %v9742_v40  ;;  %v17569_v40 = vld [vmem:[#allocation38_spill] sm:$0xff] }
0x1f16   :  { %v13736_v51 = vpop.eup %13735 }
0x1f17   :  { %v13738_v49 = vpop.eup %13737  ;;  %v3472_v14 = vadd.f32 1.0, %v13736_v51  ;;  %v17568_v51 = vld [vmem:[#allocation36_spill] sm:$0xff] }
0x1f18   :  { %v3473_v27 = vadd.f32 1.0, %v13738_v49  ;;  %v17567_v49 = vld [vmem:[#allocation18_spill] sm:$0xff] }
0x1f19   :  { %13739 = vrcp.f32 %v3472_v14  ;;  %v17574_v14 = vld [vmem:[#allocation44_spill] sm:$0xff] }
0x1f1a   :  { %13741 = vrcp.f32 %v3473_v27 }
0x1f23   :  { %v13740_v56 = vpop.eup %13739 }
0x1f24   :  { %v13742_v35 = vpop.eup %13741  ;;  %v3478_v8 = vmul.f32 %v13740_v56, %v3464_v12  ;;  %v17579_v12 = vld [vmem:[#allocation22_spill] sm:$0xff]  ;;  %v17580_v56 = vld [vmem:[#allocation24_spill] sm:$0xff] }
0x1f25   :  { %v3479_v63 = vmul.f32 %v13742_v35, %v3465_v3  ;;  %v17571_v3 = vld [vmem:[#allocation40_spill] sm:$0xff]  ;;  %v17581_v35 = vld [vmem:[#allocation51_spill] sm:$0xff] }
0x1f26   :  { %3554 = vrot.lane.b32.xlu0 %v3478_v8, %s13911_s26  ;;  %9743 = vmatmul.mubr.msk.f32.vlgmr.msra.gmra.mrb[34].mxu1 %vm421_vm0, %v3478_v8 }
0x1f27   :  { %v13594_v20 = vpack.i.bf16 %v3479_v63, %v3478_v8  ;;  %12373 = vmatpush1.bf16.msra.mxu1 %v14199_v25  ;;  %3693 = vmatprep.mubr.f32.mxu1 %v17384_v15  ;;  %v17582_v63 = vld [vmem:[#allocation54_spill] sm:$0xff] }
0x1f28   :  { %12375 = vmatprep.subr.bf16.mxu1 %v14201_v30 }
0x1f29   :  { %13595 = vrot.lane.b32.xlu1 %v13594_v20, %s13912_s2  ;;  %v17583_v20 = vld [vmem:[#allocation25_spill] sm:$0xff] }
0x1f2b   :  { %12377 = vmatpush1.bf16.msra.mxu1 %v14212_v37 }
0x1f2c   :  { %12403 = vmatprep.subr.bf16.mxu1 %v14331_v58 }
0x1f98   :  { %v3555_v27 = vpop.permute.xlu0 %3554 }
0x1f99   :  { %9744 = vmatmul.mubr.msk.f32.vlgmr.msra.gmra.mrb[32].mxu0 %vm421_vm0, %v3555_v27  ;;  %9745 = vmatmul.mubr.msk.f32.vlgmr.msra.gmra.mrb[36].mxu1 %vm421_vm0, %v3555_v27  ;;  %v17584_v27 = vld [vmem:[#allocation28_spill] sm:$0xff] }
0x1f9a   :  { %12380 = vmatpush3.bf16.msra.mxu0 %v14224_v42  ;;  %11480 = vmatprep.mubr.msk.f32.mxu0 %vm13913_vm1, %v17384_v15 }
0x1f9b   :  { %12381 = vmatprep.subr.bf16.mxu0 %v17397_v36  ;;  %12405 = vmatpush3.bf16.msra.mxu1 %v14342_v0  ;;  %v13596_v60 = vpop.permute.xlu1 %13595 }
0x1f9c   :  { %12407 = vmatprep.subr.bf16.mxu1 %v14369_v19  ;;  %v13598_v61 = vunpack.i.h.bf16 %v13596_v60  ;;  %v13597_v50 = vunpack.i.l.bf16 %v13596_v60  ;;  %v17586_v60 = vld [vmem:[#allocation32_spill] sm:$0xff] }
0x1f9e   :  { %12383 = vmatpush3.bf16.msra.mxu0 %v14235_v52  ;;  %v3705_v8 = vsel %vm674_vm2, %v13597_v50, %v13598_v61  ;;  %v17591_v61 = vld [vmem:[#allocation41_spill] sm:$0xff]  ;;  %v17592_v50 = vld [vmem:[#allocation43_spill] sm:$0xff] }
0x1f9f   :  { %12384 = vmatprep.subr.bf16.mxu0 %v17397_v36  ;;  %12409 = vmatpush3.bf16.msra.mxu1 %v14371_v33 }
0x1fa0   :  { %12411 = vmatprep.subr.bf16.mxu1 %v14397_v59 }
0x1fa2   :  { %12386 = vmatpush3.bf16.msra.mxu0 %v14247_v57 }
0x1fa3   :  { %12387 = vmatprep.subr.bf16.mxu0 %v17397_v36  ;;  %12413 = vmatpush3.bf16.msra.mxu1 %v14419_v17 }
0x1fa4   :  { %12415 = vmatprep.subr.bf16.mxu1 %v14436_v48 }
0x1fa6   :  { %12389 = vmatpush3.bf16.msra.mxu0 %v17567_v49 }
0x1fa7   :  { %12390 = vmatprep.subr.bf16.mxu0 %v17397_v36  ;;  %12417 = vmatpush3.bf16.msra.mxu1 %v17568_v51 }
0x1fa8   :  { %12419 = vmatprep.subr.bf16.mxu1 %v17569_v40 }
0x1faa   :  { %12392 = vmatpush3.bf16.msra.mxu0 %v17570_v54 }
0x1fab   :  { %12393 = vmatprep.subr.bf16.mxu0 %v17397_v36  ;;  %12421 = vmatpush3.bf16.msra.mxu1 %v17571_v3 }
0x1fac   :  { %12423 = vmatprep.subr.bf16.mxu1 %v17572_v41 }
0x1fae   :  { %12395 = vmatpush3.bf16.msra.mxu0 %v17573_v39 }
0x1faf   :  { %12396 = vmatprep.subr.bf16.mxu0 %v17397_v36  ;;  %12425 = vmatpush3.bf16.msra.mxu1 %v17574_v14 }
0x1fb0   :  { %12427 = vmatprep.subr.bf16.mxu1 %v17575_v28 }
0x1fb2   :  { %12398 = vmatpush3.bf16.msra.mxu0 %v17576_v46 }
0x1fb3   :  { %12399 = vmatprep.subr.bf16.mxu0 %v17397_v36  ;;  %12429 = vmatpush3.bf16.msra.mxu1 %v17577_v9  ;;  %v17585_v9 = vld [vmem:[#allocation29_spill] sm:$0xff] }
0x1fb4   :  { %12431 = vmatprep.subr.bf16.mxu1 %v17578_v26  ;;  %v17587_v26 = vld [vmem:[#allocation33_spill] sm:$0xff] }
0x1fb6   :  { %12401 = vmatpush3.bf16.msra.mxu0 %v17579_v12  ;;  %v17588_v12 = vld [vmem:[#allocation35_spill] sm:$0xff] }
0x1fb7   :  { %12435 = vmatprep.subr.bf16.mxu0 %v17580_v56  ;;  %12433 = vmatpush3.bf16.msra.mxu1 %v17581_v35  ;;  %v17589_v56 = vld [vmem:[#allocation37_spill] sm:$0xff]  ;;  %v17590_v35 = vld [vmem:[#allocation39_spill] sm:$0xff] }
0x1fb8   :  { %12467 = vmatprep.subr.bf16.mxu1 %v17582_v63 }
0x1fb9   :  { %11481 = vmatmul.mubr.f32.vlgmr.msra.gmra.mrb[34].mxu0 %v3705_v8  ;;  %v17593_v8 = vld [vmem:[#allocation45_spill] sm:$0xff] }
0x1fba   :  { %12437 = vmatpush3.bf16.msra.mxu0 %v17583_v20  ;;  %v17594_v20 = vld [vmem:[#allocation47_spill] sm:$0xff] }
0x1fbb   :  { %12439 = vmatprep.subr.bf16.mxu0 %v17584_v27  ;;  %v17595_v27 = vld [vmem:[#allocation49_spill] sm:$0xff] }
0x1fbe   :  { %12441 = vmatpush3.bf16.msra.mxu0 %v17585_v9  ;;  %v17596_v9 = vld [vmem:[#allocation52_spill] sm:$0xff] }
0x1fbf   :  { %12443 = vmatprep.subr.bf16.mxu0 %v17586_v60  ;;  %v17597_v60 = vld [vmem:[#allocation53_spill] sm:$0xff] }
0x1fc2   :  { %12445 = vmatpush3.bf16.msra.mxu0 %v17587_v26  ;;  %v17598_v26 = vld [vmem:[#allocation6_spill] sm:$0xff] }
0x1fc3   :  { %12447 = vmatprep.subr.bf16.mxu0 %v17588_v12 }
0x1fc6   :  { %12449 = vmatpush3.bf16.msra.mxu0 %v17589_v56 }
0x1fc7   :  { %12451 = vmatprep.subr.bf16.mxu0 %v17590_v35 }
0x1fca   :  { %12453 = vmatpush3.bf16.msra.mxu0 %v17591_v61 }
0x1fcb   :  { %12455 = vmatprep.subr.bf16.mxu0 %v17592_v50 }
0x1fce   :  { %12457 = vmatpush3.bf16.msra.mxu0 %v17593_v8 }
0x1fcf   :  { %12459 = vmatprep.subr.bf16.mxu0 %v17594_v20  ;;  %v15562_v20 = vld [vmem:[%s17131_s11] ss:$0 sm:$0xff] }
0x1fd0   :  { %17599 = vst [vmem:[#allocation62_spill] sm:$0xff] %v15562_v20 }
0x1fd2   :  { %12461 = vmatpush3.bf16.msra.mxu0 %v17595_v27 }
0x1fd3   :  { %12463 = vmatprep.subr.bf16.mxu0 %v17596_v9 }
0x1fd6   :  { %12465 = vmatpush3.bf16.msra.mxu0 %v17597_v60 }
0x1fd7   :  { %12499 = vmatprep.subr.bf16.mxu0 %v17598_v26 }
0x1ff9   :  { %v3549_v12 = vpop.f32.mrb[34].mxu1 }
0x1ffa   :  { %v3551_v56 = vpop.f32.mrb[35].mxu1 }
0x206c   :  { %v3624_v63 = vpop.f32.mrb[32].mxu0  ;;  %v15557_v35 = vpop.f32.mrb[36].mxu1 }
0x206d   :  { %v3626_v61 = vpop.f32.mrb[33].mxu0  ;;  %v3697_v46 = vpop.f32.mrb[37].mxu1 }
0x208c   :  { %v3773_v50 = vpop.f32.mrb[34].mxu0 }
0x208d   :  { %v3774_v27 = vadd.f32 %v15562_v20, %v3773_v50  ;;  %v11482_v9 = vpop.f32.mrb[35].mxu0  ;;  %v9738_v50 = vld [vmem:[%s17377_s4 + $0x20] sm:$0xff] }
0x208e   :  { %v3906_v48 = vcombine.high %v9738_v50, %v9738_v50 }
0x208f   :  { %v9746_v8 = vmul.f32 -1.442695, %v3774_v27  ;;  %v17600_v27 = vmov 0  }
0x2091   :  { %13743 = vpow2.f32 %v9746_v8  ;;  %v3913_v8 = vrot.slane %v9738_v50, %v17429_v11 }
0x2093   :  { %v3921_v41 = vcombine.high %v3913_v8, %v3913_v8 }
0x209b   :  { %v13744_v60 = vpop.eup %13743 }
0x209c   :  { %v3780_v26 = vadd.f32 1.0, %v13744_v60 }
0x209e   :  { %13745 = vrcp.f32 %v3780_v26 }
0x20a8   :  { %v15565_v28 = vpop.eup %13745 }
0x20a9   :  { %3784 = vrot.lane.b32.xlu0 %v15565_v28, %s13915_s30 }
0x20ad   :  { %3805 = vrot.lane.b32.xlu0 %v15467_v18, %s13917_s13 }
0x20b1   :  { %3811 = vrot.lane.b32.xlu0 %v15467_v18, %s13919_s27 }
0x20b5   :  { %3817 = vrot.lane.b32.xlu0 %v15467_v18, %s13920_s20 }
0x20b9   :  { %3823 = vrot.lane.b32.xlu0 %v15467_v18, %s13918_s24 }
0x211b   :  { %v3785_v9 = vpop.permute.xlu0 %3784 }
0x211c   :  { %v3787_v26 = vmul.f32 %v15565_v28, %v3785_v9  ;;  %v3625_v9 = vadd.f32 %v3624_v63, %v17488_v10 }
0x211e   :  { %3790 = vperm.xlu1 %13599, %v3787_v26   ;;  %v17601_v26 = vld [vmem:[#allocation59_spill] sm:$0xff] }
0x211f   :  { %v3806_v60 = vpop.permute.xlu0 %3805  ;;  %v3627_v20 = vadd.f32 %v3626_v61, %v17601_v26 }
0x2120   :  { %v3826_v51 = vsel %vm281_vm4, %v15467_v18, %v3806_v60  ;;  %v3920_v60 = vrot.slane %v3906_v48, %v17429_v11 }
0x2122   :  { %3808 = vrot.lane.b32.xlu1 %v15467_v18, %s13921_s21 }
0x2123   :  { %13600 = vset.pattern.permute.xlu1 %v17600_v27  ;;  %v3812_v39 = vpop.permute.xlu0 %3811 }
0x2126   :  { %3814 = vrot.lane.b32.xlu1 %v15467_v18, %s13912_s2 }
0x212a   :  { %3820 = vrot.lane.b32.xlu1 %v15467_v18, %s13911_s26 }
0x219d   :  { %v3791_v14 = vpop.permute.xlu1 %3790 }
0x219e   :  { %v3798_v27 = vmul.f32 %v3791_v14, %v3627_v20  ;;  %v3797_v3 = vmul.f32 %v3791_v14, %v3625_v9  ;;  %v3550_v20 = vadd.f32 %v3549_v12, %v17432_v45  ;;  %v3552_v9 = vadd.f32 %v3551_v56, %v17433_v29 }
0x219f   :  { %v3922_v56 = vcombine.high %v3920_v60, %v3920_v60 }
0x21a0   :  { %v15592_v54 = vadd.f32 %v3798_v27, %v15398_v13  ;;  %v15595_v40 = vadd.f32 %v3797_v3, %v15401_v34  ;;  %v3698_v13 = vadd.f32 %v3697_v46, %v17434_v22  ;;  %v3818_v27 = vpop.permute.xlu0 %3817  ;;  %v3793_v18 = vmul.f32 %v3791_v14, %v3550_v20 }
0x21a1   :  { %v3809_v49 = vpop.permute.xlu1 %3808 }
0x21a2   :  { %v3827_v63 = vsel %vm421_vm0, %v3826_v51, %v3809_v49  ;;  %v3928_v61 = vmul.f32 %v3921_v41, %v15592_v54  ;;  %v3927_v26 = vmul.f32 %v3913_v8, %v15595_v40  ;;  %v3794_v51 = vmul.f32 %v3791_v14, %v3552_v9 }
0x21a3   :  { %v3828_v3 = vsel %vm1544_vm5, %v3827_v63, %v3812_v39  ;;  %v3800_v41 = vmul.f32 %v3791_v14, %v3698_v13  ;;  %v15613_v39 = vadd.f32 %v3793_v18, %v15419_v31  ;;  %v3696_v31 = vadd.f32 %v15557_v35, %v17546_v4  ;;  %v17610_v35 = vld [vmem:[#allocation11_spill] sm:$0xff] }
0x21a4   :  { %3995 = vmatprep.mubr.f32.mxu0 %v3928_v61  ;;  %v3824_v50 = vpop.permute.xlu0 %3823  ;;  %v15617_v8 = vadd.f32 %v3794_v51, %v15423_v24  ;;  %v17602_v24 = vld [vmem:[#allocation67_spill] sm:$0xff] }
0x21a5   :  { %v3815_v34 = vpop.permute.xlu1 %3814  ;;  %3996 = vmatmul.mubr.f32.vlgmr.msra.gmra.mrb[36].mxu0 %v3927_v26  ;;  %v15620_v26 = vadd.f32 %v3800_v41, %v15426_v47  ;;  %v17603_v47 = vld [vmem:[#allocation68_spill] sm:$0xff]  ;;  %v3799_v13 = vmul.f32 %v3791_v14, %v3696_v31  ;;  %v17609_v41 = vld [vmem:[#allocation10_spill] sm:$0xff] }
0x21a6   :  { %v3829_v49 = vsel %vm674_vm2, %v3828_v3, %v3815_v34  ;;  %12501 = vmatpush1.bf16.msra.mxu0 %v14059_v6  ;;  %4201 = vmatprep.mubr.f32.mxu0 %v17384_v15  ;;  %v17605_v34 = vld [vmem:[#allocation70_spill] sm:$0xff]  ;;  %v17606_v3 = vld [vmem:[#allocation61_spill] sm:$0xff] }
0x21a7   :  { %12503 = vmatprep.subr.bf16.mxu0 %v14081_v23  ;;  %v3830_v12 = vsel %vm1547_vm6, %v3829_v49, %v3818_v27  ;;  %v3930_v9 = vmul.f32 %v3922_v56, %v15620_v26  ;;  %v17604_v27 = vld [vmem:[#allocation69_spill] sm:$0xff]  ;;  %v15643_v18 = vadd.f32 %v3799_v13, %v17606_v3  ;;  %v17608_v49 = vld [vmem:[#allocation71_spill] sm:$0xff]  ;;  %v17612_v14 = vld [vmem:[#allocation14_spill] sm:$0xff] }
0x21a9   :  { %v3821_v46 = vpop.permute.xlu1 %3820  ;;  %17607 = vst [vmem:[#allocation63_spill] sm:$0xff] %v15643_v18  ;;  %v3929_v51 = vmul.f32 %v3920_v60, %v15643_v18 }
0x21aa   :  { %v3831_v48 = vsel %vm1549_vm7, %v3830_v12, %v3821_v46  ;;  %v17611_v46 = vld [vmem:[#allocation13_spill] sm:$0xff] }
0x21ab   :  { %v3832_v63 = vsel %vm1551_vm8, %v3831_v48, %v3824_v50 }
0x21ac   :  { %v3833_v61 = vmul.f32 %v3832_v63, %v15613_v39  ;;  %v3834_v20 = vmul.f32 %v3832_v63, %v15617_v8 }
0x21ae   :  { %3899 = vmatprep.mubr.f32.mxu1 %v3834_v20 }
0x21af   :  { %3900 = vmatmul.mubr.f32.vlgmr.msra.gmra.mrb[38].mxu1 %v3833_v61 }
0x21b0   :  { %12469 = vmatpush3.bf16.msra.mxu1 %v14716_v21  ;;  %4065 = vmatprep.mubr.f32.mxu1 %v3930_v9 }
0x21b1   :  { %12471 = vmatprep.subr.bf16.mxu1 %v14724_v7 }
0x21b4   :  { %12473 = vmatpush3.bf16.msra.mxu1 %v14740_v53 }
0x21b5   :  { %12475 = vmatprep.subr.bf16.mxu1 %v14743_v32 }
0x21b8   :  { %12477 = vmatpush3.bf16.msra.mxu1 %v14761_v44 }
0x21b9   :  { %12479 = vmatprep.subr.bf16.mxu1 %v17435_v43 }
0x21bc   :  { %12481 = vmatpush3.bf16.msra.mxu1 %v17436_v16 }
0x21bd   :  { %12483 = vmatprep.subr.bf16.mxu1 %v17437_v5 }
0x21c0   :  { %12485 = vmatpush3.bf16.msra.mxu1 %v17438_v38 }
0x21c1   :  { %12487 = vmatprep.subr.bf16.mxu1 %v17490_v62 }
0x21c4   :  { %12489 = vmatpush3.bf16.msra.mxu1 %v17602_v24 }
0x21c5   :  { %12491 = vmatprep.subr.bf16.mxu1 %v17603_v47 }
0x21c8   :  { %12493 = vmatpush3.bf16.msra.mxu1 %v17604_v27 }
0x21c9   :  { %12495 = vmatprep.subr.bf16.mxu1 %v17605_v34 }
0x21cc   :  { %12497 = vmatpush3.bf16.msra.mxu1 %v17608_v49 }
0x21cd   :  { %12511 = vmatprep.subr.bf16.mxu1 %v17609_v41 }
0x21cf   :  { %4066 = vmatmul.mubr.f32.vlgmr.msra.gmra.mrb[40].mxu1 %v3929_v51 }
0x21d0   :  { %12513 = vmatpush1.bf16.msra.mxu1 %v17610_v35  ;;  %4382 = vmatprep.mubr.f32.mxu1 %v17384_v15 }
0x21d1   :  { %12515 = vmatprep.subr.bf16.mxu1 %v17611_v46 }
0x21d4   :  { %12517 = vmatpush1.bf16.msra.mxu1 %v17612_v14 }
0x21d5   :  { %12526 = vmatprep.subr.bf16.mxu1 %v17397_v36 }
0x2278   :  { %v10404_v12 = vpop.f32.mrb[36].mxu0 }
0x2279   :  { %v10405_v56 = vpop.f32.mrb[37].mxu0 }
0x227a   :  { %v10406_v50 = vadd.f32 %v10405_v56, %v10404_v12 }
0x2282   :  { %v10369_v48 = vpop.f32.mrb[38].mxu1 }
0x2283   :  { %v10370_v63 = vpop.f32.mrb[39].mxu1 }
0x2284   :  { %v10371_v61 = vadd.f32 %v10370_v63, %v10369_v48 }
0x2286   :  { %v4071_v51 = vmul.f32 %v15565_v28, %v10371_v61 }
0x22a2   :  { %v10439_v60 = vpop.f32.mrb[40].mxu1 }
0x22a3   :  { %v10440_v20 = vpop.f32.mrb[41].mxu1 }
0x22a4   :  { %v10441_v9 = vadd.f32 %v10440_v20, %v10439_v60 }
0x22a6   :  { %v4068_v31 = vadd.f32 %v10441_v9, %v10406_v50 }
0x22a8   :  { %4073 = vrot.lane.b32.xlu1 %v4068_v31, %s13917_s13 }
0x231a   :  { %v4074_v13 = vpop.permute.xlu1 %4073 }
0x231b   :  { %v4076_v3 = vmul.f32 %v15565_v28, %v4074_v13  ;;  %v15662_v28 = vld [vmem:[%s17135_s15] ss:$0 sm:$0xff] }
0x231c   :  { %17613 = vst [vmem:[#allocation64_spill] sm:$0xff] %v15662_v28 }
0x231d   :  { %4078 = vrot.lane.b32.xlu0 %v4076_v3, %s13918_s24 }
0x238f   :  { %v4079_v14 = vpop.permute.xlu0 %4078 }
0x2390   :  { %v4081_v46 = vadd.f32 %v4079_v14, %v4071_v51  ;;  %v17615_v51 = vld [vmem:[#allocation7_spill] sm:$0xff] }
0x2392   :  { %v4082_v12 = vsel %vm1024_vm3, %v4081_v46, 0.0 }
0x2393   :  { %4083 = vadd.xlane.f32.xlu1 %v4082_v12 }
0x2420   :  { %v4084_v56 = vpop.xlane.xlu1 %4083 }
0x2421   :  { %v4085_v48 = vmul.f32 0.0625, %v4084_v56  ;;  %v17616_v56 = vld [vmem:[#allocation8_spill] sm:$0xff] }
0x2423   :  { %v4086_v63 = vsub.f32 %v4081_v46, %v4085_v48  ;;  %v15668_v46 = vld [vmem:[%s17136_s16] ss:$0 sm:$0xff]  ;;  %v17617_v48 = vld [vmem:[#allocation9_spill] sm:$0xff] }
0x2424   :  { %17614 = vst [vmem:[#allocation72_spill] sm:$0xff] %v15668_v46 }
0x2425   :  { %v4087_v35 = vmul.f32 %v4086_v63, %v4086_v63 }
0x2427   :  { %v4088_v50 = vsel %vm1024_vm3, %v4087_v35, 0.0 }
0x2428   :  { %4089 = vadd.xlane.f32.xlu0 %v4088_v50  ;;  %v9748_v50 = vld [vmem:[%s17322_s28 + $0xa] sm:$0x3] }
0x24b5   :  { %v4090_v60 = vpop.xlane.xlu0 %4089 }
0x24b6   :  { %v4091_v20 = vmul.f32 0.0625, %v4090_v60 }
0x24b8   :  { %v4092_v9 = vadd.f32 1e-05, %v4091_v20 }
0x24ba   :  { %13747 = vrsqrt.f32 %v4092_v9 }
0x24c4   :  { %v13748_v31 = vpop.eup %13747 }
0x24c5   :  { %v4094_v13 = vmul.f32 %v13748_v31, %v4086_v63  ;;  %v17618_v63 = vld [vmem:[#allocation12_spill] sm:$0xff] }
0x24c7   :  { %v4095_v14 = vmul.f32 %v15662_v28, %v4094_v13  ;;  %v17619_v13 = vmov 1   ;;  %v17620_v28 = vmov 32  }
0x24c9   :  { %v15671_v35 = vadd.f32 %v15668_v46, %v4095_v14 }
0x24cb   :  { %4097 = vst.msk [vmem:[#allocation2 + $0x8] sm:$0x3] %vm1024_vm3, %v15671_v35  ;;  %9751 = vmatmul.mubr.msk.f32.vlgmr.msra.gmra.mrb[38].mxu0 %vm281_vm4, %v15671_v35  ;;  %v4104_v61 = vsel %vm1024_vm3, %v15671_v35, 0.0  ;;  %v4109_v3 = vmul.f32 %v15671_v35, %v15671_v35 }
0x24cc   :  { %4105 = vadd.xlane.f32.xlu0 %v4104_v61  ;;  %12505 = vmatpush1.bf16.msra.mxu0 %v17615_v51 }
0x24cd   :  { %v4110_v12 = vsel %vm1024_vm3, %v4109_v3, 0.0  ;;  %12507 = vmatprep.subr.bf16.mxu0 %v17616_v56  ;;  %4307 = vmatprep.mubr.f32.mxu0 %v17384_v15 }
0x24ce   :  { %4111 = vadd.xlane.f32.xlu1 %v4110_v12 }
0x24d0   :  { %12509 = vmatpush1.bf16.msra.mxu0 %v17617_v48 }
0x24d1   :  { %12519 = vmatprep.subr.bf16.mxu0 %v17618_v63 }
0x2559   :  { %v4106_v60 = vpop.xlane.xlu0 %4105 }
0x255a   :  { %v4107_v20 = vmul.f32 0.020833334, %v4106_v60  ;;  %v9750_v60 = vld.sshfl [vmem:[%s17332_s3 + $0x14] sm:$0x33 pattern:$0x76325410] }
0x255b   :  { %v4112_v3 = vpop.xlane.xlu1 %4111 }
0x255c   :  { %v4108_v9 = vadd.f32 %v9748_v50, %v4107_v20  ;;  %v4113_v12 = vmul.f32 0.020833334, %v4112_v3 }
0x255e   :  { %4210 = vperm.xlu1 %13600, %v4108_v9   ;;  %v4115_v31 = vmul.f32 %v4108_v9, %v4108_v9  ;;  %v4114_v48 = vadd.f32 %v9748_v50, %v4113_v12  ;;  %v4131_v9 = vcombine.high %v9750_v60, %v9750_v60 }
0x2560   :  { %4117 = vrot.lane.b32.xlu0 %v4115_v31, %s13908_s29  ;;  %v17621_v31 = vld [vmem:[#allocation15_spill] sm:$0xff] }
0x2562   :  { %13601 = vset.pattern.permute.xlu1 %v17619_v13 }
0x259e   :  { %v4203_v14 = vpop.f32.mrb[38].mxu0 }
0x259f   :  { %v4205_v61 = vpop.f32.mrb[39].mxu0  ;;  %v4204_v3 = vadd.f32 %v9750_v60, %v4203_v14 }
0x25a0   :  { %v4206_v50 = vadd.f32 %v4205_v61, %v4131_v9  ;;  %v17628_v9 = vld [vmem:[#allocation42_spill] sm:$0xff] }
0x25d2   :  { %v4118_v56 = vpop.permute.xlu0 %4117 }
0x25d3   :  { %v4120_v63 = vsub.f32 %v4114_v48, %v4118_v56 }
0x25d5   :  { %v4121_v51 = vadd.f32 1e-05, %v4120_v63 }
0x25d7   :  { %13749 = vrsqrt.f32 %v4121_v51 }
0x25dd   :  { %v4211_v20 = vpop.permute.xlu1 %4210 }
0x25de   :  { %v4213_v13 = vmul.f32 %v4211_v20, %v17621_v31  ;;  %v4214_v41 = vmul.f32 %v4211_v20, %v14172_v55  ;;  %v17627_v20 = vld [vmem:[#allocation40_spill] sm:$0xff] }
0x25e0   :  { %v4215_v12 = vsub.f32 %v4204_v3, %v4213_v13  ;;  %v4216_v56 = vsub.f32 %v4206_v50, %v4214_v41  ;;  %v17630_v3 = vld [vmem:[#allocation44_spill] sm:$0xff]  ;;  %v17631_v50 = vld [vmem:[#allocation46_spill] sm:$0xff] }
0x25e1   :  { %v13750_v46 = vpop.eup %13749 }
0x25e2   :  { %4219 = vperm.xlu1 %13601, %v13750_v46  }
0x25e6   :  { %13607 = vset.pattern.permute.xlu1 %v17620_v28 }
0x2661   :  { %v4220_v48 = vpop.permute.xlu1 %4219 }
0x2662   :  { %v4222_v51 = vmul.f32 %v4220_v48, %v4215_v12  ;;  %v4223_v63 = vmul.f32 %v4220_v48, %v4216_v56  ;;  %v17632_v56 = vld [vmem:[#allocation21_spill] sm:$0xff]  ;;  %v17633_v48 = vld [vmem:[#allocation48_spill] sm:$0xff] }
0x2664   :  { %v4224_v46 = vadd.f32 %v4222_v51, %v14180_v1  ;;  %v4225_v28 = vadd.f32 %v4223_v63, %v14183_v2 }
0x2666   :  { %v9752_v49 = vmul.f32 -1.442695, %v4224_v46  ;;  %v9753_v18 = vmul.f32 -1.442695, %v4225_v28 }
0x2668   :  { %13751 = vpow2.f32 %v9752_v49  ;;  %v17625_v49 = vld [vmem:[#allocation38_spill] sm:$0xff] }
0x2669   :  { %13753 = vpow2.f32 %v9753_v18  ;;  %v17624_v18 = vld [vmem:[#allocation36_spill] sm:$0xff] }
0x2672   :  { %v13752_v34 = vpop.eup %13751 }
0x2673   :  { %v13754_v27 = vpop.eup %13753  ;;  %v4232_v31 = vadd.f32 1.0, %v13752_v34  ;;  %v17623_v34 = vld [vmem:[#allocation18_spill] sm:$0xff] }
0x2674   :  { %v4233_v47 = vadd.f32 1.0, %v13754_v27  ;;  %v17622_v27 = vld [vmem:[#allocation34_spill] sm:$0xff] }
0x2675   :  { %13755 = vrcp.f32 %v4232_v31  ;;  %v17629_v31 = vld [vmem:[#allocation20_spill] sm:$0xff] }
0x2676   :  { %13757 = vrcp.f32 %v4233_v47 }
0x267f   :  { %v13756_v14 = vpop.eup %13755 }
0x2680   :  { %v13758_v13 = vpop.eup %13757  ;;  %v4238_v41 = vmul.f32 %v13756_v14, %v4224_v46  ;;  %v17634_v46 = vld [vmem:[#allocation50_spill] sm:$0xff] }
0x2681   :  { %v4239_v61 = vmul.f32 %v13758_v13, %v4225_v28  ;;  %v17626_v28 = vld [vmem:[#allocation19_spill] sm:$0xff]  ;;  %v17635_v14 = vld [vmem:[#allocation22_spill] sm:$0xff]  ;;  %v17636_v13 = vld [vmem:[#allocation24_spill] sm:$0xff] }
0x2682   :  { %4314 = vrot.lane.b32.xlu0 %v4238_v41, %s13911_s26  ;;  %9754 = vmatmul.mubr.msk.f32.vlgmr.msra.gmra.mrb[40].mxu0 %vm421_vm0, %v4238_v41 }
0x2683   :  { %v13602_v60 = vpack.i.bf16 %v4239_v61, %v4238_v41  ;;  %12521 = vmatpush1.bf16.msra.mxu0 %v14199_v25  ;;  %4453 = vmatprep.mubr.f32.mxu0 %v17384_v15  ;;  %v17637_v41 = vld [vmem:[#allocation51_spill] sm:$0xff] }
0x2684   :  { %12523 = vmatprep.subr.bf16.mxu0 %v14201_v30 }
0x2685   :  { %13603 = vrot.lane.b32.xlu1 %v13602_v60, %s13912_s2  ;;  %v17638_v60 = vld [vmem:[#allocation54_spill] sm:$0xff] }
0x2687   :  { %12525 = vmatpush1.bf16.msra.mxu0 %v14212_v37 }
0x2688   :  { %12551 = vmatprep.subr.bf16.mxu0 %v14331_v58 }
0x26f4   :  { %v4315_v47 = vpop.permute.xlu0 %4314 }
0x26f5   :  { %9755 = vmatmul.mubr.msk.f32.vlgmr.msra.gmra.mrb[42].mxu1 %vm421_vm0, %v4315_v47  ;;  %9756 = vmatmul.mubr.msk.f32.vlgmr.msra.gmra.mrb[42].mxu0 %vm421_vm0, %v4315_v47  ;;  %v17639_v47 = vld [vmem:[#allocation25_spill] sm:$0xff] }
0x26f6   :  { %12528 = vmatpush3.bf16.msra.mxu1 %v14224_v42  ;;  %11515 = vmatprep.mubr.msk.f32.mxu1 %vm13913_vm1, %v17384_v15 }
0x26f7   :  { %12529 = vmatprep.subr.bf16.mxu1 %v17397_v36  ;;  %12553 = vmatpush3.bf16.msra.mxu0 %v14342_v0  ;;  %v13604_v12 = vpop.permute.xlu1 %13603 }
0x26f8   :  { %12555 = vmatprep.subr.bf16.mxu0 %v14369_v19  ;;  %v13606_v51 = vunpack.i.h.bf16 %v13604_v12  ;;  %v13605_v63 = vunpack.i.l.bf16 %v13604_v12  ;;  %v17642_v12 = vld [vmem:[#allocation32_spill] sm:$0xff] }
0x26fa   :  { %12531 = vmatpush3.bf16.msra.mxu1 %v14235_v52  ;;  %v4465_v61 = vsel %vm674_vm2, %v13605_v63, %v13606_v51  ;;  %v17647_v51 = vld [vmem:[#allocation41_spill] sm:$0xff]  ;;  %v17648_v63 = vld [vmem:[#allocation43_spill] sm:$0xff] }
0x26fb   :  { %12532 = vmatprep.subr.bf16.mxu1 %v17397_v36  ;;  %12557 = vmatpush3.bf16.msra.mxu0 %v14371_v33 }
0x26fc   :  { %12559 = vmatprep.subr.bf16.mxu0 %v14397_v59 }
0x26fe   :  { %12534 = vmatpush3.bf16.msra.mxu1 %v14247_v57 }
0x26ff   :  { %12535 = vmatprep.subr.bf16.mxu1 %v17397_v36  ;;  %12561 = vmatpush3.bf16.msra.mxu0 %v14419_v17 }
0x2700   :  { %12563 = vmatprep.subr.bf16.mxu0 %v17622_v27 }
0x2702   :  { %12537 = vmatpush3.bf16.msra.mxu1 %v17623_v34 }
0x2703   :  { %12538 = vmatprep.subr.bf16.mxu1 %v17397_v36  ;;  %12565 = vmatpush3.bf16.msra.mxu0 %v17624_v18 }
0x2704   :  { %12567 = vmatprep.subr.bf16.mxu0 %v17625_v49 }
0x2706   :  { %12540 = vmatpush3.bf16.msra.mxu1 %v17626_v28 }
0x2707   :  { %12541 = vmatprep.subr.bf16.mxu1 %v17397_v36  ;;  %12569 = vmatpush3.bf16.msra.mxu0 %v17627_v20 }
0x2708   :  { %12571 = vmatprep.subr.bf16.mxu0 %v17628_v9 }
0x270a   :  { %12543 = vmatpush3.bf16.msra.mxu1 %v17629_v31 }
0x270b   :  { %12544 = vmatprep.subr.bf16.mxu1 %v17397_v36  ;;  %12573 = vmatpush3.bf16.msra.mxu0 %v17630_v3  ;;  %v17655_v3 = vld [vmem:[#allocation62_spill] sm:$0xff] }
0x270c   :  { %12575 = vmatprep.subr.bf16.mxu0 %v17631_v50 }
0x270e   :  { %12546 = vmatpush3.bf16.msra.mxu1 %v17632_v56  ;;  %v17640_v56 = vld [vmem:[#allocation28_spill] sm:$0xff] }
0x270f   :  { %12547 = vmatprep.subr.bf16.mxu1 %v17397_v36  ;;  %12577 = vmatpush3.bf16.msra.mxu0 %v17633_v48  ;;  %v17641_v48 = vld [vmem:[#allocation29_spill] sm:$0xff] }
0x2710   :  { %12579 = vmatprep.subr.bf16.mxu0 %v17634_v46  ;;  %v17643_v46 = vld [vmem:[#allocation33_spill] sm:$0xff] }
0x2712   :  { %12549 = vmatpush3.bf16.msra.mxu1 %v17635_v14  ;;  %v17644_v14 = vld [vmem:[#allocation35_spill] sm:$0xff] }
0x2713   :  { %12583 = vmatprep.subr.bf16.mxu1 %v17636_v13  ;;  %12581 = vmatpush3.bf16.msra.mxu0 %v17637_v41  ;;  %v17645_v13 = vld [vmem:[#allocation37_spill] sm:$0xff]  ;;  %v17646_v41 = vld [vmem:[#allocation39_spill] sm:$0xff] }
0x2714   :  { %12615 = vmatprep.subr.bf16.mxu0 %v17638_v60 }
0x2715   :  { %11516 = vmatmul.mubr.f32.vlgmr.msra.gmra.mrb[44].mxu1 %v4465_v61  ;;  %v17649_v61 = vld [vmem:[#allocation45_spill] sm:$0xff] }
0x2716   :  { %12585 = vmatpush3.bf16.msra.mxu1 %v17639_v47  ;;  %v17650_v47 = vld [vmem:[#allocation47_spill] sm:$0xff] }
0x2717   :  { %12587 = vmatprep.subr.bf16.mxu1 %v17640_v56  ;;  %v17651_v56 = vld [vmem:[#allocation49_spill] sm:$0xff] }
0x271a   :  { %12589 = vmatpush3.bf16.msra.mxu1 %v17641_v48  ;;  %v17652_v48 = vld [vmem:[#allocation52_spill] sm:$0xff] }
0x271b   :  { %12591 = vmatprep.subr.bf16.mxu1 %v17642_v12  ;;  %v17653_v12 = vld [vmem:[#allocation53_spill] sm:$0xff] }
0x271e   :  { %12593 = vmatpush3.bf16.msra.mxu1 %v17643_v46  ;;  %v17654_v46 = vld [vmem:[#allocation6_spill] sm:$0xff] }
0x271f   :  { %12595 = vmatprep.subr.bf16.mxu1 %v17644_v14 }
0x2722   :  { %12597 = vmatpush3.bf16.msra.mxu1 %v17645_v13 }
0x2723   :  { %12599 = vmatprep.subr.bf16.mxu1 %v17646_v41 }
0x2726   :  { %12601 = vmatpush3.bf16.msra.mxu1 %v17647_v51 }
0x2727   :  { %12603 = vmatprep.subr.bf16.mxu1 %v17648_v63 }
0x272a   :  { %12605 = vmatpush3.bf16.msra.mxu1 %v17649_v61 }
0x272b   :  { %12607 = vmatprep.subr.bf16.mxu1 %v17650_v47 }
0x272e   :  { %12609 = vmatpush3.bf16.msra.mxu1 %v17651_v56 }
0x272f   :  { %12611 = vmatprep.subr.bf16.mxu1 %v17652_v48 }
0x2732   :  { %12613 = vmatpush3.bf16.msra.mxu1 %v17653_v12 }
0x2733   :  { %12647 = vmatprep.subr.bf16.mxu1 %v17654_v46 }
0x2755   :  { %v4309_v14 = vpop.f32.mrb[40].mxu0 }
0x2756   :  { %v4311_v13 = vpop.f32.mrb[41].mxu0 }
0x27c8   :  { %v4384_v60 = vpop.f32.mrb[42].mxu1  ;;  %v15761_v41 = vpop.f32.mrb[42].mxu0 }
0x27c9   :  { %v4386_v51 = vpop.f32.mrb[43].mxu1  ;;  %v4457_v50 = vpop.f32.mrb[43].mxu0 }
0x27e8   :  { %v4533_v63 = vpop.f32.mrb[44].mxu1 }
0x27e9   :  { %v4534_v61 = vadd.f32 %v17655_v3, %v4533_v63  ;;  %v11517_v31 = vpop.f32.mrb[45].mxu1  ;;  %v17656_v3 = vmov 0  }
0x27eb   :  { %v9757_v47 = vmul.f32 -1.442695, %v4534_v61  ;;  %v4385_v61 = vadd.f32 %v4384_v60, %v17488_v10 }
0x27ed   :  { %13759 = vpow2.f32 %v9757_v47  ;;  %v9749_v47 = vld [vmem:[%s17377_s4 + $0x28] sm:$0xff] }
0x27ee   :  { %v4673_v63 = vrot.slane %v9749_v47, %v17429_v11  ;;  %v4666_v17 = vcombine.high %v9749_v47, %v9749_v47 }
0x27f0   :  { %v4681_v20 = vcombine.high %v4673_v63, %v4673_v63 }
0x27f7   :  { %v13760_v56 = vpop.eup %13759 }
0x27f8   :  { %v4540_v9 = vadd.f32 1.0, %v13760_v56 }
0x27fa   :  { %13761 = vrcp.f32 %v4540_v9 }
0x2804   :  { %v15764_v48 = vpop.eup %13761 }
0x2805   :  { %4544 = vrot.lane.b32.xlu0 %v15764_v48, %s13915_s30 }
0x2809   :  { %4565 = vrot.lane.b32.xlu0 %v15671_v35, %s13917_s13 }
0x280d   :  { %4571 = vrot.lane.b32.xlu0 %v15671_v35, %s13919_s27 }
0x2811   :  { %4577 = vrot.lane.b32.xlu0 %v15671_v35, %s13920_s20 }
0x2815   :  { %4583 = vrot.lane.b32.xlu0 %v15671_v35, %s13918_s24 }
0x2877   :  { %v4545_v31 = vpop.permute.xlu0 %4544 }
0x2878   :  { %v4547_v9 = vmul.f32 %v15764_v48, %v4545_v31  ;;  %v17657_v31 = vld [vmem:[#allocation59_spill] sm:$0xff] }
0x287a   :  { %4550 = vperm.xlu1 %13607, %v4547_v9   ;;  %v4387_v9 = vadd.f32 %v4386_v51, %v17657_v31 }
0x287b   :  { %v4566_v56 = vpop.permute.xlu0 %4565 }
0x287c   :  { %v4586_v34 = vsel %vm281_vm4, %v15671_v35, %v4566_v56  ;;  %v4680_v56 = vrot.slane %v4666_v17, %v17429_v11 }
0x287e   :  { %4568 = vrot.lane.b32.xlu1 %v15671_v35, %s13921_s21 }
0x287f   :  { %13608 = vset.pattern.permute.xlu1 %v17656_v3  ;;  %v4572_v12 = vpop.permute.xlu0 %4571 }
0x2882   :  { %4574 = vrot.lane.b32.xlu1 %v15671_v35, %s13912_s2 }
0x2886   :  { %4580 = vrot.lane.b32.xlu1 %v15671_v35, %s13911_s26 }
0x28f9   :  { %v4551_v46 = vpop.permute.xlu1 %4550 }
0x28fa   :  { %v4558_v3 = vmul.f32 %v4551_v46, %v4387_v9  ;;  %v4557_v28 = vmul.f32 %v4551_v46, %v4385_v61  ;;  %v4310_v9 = vadd.f32 %v4309_v14, %v17432_v45  ;;  %v4312_v61 = vadd.f32 %v4311_v13, %v17433_v29 }
0x28fb   :  { %v4682_v13 = vcombine.high %v4680_v56, %v4680_v56 }
0x28fc   :  { %v15791_v49 = vadd.f32 %v4558_v3, %v15592_v54  ;;  %v15794_v18 = vadd.f32 %v4557_v28, %v15595_v40  ;;  %v4458_v54 = vadd.f32 %v4457_v50, %v17434_v22  ;;  %v4578_v3 = vpop.permute.xlu0 %4577  ;;  %v4553_v35 = vmul.f32 %v4551_v46, %v4310_v9 }
0x28fd   :  { %v4569_v27 = vpop.permute.xlu1 %4568 }
0x28fe   :  { %v4587_v60 = vsel %vm421_vm0, %v4586_v34, %v4569_v27  ;;  %v4688_v51 = vmul.f32 %v4681_v20, %v15791_v49  ;;  %v4687_v31 = vmul.f32 %v4673_v63, %v15794_v18  ;;  %v4554_v34 = vmul.f32 %v4551_v46, %v4312_v61 }
0x28ff   :  { %v4588_v28 = vsel %vm1544_vm5, %v4587_v60, %v4572_v12  ;;  %v4560_v20 = vmul.f32 %v4551_v46, %v4458_v54  ;;  %v15812_v12 = vadd.f32 %v4553_v35, %v15613_v39  ;;  %v4456_v39 = vadd.f32 %v15761_v41, %v17546_v4  ;;  %v17659_v54 = vld [vmem:[#allocation69_spill] sm:$0xff]  ;;  %v17663_v35 = vld [vmem:[#allocation71_spill] sm:$0xff] }
0x2900   :  { %4755 = vmatprep.mubr.f32.mxu1 %v4688_v51  ;;  %v4584_v47 = vpop.permute.xlu0 %4583  ;;  %v15816_v63 = vadd.f32 %v4554_v34, %v15617_v8  ;;  %v17658_v8 = vld [vmem:[#allocation68_spill] sm:$0xff]  ;;  %v17664_v34 = vld [vmem:[#allocation10_spill] sm:$0xff]  ;;  %v17665_v41 = vld [vmem:[#allocation11_spill] sm:$0xff] }
0x2901   :  { %v4575_v40 = vpop.permute.xlu1 %4574  ;;  %4756 = vmatmul.mubr.f32.vlgmr.msra.gmra.mrb[46].mxu1 %v4687_v31  ;;  %v15819_v31 = vadd.f32 %v4560_v20, %v15620_v26  ;;  %v4559_v26 = vmul.f32 %v4551_v46, %v4456_v39  ;;  %v17666_v20 = vld [vmem:[#allocation13_spill] sm:$0xff]  ;;  %v17667_v46 = vld [vmem:[#allocation14_spill] sm:$0xff] }
0x2902   :  { %v4589_v27 = vsel %vm674_vm2, %v4588_v28, %v4575_v40  ;;  %12649 = vmatpush1.bf16.msra.mxu1 %v14059_v6  ;;  %4961 = vmatprep.mubr.f32.mxu1 %v17384_v15  ;;  %v17661_v40 = vld [vmem:[#allocation63_spill] sm:$0xff] }
0x2903   :  { %12651 = vmatprep.subr.bf16.mxu1 %v14081_v23  ;;  %v4590_v14 = vsel %vm1547_vm6, %v4589_v27, %v4578_v3  ;;  %v4690_v61 = vmul.f32 %v4682_v13, %v15819_v31  ;;  %v17660_v3 = vld [vmem:[#allocation70_spill] sm:$0xff]  ;;  %v15842_v28 = vadd.f32 %v4559_v26, %v17661_v40 }
0x2905   :  { %v4581_v50 = vpop.permute.xlu1 %4580  ;;  %17662 = vst [vmem:[#allocation73_spill] sm:$0xff] %v15842_v28  ;;  %v4689_v27 = vmul.f32 %v4680_v56, %v15842_v28 }
0x2906   :  { %v4591_v17 = vsel %vm1549_vm7, %v4590_v14, %v4581_v50 }
0x2907   :  { %v4592_v60 = vsel %vm1551_vm8, %v4591_v17, %v4584_v47 }
0x2908   :  { %v4593_v51 = vmul.f32 %v4592_v60, %v15812_v12  ;;  %v4594_v9 = vmul.f32 %v4592_v60, %v15816_v63 }
0x290a   :  { %4659 = vmatprep.mubr.f32.mxu0 %v4594_v9 }
0x290b   :  { %4660 = vmatmul.mubr.f32.vlgmr.msra.gmra.mrb[44].mxu0 %v4593_v51 }
0x290c   :  { %12617 = vmatpush3.bf16.msra.mxu0 %v14716_v21  ;;  %4825 = vmatprep.mubr.f32.mxu0 %v4690_v61 }
0x290d   :  { %12619 = vmatprep.subr.bf16.mxu0 %v14724_v7 }
0x2910   :  { %12621 = vmatpush3.bf16.msra.mxu0 %v14740_v53 }
0x2911   :  { %12623 = vmatprep.subr.bf16.mxu0 %v14743_v32 }
0x2914   :  { %12625 = vmatpush3.bf16.msra.mxu0 %v14761_v44 }
0x2915   :  { %12627 = vmatprep.subr.bf16.mxu0 %v17435_v43 }
0x2918   :  { %12629 = vmatpush3.bf16.msra.mxu0 %v17436_v16 }
0x2919   :  { %12631 = vmatprep.subr.bf16.mxu0 %v17437_v5 }
0x291c   :  { %12633 = vmatpush3.bf16.msra.mxu0 %v17438_v38 }
0x291d   :  { %12635 = vmatprep.subr.bf16.mxu0 %v17490_v62 }
0x2920   :  { %12637 = vmatpush3.bf16.msra.mxu0 %v17602_v24 }
0x2921   :  { %12639 = vmatprep.subr.bf16.mxu0 %v17658_v8 }
0x2924   :  { %12641 = vmatpush3.bf16.msra.mxu0 %v17659_v54 }
0x2925   :  { %12643 = vmatprep.subr.bf16.mxu0 %v17660_v3 }
0x2928   :  { %12645 = vmatpush3.bf16.msra.mxu0 %v17663_v35 }
0x2929   :  { %12659 = vmatprep.subr.bf16.mxu0 %v17664_v34 }
0x292b   :  { %4826 = vmatmul.mubr.f32.vlgmr.msra.gmra.mrb[46].mxu0 %v4689_v27 }
0x292c   :  { %12661 = vmatpush1.bf16.msra.mxu0 %v17665_v41  ;;  %5142 = vmatprep.mubr.f32.mxu0 %v17384_v15 }
0x292d   :  { %12663 = vmatprep.subr.bf16.mxu0 %v17666_v20 }
0x2930   :  { %12665 = vmatpush1.bf16.msra.mxu0 %v17667_v46 }
0x2931   :  { %12674 = vmatprep.subr.bf16.mxu0 %v17397_v36 }
0x29d4   :  { %v10526_v50 = vpop.f32.mrb[46].mxu1 }
0x29d5   :  { %v10527_v14 = vpop.f32.mrb[47].mxu1 }
0x29d6   :  { %v10528_v13 = vadd.f32 %v10527_v14, %v10526_v50 }
0x29de   :  { %v10491_v47 = vpop.f32.mrb[44].mxu0 }
0x29df   :  { %v10492_v17 = vpop.f32.mrb[45].mxu0 }
0x29e0   :  { %v10493_v60 = vadd.f32 %v10492_v17, %v10491_v47 }
0x29e2   :  { %v4831_v40 = vmul.f32 %v15764_v48, %v10493_v60  ;;  %v17669_v60 = vld [vmem:[#allocation72_spill] sm:$0xff] }
0x29fe   :  { %v10561_v56 = vpop.f32.mrb[46].mxu0 }
0x29ff   :  { %v10562_v51 = vpop.f32.mrb[47].mxu0 }
0x2a00   :  { %v10563_v9 = vadd.f32 %v10562_v51, %v10561_v56 }
0x2a02   :  { %v4828_v61 = vadd.f32 %v10563_v9, %v10528_v13 }
0x2a04   :  { %4833 = vrot.lane.b32.xlu1 %v4828_v61, %s13917_s13 }
0x2a76   :  { %v4834_v39 = vpop.permute.xlu1 %4833 }
0x2a77   :  { %v4836_v26 = vmul.f32 %v15764_v48, %v4834_v39 }
0x2a79   :  { %4838 = vrot.lane.b32.xlu0 %v4836_v26, %s13918_s24  ;;  %v17668_v26 = vld [vmem:[#allocation64_spill] sm:$0xff] }
0x2aeb   :  { %v4839_v27 = vpop.permute.xlu0 %4838 }
0x2aec   :  { %v4841_v46 = vadd.f32 %v4839_v27, %v4831_v40  ;;  %v17670_v27 = vld [vmem:[#allocation7_spill] sm:$0xff] }
0x2aee   :  { %v4842_v50 = vsel %vm1024_vm3, %v4841_v46, 0.0 }
0x2aef   :  { %4843 = vadd.xlane.f32.xlu1 %v4842_v50 }
0x2b7c   :  { %v4844_v14 = vpop.xlane.xlu1 %4843 }
0x2b7d   :  { %v4845_v47 = vmul.f32 0.0625, %v4844_v14  ;;  %v17671_v14 = vld [vmem:[#allocation8_spill] sm:$0xff] }
0x2b7f   :  { %v4846_v17 = vsub.f32 %v4841_v46, %v4845_v47  ;;  %v17672_v47 = vld [vmem:[#allocation9_spill] sm:$0xff] }
0x2b81   :  { %v4847_v20 = vmul.f32 %v4846_v17, %v4846_v17 }
0x2b83   :  { %v4848_v13 = vsel %vm1024_vm3, %v4847_v20, 0.0 }
0x2b84   :  { %4849 = vadd.xlane.f32.xlu0 %v4848_v13  ;;  %v9759_v13 = vld [vmem:[%s17322_s28 + $0xc] sm:$0x3] }
0x2c11   :  { %v4850_v56 = vpop.xlane.xlu0 %4849 }
0x2c12   :  { %v4851_v51 = vmul.f32 0.0625, %v4850_v56 }
0x2c14   :  { %v4852_v9 = vadd.f32 1e-05, %v4851_v51 }
0x2c16   :  { %13763 = vrsqrt.f32 %v4852_v9 }
0x2c20   :  { %v13764_v61 = vpop.eup %13763 }
0x2c21   :  { %v4854_v39 = vmul.f32 %v13764_v61, %v4846_v17  ;;  %v17673_v17 = vld [vmem:[#allocation12_spill] sm:$0xff] }
0x2c23   :  { %v4855_v48 = vmul.f32 %v17668_v26, %v4854_v39  ;;  %v17674_v39 = vmov 1  }
0x2c25   :  { %v15860_v40 = vadd.f32 %v17669_v60, %v4855_v48 }
0x2c27   :  { %4857 = vst.msk [vmem:[#allocation2 + $0xa] sm:$0x3] %vm1024_vm3, %v15860_v40  ;;  %9762 = vmatmul.mubr.msk.f32.vlgmr.msra.gmra.mrb[48].mxu1 %vm281_vm4, %v15860_v40  ;;  %v4864_v20 = vsel %vm1024_vm3, %v15860_v40, 0.0  ;;  %v4869_v46 = vmul.f32 %v15860_v40, %v15860_v40 }
0x2c28   :  { %4865 = vadd.xlane.f32.xlu0 %v4864_v20  ;;  %12653 = vmatpush1.bf16.msra.mxu1 %v17670_v27  ;;  %v17675_v27 = vmov 32  }
0x2c29   :  { %v4870_v50 = vsel %vm1024_vm3, %v4869_v46, 0.0  ;;  %12655 = vmatprep.subr.bf16.mxu1 %v17671_v14  ;;  %5067 = vmatprep.mubr.f32.mxu1 %v17384_v15 }
0x2c2a   :  { %4871 = vadd.xlane.f32.xlu1 %v4870_v50 }
0x2c2c   :  { %12657 = vmatpush1.bf16.msra.mxu1 %v17672_v47 }
0x2c2d   :  { %12667 = vmatprep.subr.bf16.mxu1 %v17673_v17 }
0x2cb5   :  { %v4866_v56 = vpop.xlane.xlu0 %4865 }
0x2cb6   :  { %v4867_v51 = vmul.f32 0.020833334, %v4866_v56  ;;  %v9761_v56 = vld.sshfl [vmem:[%s17332_s3 + $0x18] sm:$0x33 pattern:$0x76325410] }
0x2cb7   :  { %v4872_v60 = vpop.xlane.xlu1 %4871 }
0x2cb8   :  { %v4868_v9 = vadd.f32 %v9759_v13, %v4867_v51  ;;  %v4873_v20 = vmul.f32 0.020833334, %v4872_v60 }
0x2cba   :  { %v4875_v61 = vmul.f32 %v4868_v9, %v4868_v9  ;;  %4970 = vperm.xlu1 %13608, %v4868_v9   ;;  %v4874_v46 = vadd.f32 %v9759_v13, %v4873_v20  ;;  %v4891_v9 = vcombine.high %v9761_v56, %v9761_v56 }
0x2cbc   :  { %4877 = vrot.lane.b32.xlu0 %v4875_v61, %s13908_s29  ;;  %v17676_v61 = vld [vmem:[#allocation15_spill] sm:$0xff] }
0x2cbe   :  { %13609 = vset.pattern.permute.xlu1 %v17674_v39 }
0x2cfa   :  { %v4963_v26 = vpop.f32.mrb[48].mxu1 }
0x2cfb   :  { %v4965_v48 = vpop.f32.mrb[49].mxu1  ;;  %v4964_v60 = vadd.f32 %v9761_v56, %v4963_v26 }
0x2cfc   :  { %v4966_v13 = vadd.f32 %v4965_v48, %v4891_v9  ;;  %v17683_v9 = vld [vmem:[#allocation40_spill] sm:$0xff] }
0x2d2e   :  { %v4878_v50 = vpop.permute.xlu0 %4877 }
0x2d2f   :  { %v4880_v17 = vsub.f32 %v4874_v46, %v4878_v50 }
0x2d31   :  { %v4881_v47 = vadd.f32 1e-05, %v4880_v17 }
0x2d33   :  { %13765 = vrsqrt.f32 %v4881_v47 }
0x2d39   :  { %v4971_v51 = vpop.permute.xlu1 %4970 }
0x2d3a   :  { %v4973_v39 = vmul.f32 %v4971_v51, %v17676_v61  ;;  %v4974_v41 = vmul.f32 %v4971_v51, %v14172_v55  ;;  %v17682_v51 = vld [vmem:[#allocation19_spill] sm:$0xff] }
0x2d3c   :  { %v4975_v20 = vsub.f32 %v4964_v60, %v4973_v39  ;;  %v4976_v46 = vsub.f32 %v4966_v13, %v4974_v41  ;;  %v17685_v60 = vld [vmem:[#allocation20_spill] sm:$0xff] }
0x2d3d   :  { %v13766_v14 = vpop.eup %13765  ;;  %v17686_v13 = vld [vmem:[#allocation44_spill] sm:$0xff] }
0x2d3e   :  { %4979 = vperm.xlu1 %13609, %v13766_v14  }
0x2d42   :  { %13615 = vset.pattern.permute.xlu1 %v17675_v27 }
0x2dbd   :  { %v4980_v17 = vpop.permute.xlu1 %4979 }
0x2dbe   :  { %v4982_v47 = vmul.f32 %v4980_v17, %v4975_v20  ;;  %v4983_v50 = vmul.f32 %v4980_v17, %v4976_v46  ;;  %v17687_v20 = vld [vmem:[#allocation46_spill] sm:$0xff]  ;;  %v17688_v17 = vld [vmem:[#allocation21_spill] sm:$0xff] }
0x2dc0   :  { %v4984_v14 = vadd.f32 %v4982_v47, %v14180_v1  ;;  %v4985_v27 = vadd.f32 %v4983_v50, %v14183_v2  ;;  %v17689_v47 = vld [vmem:[#allocation48_spill] sm:$0xff] }
0x2dc2   :  { %v9763_v34 = vmul.f32 -1.442695, %v4984_v14  ;;  %v9764_v35 = vmul.f32 -1.442695, %v4985_v27 }
0x2dc4   :  { %13767 = vpow2.f32 %v9763_v34  ;;  %v17680_v34 = vld [vmem:[#allocation36_spill] sm:$0xff] }
0x2dc5   :  { %13769 = vpow2.f32 %v9764_v35  ;;  %v17679_v35 = vld [vmem:[#allocation18_spill] sm:$0xff] }
0x2dce   :  { %v13768_v28 = vpop.eup %13767 }
0x2dcf   :  { %v13770_v3 = vpop.eup %13769  ;;  %v4992_v61 = vadd.f32 1.0, %v13768_v28  ;;  %v17678_v28 = vld [vmem:[#allocation34_spill] sm:$0xff] }
0x2dd0   :  { %v4993_v54 = vadd.f32 1.0, %v13770_v3  ;;  %v17677_v3 = vld [vmem:[#allocation31_spill] sm:$0xff] }
0x2dd1   :  { %13771 = vrcp.f32 %v4992_v61  ;;  %v17684_v61 = vld [vmem:[#allocation42_spill] sm:$0xff] }
0x2dd2   :  { %13773 = vrcp.f32 %v4993_v54 }
0x2ddb   :  { %v13772_v26 = vpop.eup %13771 }
0x2ddc   :  { %v13774_v39 = vpop.eup %13773  ;;  %v4998_v41 = vmul.f32 %v13772_v26, %v4984_v14  ;;  %v17690_v26 = vld [vmem:[#allocation50_spill] sm:$0xff] }
0x2ddd   :  { %v4999_v48 = vmul.f32 %v13774_v39, %v4985_v27  ;;  %v17681_v27 = vld [vmem:[#allocation38_spill] sm:$0xff] }
0x2dde   :  { %5074 = vrot.lane.b32.xlu0 %v4998_v41, %s13911_s26  ;;  %9765 = vmatmul.mubr.msk.f32.vlgmr.msra.gmra.mrb[50].mxu1 %vm421_vm0, %v4998_v41  ;;  %v17691_v39 = vld [vmem:[#allocation22_spill] sm:$0xff] }
0x2ddf   :  { %v13610_v56 = vpack.i.bf16 %v4999_v48, %v4998_v41  ;;  %12669 = vmatpush1.bf16.msra.mxu1 %v14199_v25  ;;  %5213 = vmatprep.mubr.f32.mxu1 %v17384_v15  ;;  %v17692_v41 = vld [vmem:[#allocation24_spill] sm:$0xff]  ;;  %v17693_v48 = vld [vmem:[#allocation51_spill] sm:$0xff] }
0x2de0   :  { %12671 = vmatprep.subr.bf16.mxu1 %v14201_v30 }
0x2de1   :  { %13611 = vrot.lane.b32.xlu1 %v13610_v56, %s13912_s2 }
0x2de3   :  { %12673 = vmatpush1.bf16.msra.mxu1 %v14212_v37 }
0x2de4   :  { %12699 = vmatprep.subr.bf16.mxu1 %v14331_v58 }
0x2e50   :  { %v5075_v54 = vpop.permute.xlu0 %5074 }
0x2e51   :  { %9766 = vmatmul.mubr.msk.f32.vlgmr.msra.gmra.mrb[48].mxu0 %vm421_vm0, %v5075_v54  ;;  %9767 = vmatmul.mubr.msk.f32.vlgmr.msra.gmra.mrb[52].mxu1 %vm421_vm0, %v5075_v54  ;;  %v17694_v54 = vld [vmem:[#allocation54_spill] sm:$0xff] }
0x2e52   :  { %12676 = vmatpush3.bf16.msra.mxu0 %v14224_v42  ;;  %11550 = vmatprep.mubr.msk.f32.mxu0 %vm13913_vm1, %v17384_v15 }
0x2e53   :  { %12677 = vmatprep.subr.bf16.mxu0 %v17397_v36  ;;  %12701 = vmatpush3.bf16.msra.mxu1 %v14342_v0  ;;  %v13612_v46 = vpop.permute.xlu1 %13611 }
0x2e54   :  { %12703 = vmatprep.subr.bf16.mxu1 %v14369_v19  ;;  %v13614_v50 = vunpack.i.h.bf16 %v13612_v46  ;;  %v13613_v14 = vunpack.i.l.bf16 %v13612_v46  ;;  %v17698_v46 = vld [vmem:[#allocation32_spill] sm:$0xff] }
0x2e56   :  { %12679 = vmatpush3.bf16.msra.mxu0 %v14235_v52  ;;  %v5225_v56 = vsel %vm674_vm2, %v13613_v14, %v13614_v50  ;;  %v17703_v50 = vld [vmem:[#allocation41_spill] sm:$0xff]  ;;  %v17704_v14 = vld [vmem:[#allocation43_spill] sm:$0xff] }
0x2e57   :  { %12680 = vmatprep.subr.bf16.mxu0 %v17397_v36  ;;  %12705 = vmatpush3.bf16.msra.mxu1 %v14371_v33 }
0x2e58   :  { %12707 = vmatprep.subr.bf16.mxu1 %v14397_v59 }
0x2e5a   :  { %12682 = vmatpush3.bf16.msra.mxu0 %v14247_v57 }
0x2e5b   :  { %12683 = vmatprep.subr.bf16.mxu0 %v17397_v36  ;;  %12709 = vmatpush3.bf16.msra.mxu1 %v17677_v3 }
0x2e5c   :  { %12711 = vmatprep.subr.bf16.mxu1 %v17678_v28 }
0x2e5e   :  { %12685 = vmatpush3.bf16.msra.mxu0 %v17679_v35 }
0x2e5f   :  { %12686 = vmatprep.subr.bf16.mxu0 %v17397_v36  ;;  %12713 = vmatpush3.bf16.msra.mxu1 %v17680_v34 }
0x2e60   :  { %12715 = vmatprep.subr.bf16.mxu1 %v17681_v27 }
0x2e62   :  { %12688 = vmatpush3.bf16.msra.mxu0 %v17682_v51 }
0x2e63   :  { %12689 = vmatprep.subr.bf16.mxu0 %v17397_v36  ;;  %12717 = vmatpush3.bf16.msra.mxu1 %v17683_v9 }
0x2e64   :  { %12719 = vmatprep.subr.bf16.mxu1 %v17684_v61 }
0x2e66   :  { %12691 = vmatpush3.bf16.msra.mxu0 %v17685_v60 }
0x2e67   :  { %12692 = vmatprep.subr.bf16.mxu0 %v17397_v36  ;;  %12721 = vmatpush3.bf16.msra.mxu1 %v17686_v13 }
0x2e68   :  { %12723 = vmatprep.subr.bf16.mxu1 %v17687_v20  ;;  %v17696_v20 = vld [vmem:[#allocation28_spill] sm:$0xff] }
0x2e6a   :  { %12694 = vmatpush3.bf16.msra.mxu0 %v17688_v17  ;;  %v17695_v17 = vld [vmem:[#allocation25_spill] sm:$0xff] }
0x2e6b   :  { %12695 = vmatprep.subr.bf16.mxu0 %v17397_v36  ;;  %12725 = vmatpush3.bf16.msra.mxu1 %v17689_v47  ;;  %v17697_v47 = vld [vmem:[#allocation29_spill] sm:$0xff] }
0x2e6c   :  { %12727 = vmatprep.subr.bf16.mxu1 %v17690_v26  ;;  %v17699_v26 = vld [vmem:[#allocation33_spill] sm:$0xff] }
0x2e6e   :  { %12697 = vmatpush3.bf16.msra.mxu0 %v17691_v39  ;;  %v17700_v39 = vld [vmem:[#allocation35_spill] sm:$0xff] }
0x2e6f   :  { %12731 = vmatprep.subr.bf16.mxu0 %v17692_v41  ;;  %12729 = vmatpush3.bf16.msra.mxu1 %v17693_v48  ;;  %v17701_v41 = vld [vmem:[#allocation37_spill] sm:$0xff]  ;;  %v17702_v48 = vld [vmem:[#allocation39_spill] sm:$0xff] }
0x2e70   :  { %12763 = vmatprep.subr.bf16.mxu1 %v17694_v54 }
0x2e71   :  { %11551 = vmatmul.mubr.f32.vlgmr.msra.gmra.mrb[50].mxu0 %v5225_v56  ;;  %v17705_v56 = vld [vmem:[#allocation45_spill] sm:$0xff] }
0x2e72   :  { %12733 = vmatpush3.bf16.msra.mxu0 %v17695_v17  ;;  %v17706_v17 = vld [vmem:[#allocation47_spill] sm:$0xff] }
0x2e73   :  { %12735 = vmatprep.subr.bf16.mxu0 %v17696_v20  ;;  %v17707_v20 = vld [vmem:[#allocation49_spill] sm:$0xff] }
0x2e76   :  { %12737 = vmatpush3.bf16.msra.mxu0 %v17697_v47  ;;  %v17708_v47 = vld [vmem:[#allocation52_spill] sm:$0xff] }
0x2e77   :  { %12739 = vmatprep.subr.bf16.mxu0 %v17698_v46  ;;  %v17709_v46 = vld [vmem:[#allocation53_spill] sm:$0xff] }
0x2e7a   :  { %12741 = vmatpush3.bf16.msra.mxu0 %v17699_v26  ;;  %v17710_v26 = vld [vmem:[#allocation6_spill] sm:$0xff] }
0x2e7b   :  { %12743 = vmatprep.subr.bf16.mxu0 %v17700_v39 }
0x2e7e   :  { %12745 = vmatpush3.bf16.msra.mxu0 %v17701_v41 }
0x2e7f   :  { %12747 = vmatprep.subr.bf16.mxu0 %v17702_v48 }
0x2e82   :  { %12749 = vmatpush3.bf16.msra.mxu0 %v17703_v50 }
0x2e83   :  { %12751 = vmatprep.subr.bf16.mxu0 %v17704_v14 }
0x2e86   :  { %12753 = vmatpush3.bf16.msra.mxu0 %v17705_v56 }
0x2e87   :  { %12755 = vmatprep.subr.bf16.mxu0 %v17706_v17  ;;  %v15955_v17 = vld [vmem:[%s17131_s11] ss:$0 sm:$0xff] }
0x2e88   :  { %17711 = vst [vmem:[#allocation74_spill] sm:$0xff] %v15955_v17 }
0x2e8a   :  { %12757 = vmatpush3.bf16.msra.mxu0 %v17707_v20 }
0x2e8b   :  { %12759 = vmatprep.subr.bf16.mxu0 %v17708_v47 }
0x2e8e   :  { %12761 = vmatpush3.bf16.msra.mxu0 %v17709_v46 }
0x2e8f   :  { %12795 = vmatprep.subr.bf16.mxu0 %v17710_v26 }
0x2eb1   :  { %v5069_v39 = vpop.f32.mrb[50].mxu1 }
0x2eb2   :  { %v5071_v41 = vpop.f32.mrb[51].mxu1 }
0x2f24   :  { %v5144_v54 = vpop.f32.mrb[48].mxu0  ;;  %v15950_v48 = vpop.f32.mrb[52].mxu1 }
0x2f25   :  { %v5146_v50 = vpop.f32.mrb[49].mxu0  ;;  %v5217_v13 = vpop.f32.mrb[53].mxu1 }
0x2f44   :  { %v5293_v14 = vpop.f32.mrb[50].mxu0 }
0x2f45   :  { %v5294_v20 = vadd.f32 %v15955_v17, %v5293_v14  ;;  %v11552_v47 = vpop.f32.mrb[51].mxu0  ;;  %v9760_v14 = vld [vmem:[%s17377_s4 + $0x30] sm:$0xff] }
0x2f46   :  { %v5426_v57 = vcombine.high %v9760_v14, %v9760_v14 }
0x2f47   :  { %v9768_v56 = vmul.f32 -1.442695, %v5294_v20 }
0x2f49   :  { %13775 = vpow2.f32 %v9768_v56  ;;  %v5433_v56 = vrot.slane %v9760_v14, %v17429_v11 }
0x2f4b   :  { %v5441_v51 = vcombine.high %v5433_v56, %v5433_v56 }
0x2f53   :  { %v13776_v46 = vpop.eup %13775 }
0x2f54   :  { %v5300_v26 = vadd.f32 1.0, %v13776_v46 }
0x2f56   :  { %13777 = vrcp.f32 %v5300_v26  ;;  %v17712_v26 = vmov 0  }
0x2f60   :  { %v15958_v60 = vpop.eup %13777 }
0x2f61   :  { %5304 = vrot.lane.b32.xlu0 %v15958_v60, %s13915_s30 }
0x2f65   :  { %5325 = vrot.lane.b32.xlu0 %v15860_v40, %s13917_s13 }
0x2f69   :  { %5331 = vrot.lane.b32.xlu0 %v15860_v40, %s13919_s27 }
0x2f6d   :  { %5337 = vrot.lane.b32.xlu0 %v15860_v40, %s13920_s20 }
0x2f71   :  { %5343 = vrot.lane.b32.xlu0 %v15860_v40, %s13918_s24 }
0x2fd3   :  { %v5305_v20 = vpop.permute.xlu0 %5304 }
0x2fd4   :  { %v5307_v47 = vmul.f32 %v15958_v60, %v5305_v20  ;;  %v5145_v20 = vadd.f32 %v5144_v54, %v17488_v10 }
0x2fd6   :  { %5310 = vperm.xlu1 %13615, %v5307_v47   ;;  %v17713_v47 = vld [vmem:[#allocation59_spill] sm:$0xff] }
0x2fd7   :  { %v5326_v46 = vpop.permute.xlu0 %5325  ;;  %v5147_v17 = vadd.f32 %v5146_v50, %v17713_v47 }
0x2fd8   :  { %v5346_v28 = vsel %vm281_vm4, %v15860_v40, %v5326_v46  ;;  %v5440_v46 = vrot.slane %v5426_v57, %v17429_v11 }
0x2fda   :  { %5328 = vrot.lane.b32.xlu1 %v15860_v40, %s13921_s21 }
0x2fdb   :  { %13616 = vset.pattern.permute.xlu1 %v17712_v26  ;;  %v5332_v9 = vpop.permute.xlu0 %5331 }
0x2fde   :  { %5334 = vrot.lane.b32.xlu1 %v15860_v40, %s13912_s2 }
0x2fe2   :  { %5340 = vrot.lane.b32.xlu1 %v15860_v40, %s13911_s26 }
0x3055   :  { %v5311_v61 = vpop.permute.xlu1 %5310 }
0x3056   :  { %v5318_v26 = vmul.f32 %v5311_v61, %v5147_v17  ;;  %v5317_v27 = vmul.f32 %v5311_v61, %v5145_v20  ;;  %v5070_v17 = vadd.f32 %v5069_v39, %v17432_v45  ;;  %v5072_v20 = vadd.f32 %v5071_v41, %v17433_v29 }
0x3057   :  { %v5442_v41 = vcombine.high %v5440_v46, %v5440_v46 }
0x3058   :  { %v15985_v34 = vadd.f32 %v5318_v26, %v15791_v49  ;;  %v15988_v35 = vadd.f32 %v5317_v27, %v15794_v18  ;;  %v5218_v49 = vadd.f32 %v5217_v13, %v17434_v22  ;;  %v5338_v26 = vpop.permute.xlu0 %5337  ;;  %v5313_v40 = vmul.f32 %v5311_v61, %v5070_v17 }
0x3059   :  { %v5329_v3 = vpop.permute.xlu1 %5328 }
0x305a   :  { %v5347_v54 = vsel %vm421_vm0, %v5346_v28, %v5329_v3  ;;  %v5448_v50 = vmul.f32 %v5441_v51, %v15985_v34  ;;  %v5447_v47 = vmul.f32 %v5433_v56, %v15988_v35  ;;  %v5314_v28 = vmul.f32 %v5311_v61, %v5072_v20 }
0x305b   :  { %v5348_v27 = vsel %vm1544_vm5, %v5347_v54, %v5332_v9  ;;  %v5320_v51 = vmul.f32 %v5311_v61, %v5218_v49  ;;  %v16006_v9 = vadd.f32 %v5313_v40, %v15812_v12  ;;  %v5216_v12 = vadd.f32 %v15950_v48, %v17546_v4  ;;  %v17715_v49 = vld [vmem:[#allocation70_spill] sm:$0xff]  ;;  %v17720_v48 = vld [vmem:[#allocation11_spill] sm:$0xff] }
0x305c   :  { %5515 = vmatprep.mubr.f32.mxu0 %v5448_v50  ;;  %v5344_v14 = vpop.permute.xlu0 %5343  ;;  %v16010_v56 = vadd.f32 %v5314_v28, %v15816_v63  ;;  %v17721_v28 = vld [vmem:[#allocation13_spill] sm:$0xff] }
0x305d   :  { %v5335_v18 = vpop.permute.xlu1 %5334  ;;  %5516 = vmatmul.mubr.f32.vlgmr.msra.gmra.mrb[52].mxu0 %v5447_v47  ;;  %v16013_v47 = vadd.f32 %v5320_v51, %v15819_v31  ;;  %v5319_v63 = vmul.f32 %v5311_v61, %v5216_v12  ;;  %v17714_v31 = vld [vmem:[#allocation69_spill] sm:$0xff]  ;;  %v17722_v61 = vld [vmem:[#allocation14_spill] sm:$0xff] }
0x305e   :  { %v5349_v3 = vsel %vm674_vm2, %v5348_v27, %v5335_v18  ;;  %12797 = vmatpush1.bf16.msra.mxu0 %v14059_v6  ;;  %5721 = vmatprep.mubr.f32.mxu0 %v17384_v15  ;;  %v17718_v27 = vld [vmem:[#allocation71_spill] sm:$0xff] }
0x305f   :  { %12799 = vmatprep.subr.bf16.mxu0 %v14081_v23  ;;  %v5350_v39 = vsel %vm1547_vm6, %v5349_v3, %v5338_v26  ;;  %v5450_v20 = vmul.f32 %v5442_v41, %v16013_v47  ;;  %v17716_v26 = vld [vmem:[#allocation73_spill] sm:$0xff]  ;;  %v17719_v3 = vld [vmem:[#allocation10_spill] sm:$0xff] }
0x3060   :  { %v16036_v18 = vadd.f32 %v5319_v63, %v17716_v26 }
0x3061   :  { %v5341_v13 = vpop.permute.xlu1 %5340 }
0x3062   :  { %v5351_v57 = vsel %vm1549_vm7, %v5350_v39, %v5341_v13  ;;  %17717 = vst [vmem:[#allocation58_spill] sm:$0xff] %v16036_v18  ;;  %v5449_v40 = vmul.f32 %v5440_v46, %v16036_v18 }
0x3063   :  { %v5352_v54 = vsel %vm1551_vm8, %v5351_v57, %v5344_v14 }
0x3064   :  { %v5353_v50 = vmul.f32 %v5352_v54, %v16006_v9  ;;  %v5354_v17 = vmul.f32 %v5352_v54, %v16010_v56 }
0x3066   :  { %5419 = vmatprep.mubr.f32.mxu1 %v5354_v17 }
0x3067   :  { %5420 = vmatmul.mubr.f32.vlgmr.msra.gmra.mrb[54].mxu1 %v5353_v50 }
0x3068   :  { %12765 = vmatpush3.bf16.msra.mxu1 %v14716_v21  ;;  %5585 = vmatprep.mubr.f32.mxu1 %v5450_v20 }
0x3069   :  { %12767 = vmatprep.subr.bf16.mxu1 %v14724_v7 }
0x306c   :  { %12769 = vmatpush3.bf16.msra.mxu1 %v14740_v53 }
0x306d   :  { %12771 = vmatprep.subr.bf16.mxu1 %v14743_v32 }
0x3070   :  { %12773 = vmatpush3.bf16.msra.mxu1 %v14761_v44 }
0x3071   :  { %12775 = vmatprep.subr.bf16.mxu1 %v17435_v43 }
0x3074   :  { %12777 = vmatpush3.bf16.msra.mxu1 %v17436_v16 }
0x3075   :  { %12779 = vmatprep.subr.bf16.mxu1 %v17437_v5 }
0x3078   :  { %12781 = vmatpush3.bf16.msra.mxu1 %v17438_v38 }
0x3079   :  { %12783 = vmatprep.subr.bf16.mxu1 %v17490_v62 }
0x307c   :  { %12785 = vmatpush3.bf16.msra.mxu1 %v17602_v24 }
0x307d   :  { %12787 = vmatprep.subr.bf16.mxu1 %v17658_v8 }
0x3080   :  { %12789 = vmatpush3.bf16.msra.mxu1 %v17714_v31 }
0x3081   :  { %12791 = vmatprep.subr.bf16.mxu1 %v17715_v49 }
0x3084   :  { %12793 = vmatpush3.bf16.msra.mxu1 %v17718_v27 }
0x3085   :  { %12807 = vmatprep.subr.bf16.mxu1 %v17719_v3 }
0x3087   :  { %5586 = vmatmul.mubr.f32.vlgmr.msra.gmra.mrb[56].mxu1 %v5449_v40 }
0x3088   :  { %12809 = vmatpush1.bf16.msra.mxu1 %v17720_v48  ;;  %5902 = vmatprep.mubr.f32.mxu1 %v17384_v15 }
0x3089   :  { %12811 = vmatprep.subr.bf16.mxu1 %v17721_v28 }
0x308c   :  { %12813 = vmatpush1.bf16.msra.mxu1 %v17722_v61 }
0x308d   :  { %12822 = vmatprep.subr.bf16.mxu1 %v17397_v36 }
0x3130   :  { %v10648_v51 = vpop.f32.mrb[52].mxu0 }
0x3131   :  { %v10649_v13 = vpop.f32.mrb[53].mxu0 }
0x3132   :  { %v10650_v39 = vadd.f32 %v10649_v13, %v10648_v51 }
0x313a   :  { %v10613_v41 = vpop.f32.mrb[54].mxu1 }
0x313b   :  { %v10614_v14 = vpop.f32.mrb[55].mxu1 }
0x313c   :  { %v10615_v57 = vadd.f32 %v10614_v14, %v10613_v41 }
0x313e   :  { %v5591_v63 = vmul.f32 %v15958_v60, %v10615_v57 }
0x315a   :  { %v10683_v46 = vpop.f32.mrb[56].mxu1 }
0x315b   :  { %v10684_v54 = vpop.f32.mrb[57].mxu1 }
0x315c   :  { %v10685_v50 = vadd.f32 %v10684_v54, %v10683_v46 }
0x315e   :  { %v5588_v17 = vadd.f32 %v10685_v50, %v10650_v39 }
0x3160   :  { %5593 = vrot.lane.b32.xlu1 %v5588_v17, %s13917_s13 }
0x31d2   :  { %v5594_v20 = vpop.permute.xlu1 %5593 }
0x31d3   :  { %v5596_v12 = vmul.f32 %v15958_v60, %v5594_v20  ;;  %v16055_v60 = vld [vmem:[%s17135_s15] ss:$0 sm:$0xff] }
0x31d4   :  { %17723 = vst [vmem:[#allocation65_spill] sm:$0xff] %v16055_v60 }
0x31d5   :  { %5598 = vrot.lane.b32.xlu0 %v5596_v12, %s13918_s24  ;;  %v16061_v12 = vld [vmem:[%s17136_s16] ss:$0 sm:$0xff] }
0x31d6   :  { %17724 = vst [vmem:[#allocation23_spill] sm:$0xff] %v16061_v12 }
0x3247   :  { %v5599_v26 = vpop.permute.xlu0 %5598 }
0x3248   :  { %v5601_v40 = vadd.f32 %v5599_v26, %v5591_v63 }
0x324a   :  { %v5602_v51 = vsel %vm1024_vm3, %v5601_v40, 0.0 }
0x324b   :  { %5603 = vadd.xlane.f32.xlu1 %v5602_v51 }
0x32d8   :  { %v5604_v13 = vpop.xlane.xlu1 %5603 }
0x32d9   :  { %v5605_v41 = vmul.f32 0.0625, %v5604_v13  ;;  %v17726_v13 = vld [vmem:[#allocation8_spill] sm:$0xff] }
0x32db   :  { %v5606_v14 = vsub.f32 %v5601_v40, %v5605_v41  ;;  %v17725_v40 = vld [vmem:[#allocation7_spill] sm:$0xff]  ;;  %v17727_v41 = vld [vmem:[#allocation9_spill] sm:$0xff] }
0x32dd   :  { %v5607_v61 = vmul.f32 %v5606_v14, %v5606_v14 }
0x32df   :  { %v5608_v39 = vsel %vm1024_vm3, %v5607_v61, 0.0 }
0x32e0   :  { %5609 = vadd.xlane.f32.xlu0 %v5608_v39  ;;  %v9770_v39 = vld [vmem:[%s17322_s28 + $0xe] sm:$0x3] }
0x336d   :  { %v5610_v46 = vpop.xlane.xlu0 %5609 }
0x336e   :  { %v5611_v54 = vmul.f32 0.0625, %v5610_v46 }
0x3370   :  { %v5612_v50 = vadd.f32 1e-05, %v5611_v54 }
0x3372   :  { %13779 = vrsqrt.f32 %v5612_v50 }
0x337c   :  { %v13780_v17 = vpop.eup %13779 }
0x337d   :  { %v5614_v20 = vmul.f32 %v13780_v17, %v5606_v14  ;;  %v17728_v14 = vld [vmem:[#allocation12_spill] sm:$0xff] }
0x337f   :  { %v5615_v57 = vmul.f32 %v16055_v60, %v5614_v20  ;;  %v17729_v20 = vmov 1   ;;  %v17730_v60 = vmov 32  }
0x3381   :  { %v16064_v61 = vadd.f32 %v16061_v12, %v5615_v57 }
0x3383   :  { %5617 = vst.msk [vmem:[#allocation2 + $0xc] sm:$0x3] %vm1024_vm3, %v16064_v61  ;;  %9773 = vmatmul.mubr.msk.f32.vlgmr.msra.gmra.mrb[54].mxu0 %vm281_vm4, %v16064_v61  ;;  %v5624_v63 = vsel %vm1024_vm3, %v16064_v61, 0.0  ;;  %v5629_v26 = vmul.f32 %v16064_v61, %v16064_v61 }
0x3384   :  { %5625 = vadd.xlane.f32.xlu0 %v5624_v63  ;;  %12801 = vmatpush1.bf16.msra.mxu0 %v17725_v40 }
0x3385   :  { %v5630_v51 = vsel %vm1024_vm3, %v5629_v26, 0.0  ;;  %12803 = vmatprep.subr.bf16.mxu0 %v17726_v13  ;;  %5827 = vmatprep.mubr.f32.mxu0 %v17384_v15 }
0x3386   :  { %5631 = vadd.xlane.f32.xlu1 %v5630_v51 }
0x3388   :  { %12805 = vmatpush1.bf16.msra.mxu0 %v17727_v41 }
0x3389   :  { %12815 = vmatprep.subr.bf16.mxu0 %v17728_v14 }
0x3411   :  { %v5626_v46 = vpop.xlane.xlu0 %5625 }
0x3412   :  { %v5627_v54 = vmul.f32 0.020833334, %v5626_v46  ;;  %v9772_v46 = vld.sshfl [vmem:[%s17332_s3 + $0x1c] sm:$0x33 pattern:$0x76325410] }
0x3413   :  { %v5632_v26 = vpop.xlane.xlu1 %5631 }
0x3414   :  { %v5628_v50 = vadd.f32 %v9770_v39, %v5627_v54  ;;  %v5633_v51 = vmul.f32 0.020833334, %v5632_v26 }
0x3416   :  { %v5635_v17 = vmul.f32 %v5628_v50, %v5628_v50  ;;  %5730 = vperm.xlu1 %13616, %v5628_v50   ;;  %v5634_v41 = vadd.f32 %v9770_v39, %v5633_v51  ;;  %v5651_v50 = vcombine.high %v9772_v46, %v9772_v46 }
0x3418   :  { %5637 = vrot.lane.b32.xlu0 %v5635_v17, %s13908_s29  ;;  %v17731_v17 = vld [vmem:[#allocation15_spill] sm:$0xff] }
0x341a   :  { %13617 = vset.pattern.permute.xlu1 %v17729_v20 }
0x3456   :  { %v5723_v57 = vpop.f32.mrb[54].mxu0 }
0x3457   :  { %v5725_v63 = vpop.f32.mrb[55].mxu0  ;;  %v5724_v26 = vadd.f32 %v9772_v46, %v5723_v57 }
0x3458   :  { %v5726_v39 = vadd.f32 %v5725_v63, %v5651_v50  ;;  %v17738_v50 = vld [vmem:[#allocation19_spill] sm:$0xff] }
0x348a   :  { %v5638_v13 = vpop.permute.xlu0 %5637 }
0x348b   :  { %v5640_v14 = vsub.f32 %v5634_v41, %v5638_v13 }
0x348d   :  { %v5641_v40 = vadd.f32 1e-05, %v5640_v14 }
0x348f   :  { %13781 = vrsqrt.f32 %v5641_v40 }
0x3495   :  { %v5731_v54 = vpop.permute.xlu1 %5730 }
0x3496   :  { %v5733_v20 = vmul.f32 %v5731_v54, %v17731_v17  ;;  %v5734_v28 = vmul.f32 %v5731_v54, %v14172_v55  ;;  %v17737_v54 = vld [vmem:[#allocation38_spill] sm:$0xff] }
0x3498   :  { %v5735_v51 = vsub.f32 %v5724_v26, %v5733_v20  ;;  %v5736_v13 = vsub.f32 %v5726_v39, %v5734_v28  ;;  %v17740_v26 = vld [vmem:[#allocation42_spill] sm:$0xff]  ;;  %v17741_v39 = vld [vmem:[#allocation20_spill] sm:$0xff] }
0x3499   :  { %v13782_v12 = vpop.eup %13781 }
0x349a   :  { %5739 = vperm.xlu1 %13617, %v13782_v12  }
0x349e   :  { %13623 = vset.pattern.permute.xlu1 %v17730_v60 }
0x3519   :  { %v5740_v41 = vpop.permute.xlu1 %5739 }
0x351a   :  { %v5742_v40 = vmul.f32 %v5740_v41, %v5735_v51  ;;  %v5743_v14 = vmul.f32 %v5740_v41, %v5736_v13  ;;  %v17742_v51 = vld [vmem:[#allocation44_spill] sm:$0xff]  ;;  %v17743_v13 = vld [vmem:[#allocation46_spill] sm:$0xff] }
0x351c   :  { %v5744_v12 = vadd.f32 %v5742_v40, %v14180_v1  ;;  %v5745_v60 = vadd.f32 %v5743_v14, %v14183_v2  ;;  %v17744_v40 = vld [vmem:[#allocation21_spill] sm:$0xff]  ;;  %v17745_v14 = vld [vmem:[#allocation48_spill] sm:$0xff] }
0x351e   :  { %v9774_v48 = vmul.f32 -1.442695, %v5744_v12  ;;  %v9775_v3 = vmul.f32 -1.442695, %v5745_v60 }
0x3520   :  { %13783 = vpow2.f32 %v9774_v48  ;;  %v17735_v48 = vld [vmem:[#allocation18_spill] sm:$0xff] }
0x3521   :  { %13785 = vpow2.f32 %v9775_v3  ;;  %v17734_v3 = vld [vmem:[#allocation34_spill] sm:$0xff] }
0x352a   :  { %v13784_v27 = vpop.eup %13783 }
0x352b   :  { %v13786_v18 = vpop.eup %13785  ;;  %v5752_v17 = vadd.f32 1.0, %v13784_v27  ;;  %v17733_v27 = vld [vmem:[#allocation31_spill] sm:$0xff] }
0x352c   :  { %v5753_v49 = vadd.f32 1.0, %v13786_v18  ;;  %v17732_v18 = vld [vmem:[#allocation17_spill] sm:$0xff] }
0x352d   :  { %13787 = vrcp.f32 %v5752_v17  ;;  %v17739_v17 = vld [vmem:[#allocation40_spill] sm:$0xff] }
0x352e   :  { %13789 = vrcp.f32 %v5753_v49 }
0x3537   :  { %v13788_v57 = vpop.eup %13787 }
0x3538   :  { %v13790_v20 = vpop.eup %13789  ;;  %v5758_v28 = vmul.f32 %v13788_v57, %v5744_v12 }
0x3539   :  { %v5759_v63 = vmul.f32 %v13790_v20, %v5745_v60  ;;  %v17736_v60 = vld [vmem:[#allocation36_spill] sm:$0xff]  ;;  %v17746_v20 = vld [vmem:[#allocation50_spill] sm:$0xff] }
0x353a   :  { %5834 = vrot.lane.b32.xlu0 %v5758_v28, %s13911_s26  ;;  %9776 = vmatmul.mubr.msk.f32.vlgmr.msra.gmra.mrb[56].mxu0 %vm421_vm0, %v5758_v28 }
0x353b   :  { %v13618_v46 = vpack.i.bf16 %v5759_v63, %v5758_v28  ;;  %12817 = vmatpush1.bf16.msra.mxu0 %v14199_v25  ;;  %5973 = vmatprep.mubr.f32.mxu0 %v17384_v15  ;;  %v17747_v28 = vld [vmem:[#allocation22_spill] sm:$0xff]  ;;  %v17748_v63 = vld [vmem:[#allocation24_spill] sm:$0xff] }
0x353c   :  { %12819 = vmatprep.subr.bf16.mxu0 %v14201_v30 }
0x353d   :  { %13619 = vrot.lane.b32.xlu1 %v13618_v46, %s13912_s2  ;;  %v17749_v46 = vld [vmem:[#allocation51_spill] sm:$0xff] }
0x353f   :  { %12821 = vmatpush1.bf16.msra.mxu0 %v14212_v37 }
0x3540   :  { %12847 = vmatprep.subr.bf16.mxu0 %v14331_v58 }
0x35ac   :  { %v5835_v49 = vpop.permute.xlu0 %5834 }
0x35ad   :  { %9777 = vmatmul.mubr.msk.f32.vlgmr.msra.gmra.mrb[58].mxu1 %vm421_vm0, %v5835_v49  ;;  %9778 = vmatmul.mubr.msk.f32.vlgmr.msra.gmra.mrb[58].mxu0 %vm421_vm0, %v5835_v49 }
0x35ae   :  { %12824 = vmatpush3.bf16.msra.mxu1 %v14224_v42  ;;  %11585 = vmatprep.mubr.msk.f32.mxu1 %vm13913_vm1, %v17384_v15 }
0x35af   :  { %12825 = vmatprep.subr.bf16.mxu1 %v17397_v36  ;;  %12849 = vmatpush3.bf16.msra.mxu0 %v14342_v0  ;;  %v13620_v41 = vpop.permute.xlu1 %13619 }
0x35b0   :  { %12851 = vmatprep.subr.bf16.mxu0 %v14369_v19  ;;  %v13622_v12 = vunpack.i.h.bf16 %v13620_v41  ;;  %v13621_v57 = vunpack.i.l.bf16 %v13620_v41  ;;  %v17754_v41 = vld [vmem:[#allocation32_spill] sm:$0xff] }
0x35b2   :  { %12827 = vmatpush3.bf16.msra.mxu1 %v14235_v52  ;;  %v5985_v49 = vsel %vm674_vm2, %v13621_v57, %v13622_v12  ;;  %v17759_v12 = vld [vmem:[#allocation41_spill] sm:$0xff]  ;;  %v17760_v57 = vld [vmem:[#allocation43_spill] sm:$0xff] }
0x35b3   :  { %12828 = vmatprep.subr.bf16.mxu1 %v17397_v36  ;;  %12853 = vmatpush3.bf16.msra.mxu0 %v14371_v33 }
0x35b4   :  { %12855 = vmatprep.subr.bf16.mxu0 %v14397_v59 }
0x35b6   :  { %12830 = vmatpush3.bf16.msra.mxu1 %v17732_v18 }
0x35b7   :  { %12831 = vmatprep.subr.bf16.mxu1 %v17397_v36  ;;  %12857 = vmatpush3.bf16.msra.mxu0 %v17733_v27 }
0x35b8   :  { %12859 = vmatprep.subr.bf16.mxu0 %v17734_v3 }
0x35ba   :  { %12833 = vmatpush3.bf16.msra.mxu1 %v17735_v48 }
0x35bb   :  { %12834 = vmatprep.subr.bf16.mxu1 %v17397_v36  ;;  %12861 = vmatpush3.bf16.msra.mxu0 %v17736_v60 }
0x35bc   :  { %12863 = vmatprep.subr.bf16.mxu0 %v17737_v54 }
0x35be   :  { %12836 = vmatpush3.bf16.msra.mxu1 %v17738_v50 }
0x35bf   :  { %12837 = vmatprep.subr.bf16.mxu1 %v17397_v36  ;;  %12865 = vmatpush3.bf16.msra.mxu0 %v17739_v17 }
0x35c0   :  { %12867 = vmatprep.subr.bf16.mxu0 %v17740_v26  ;;  %v17767_v26 = vld [vmem:[#allocation74_spill] sm:$0xff] }
0x35c2   :  { %12839 = vmatpush3.bf16.msra.mxu1 %v17741_v39 }
0x35c3   :  { %12840 = vmatprep.subr.bf16.mxu1 %v17397_v36  ;;  %12869 = vmatpush3.bf16.msra.mxu0 %v17742_v51  ;;  %v17752_v51 = vld [vmem:[#allocation28_spill] sm:$0xff] }
0x35c4   :  { %12871 = vmatprep.subr.bf16.mxu0 %v17743_v13  ;;  %v17750_v13 = vld [vmem:[#allocation54_spill] sm:$0xff] }
0x35c6   :  { %12842 = vmatpush3.bf16.msra.mxu1 %v17744_v40  ;;  %v17751_v40 = vld [vmem:[#allocation25_spill] sm:$0xff] }
0x35c7   :  { %12843 = vmatprep.subr.bf16.mxu1 %v17397_v36  ;;  %12873 = vmatpush3.bf16.msra.mxu0 %v17745_v14  ;;  %v17753_v14 = vld [vmem:[#allocation29_spill] sm:$0xff] }
0x35c8   :  { %12875 = vmatprep.subr.bf16.mxu0 %v17746_v20  ;;  %v17755_v20 = vld [vmem:[#allocation33_spill] sm:$0xff] }
0x35ca   :  { %12845 = vmatpush3.bf16.msra.mxu1 %v17747_v28  ;;  %v17756_v28 = vld [vmem:[#allocation35_spill] sm:$0xff] }
0x35cb   :  { %12879 = vmatprep.subr.bf16.mxu1 %v17748_v63  ;;  %12877 = vmatpush3.bf16.msra.mxu0 %v17749_v46  ;;  %v17757_v63 = vld [vmem:[#allocation37_spill] sm:$0xff]  ;;  %v17758_v46 = vld [vmem:[#allocation39_spill] sm:$0xff] }
0x35cc   :  { %12911 = vmatprep.subr.bf16.mxu0 %v17750_v13 }
0x35cd   :  { %11586 = vmatmul.mubr.f32.vlgmr.msra.gmra.mrb[60].mxu1 %v5985_v49  ;;  %v17761_v49 = vld [vmem:[#allocation45_spill] sm:$0xff] }
0x35ce   :  { %12881 = vmatpush3.bf16.msra.mxu1 %v17751_v40  ;;  %v17762_v40 = vld [vmem:[#allocation47_spill] sm:$0xff] }
0x35cf   :  { %12883 = vmatprep.subr.bf16.mxu1 %v17752_v51  ;;  %v17763_v51 = vld [vmem:[#allocation49_spill] sm:$0xff] }
0x35d2   :  { %12885 = vmatpush3.bf16.msra.mxu1 %v17753_v14  ;;  %v17764_v14 = vld [vmem:[#allocation52_spill] sm:$0xff] }
0x35d3   :  { %12887 = vmatprep.subr.bf16.mxu1 %v17754_v41  ;;  %v17765_v41 = vld [vmem:[#allocation53_spill] sm:$0xff] }
0x35d6   :  { %12889 = vmatpush3.bf16.msra.mxu1 %v17755_v20  ;;  %v17766_v20 = vld [vmem:[#allocation6_spill] sm:$0xff] }
0x35d7   :  { %12891 = vmatprep.subr.bf16.mxu1 %v17756_v28 }
0x35da   :  { %12893 = vmatpush3.bf16.msra.mxu1 %v17757_v63 }
0x35db   :  { %12895 = vmatprep.subr.bf16.mxu1 %v17758_v46 }
0x35de   :  { %12897 = vmatpush3.bf16.msra.mxu1 %v17759_v12 }
0x35df   :  { %12899 = vmatprep.subr.bf16.mxu1 %v17760_v57 }
0x35e2   :  { %12901 = vmatpush3.bf16.msra.mxu1 %v17761_v49 }
0x35e3   :  { %12903 = vmatprep.subr.bf16.mxu1 %v17762_v40 }
0x35e6   :  { %12905 = vmatpush3.bf16.msra.mxu1 %v17763_v51 }
0x35e7   :  { %12907 = vmatprep.subr.bf16.mxu1 %v17764_v14 }
0x35ea   :  { %12909 = vmatpush3.bf16.msra.mxu1 %v17765_v41 }
0x35eb   :  { %12943 = vmatprep.subr.bf16.mxu1 %v17766_v20 }
0x360d   :  { %v5829_v28 = vpop.f32.mrb[56].mxu0 }
0x360e   :  { %v5831_v63 = vpop.f32.mrb[57].mxu0 }
0x3680   :  { %v5904_v13 = vpop.f32.mrb[58].mxu1  ;;  %v16154_v46 = vpop.f32.mrb[58].mxu0 }
0x3681   :  { %v5906_v12 = vpop.f32.mrb[59].mxu1  ;;  %v5977_v39 = vpop.f32.mrb[59].mxu0 }
0x36a0   :  { %v6053_v57 = vpop.f32.mrb[60].mxu1 }
0x36a1   :  { %v6054_v49 = vadd.f32 %v17767_v26, %v6053_v57  ;;  %v11587_v17 = vpop.f32.mrb[61].mxu1  ;;  %v17768_v26 = vmov 0  }
0x36a3   :  { %v9779_v40 = vmul.f32 -1.442695, %v6054_v49  ;;  %v5905_v49 = vadd.f32 %v5904_v13, %v17488_v10 }
0x36a5   :  { %13791 = vpow2.f32 %v9779_v40  ;;  %v9771_v40 = vld [vmem:[%s17377_s4 + $0x38] sm:$0xff] }
0x36a6   :  { %v6193_v57 = vrot.slane %v9771_v40, %v17429_v11  ;;  %v6186_v59 = vcombine.high %v9771_v40, %v9771_v40 }
0x36a8   :  { %v6201_v54 = vcombine.high %v6193_v57, %v6193_v57 }
0x36af   :  { %v13792_v51 = vpop.eup %13791 }
0x36b0   :  { %v6060_v50 = vadd.f32 1.0, %v13792_v51 }
0x36b2   :  { %13793 = vrcp.f32 %v6060_v50 }
0x36bc   :  { %v16157_v14 = vpop.eup %13793 }
0x36bd   :  { %6064 = vrot.lane.b32.xlu0 %v16157_v14, %s13915_s30 }
0x36c1   :  { %6085 = vrot.lane.b32.xlu0 %v16064_v61, %s13917_s13 }
0x36c5   :  { %6091 = vrot.lane.b32.xlu0 %v16064_v61, %s13919_s27 }
0x36c9   :  { %6097 = vrot.lane.b32.xlu0 %v16064_v61, %s13920_s20 }
0x36cd   :  { %6103 = vrot.lane.b32.xlu0 %v16064_v61, %s13918_s24 }
0x372f   :  { %v6065_v17 = vpop.permute.xlu0 %6064 }
0x3730   :  { %v6067_v50 = vmul.f32 %v16157_v14, %v6065_v17  ;;  %v17769_v17 = vld [vmem:[#allocation59_spill] sm:$0xff] }
0x3732   :  { %6070 = vperm.xlu1 %13623, %v6067_v50   ;;  %v5907_v50 = vadd.f32 %v5906_v12, %v17769_v17 }
0x3733   :  { %v6086_v51 = vpop.permute.xlu0 %6085 }
0x3734   :  { %v6106_v27 = vsel %vm281_vm4, %v16064_v61, %v6086_v51  ;;  %v6200_v51 = vrot.slane %v6186_v59, %v17429_v11 }
0x3736   :  { %6088 = vrot.lane.b32.xlu1 %v16064_v61, %s13921_s21 }
0x3737   :  { %13624 = vset.pattern.permute.xlu1 %v17768_v26  ;;  %v6092_v41 = vpop.permute.xlu0 %6091 }
0x373a   :  { %6094 = vrot.lane.b32.xlu1 %v16064_v61, %s13912_s2 }
0x373e   :  { %6100 = vrot.lane.b32.xlu1 %v16064_v61, %s13911_s26 }
0x37b1   :  { %v6071_v20 = vpop.permute.xlu1 %6070 }
0x37b2   :  { %v6078_v26 = vmul.f32 %v6071_v20, %v5907_v50  ;;  %v6077_v60 = vmul.f32 %v6071_v20, %v5905_v49  ;;  %v5830_v50 = vadd.f32 %v5829_v28, %v17432_v45  ;;  %v5832_v49 = vadd.f32 %v5831_v63, %v17433_v29 }
0x37b3   :  { %v6202_v63 = vcombine.high %v6200_v51, %v6200_v51 }
0x37b4   :  { %v16184_v48 = vadd.f32 %v6078_v26, %v15985_v34  ;;  %v16187_v3 = vadd.f32 %v6077_v60, %v15988_v35  ;;  %v5978_v34 = vadd.f32 %v5977_v39, %v17434_v22  ;;  %v6098_v26 = vpop.permute.xlu0 %6097  ;;  %v6073_v61 = vmul.f32 %v6071_v20, %v5830_v50 }
0x37b5   :  { %v6089_v18 = vpop.permute.xlu1 %6088 }
0x37b6   :  { %v6107_v13 = vsel %vm421_vm0, %v6106_v27, %v6089_v18  ;;  %v6208_v12 = vmul.f32 %v6201_v54, %v16184_v48  ;;  %v6207_v17 = vmul.f32 %v6193_v57, %v16187_v3  ;;  %v6074_v27 = vmul.f32 %v6071_v20, %v5832_v49 }
0x37b7   :  { %v6108_v60 = vsel %vm1544_vm5, %v6107_v13, %v6092_v41  ;;  %v6080_v54 = vmul.f32 %v6071_v20, %v5978_v34  ;;  %v16205_v41 = vadd.f32 %v6073_v61, %v16006_v9  ;;  %v5976_v9 = vadd.f32 %v16154_v46, %v17546_v4  ;;  %v17771_v34 = vld [vmem:[#allocation58_spill] sm:$0xff]  ;;  %v17775_v46 = vld [vmem:[#allocation11_spill] sm:$0xff] }
0x37b8   :  { %6275 = vmatprep.mubr.f32.mxu1 %v6208_v12  ;;  %v6104_v40 = vpop.permute.xlu0 %6103  ;;  %v16209_v57 = vadd.f32 %v6074_v27, %v16010_v56  ;;  %v17774_v61 = vld [vmem:[#allocation10_spill] sm:$0xff] }
0x37b9   :  { %v6095_v35 = vpop.permute.xlu1 %6094  ;;  %6276 = vmatmul.mubr.f32.vlgmr.msra.gmra.mrb[62].mxu1 %v6207_v17  ;;  %v16212_v17 = vadd.f32 %v6080_v54, %v16013_v47  ;;  %v6079_v56 = vmul.f32 %v6071_v20, %v5976_v9  ;;  %v17770_v47 = vld [vmem:[#allocation70_spill] sm:$0xff] }
0x37ba   :  { %v6109_v18 = vsel %vm674_vm2, %v6108_v60, %v6095_v35  ;;  %12945 = vmatpush1.bf16.msra.mxu1 %v14059_v6  ;;  %6481 = vmatprep.mubr.f32.mxu1 %v17384_v15  ;;  %v17773_v35 = vld [vmem:[#allocation71_spill] sm:$0xff]  ;;  %v17777_v20 = vld [vmem:[#allocation14_spill] sm:$0xff] }
0x37bb   :  { %12947 = vmatprep.subr.bf16.mxu1 %v14081_v23  ;;  %v6110_v28 = vsel %vm1547_vm6, %v6109_v18, %v6098_v26  ;;  %v6210_v49 = vmul.f32 %v6202_v63, %v16212_v17  ;;  %v16235_v26 = vadd.f32 %v6079_v56, %v17771_v34  ;;  %v17776_v18 = vld [vmem:[#allocation13_spill] sm:$0xff] }
0x37bd   :  { %v6101_v39 = vpop.permute.xlu1 %6100  ;;  %17772 = vst [vmem:[#allocation55_spill] sm:$0xff] %v16235_v26  ;;  %v6209_v60 = vmul.f32 %v6200_v51, %v16235_v26 }
0x37be   :  { %v6111_v59 = vsel %vm1549_vm7, %v6110_v28, %v6101_v39 }
0x37bf   :  { %v6112_v13 = vsel %vm1551_vm8, %v6111_v59, %v6104_v40 }
0x37c0   :  { %v6113_v12 = vmul.f32 %v6112_v13, %v16205_v41  ;;  %v6114_v50 = vmul.f32 %v6112_v13, %v16209_v57 }
0x37c2   :  { %6179 = vmatprep.mubr.f32.mxu0 %v6114_v50 }
0x37c3   :  { %6180 = vmatmul.mubr.f32.vlgmr.msra.gmra.mrb[60].mxu0 %v6113_v12 }
0x37c4   :  { %12913 = vmatpush3.bf16.msra.mxu0 %v14716_v21  ;;  %6345 = vmatprep.mubr.f32.mxu0 %v6210_v49 }
0x37c5   :  { %12915 = vmatprep.subr.bf16.mxu0 %v14724_v7 }
0x37c8   :  { %12917 = vmatpush3.bf16.msra.mxu0 %v14740_v53 }
0x37c9   :  { %12919 = vmatprep.subr.bf16.mxu0 %v14743_v32 }
0x37cc   :  { %12921 = vmatpush3.bf16.msra.mxu0 %v14761_v44 }
0x37cd   :  { %12923 = vmatprep.subr.bf16.mxu0 %v17435_v43 }
0x37d0   :  { %12925 = vmatpush3.bf16.msra.mxu0 %v17436_v16 }
0x37d1   :  { %12927 = vmatprep.subr.bf16.mxu0 %v17437_v5 }
0x37d4   :  { %12929 = vmatpush3.bf16.msra.mxu0 %v17438_v38 }
0x37d5   :  { %12931 = vmatprep.subr.bf16.mxu0 %v17490_v62 }
0x37d8   :  { %12933 = vmatpush3.bf16.msra.mxu0 %v17602_v24 }
0x37d9   :  { %12935 = vmatprep.subr.bf16.mxu0 %v17658_v8 }
0x37dc   :  { %12937 = vmatpush3.bf16.msra.mxu0 %v17714_v31 }
0x37dd   :  { %12939 = vmatprep.subr.bf16.mxu0 %v17770_v47 }
0x37e0   :  { %12941 = vmatpush3.bf16.msra.mxu0 %v17773_v35 }
0x37e1   :  { %12955 = vmatprep.subr.bf16.mxu0 %v17774_v61 }
0x37e3   :  { %6346 = vmatmul.mubr.f32.vlgmr.msra.gmra.mrb[62].mxu0 %v6209_v60 }
0x37e4   :  { %12957 = vmatpush1.bf16.msra.mxu0 %v17775_v46  ;;  %6662 = vmatprep.mubr.f32.mxu0 %v17384_v15 }
0x37e5   :  { %12959 = vmatprep.subr.bf16.mxu0 %v17776_v18 }
0x37e8   :  { %12961 = vmatpush1.bf16.msra.mxu0 %v17777_v20 }
0x37e9   :  { %12970 = vmatprep.subr.bf16.mxu0 %v17397_v36 }
0x388c   :  { %v10770_v27 = vpop.f32.mrb[62].mxu1 }
0x388d   :  { %v10771_v54 = vpop.f32.mrb[63].mxu1 }
0x388e   :  { %v10772_v39 = vadd.f32 %v10771_v54, %v10770_v27 }
0x3896   :  { %v10735_v28 = vpop.f32.mrb[60].mxu0 }
0x3897   :  { %v10736_v63 = vpop.f32.mrb[61].mxu0 }
0x3898   :  { %v10737_v40 = vadd.f32 %v10736_v63, %v10735_v28 }
0x389a   :  { %v6351_v9 = vmul.f32 %v16157_v14, %v10737_v40  ;;  %v17779_v40 = vld [vmem:[#allocation23_spill] sm:$0xff] }
0x38b6   :  { %v10805_v51 = vpop.f32.mrb[62].mxu0 }
0x38b7   :  { %v10806_v59 = vpop.f32.mrb[63].mxu0 }
0x38b8   :  { %v10807_v13 = vadd.f32 %v10806_v59, %v10805_v51 }
0x38ba   :  { %v6348_v12 = vadd.f32 %v10807_v13, %v10772_v39 }
0x38bc   :  { %6353 = vrot.lane.b32.xlu1 %v6348_v12, %s13917_s13 }
0x392e   :  { %v6354_v50 = vpop.permute.xlu1 %6353 }
0x392f   :  { %v6356_v49 = vmul.f32 %v16157_v14, %v6354_v50 }
0x3931   :  { %6358 = vrot.lane.b32.xlu0 %v6356_v49, %s13918_s24  ;;  %v17778_v49 = vld [vmem:[#allocation65_spill] sm:$0xff] }
0x39a3   :  { %v6359_v56 = vpop.permute.xlu0 %6358 }
0x39a4   :  { %v6361_v34 = vadd.f32 %v6359_v56, %v6351_v9 }
0x39a6   :  { %v6362_v60 = vsel %vm1024_vm3, %v6361_v34, 0.0 }
0x39a7   :  { %6363 = vadd.xlane.f32.xlu1 %v6362_v60  ;;  %v17780_v60 = vld [vmem:[#allocation7_spill] sm:$0xff] }
0x3a34   :  { %v6364_v27 = vpop.xlane.xlu1 %6363 }
0x3a35   :  { %v6365_v54 = vmul.f32 0.0625, %v6364_v27 }
0x3a37   :  { %v6366_v28 = vsub.f32 %v6361_v34, %v6365_v54  ;;  %v17781_v54 = vld [vmem:[#allocation8_spill] sm:$0xff] }
0x3a39   :  { %v6367_v63 = vmul.f32 %v6366_v28, %v6366_v28 }
0x3a3b   :  { %v6368_v39 = vsel %vm1024_vm3, %v6367_v63, 0.0  ;;  %v17783_v63 = vld [vmem:[#allocation12_spill] sm:$0xff] }
0x3a3c   :  { %6369 = vadd.xlane.f32.xlu0 %v6368_v39  ;;  %v9781_v39 = vld [vmem:[%s17322_s28 + $0x10] sm:$0x3] }
0x3ac9   :  { %v6370_v51 = vpop.xlane.xlu0 %6369 }
0x3aca   :  { %v6371_v59 = vmul.f32 0.0625, %v6370_v51 }
0x3acc   :  { %v6372_v13 = vadd.f32 1e-05, %v6371_v59 }
0x3ace   :  { %13795 = vrsqrt.f32 %v6372_v13 }
0x3ad8   :  { %v13796_v12 = vpop.eup %13795 }
0x3ad9   :  { %v6374_v50 = vmul.f32 %v13796_v12, %v6366_v28  ;;  %v17782_v28 = vld [vmem:[#allocation9_spill] sm:$0xff] }
0x3adb   :  { %v6375_v14 = vmul.f32 %v17778_v49, %v6374_v50  ;;  %v17784_v50 = vmov 1  }
0x3add   :  { %v16253_v9 = vadd.f32 %v17779_v40, %v6375_v14 }
0x3adf   :  { %6377 = vst.msk [vmem:[#allocation2 + $0xe] sm:$0x3] %vm1024_vm3, %v16253_v9  ;;  %9784 = vmatmul.mubr.msk.f32.vlgmr.msra.gmra.mrb[64].mxu1 %vm281_vm4, %v16253_v9  ;;  %v6384_v56 = vsel %vm1024_vm3, %v16253_v9, 0.0  ;;  %v6389_v34 = vmul.f32 %v16253_v9, %v16253_v9 }
0x3ae0   :  { %6385 = vadd.xlane.f32.xlu0 %v6384_v56  ;;  %12949 = vmatpush1.bf16.msra.mxu1 %v17780_v60  ;;  %v17785_v60 = vmov 32  }
0x3ae1   :  { %v6390_v27 = vsel %vm1024_vm3, %v6389_v34, 0.0  ;;  %12951 = vmatprep.subr.bf16.mxu1 %v17781_v54  ;;  %6587 = vmatprep.mubr.f32.mxu1 %v17384_v15 }
0x3ae2   :  { %6391 = vadd.xlane.f32.xlu1 %v6390_v27 }
0x3ae4   :  { %12953 = vmatpush1.bf16.msra.mxu1 %v17782_v28 }
0x3ae5   :  { %12963 = vmatprep.subr.bf16.mxu1 %v17783_v63 }
0x3b6d   :  { %v6386_v51 = vpop.xlane.xlu0 %6385 }
0x3b6e   :  { %v6387_v59 = vmul.f32 0.020833334, %v6386_v51  ;;  %v9783_v51 = vld.sshfl [vmem:[%s17332_s3 + $0x20] sm:$0x33 pattern:$0x76325410] }
0x3b6f   :  { %v6392_v40 = vpop.xlane.xlu1 %6391 }
0x3b70   :  { %v6388_v13 = vadd.f32 %v9781_v39, %v6387_v59  ;;  %v6393_v56 = vmul.f32 0.020833334, %v6392_v40 }
0x3b72   :  { %v6395_v12 = vmul.f32 %v6388_v13, %v6388_v13  ;;  %6490 = vperm.xlu1 %13624, %v6388_v13   ;;  %v6394_v34 = vadd.f32 %v9781_v39, %v6393_v56  ;;  %v6411_v13 = vcombine.high %v9783_v51, %v9783_v51 }
0x3b74   :  { %6397 = vrot.lane.b32.xlu0 %v6395_v12, %s13908_s29  ;;  %v17786_v12 = vld [vmem:[#allocation15_spill] sm:$0xff] }
0x3b76   :  { %13625 = vset.pattern.permute.xlu1 %v17784_v50 }
0x3bb2   :  { %v6483_v49 = vpop.f32.mrb[64].mxu1 }
0x3bb3   :  { %v6485_v14 = vpop.f32.mrb[65].mxu1  ;;  %v6484_v40 = vadd.f32 %v9783_v51, %v6483_v49 }
0x3bb4   :  { %v6486_v39 = vadd.f32 %v6485_v14, %v6411_v13  ;;  %v17793_v13 = vld [vmem:[#allocation38_spill] sm:$0xff] }
0x3be6   :  { %v6398_v27 = vpop.permute.xlu0 %6397 }
0x3be7   :  { %v6400_v63 = vsub.f32 %v6394_v34, %v6398_v27 }
0x3be9   :  { %v6401_v28 = vadd.f32 1e-05, %v6400_v63 }
0x3beb   :  { %13797 = vrsqrt.f32 %v6401_v28 }
0x3bf1   :  { %v6491_v59 = vpop.permute.xlu1 %6490 }
0x3bf2   :  { %v6493_v50 = vmul.f32 %v6491_v59, %v17786_v12  ;;  %v6494_v20 = vmul.f32 %v6491_v59, %v14172_v55  ;;  %v17792_v59 = vld [vmem:[#allocation36_spill] sm:$0xff] }
0x3bf4   :  { %v6495_v56 = vsub.f32 %v6484_v40, %v6493_v50  ;;  %v6496_v34 = vsub.f32 %v6486_v39, %v6494_v20  ;;  %v17795_v40 = vld [vmem:[#allocation40_spill] sm:$0xff]  ;;  %v17796_v39 = vld [vmem:[#allocation42_spill] sm:$0xff] }
0x3bf5   :  { %v13798_v54 = vpop.eup %13797 }
0x3bf6   :  { %6499 = vperm.xlu1 %13625, %v13798_v54  }
0x3bfa   :  { %13631 = vset.pattern.permute.xlu1 %v17785_v60 }
0x3c75   :  { %v6500_v63 = vpop.permute.xlu1 %6499 }
0x3c76   :  { %v6502_v28 = vmul.f32 %v6500_v63, %v6495_v56  ;;  %v6503_v27 = vmul.f32 %v6500_v63, %v6496_v34  ;;  %v17797_v56 = vld [vmem:[#allocation20_spill] sm:$0xff]  ;;  %v17799_v63 = vld [vmem:[#allocation46_spill] sm:$0xff] }
0x3c77   :  { %v17798_v34 = vld [vmem:[#allocation44_spill] sm:$0xff] }
0x3c78   :  { %v6504_v54 = vadd.f32 %v6502_v28, %v14180_v1  ;;  %v6505_v60 = vadd.f32 %v6503_v27, %v14183_v2  ;;  %v17800_v27 = vld [vmem:[#allocation21_spill] sm:$0xff] }
0x3c7a   :  { %v9785_v18 = vmul.f32 -1.442695, %v6504_v54  ;;  %v9786_v46 = vmul.f32 -1.442695, %v6505_v60 }
0x3c7c   :  { %13799 = vpow2.f32 %v9785_v18  ;;  %v17790_v18 = vld [vmem:[#allocation34_spill] sm:$0xff] }
0x3c7d   :  { %13801 = vpow2.f32 %v9786_v46  ;;  %v17789_v46 = vld [vmem:[#allocation31_spill] sm:$0xff] }
0x3c86   :  { %v13800_v61 = vpop.eup %13799 }
0x3c87   :  { %v13802_v35 = vpop.eup %13801  ;;  %v6512_v12 = vadd.f32 1.0, %v13800_v61  ;;  %v17788_v61 = vld [vmem:[#allocation17_spill] sm:$0xff] }
0x3c88   :  { %v6513_v26 = vadd.f32 1.0, %v13802_v35  ;;  %v17787_v35 = vld [vmem:[#allocation30_spill] sm:$0xff] }
0x3c89   :  { %13803 = vrcp.f32 %v6512_v12  ;;  %v17794_v12 = vld [vmem:[#allocation19_spill] sm:$0xff] }
0x3c8a   :  { %13805 = vrcp.f32 %v6513_v26 }
0x3c93   :  { %v13804_v49 = vpop.eup %13803 }
0x3c94   :  { %v13806_v50 = vpop.eup %13805  ;;  %v6518_v20 = vmul.f32 %v13804_v49, %v6504_v54  ;;  %v17801_v54 = vld [vmem:[#allocation48_spill] sm:$0xff] }
0x3c95   :  { %v6519_v14 = vmul.f32 %v13806_v50, %v6505_v60  ;;  %v17791_v60 = vld [vmem:[#allocation18_spill] sm:$0xff] }
0x3c96   :  { %6594 = vrot.lane.b32.xlu0 %v6518_v20, %s13911_s26  ;;  %9787 = vmatmul.mubr.msk.f32.vlgmr.msra.gmra.mrb[66].mxu1 %vm421_vm0, %v6518_v20 }
0x3c97   :  { %v13626_v51 = vpack.i.bf16 %v6519_v14, %v6518_v20  ;;  %12965 = vmatpush1.bf16.msra.mxu1 %v14199_v25  ;;  %6733 = vmatprep.mubr.f32.mxu1 %v17384_v15  ;;  %v17802_v20 = vld [vmem:[#allocation50_spill] sm:$0xff] }
0x3c98   :  { %12967 = vmatprep.subr.bf16.mxu1 %v14201_v30  ;;  %v17803_v14 = vld [vmem:[#allocation22_spill] sm:$0xff] }
0x3c99   :  { %13627 = vrot.lane.b32.xlu1 %v13626_v51, %s13912_s2  ;;  %v17804_v51 = vld [vmem:[#allocation24_spill] sm:$0xff] }
0x3c9b   :  { %12969 = vmatpush1.bf16.msra.mxu1 %v14212_v37 }
0x3c9c   :  { %12995 = vmatprep.subr.bf16.mxu1 %v14331_v58 }
0x3d08   :  { %v6595_v26 = vpop.permute.xlu0 %6594 }
0x3d09   :  { %9788 = vmatmul.mubr.msk.f32.vlgmr.msra.gmra.mrb[64].mxu0 %vm421_vm0, %v6595_v26  ;;  %9789 = vmatmul.mubr.msk.f32.vlgmr.msra.gmra.mrb[68].mxu1 %vm421_vm0, %v6595_v26  ;;  %v17805_v26 = vld [vmem:[#allocation51_spill] sm:$0xff] }
0x3d0a   :  { %12972 = vmatpush3.bf16.msra.mxu0 %v14224_v42  ;;  %11620 = vmatprep.mubr.msk.f32.mxu0 %vm13913_vm1, %v17384_v15 }
0x3d0b   :  { %12973 = vmatprep.subr.bf16.mxu0 %v17397_v36  ;;  %12997 = vmatpush3.bf16.msra.mxu1 %v14342_v0  ;;  %v13628_v28 = vpop.permute.xlu1 %13627 }
0x3d0c   :  { %12999 = vmatprep.subr.bf16.mxu1 %v14369_v19  ;;  %v13630_v49 = vunpack.i.h.bf16 %v13628_v28  ;;  %v13629_v50 = vunpack.i.l.bf16 %v13628_v28  ;;  %v17810_v28 = vld [vmem:[#allocation32_spill] sm:$0xff] }
0x3d0e   :  { %12975 = vmatpush3.bf16.msra.mxu0 %v14235_v52 }
0x3d0f   :  { %12976 = vmatprep.subr.bf16.mxu0 %v17397_v36  ;;  %13001 = vmatpush3.bf16.msra.mxu1 %v14371_v33 }
0x3d10   :  { %13003 = vmatprep.subr.bf16.mxu1 %v17787_v35 }
0x3d12   :  { %12978 = vmatpush3.bf16.msra.mxu0 %v17788_v61 }
0x3d13   :  { %12979 = vmatprep.subr.bf16.mxu0 %v17397_v36  ;;  %13005 = vmatpush3.bf16.msra.mxu1 %v17789_v46 }
0x3d14   :  { %13007 = vmatprep.subr.bf16.mxu1 %v17790_v18 }
0x3d16   :  { %12981 = vmatpush3.bf16.msra.mxu0 %v17791_v60 }
0x3d17   :  { %12982 = vmatprep.subr.bf16.mxu0 %v17397_v36  ;;  %13009 = vmatpush3.bf16.msra.mxu1 %v17792_v59 }
0x3d18   :  { %13011 = vmatprep.subr.bf16.mxu1 %v17793_v13 }
0x3d1a   :  { %12984 = vmatpush3.bf16.msra.mxu0 %v17794_v12 }
0x3d1b   :  { %12985 = vmatprep.subr.bf16.mxu0 %v17397_v36  ;;  %13013 = vmatpush3.bf16.msra.mxu1 %v17795_v40 }
0x3d1c   :  { %13015 = vmatprep.subr.bf16.mxu1 %v17796_v39 }
0x3d1e   :  { %12987 = vmatpush3.bf16.msra.mxu0 %v17797_v56  ;;  %v17808_v56 = vld [vmem:[#allocation28_spill] sm:$0xff] }
0x3d1f   :  { %12988 = vmatprep.subr.bf16.mxu0 %v17397_v36  ;;  %13017 = vmatpush3.bf16.msra.mxu1 %v17798_v34  ;;  %v6745_v34 = vsel %vm674_vm2, %v13629_v50, %v13630_v49  ;;  %v17815_v49 = vld [vmem:[#allocation41_spill] sm:$0xff]  ;;  %v17816_v50 = vld [vmem:[#allocation43_spill] sm:$0xff] }
0x3d20   :  { %13019 = vmatprep.subr.bf16.mxu1 %v17799_v63  ;;  %v17806_v63 = vld [vmem:[#allocation54_spill] sm:$0xff] }
0x3d22   :  { %12990 = vmatpush3.bf16.msra.mxu0 %v17800_v27  ;;  %v17807_v27 = vld [vmem:[#allocation25_spill] sm:$0xff] }
0x3d23   :  { %12991 = vmatprep.subr.bf16.mxu0 %v17397_v36  ;;  %13021 = vmatpush3.bf16.msra.mxu1 %v17801_v54  ;;  %v17809_v54 = vld [vmem:[#allocation29_spill] sm:$0xff] }
0x3d24   :  { %13023 = vmatprep.subr.bf16.mxu1 %v17802_v20  ;;  %v17811_v20 = vld [vmem:[#allocation33_spill] sm:$0xff] }
0x3d26   :  { %12993 = vmatpush3.bf16.msra.mxu0 %v17803_v14  ;;  %v17812_v14 = vld [vmem:[#allocation35_spill] sm:$0xff] }
0x3d27   :  { %13027 = vmatprep.subr.bf16.mxu0 %v17804_v51  ;;  %13025 = vmatpush3.bf16.msra.mxu1 %v17805_v26  ;;  %v17813_v51 = vld [vmem:[#allocation37_spill] sm:$0xff]  ;;  %v17814_v26 = vld [vmem:[#allocation39_spill] sm:$0xff] }
0x3d28   :  { %13059 = vmatprep.subr.bf16.mxu1 %v17806_v63 }
0x3d29   :  { %11621 = vmatmul.mubr.f32.vlgmr.msra.gmra.mrb[66].mxu0 %v6745_v34  ;;  %v17817_v34 = vld [vmem:[#allocation45_spill] sm:$0xff] }
0x3d2a   :  { %13029 = vmatpush3.bf16.msra.mxu0 %v17807_v27  ;;  %v17818_v27 = vld [vmem:[#allocation47_spill] sm:$0xff] }
0x3d2b   :  { %13031 = vmatprep.subr.bf16.mxu0 %v17808_v56  ;;  %v17819_v56 = vld [vmem:[#allocation49_spill] sm:$0xff] }
0x3d2e   :  { %13033 = vmatpush3.bf16.msra.mxu0 %v17809_v54  ;;  %v17820_v54 = vld [vmem:[#allocation52_spill] sm:$0xff] }
0x3d2f   :  { %13035 = vmatprep.subr.bf16.mxu0 %v17810_v28  ;;  %v17821_v28 = vld [vmem:[#allocation53_spill] sm:$0xff] }
0x3d32   :  { %13037 = vmatpush3.bf16.msra.mxu0 %v17811_v20  ;;  %v17822_v20 = vld [vmem:[#allocation6_spill] sm:$0xff] }
0x3d33   :  { %13039 = vmatprep.subr.bf16.mxu0 %v17812_v14 }
0x3d36   :  { %13041 = vmatpush3.bf16.msra.mxu0 %v17813_v51 }
0x3d37   :  { %13043 = vmatprep.subr.bf16.mxu0 %v17814_v26 }
0x3d3a   :  { %13045 = vmatpush3.bf16.msra.mxu0 %v17815_v49 }
0x3d3b   :  { %13047 = vmatprep.subr.bf16.mxu0 %v17816_v50 }
0x3d3e   :  { %13049 = vmatpush3.bf16.msra.mxu0 %v17817_v34 }
0x3d3f   :  { %13051 = vmatprep.subr.bf16.mxu0 %v17818_v27  ;;  %v16348_v27 = vld [vmem:[%s17131_s11] ss:$0 sm:$0xff] }
0x3d40   :  { %17823 = vst [vmem:[#allocation66_spill] sm:$0xff] %v16348_v27 }
0x3d42   :  { %13053 = vmatpush3.bf16.msra.mxu0 %v17819_v56 }
0x3d43   :  { %13055 = vmatprep.subr.bf16.mxu0 %v17820_v54 }
0x3d46   :  { %13057 = vmatpush3.bf16.msra.mxu0 %v17821_v28 }
0x3d47   :  { %13091 = vmatprep.subr.bf16.mxu0 %v17822_v20 }
0x3d69   :  { %v6589_v14 = vpop.f32.mrb[66].mxu1 }
0x3d6a   :  { %v6591_v51 = vpop.f32.mrb[67].mxu1 }
0x3ddc   :  { %v6664_v63 = vpop.f32.mrb[64].mxu0  ;;  %v16343_v26 = vpop.f32.mrb[68].mxu1 }
0x3ddd   :  { %v6666_v49 = vpop.f32.mrb[65].mxu0  ;;  %v6737_v39 = vpop.f32.mrb[69].mxu1 }
0x3dfc   :  { %v6813_v50 = vpop.f32.mrb[66].mxu0 }
0x3dfd   :  { %v6814_v56 = vadd.f32 %v16348_v27, %v6813_v50  ;;  %v11622_v54 = vpop.f32.mrb[67].mxu0  ;;  %v9782_v50 = vld [vmem:[%s17377_s4 + $0x40] sm:$0xff] }
0x3dfe   :  { %v6946_v33 = vcombine.high %v9782_v50, %v9782_v50 }
0x3dff   :  { %v9790_v34 = vmul.f32 -1.442695, %v6814_v56 }
0x3e01   :  { %13807 = vpow2.f32 %v9790_v34  ;;  %v6953_v34 = vrot.slane %v9782_v50, %v17429_v11 }
0x3e03   :  { %v6961_v59 = vcombine.high %v6953_v34, %v6953_v34 }
0x3e0b   :  { %v13808_v28 = vpop.eup %13807 }
0x3e0c   :  { %v6820_v20 = vadd.f32 1.0, %v13808_v28 }
0x3e0e   :  { %13809 = vrcp.f32 %v6820_v20  ;;  %v17824_v20 = vmov 0  }
0x3e18   :  { %v16351_v40 = vpop.eup %13809 }
0x3e19   :  { %6824 = vrot.lane.b32.xlu0 %v16351_v40, %s13915_s30 }
0x3e1d   :  { %6845 = vrot.lane.b32.xlu0 %v16253_v9, %s13917_s13 }
0x3e21   :  { %6851 = vrot.lane.b32.xlu0 %v16253_v9, %s13919_s27 }
0x3e25   :  { %6857 = vrot.lane.b32.xlu0 %v16253_v9, %s13920_s20 }
0x3e29   :  { %6863 = vrot.lane.b32.xlu0 %v16253_v9, %s13918_s24 }
0x3e8b   :  { %v6825_v56 = vpop.permute.xlu0 %6824 }
0x3e8c   :  { %v6827_v54 = vmul.f32 %v16351_v40, %v6825_v56  ;;  %v6665_v56 = vadd.f32 %v6664_v63, %v17488_v10 }
0x3e8e   :  { %6830 = vperm.xlu1 %13631, %v6827_v54   ;;  %v17825_v54 = vld [vmem:[#allocation59_spill] sm:$0xff] }
0x3e8f   :  { %v6846_v28 = vpop.permute.xlu0 %6845  ;;  %v6667_v27 = vadd.f32 %v6666_v49, %v17825_v54 }
0x3e90   :  { %v6866_v61 = vsel %vm281_vm4, %v16253_v9, %v6846_v28  ;;  %v6960_v28 = vrot.slane %v6946_v33, %v17429_v11 }
0x3e92   :  { %6848 = vrot.lane.b32.xlu1 %v16253_v9, %s13921_s21 }
0x3e93   :  { %13632 = vset.pattern.permute.xlu1 %v17824_v20  ;;  %v6852_v13 = vpop.permute.xlu0 %6851 }
0x3e96   :  { %6854 = vrot.lane.b32.xlu1 %v16253_v9, %s13912_s2 }
0x3e9a   :  { %6860 = vrot.lane.b32.xlu1 %v16253_v9, %s13911_s26 }
0x3f0d   :  { %v6831_v12 = vpop.permute.xlu1 %6830 }
0x3f0e   :  { %v6838_v20 = vmul.f32 %v6831_v12, %v6667_v27  ;;  %v6837_v60 = vmul.f32 %v6831_v12, %v6665_v56  ;;  %v6590_v27 = vadd.f32 %v6589_v14, %v17432_v45  ;;  %v6592_v56 = vadd.f32 %v6591_v51, %v17433_v29 }
0x3f0f   :  { %v6962_v51 = vcombine.high %v6960_v28, %v6960_v28 }
0x3f10   :  { %v16378_v18 = vadd.f32 %v6838_v20, %v16184_v48  ;;  %v16381_v46 = vadd.f32 %v6837_v60, %v16187_v3  ;;  %v6738_v48 = vadd.f32 %v6737_v39, %v17434_v22  ;;  %v6858_v20 = vpop.permute.xlu0 %6857  ;;  %v6833_v9 = vmul.f32 %v6831_v12, %v6590_v27 }
0x3f11   :  { %v6849_v35 = vpop.permute.xlu1 %6848 }
0x3f12   :  { %v6867_v63 = vsel %vm421_vm0, %v6866_v61, %v6849_v35  ;;  %v6968_v49 = vmul.f32 %v6961_v59, %v16378_v18  ;;  %v6967_v54 = vmul.f32 %v6953_v34, %v16381_v46  ;;  %v6834_v61 = vmul.f32 %v6831_v12, %v6592_v56 }
0x3f13   :  { %v6868_v60 = vsel %vm1544_vm5, %v6867_v63, %v6852_v13  ;;  %v6840_v59 = vmul.f32 %v6831_v12, %v6738_v48  ;;  %v16399_v13 = vadd.f32 %v6833_v9, %v16205_v41  ;;  %v6736_v41 = vadd.f32 %v16343_v26, %v17546_v4  ;;  %v17829_v26 = vld [vmem:[#allocation11_spill] sm:$0xff]  ;;  %v17830_v9 = vld [vmem:[#allocation13_spill] sm:$0xff] }
0x3f14   :  { %7035 = vmatprep.mubr.f32.mxu0 %v6968_v49  ;;  %v6864_v50 = vpop.permute.xlu0 %6863  ;;  %v16403_v34 = vadd.f32 %v6834_v61, %v16209_v57 }
0x3f15   :  { %v6855_v3 = vpop.permute.xlu1 %6854  ;;  %7036 = vmatmul.mubr.f32.vlgmr.msra.gmra.mrb[68].mxu0 %v6967_v54  ;;  %v16406_v54 = vadd.f32 %v6840_v59, %v16212_v17  ;;  %v6839_v57 = vmul.f32 %v6831_v12, %v6736_v41  ;;  %v17826_v17 = vld [vmem:[#allocation55_spill] sm:$0xff]  ;;  %v17831_v12 = vld [vmem:[#allocation14_spill] sm:$0xff] }
0x3f16   :  { %v6869_v35 = vsel %vm674_vm2, %v6868_v60, %v6855_v3  ;;  %13093 = vmatpush1.bf16.msra.mxu0 %v14059_v6  ;;  %7241 = vmatprep.mubr.f32.mxu0 %v17384_v15  ;;  %v17828_v60 = vld [vmem:[#allocation10_spill] sm:$0xff] }
0x3f17   :  { %13095 = vmatprep.subr.bf16.mxu0 %v14081_v23  ;;  %v6870_v14 = vsel %vm1547_vm6, %v6869_v35, %v6858_v20  ;;  %v6970_v56 = vmul.f32 %v6962_v51, %v16406_v54  ;;  %v16429_v48 = vadd.f32 %v6839_v57, %v17826_v17  ;;  %v17827_v20 = vld [vmem:[#allocation71_spill] sm:$0xff] }
0x3f19   :  { %v6861_v39 = vpop.permute.xlu1 %6860  ;;  %v6969_v3 = vmul.f32 %v6960_v28, %v16429_v48 }
0x3f1a   :  { %v6871_v33 = vsel %vm1549_vm7, %v6870_v14, %v6861_v39 }
0x3f1b   :  { %v6872_v63 = vsel %vm1551_vm8, %v6871_v33, %v6864_v50 }
0x3f1c   :  { %v6873_v49 = vmul.f32 %v6872_v63, %v16399_v13  ;;  %v6874_v27 = vmul.f32 %v6872_v63, %v16403_v34 }
0x3f1e   :  { %6939 = vmatprep.mubr.f32.mxu1 %v6874_v27 }
0x3f1f   :  { %6940 = vmatmul.mubr.f32.vlgmr.msra.gmra.mrb[70].mxu1 %v6873_v49 }
0x3f20   :  { %13061 = vmatpush3.bf16.msra.mxu1 %v14716_v21  ;;  %7105 = vmatprep.mubr.f32.mxu1 %v6970_v56 }
0x3f21   :  { %13063 = vmatprep.subr.bf16.mxu1 %v14724_v7 }
0x3f24   :  { %13065 = vmatpush3.bf16.msra.mxu1 %v14740_v53 }
0x3f25   :  { %13067 = vmatprep.subr.bf16.mxu1 %v14743_v32 }
0x3f28   :  { %13069 = vmatpush3.bf16.msra.mxu1 %v14761_v44 }
0x3f29   :  { %13071 = vmatprep.subr.bf16.mxu1 %v17435_v43 }
0x3f2c   :  { %13073 = vmatpush3.bf16.msra.mxu1 %v17436_v16 }
0x3f2d   :  { %13075 = vmatprep.subr.bf16.mxu1 %v17437_v5 }
0x3f30   :  { %13077 = vmatpush3.bf16.msra.mxu1 %v17438_v38 }
0x3f31   :  { %13079 = vmatprep.subr.bf16.mxu1 %v17490_v62 }
0x3f34   :  { %13081 = vmatpush3.bf16.msra.mxu1 %v17602_v24 }
0x3f35   :  { %13083 = vmatprep.subr.bf16.mxu1 %v17658_v8 }
0x3f38   :  { %13085 = vmatpush3.bf16.msra.mxu1 %v17714_v31 }
0x3f39   :  { %13087 = vmatprep.subr.bf16.mxu1 %v17770_v47 }
0x3f3c   :  { %13089 = vmatpush3.bf16.msra.mxu1 %v17827_v20 }
0x3f3d   :  { %13103 = vmatprep.subr.bf16.mxu1 %v17828_v60 }
0x3f3f   :  { %7106 = vmatmul.mubr.f32.vlgmr.msra.gmra.mrb[72].mxu1 %v6969_v3 }
0x3f40   :  { %13105 = vmatpush1.bf16.msra.mxu1 %v17829_v26  ;;  %7422 = vmatprep.mubr.f32.mxu1 %v17384_v15 }
0x3f41   :  { %13107 = vmatprep.subr.bf16.mxu1 %v17830_v9 }
0x3f44   :  { %13109 = vmatpush1.bf16.msra.mxu1 %v17831_v12 }
0x3f45   :  { %13118 = vmatprep.subr.bf16.mxu1 %v17397_v36 }
0x3fe8   :  { %v10892_v35 = vpop.f32.mrb[68].mxu0 }
0x3fe9   :  { %v10893_v61 = vpop.f32.mrb[69].mxu0 }
0x3fea   :  { %v10894_v59 = vadd.f32 %v10893_v61, %v10892_v35 }
0x3ff2   :  { %v10857_v39 = vpop.f32.mrb[70].mxu1 }
0x3ff3   :  { %v10858_v14 = vpop.f32.mrb[71].mxu1 }
0x3ff4   :  { %v10859_v51 = vadd.f32 %v10858_v14, %v10857_v39 }
0x3ff6   :  { %v7111_v56 = vmul.f32 %v16351_v40, %v10859_v51 }
0x4012   :  { %v10927_v28 = vpop.f32.mrb[72].mxu1 }
0x4013   :  { %v10928_v50 = vpop.f32.mrb[73].mxu1 }
0x4014   :  { %v10929_v33 = vadd.f32 %v10928_v50, %v10927_v28 }
0x4016   :  { %v7108_v63 = vadd.f32 %v10929_v33, %v10894_v59 }
0x4018   :  { %7113 = vrot.lane.b32.xlu1 %v7108_v63, %s13917_s13 }
0x408a   :  { %v7114_v49 = vpop.permute.xlu1 %7113 }
0x408b   :  { %v7116_v27 = vmul.f32 %v16351_v40, %v7114_v49  ;;  %v16448_v40 = vld [vmem:[%s17135_s15] ss:$0 sm:$0xff] }
0x408c   :  { %17832 = vst [vmem:[#allocation56_spill] sm:$0xff] %v16448_v40  ;;  %v16454_v49 = vld [vmem:[%s17136_s16] ss:$0 sm:$0xff] }
0x408d   :  { %7118 = vrot.lane.b32.xlu0 %v7116_v27, %s13918_s24  ;;  %17833 = vst [vmem:[#allocation57_spill] sm:$0xff] %v16454_v49 }
0x40ff   :  { %v7119_v41 = vpop.permute.xlu0 %7118 }
0x4100   :  { %v7121_v57 = vadd.f32 %v7119_v41, %v7111_v56 }
0x4102   :  { %v7122_v17 = vsel %vm1024_vm3, %v7121_v57, 0.0 }
0x4103   :  { %7123 = vadd.xlane.f32.xlu1 %v7122_v17 }
0x4190   :  { %v7124_v3 = vpop.xlane.xlu1 %7123 }
0x4191   :  { %v7125_v35 = vmul.f32 0.0625, %v7124_v3  ;;  %v17835_v3 = vld [vmem:[#allocation8_spill] sm:$0xff] }
0x4193   :  { %v7126_v61 = vsub.f32 %v7121_v57, %v7125_v35  ;;  %v17834_v57 = vld [vmem:[#allocation7_spill] sm:$0xff]  ;;  %v17836_v35 = vld [vmem:[#allocation9_spill] sm:$0xff] }
0x4195   :  { %v7127_v39 = vmul.f32 %v7126_v61, %v7126_v61 }
0x4197   :  { %v7128_v59 = vsel %vm1024_vm3, %v7127_v39, 0.0  ;;  %v9792_v39 = vld [vmem:[%s17322_s28 + $0x12] sm:$0x3] }
0x4198   :  { %7129 = vadd.xlane.f32.xlu0 %v7128_v59 }
0x4225   :  { %v7130_v14 = vpop.xlane.xlu0 %7129 }
0x4226   :  { %v7131_v28 = vmul.f32 0.0625, %v7130_v14 }
0x4228   :  { %v7132_v50 = vadd.f32 1e-05, %v7131_v28 }
0x422a   :  { %13811 = vrsqrt.f32 %v7132_v50 }
0x4234   :  { %v13812_v33 = vpop.eup %13811 }
0x4235   :  { %v7134_v63 = vmul.f32 %v13812_v33, %v7126_v61  ;;  %v17837_v61 = vld [vmem:[#allocation12_spill] sm:$0xff]  ;;  %v17838_v33 = vmov 1  }
0x4237   :  { %v7135_v51 = vmul.f32 %v16448_v40, %v7134_v63 }
0x4239   :  { %v16457_v27 = vadd.f32 %v16454_v49, %v7135_v51  ;;  %v17839_v49 = vmov 32  }
0x423b   :  { %7137 = vst.msk [vmem:[#allocation2 + $0x10] sm:$0x3] %vm1024_vm3, %v16457_v27  ;;  %9795 = vmatmul.mubr.msk.f32.vlgmr.msra.gmra.mrb[70].mxu0 %vm281_vm4, %v16457_v27  ;;  %v7144_v56 = vsel %vm1024_vm3, %v16457_v27, 0.0  ;;  %v7149_v41 = vmul.f32 %v16457_v27, %v16457_v27 }
0x423c   :  { %7145 = vadd.xlane.f32.xlu0 %v7144_v56  ;;  %13097 = vmatpush1.bf16.msra.mxu0 %v17834_v57 }
0x423d   :  { %v7150_v17 = vsel %vm1024_vm3, %v7149_v41, 0.0  ;;  %13099 = vmatprep.subr.bf16.mxu0 %v17835_v3  ;;  %7347 = vmatprep.mubr.f32.mxu0 %v17384_v15 }
0x423e   :  { %7151 = vadd.xlane.f32.xlu1 %v7150_v17 }
0x4240   :  { %13101 = vmatpush1.bf16.msra.mxu0 %v17836_v35 }
0x4241   :  { %13111 = vmatprep.subr.bf16.mxu0 %v17837_v61 }
0x42c9   :  { %v7146_v59 = vpop.xlane.xlu0 %7145 }
0x42ca   :  { %v7147_v14 = vmul.f32 0.020833334, %v7146_v59  ;;  %v9794_v59 = vld.sshfl [vmem:[%s17332_s3 + $0x24] sm:$0x33 pattern:$0x76325410] }
0x42cb   :  { %v7152_v56 = vpop.xlane.xlu1 %7151 }
0x42cc   :  { %v7148_v28 = vadd.f32 %v9792_v39, %v7147_v14  ;;  %v7153_v41 = vmul.f32 0.020833334, %v7152_v56 }
0x42ce   :  { %v7155_v50 = vmul.f32 %v7148_v28, %v7148_v28  ;;  %7250 = vperm.xlu1 %13632, %v7148_v28   ;;  %v7154_v17 = vadd.f32 %v9792_v39, %v7153_v41  ;;  %v7171_v28 = vcombine.high %v9794_v59, %v9794_v59 }
0x42d0   :  { %7157 = vrot.lane.b32.xlu0 %v7155_v50, %s13908_s29  ;;  %v17840_v50 = vld [vmem:[#allocation15_spill] sm:$0xff] }
0x42d2   :  { %13633 = vset.pattern.permute.xlu1 %v17838_v33 }
0x430e   :  { %v7243_v63 = vpop.f32.mrb[70].mxu0 }
0x430f   :  { %v7245_v51 = vpop.f32.mrb[71].mxu0  ;;  %v7244_v56 = vadd.f32 %v9794_v59, %v7243_v63 }
0x4310   :  { %v7246_v39 = vadd.f32 %v7245_v51, %v7171_v28  ;;  %v17847_v28 = vld [vmem:[#allocation36_spill] sm:$0xff] }
0x4342   :  { %v7158_v35 = vpop.permute.xlu0 %7157 }
0x4343   :  { %v7160_v61 = vsub.f32 %v7154_v17, %v7158_v35 }
0x4345   :  { %v7161_v3 = vadd.f32 1e-05, %v7160_v61 }
0x4347   :  { %13813 = vrsqrt.f32 %v7161_v3 }
0x434d   :  { %v7251_v14 = vpop.permute.xlu1 %7250 }
0x434e   :  { %v7253_v33 = vmul.f32 %v7251_v14, %v17840_v50  ;;  %v7254_v40 = vmul.f32 %v7251_v14, %v14172_v55  ;;  %v17846_v14 = vld [vmem:[#allocation18_spill] sm:$0xff] }
0x4350   :  { %v7255_v41 = vsub.f32 %v7244_v56, %v7253_v33  ;;  %v7256_v35 = vsub.f32 %v7246_v39, %v7254_v40  ;;  %v17849_v56 = vld [vmem:[#allocation19_spill] sm:$0xff]  ;;  %v17850_v39 = vld [vmem:[#allocation40_spill] sm:$0xff] }
0x4351   :  { %v13814_v57 = vpop.eup %13813 }
0x4352   :  { %7259 = vperm.xlu1 %13633, %v13814_v57  }
0x4356   :  { %13639 = vset.pattern.permute.xlu1 %v17839_v49 }
0x43d1   :  { %v7260_v61 = vpop.permute.xlu1 %7259 }
0x43d2   :  { %v7262_v3 = vmul.f32 %v7260_v61, %v7255_v41  ;;  %v7263_v17 = vmul.f32 %v7260_v61, %v7256_v35  ;;  %v17851_v41 = vld [vmem:[#allocation42_spill] sm:$0xff]  ;;  %v17852_v35 = vld [vmem:[#allocation20_spill] sm:$0xff] }
0x43d3   :  { %v17853_v61 = vld [vmem:[#allocation44_spill] sm:$0xff] }
0x43d4   :  { %v7264_v57 = vadd.f32 %v7262_v3, %v14180_v1  ;;  %v7265_v49 = vadd.f32 %v7263_v17, %v14183_v2  ;;  %v17854_v3 = vld [vmem:[#allocation46_spill] sm:$0xff] }
0x43d6   :  { %v9796_v12 = vmul.f32 -1.442695, %v7264_v57  ;;  %v9797_v9 = vmul.f32 -1.442695, %v7265_v49 }
0x43d8   :  { %13815 = vpow2.f32 %v9796_v12  ;;  %v17844_v12 = vld [vmem:[#allocation31_spill] sm:$0xff] }
0x43d9   :  { %13817 = vpow2.f32 %v9797_v9  ;;  %v17843_v9 = vld [vmem:[#allocation17_spill] sm:$0xff] }
0x43e2   :  { %v13816_v26 = vpop.eup %13815 }
0x43e3   :  { %v13818_v60 = vpop.eup %13817  ;;  %v7272_v50 = vadd.f32 1.0, %v13816_v26  ;;  %v17842_v26 = vld [vmem:[#allocation30_spill] sm:$0xff] }
0x43e4   :  { %v7273_v20 = vadd.f32 1.0, %v13818_v60  ;;  %v17841_v60 = vld [vmem:[#allocation27_spill] sm:$0xff] }
0x43e5   :  { %13819 = vrcp.f32 %v7272_v50  ;;  %v17848_v50 = vld [vmem:[#allocation38_spill] sm:$0xff] }
0x43e6   :  { %13821 = vrcp.f32 %v7273_v20 }
0x43ef   :  { %v13820_v63 = vpop.eup %13819 }
0x43f0   :  { %v13822_v33 = vpop.eup %13821  ;;  %v7278_v40 = vmul.f32 %v13820_v63, %v7264_v57  ;;  %v17855_v57 = vld [vmem:[#allocation21_spill] sm:$0xff]  ;;  %v17856_v63 = vld [vmem:[#allocation48_spill] sm:$0xff] }
0x43f1   :  { %v7279_v51 = vmul.f32 %v13822_v33, %v7265_v49  ;;  %v17845_v49 = vld [vmem:[#allocation34_spill] sm:$0xff] }
0x43f2   :  { %7354 = vrot.lane.b32.xlu0 %v7278_v40, %s13911_s26  ;;  %9798 = vmatmul.mubr.msk.f32.vlgmr.msra.gmra.mrb[72].mxu0 %vm421_vm0, %v7278_v40 }
0x43f3   :  { %v13634_v59 = vpack.i.bf16 %v7279_v51, %v7278_v40  ;;  %13113 = vmatpush1.bf16.msra.mxu0 %v14199_v25  ;;  %7493 = vmatprep.mubr.f32.mxu0 %v17384_v15  ;;  %v17857_v51 = vld [vmem:[#allocation50_spill] sm:$0xff] }
0x43f4   :  { %13115 = vmatprep.subr.bf16.mxu0 %v14201_v30 }
0x43f5   :  { %13635 = vrot.lane.b32.xlu1 %v13634_v59, %s13912_s2  ;;  %v17858_v59 = vld [vmem:[#allocation22_spill] sm:$0xff] }
0x43f7   :  { %13117 = vmatpush1.bf16.msra.mxu0 %v14212_v37 }
0x43f8   :  { %13143 = vmatprep.subr.bf16.mxu0 %v14331_v58 }
0x4464   :  { %v7355_v20 = vpop.permute.xlu0 %7354 }
0x4465   :  { %9799 = vmatmul.mubr.msk.f32.vlgmr.msra.gmra.mrb[74].mxu1 %vm421_vm0, %v7355_v20  ;;  %9800 = vmatmul.mubr.msk.f32.vlgmr.msra.gmra.mrb[74].mxu0 %vm421_vm0, %v7355_v20  ;;  %v17859_v20 = vld [vmem:[#allocation24_spill] sm:$0xff] }
0x4466   :  { %13120 = vmatpush3.bf16.msra.mxu1 %v14224_v42  ;;  %11655 = vmatprep.mubr.msk.f32.mxu1 %vm13913_vm1, %v17384_v15 }
0x4467   :  { %13121 = vmatprep.subr.bf16.mxu1 %v17397_v36  ;;  %13145 = vmatpush3.bf16.msra.mxu0 %v14342_v0  ;;  %v13636_v17 = vpop.permute.xlu1 %13635 }
0x4468   :  { %13147 = vmatprep.subr.bf16.mxu0 %v14369_v19  ;;  %v13638_v33 = vunpack.i.h.bf16 %v13636_v17  ;;  %v13637_v40 = vunpack.i.l.bf16 %v13636_v17  ;;  %v17865_v17 = vld [vmem:[#allocation32_spill] sm:$0xff] }
0x446a   :  { %13123 = vmatpush3.bf16.msra.mxu1 %v14235_v52 }
0x446b   :  { %13124 = vmatprep.subr.bf16.mxu1 %v17397_v36  ;;  %13149 = vmatpush3.bf16.msra.mxu0 %v17841_v60 }
0x446c   :  { %13151 = vmatprep.subr.bf16.mxu0 %v17842_v26 }
0x446e   :  { %13126 = vmatpush3.bf16.msra.mxu1 %v17843_v9 }
0x446f   :  { %13127 = vmatprep.subr.bf16.mxu1 %v17397_v36  ;;  %13153 = vmatpush3.bf16.msra.mxu0 %v17844_v12 }
0x4470   :  { %13155 = vmatprep.subr.bf16.mxu0 %v17845_v49 }
0x4472   :  { %13129 = vmatpush3.bf16.msra.mxu1 %v17846_v14 }
0x4473   :  { %13130 = vmatprep.subr.bf16.mxu1 %v17397_v36  ;;  %13157 = vmatpush3.bf16.msra.mxu0 %v17847_v28 }
0x4474   :  { %13159 = vmatprep.subr.bf16.mxu0 %v17848_v50 }
0x4476   :  { %13132 = vmatpush3.bf16.msra.mxu1 %v17849_v56  ;;  %v17878_v56 = vld [vmem:[#allocation66_spill] sm:$0xff] }
0x4477   :  { %13133 = vmatprep.subr.bf16.mxu1 %v17397_v36  ;;  %13161 = vmatpush3.bf16.msra.mxu0 %v17850_v39 }
0x4478   :  { %13163 = vmatprep.subr.bf16.mxu0 %v17851_v41  ;;  %v17863_v41 = vld [vmem:[#allocation28_spill] sm:$0xff] }
0x447a   :  { %13135 = vmatpush3.bf16.msra.mxu1 %v17852_v35  ;;  %v17860_v35 = vld [vmem:[#allocation51_spill] sm:$0xff] }
0x447b   :  { %13136 = vmatprep.subr.bf16.mxu1 %v17397_v36  ;;  %13165 = vmatpush3.bf16.msra.mxu0 %v17853_v61  ;;  %v7505_v61 = vsel %vm674_vm2, %v13637_v40, %v13638_v33  ;;  %v17870_v33 = vld [vmem:[#allocation41_spill] sm:$0xff]  ;;  %v17871_v40 = vld [vmem:[#allocation43_spill] sm:$0xff] }
0x447c   :  { %13167 = vmatprep.subr.bf16.mxu0 %v17854_v3  ;;  %v17861_v3 = vld [vmem:[#allocation54_spill] sm:$0xff] }
0x447e   :  { %13138 = vmatpush3.bf16.msra.mxu1 %v17855_v57  ;;  %v17862_v57 = vld [vmem:[#allocation25_spill] sm:$0xff] }
0x447f   :  { %13139 = vmatprep.subr.bf16.mxu1 %v17397_v36  ;;  %13169 = vmatpush3.bf16.msra.mxu0 %v17856_v63  ;;  %v17864_v63 = vld [vmem:[#allocation29_spill] sm:$0xff] }
0x4480   :  { %13171 = vmatprep.subr.bf16.mxu0 %v17857_v51  ;;  %v17866_v51 = vld [vmem:[#allocation33_spill] sm:$0xff] }
0x4482   :  { %13141 = vmatpush3.bf16.msra.mxu1 %v17858_v59  ;;  %v17867_v59 = vld [vmem:[#allocation35_spill] sm:$0xff] }
0x4483   :  { %13175 = vmatprep.subr.bf16.mxu1 %v17859_v20  ;;  %13173 = vmatpush3.bf16.msra.mxu0 %v17860_v35  ;;  %v17868_v20 = vld [vmem:[#allocation37_spill] sm:$0xff]  ;;  %v17869_v35 = vld [vmem:[#allocation39_spill] sm:$0xff] }
0x4484   :  { %13207 = vmatprep.subr.bf16.mxu0 %v17861_v3 }
0x4485   :  { %11656 = vmatmul.mubr.f32.vlgmr.msra.gmra.mrb[76].mxu1 %v7505_v61  ;;  %v17872_v61 = vld [vmem:[#allocation45_spill] sm:$0xff] }
0x4486   :  { %13177 = vmatpush3.bf16.msra.mxu1 %v17862_v57  ;;  %v17873_v57 = vld [vmem:[#allocation47_spill] sm:$0xff] }
0x4487   :  { %13179 = vmatprep.subr.bf16.mxu1 %v17863_v41  ;;  %v17874_v41 = vld [vmem:[#allocation49_spill] sm:$0xff] }
0x448a   :  { %13181 = vmatpush3.bf16.msra.mxu1 %v17864_v63  ;;  %v17875_v63 = vld [vmem:[#allocation52_spill] sm:$0xff] }
0x448b   :  { %13183 = vmatprep.subr.bf16.mxu1 %v17865_v17  ;;  %v17876_v17 = vld [vmem:[#allocation53_spill] sm:$0xff] }
0x448e   :  { %13185 = vmatpush3.bf16.msra.mxu1 %v17866_v51  ;;  %v17877_v51 = vld [vmem:[#allocation6_spill] sm:$0xff] }
0x448f   :  { %13187 = vmatprep.subr.bf16.mxu1 %v17867_v59 }
0x4492   :  { %13189 = vmatpush3.bf16.msra.mxu1 %v17868_v20 }
0x4493   :  { %13191 = vmatprep.subr.bf16.mxu1 %v17869_v35 }
0x4496   :  { %13193 = vmatpush3.bf16.msra.mxu1 %v17870_v33 }
0x4497   :  { %13195 = vmatprep.subr.bf16.mxu1 %v17871_v40 }
0x449a   :  { %13197 = vmatpush3.bf16.msra.mxu1 %v17872_v61 }
0x449b   :  { %13199 = vmatprep.subr.bf16.mxu1 %v17873_v57 }
0x449e   :  { %13201 = vmatpush3.bf16.msra.mxu1 %v17874_v41 }
0x449f   :  { %13203 = vmatprep.subr.bf16.mxu1 %v17875_v63 }
0x44a2   :  { %13205 = vmatpush3.bf16.msra.mxu1 %v17876_v17 }
0x44a3   :  { %13239 = vmatprep.subr.bf16.mxu1 %v17877_v51 }
0x44c5   :  { %v7349_v59 = vpop.f32.mrb[72].mxu0 }
0x44c6   :  { %v7351_v20 = vpop.f32.mrb[73].mxu0 }
0x4538   :  { %v7424_v3 = vpop.f32.mrb[74].mxu1  ;;  %v16547_v35 = vpop.f32.mrb[74].mxu0 }
0x4539   :  { %v7426_v33 = vpop.f32.mrb[75].mxu1  ;;  %v7497_v39 = vpop.f32.mrb[75].mxu0 }
0x4558   :  { %v7573_v40 = vpop.f32.mrb[76].mxu1 }
0x4559   :  { %v7574_v61 = vadd.f32 %v17878_v56, %v7573_v40  ;;  %v11657_v50 = vpop.f32.mrb[77].mxu1  ;;  %v17879_v56 = vmov 0  }
0x455b   :  { %v9801_v57 = vmul.f32 -1.442695, %v7574_v61  ;;  %v7425_v61 = vadd.f32 %v7424_v3, %v17488_v10 }
0x455d   :  { %13823 = vpow2.f32 %v9801_v57  ;;  %v9793_v57 = vld [vmem:[%s17377_s4 + $0x48] sm:$0xff] }
0x455e   :  { %v7713_v40 = vrot.slane %v9793_v57, %v17429_v11  ;;  %v7706_v52 = vcombine.high %v9793_v57, %v9793_v57 }
0x4560   :  { %v7721_v14 = vcombine.high %v7713_v40, %v7713_v40 }
0x4567   :  { %v13824_v41 = vpop.eup %13823 }
0x4568   :  { %v7580_v28 = vadd.f32 1.0, %v13824_v41 }
0x456a   :  { %13825 = vrcp.f32 %v7580_v28 }
0x4574   :  { %v16550_v63 = vpop.eup %13825 }
0x4575   :  { %7584 = vrot.lane.b32.xlu0 %v16550_v63, %s13915_s30 }
0x4579   :  { %7605 = vrot.lane.b32.xlu0 %v16457_v27, %s13917_s13 }
0x457d   :  { %7611 = vrot.lane.b32.xlu0 %v16457_v27, %s13919_s27 }
0x4581   :  { %7617 = vrot.lane.b32.xlu0 %v16457_v27, %s13920_s20 }
0x4585   :  { %7623 = vrot.lane.b32.xlu0 %v16457_v27, %s13918_s24 }
0x45e7   :  { %v7585_v50 = vpop.permute.xlu0 %7584 }
0x45e8   :  { %v7587_v28 = vmul.f32 %v16550_v63, %v7585_v50  ;;  %v17880_v50 = vld [vmem:[#allocation59_spill] sm:$0xff] }
0x45ea   :  { %7590 = vperm.xlu1 %13639, %v7587_v28   ;;  %v7427_v28 = vadd.f32 %v7426_v33, %v17880_v50 }
0x45eb   :  { %v7606_v41 = vpop.permute.xlu0 %7605 }
0x45ec   :  { %v7626_v26 = vsel %vm281_vm4, %v16457_v27, %v7606_v41  ;;  %v7720_v41 = vrot.slane %v7706_v52, %v17429_v11 }
0x45ee   :  { %7608 = vrot.lane.b32.xlu1 %v16457_v27, %s13921_s21 }
0x45ef   :  { %13640 = vset.pattern.permute.xlu1 %v17879_v56  ;;  %v7612_v17 = vpop.permute.xlu0 %7611 }
0x45f2   :  { %7614 = vrot.lane.b32.xlu1 %v16457_v27, %s13912_s2 }
0x45f6   :  { %7620 = vrot.lane.b32.xlu1 %v16457_v27, %s13911_s26 }
0x4669   :  { %v7591_v51 = vpop.permute.xlu1 %7590 }
0x466a   :  { %v7598_v56 = vmul.f32 %v7591_v51, %v7427_v28  ;;  %v7597_v49 = vmul.f32 %v7591_v51, %v7425_v61  ;;  %v7350_v28 = vadd.f32 %v7349_v59, %v17432_v45  ;;  %v7352_v61 = vadd.f32 %v7351_v20, %v17433_v29 }
0x466b   :  { %v7722_v20 = vcombine.high %v7720_v41, %v7720_v41 }
0x466c   :  { %v16577_v12 = vadd.f32 %v7598_v56, %v16378_v18  ;;  %v16580_v9 = vadd.f32 %v7597_v49, %v16381_v46  ;;  %v7498_v18 = vadd.f32 %v7497_v39, %v17434_v22  ;;  %v7618_v56 = vpop.permute.xlu0 %7617  ;;  %v7593_v27 = vmul.f32 %v7591_v51, %v7350_v28 }
0x466d   :  { %v7609_v60 = vpop.permute.xlu1 %7608 }
0x466e   :  { %v7627_v3 = vsel %vm421_vm0, %v7626_v26, %v7609_v60  ;;  %v7728_v33 = vmul.f32 %v7721_v14, %v16577_v12  ;;  %v7727_v50 = vmul.f32 %v7713_v40, %v16580_v9  ;;  %v7594_v26 = vmul.f32 %v7591_v51, %v7352_v61 }
0x466f   :  { %v7628_v49 = vsel %vm1544_vm5, %v7627_v3, %v7612_v17  ;;  %v7600_v14 = vmul.f32 %v7591_v51, %v7498_v18  ;;  %v16598_v17 = vadd.f32 %v7593_v27, %v16399_v13  ;;  %v7496_v13 = vadd.f32 %v16547_v35, %v17546_v4  ;;  %v17881_v18 = vld [vmem:[#allocation71_spill] sm:$0xff] }
0x4670   :  { %7795 = vmatprep.mubr.f32.mxu1 %v7728_v33  ;;  %v7624_v57 = vpop.permute.xlu0 %7623  ;;  %v16602_v40 = vadd.f32 %v7594_v26, %v16403_v34  ;;  %v17883_v35 = vld [vmem:[#allocation11_spill] sm:$0xff] }
0x4671   :  { %v7615_v46 = vpop.permute.xlu1 %7614  ;;  %7796 = vmatmul.mubr.f32.vlgmr.msra.gmra.mrb[78].mxu1 %v7727_v50  ;;  %v16605_v50 = vadd.f32 %v7600_v14, %v16406_v54  ;;  %v7599_v34 = vmul.f32 %v7591_v51, %v7496_v13  ;;  %v17885_v51 = vld [vmem:[#allocation14_spill] sm:$0xff] }
0x4672   :  { %v7629_v60 = vsel %vm674_vm2, %v7628_v49, %v7615_v46  ;;  %13241 = vmatpush1.bf16.msra.mxu1 %v14059_v6  ;;  %8001 = vmatprep.mubr.f32.mxu1 %v17384_v15  ;;  %v17882_v46 = vld [vmem:[#allocation10_spill] sm:$0xff]  ;;  %v17884_v49 = vld [vmem:[#allocation13_spill] sm:$0xff] }
0x4673   :  { %13243 = vmatprep.subr.bf16.mxu1 %v14081_v23  ;;  %v7630_v59 = vsel %vm1547_vm6, %v7629_v60, %v7618_v56  ;;  %v7730_v61 = vmul.f32 %v7722_v20, %v16605_v50  ;;  %v16628_v54 = vadd.f32 %v7599_v34, %v16429_v48 }
0x4675   :  { %v7621_v39 = vpop.permute.xlu1 %7620  ;;  %v7729_v56 = vmul.f32 %v7720_v41, %v16628_v54 }
0x4676   :  { %v7631_v52 = vsel %vm1549_vm7, %v7630_v59, %v7621_v39 }
0x4677   :  { %v7632_v3 = vsel %vm1551_vm8, %v7631_v52, %v7624_v57 }
0x4678   :  { %v7633_v33 = vmul.f32 %v7632_v3, %v16598_v17  ;;  %v7634_v28 = vmul.f32 %v7632_v3, %v16602_v40 }
0x467a   :  { %7699 = vmatprep.mubr.f32.mxu0 %v7634_v28 }
0x467b   :  { %7700 = vmatmul.mubr.f32.vlgmr.msra.gmra.mrb[76].mxu0 %v7633_v33 }
0x467c   :  { %13209 = vmatpush3.bf16.msra.mxu0 %v14716_v21  ;;  %7865 = vmatprep.mubr.f32.mxu0 %v7730_v61 }
0x467d   :  { %13211 = vmatprep.subr.bf16.mxu0 %v14724_v7 }
0x4680   :  { %13213 = vmatpush3.bf16.msra.mxu0 %v14740_v53 }
0x4681   :  { %13215 = vmatprep.subr.bf16.mxu0 %v14743_v32 }
0x4684   :  { %13217 = vmatpush3.bf16.msra.mxu0 %v14761_v44 }
0x4685   :  { %13219 = vmatprep.subr.bf16.mxu0 %v17435_v43 }
0x4688   :  { %13221 = vmatpush3.bf16.msra.mxu0 %v17436_v16 }
0x4689   :  { %13223 = vmatprep.subr.bf16.mxu0 %v17437_v5 }
0x468c   :  { %13225 = vmatpush3.bf16.msra.mxu0 %v17438_v38 }
0x468d   :  { %13227 = vmatprep.subr.bf16.mxu0 %v17490_v62 }
0x4690   :  { %13229 = vmatpush3.bf16.msra.mxu0 %v17602_v24 }
0x4691   :  { %13231 = vmatprep.subr.bf16.mxu0 %v17658_v8 }
0x4694   :  { %13233 = vmatpush3.bf16.msra.mxu0 %v17714_v31 }
0x4695   :  { %13235 = vmatprep.subr.bf16.mxu0 %v17770_v47 }
0x4698   :  { %13237 = vmatpush3.bf16.msra.mxu0 %v17881_v18 }
0x4699   :  { %13251 = vmatprep.subr.bf16.mxu0 %v17882_v46 }
0x469b   :  { %7866 = vmatmul.mubr.f32.vlgmr.msra.gmra.mrb[78].mxu0 %v7729_v56 }
0x469c   :  { %13253 = vmatpush1.bf16.msra.mxu0 %v17883_v35  ;;  %8182 = vmatprep.mubr.f32.mxu0 %v17384_v15 }
0x469d   :  { %13255 = vmatprep.subr.bf16.mxu0 %v17884_v49 }
0x46a0   :  { %13257 = vmatpush1.bf16.msra.mxu0 %v17885_v51 }
0x46a1   :  { %13266 = vmatprep.subr.bf16.mxu0 %v17397_v36 }
0x4744   :  { %v11014_v27 = vpop.f32.mrb[78].mxu1 }
0x4745   :  { %v11015_v48 = vpop.f32.mrb[79].mxu1 }
0x4746   :  { %v11016_v60 = vadd.f32 %v11015_v48, %v11014_v27 }
0x474e   :  { %v10979_v26 = vpop.f32.mrb[76].mxu0 }
0x474f   :  { %v10980_v14 = vpop.f32.mrb[77].mxu0 }
0x4750   :  { %v10981_v39 = vadd.f32 %v10980_v14, %v10979_v26 }
0x4752   :  { %v7871_v33 = vmul.f32 %v16550_v63, %v10981_v39  ;;  %v17887_v39 = vld [vmem:[#allocation57_spill] sm:$0xff] }
0x476e   :  { %v11049_v41 = vpop.f32.mrb[78].mxu0 }
0x476f   :  { %v11050_v59 = vpop.f32.mrb[79].mxu0 }
0x4770   :  { %v11051_v20 = vadd.f32 %v11050_v59, %v11049_v41 }
0x4772   :  { %v7868_v57 = vadd.f32 %v11051_v20, %v11016_v60 }
0x4774   :  { %7873 = vrot.lane.b32.xlu1 %v7868_v57, %s13917_s13  ;;  %v17886_v57 = vld [vmem:[#allocation56_spill] sm:$0xff] }
0x47e6   :  { %v7874_v52 = vpop.permute.xlu1 %7873 }
0x47e7   :  { %v7876_v3 = vmul.f32 %v16550_v63, %v7874_v52 }
0x47e9   :  { %7878 = vrot.lane.b32.xlu0 %v7876_v3, %s13918_s24 }
0x485b   :  { %v7879_v28 = vpop.permute.xlu0 %7878 }
0x485c   :  { %v7881_v61 = vadd.f32 %v7879_v28, %v7871_v33  ;;  %v17888_v28 = vld [vmem:[#allocation7_spill] sm:$0xff] }
0x485e   :  { %v7882_v13 = vsel %vm1024_vm3, %v7881_v61, 0.0 }
0x485f   :  { %7883 = vadd.xlane.f32.xlu1 %v7882_v13  ;;  %v17889_v13 = vld [vmem:[#allocation8_spill] sm:$0xff] }
0x48ec   :  { %v7884_v34 = vpop.xlane.xlu1 %7883 }
0x48ed   :  { %v7885_v56 = vmul.f32 0.0625, %v7884_v34  ;;  %v17890_v34 = vld [vmem:[#allocation9_spill] sm:$0xff] }
0x48ef   :  { %v7886_v27 = vsub.f32 %v7881_v61, %v7885_v56  ;;  %v17891_v56 = vld [vmem:[#allocation12_spill] sm:$0xff] }
0x48f1   :  { %v7887_v48 = vmul.f32 %v7886_v27, %v7886_v27 }
0x48f3   :  { %v7888_v60 = vsel %vm1024_vm3, %v7887_v48, 0.0 }
0x48f4   :  { %7889 = vadd.xlane.f32.xlu0 %v7888_v60 }
0x4981   :  { %v7890_v26 = vpop.xlane.xlu0 %7889 }
0x4982   :  { %v7891_v14 = vmul.f32 0.0625, %v7890_v26 }
0x4984   :  { %v7892_v41 = vadd.f32 1e-05, %v7891_v14 }
0x4986   :  { %13827 = vrsqrt.f32 %v7892_v41  ;;  %v17892_v41 = vmov 1  }
0x4990   :  { %v13828_v59 = vpop.eup %13827 }
0x4991   :  { %v7894_v20 = vmul.f32 %v13828_v59, %v7886_v27  ;;  %v9803_v27 = vld [vmem:[%s17322_s28 + $0x14] sm:$0x3] }
0x4993   :  { %v7895_v63 = vmul.f32 %v17886_v57, %v7894_v20 }
0x4995   :  { %v16646_v52 = vadd.f32 %v17887_v39, %v7895_v63 }
0x4997   :  { %7897 = vst.msk [vmem:[#allocation2 + $0x12] sm:$0x3] %vm1024_vm3, %v16646_v52  ;;  %9806 = vmatmul.mubr.msk.f32.vlgmr.msra.gmra.mrb[80].mxu1 %vm281_vm4, %v16646_v52  ;;  %v7904_v3 = vsel %vm1024_vm3, %v16646_v52, 0.0  ;;  %v7909_v33 = vmul.f32 %v16646_v52, %v16646_v52 }
0x4998   :  { %7905 = vadd.xlane.f32.xlu0 %v7904_v3  ;;  %13245 = vmatpush1.bf16.msra.mxu1 %v17888_v28 }
0x4999   :  { %v7910_v61 = vsel %vm1024_vm3, %v7909_v33, 0.0  ;;  %13247 = vmatprep.subr.bf16.mxu1 %v17889_v13  ;;  %8107 = vmatprep.mubr.f32.mxu1 %v17384_v15 }
0x499a   :  { %7911 = vadd.xlane.f32.xlu1 %v7910_v61 }
0x499c   :  { %13249 = vmatpush1.bf16.msra.mxu1 %v17890_v34  ;;  %v17893_v34 = vmov 32  }
0x499d   :  { %13259 = vmatprep.subr.bf16.mxu1 %v17891_v56 }
0x4a25   :  { %v7906_v48 = vpop.xlane.xlu0 %7905 }
0x4a26   :  { %v7907_v60 = vmul.f32 0.020833334, %v7906_v48  ;;  %v9805_v48 = vld.sshfl [vmem:[%s17332_s3 + $0x28] sm:$0x33 pattern:$0x76325410] }
0x4a27   :  { %v7912_v57 = vpop.xlane.xlu1 %7911 }
0x4a28   :  { %v7908_v26 = vadd.f32 %v9803_v27, %v7907_v60  ;;  %v7913_v63 = vmul.f32 0.020833334, %v7912_v57 }
0x4a2a   :  { %v7915_v14 = vmul.f32 %v7908_v26, %v7908_v26  ;;  %8010 = vperm.xlu1 %13640, %v7908_v26   ;;  %v7914_v39 = vadd.f32 %v9803_v27, %v7913_v63  ;;  %v7931_v26 = vcombine.high %v9805_v48, %v9805_v48 }
0x4a2c   :  { %7917 = vrot.lane.b32.xlu0 %v7915_v14, %s13908_s29  ;;  %v17894_v14 = vld [vmem:[#allocation15_spill] sm:$0xff] }
0x4a2e   :  { %13641 = vset.pattern.permute.xlu1 %v17892_v41 }
0x4a6a   :  { %v8003_v59 = vpop.f32.mrb[80].mxu1 }
0x4a6b   :  { %v8005_v20 = vpop.f32.mrb[81].mxu1  ;;  %v8004_v57 = vadd.f32 %v9805_v48, %v8003_v59 }
0x4a6c   :  { %v8006_v27 = vadd.f32 %v8005_v20, %v7931_v26  ;;  %v17901_v26 = vld [vmem:[#allocation18_spill] sm:$0xff] }
0x4a9e   :  { %v7918_v3 = vpop.permute.xlu0 %7917 }
0x4a9f   :  { %v7920_v33 = vsub.f32 %v7914_v39, %v7918_v3 }
0x4aa1   :  { %v7921_v61 = vadd.f32 1e-05, %v7920_v33 }
0x4aa3   :  { %13829 = vrsqrt.f32 %v7921_v61 }
0x4aa9   :  { %v8011_v60 = vpop.permute.xlu1 %8010 }
0x4aaa   :  { %v8013_v41 = vmul.f32 %v8011_v60, %v17894_v14  ;;  %v8014_v13 = vmul.f32 %v8011_v60, %v14172_v55  ;;  %v17900_v60 = vld [vmem:[#allocation34_spill] sm:$0xff] }
0x4aac   :  { %v8015_v63 = vsub.f32 %v8004_v57, %v8013_v41  ;;  %v8016_v39 = vsub.f32 %v8006_v27, %v8014_v13  ;;  %v17903_v57 = vld [vmem:[#allocation38_spill] sm:$0xff]  ;;  %v17904_v27 = vld [vmem:[#allocation19_spill] sm:$0xff] }
0x4aad   :  { %v13830_v56 = vpop.eup %13829 }
0x4aae   :  { %8019 = vperm.xlu1 %13641, %v13830_v56  }
0x4ab2   :  { %13647 = vset.pattern.permute.xlu1 %v17893_v34 }
0x4b2d   :  { %v8020_v3 = vpop.permute.xlu1 %8019 }
0x4b2e   :  { %v8022_v33 = vmul.f32 %v8020_v3, %v8015_v63  ;;  %v8023_v61 = vmul.f32 %v8020_v3, %v8016_v39  ;;  %v17905_v63 = vld [vmem:[#allocation40_spill] sm:$0xff]  ;;  %v17906_v39 = vld [vmem:[#allocation42_spill] sm:$0xff] }
0x4b2f   :  { %v17907_v3 = vld [vmem:[#allocation20_spill] sm:$0xff] }
0x4b30   :  { %v8024_v56 = vadd.f32 %v8022_v33, %v14180_v1  ;;  %v8025_v34 = vadd.f32 %v8023_v61, %v14183_v2  ;;  %v17908_v33 = vld [vmem:[#allocation44_spill] sm:$0xff]  ;;  %v17909_v61 = vld [vmem:[#allocation46_spill] sm:$0xff] }
0x4b32   :  { %v9807_v28 = vmul.f32 -1.442695, %v8024_v56  ;;  %v9808_v51 = vmul.f32 -1.442695, %v8025_v34 }
0x4b34   :  { %13831 = vpow2.f32 %v9807_v28  ;;  %v17898_v28 = vld [vmem:[#allocation17_spill] sm:$0xff] }
0x4b35   :  { %13833 = vpow2.f32 %v9808_v51  ;;  %v17897_v51 = vld [vmem:[#allocation30_spill] sm:$0xff] }
0x4b3e   :  { %v13832_v49 = vpop.eup %13831 }
0x4b3f   :  { %v13834_v35 = vpop.eup %13833  ;;  %v8032_v14 = vadd.f32 1.0, %v13832_v49  ;;  %v17896_v49 = vld [vmem:[#allocation27_spill] sm:$0xff] }
0x4b40   :  { %v8033_v46 = vadd.f32 1.0, %v13834_v35  ;;  %v17895_v35 = vld [vmem:[#allocation16_spill] sm:$0xff] }
0x4b41   :  { %13835 = vrcp.f32 %v8032_v14  ;;  %v17902_v14 = vld [vmem:[#allocation36_spill] sm:$0xff] }
0x4b42   :  { %13837 = vrcp.f32 %v8033_v46 }
0x4b4b   :  { %v13836_v59 = vpop.eup %13835 }
0x4b4c   :  { %v13838_v41 = vpop.eup %13837  ;;  %v8038_v13 = vmul.f32 %v13836_v59, %v8024_v56  ;;  %v17910_v59 = vld [vmem:[#allocation21_spill] sm:$0xff] }
0x4b4d   :  { %v8039_v20 = vmul.f32 %v13838_v41, %v8025_v34  ;;  %v17899_v34 = vld [vmem:[#allocation31_spill] sm:$0xff]  ;;  %v17911_v41 = vld [vmem:[#allocation48_spill] sm:$0xff] }
0x4b4e   :  { %8114 = vrot.lane.b32.xlu0 %v8038_v13, %s13911_s26  ;;  %9809 = vmatmul.mubr.msk.f32.vlgmr.msra.gmra.mrb[82].mxu1 %vm421_vm0, %v8038_v13 }
0x4b4f   :  { %v13642_v48 = vpack.i.bf16 %v8039_v20, %v8038_v13  ;;  %13261 = vmatpush1.bf16.msra.mxu1 %v14199_v25  ;;  %8253 = vmatprep.mubr.f32.mxu1 %v17384_v15 }
0x4b50   :  { %13263 = vmatprep.subr.bf16.mxu1 %v14201_v30 }
0x4b51   :  { %13643 = vrot.lane.b32.xlu1 %v13642_v48, %s13912_s2  ;;  %v17912_v48 = vld [vmem:[#allocation50_spill] sm:$0xff] }
0x4b53   :  { %13265 = vmatpush1.bf16.msra.mxu1 %v14212_v37 }
0x4b54   :  { %13291 = vmatprep.subr.bf16.mxu1 %v14331_v58 }
0x4bc0   :  { %v8115_v46 = vpop.permute.xlu0 %8114 }
0x4bc1   :  { %9810 = vmatmul.mubr.msk.f32.vlgmr.msra.gmra.mrb[80].mxu0 %vm421_vm0, %v8115_v46  ;;  %9811 = vmatmul.mubr.msk.f32.vlgmr.msra.gmra.mrb[84].mxu1 %vm421_vm0, %v8115_v46  ;;  %v17913_v46 = vld [vmem:[#allocation22_spill] sm:$0xff] }
0x4bc2   :  { %13268 = vmatpush3.bf16.msra.mxu0 %v14224_v42  ;;  %11690 = vmatprep.mubr.msk.f32.mxu0 %vm13913_vm1, %v17384_v15 }
0x4bc3   :  { %13269 = vmatprep.subr.bf16.mxu0 %v17397_v36  ;;  %13293 = vmatpush3.bf16.msra.mxu1 %v14342_v0  ;;  %v13644_v56 = vpop.permute.xlu1 %13643 }
0x4bc4   :  { %13295 = vmatprep.subr.bf16.mxu1 %v14369_v19  ;;  %v13646_v13 = vunpack.i.h.bf16 %v13644_v56  ;;  %v13645_v20 = vunpack.i.l.bf16 %v13644_v56  ;;  %v17920_v56 = vld [vmem:[#allocation32_spill] sm:$0xff] }
0x4bc6   :  { %13271 = vmatpush3.bf16.msra.mxu0 %v17895_v35 }
0x4bc7   :  { %13272 = vmatprep.subr.bf16.mxu0 %v17397_v36  ;;  %13297 = vmatpush3.bf16.msra.mxu1 %v17896_v49 }
0x4bc8   :  { %13299 = vmatprep.subr.bf16.mxu1 %v17897_v51 }
0x4bca   :  { %13274 = vmatpush3.bf16.msra.mxu0 %v17898_v28 }
0x4bcb   :  { %13275 = vmatprep.subr.bf16.mxu0 %v17397_v36  ;;  %13301 = vmatpush3.bf16.msra.mxu1 %v17899_v34 }
0x4bcc   :  { %13303 = vmatprep.subr.bf16.mxu1 %v17900_v60 }
0x4bce   :  { %13277 = vmatpush3.bf16.msra.mxu0 %v17901_v26 }
0x4bcf   :  { %13278 = vmatprep.subr.bf16.mxu0 %v17397_v36  ;;  %13305 = vmatpush3.bf16.msra.mxu1 %v17902_v14 }
0x4bd0   :  { %13307 = vmatprep.subr.bf16.mxu1 %v17903_v57 }
0x4bd2   :  { %13280 = vmatpush3.bf16.msra.mxu0 %v17904_v27 }
0x4bd3   :  { %13281 = vmatprep.subr.bf16.mxu0 %v17397_v36  ;;  %13309 = vmatpush3.bf16.msra.mxu1 %v17905_v63  ;;  %v17918_v63 = vld [vmem:[#allocation28_spill] sm:$0xff] }
0x4bd4   :  { %13311 = vmatprep.subr.bf16.mxu1 %v17906_v39  ;;  %v17915_v39 = vld [vmem:[#allocation51_spill] sm:$0xff] }
0x4bd6   :  { %13283 = vmatpush3.bf16.msra.mxu0 %v17907_v3  ;;  %v17914_v3 = vld [vmem:[#allocation24_spill] sm:$0xff] }
0x4bd7   :  { %13284 = vmatprep.subr.bf16.mxu0 %v17397_v36  ;;  %13313 = vmatpush3.bf16.msra.mxu1 %v17908_v33  ;;  %v8265_v33 = vsel %vm674_vm2, %v13645_v20, %v13646_v13  ;;  %v17925_v13 = vld [vmem:[#allocation41_spill] sm:$0xff]  ;;  %v17926_v20 = vld [vmem:[#allocation43_spill] sm:$0xff] }
0x4bd8   :  { %13315 = vmatprep.subr.bf16.mxu1 %v17909_v61  ;;  %v17916_v61 = vld [vmem:[#allocation54_spill] sm:$0xff] }
0x4bda   :  { %13286 = vmatpush3.bf16.msra.mxu0 %v17910_v59  ;;  %v17917_v59 = vld [vmem:[#allocation25_spill] sm:$0xff] }
0x4bdb   :  { %13287 = vmatprep.subr.bf16.mxu0 %v17397_v36  ;;  %13317 = vmatpush3.bf16.msra.mxu1 %v17911_v41  ;;  %v17919_v41 = vld [vmem:[#allocation29_spill] sm:$0xff] }
0x4bdc   :  { %13319 = vmatprep.subr.bf16.mxu1 %v17912_v48  ;;  %v17921_v48 = vld [vmem:[#allocation33_spill] sm:$0xff] }
0x4bde   :  { %13289 = vmatpush3.bf16.msra.mxu0 %v17913_v46  ;;  %v17922_v46 = vld [vmem:[#allocation35_spill] sm:$0xff] }
0x4bdf   :  { %13323 = vmatprep.subr.bf16.mxu0 %v17914_v3  ;;  %13321 = vmatpush3.bf16.msra.mxu1 %v17915_v39  ;;  %v17923_v3 = vld [vmem:[#allocation37_spill] sm:$0xff]  ;;  %v17924_v39 = vld [vmem:[#allocation39_spill] sm:$0xff] }
0x4be0   :  { %13355 = vmatprep.subr.bf16.mxu1 %v17916_v61 }
0x4be1   :  { %11691 = vmatmul.mubr.f32.vlgmr.msra.gmra.mrb[82].mxu0 %v8265_v33  ;;  %v17927_v33 = vld [vmem:[#allocation45_spill] sm:$0xff] }
0x4be2   :  { %13325 = vmatpush3.bf16.msra.mxu0 %v17917_v59  ;;  %v17928_v59 = vld [vmem:[#allocation47_spill] sm:$0xff] }
0x4be3   :  { %13327 = vmatprep.subr.bf16.mxu0 %v17918_v63  ;;  %v17929_v63 = vld [vmem:[#allocation49_spill] sm:$0xff] }
0x4be6   :  { %13329 = vmatpush3.bf16.msra.mxu0 %v17919_v41  ;;  %v17930_v41 = vld [vmem:[#allocation52_spill] sm:$0xff] }
0x4be7   :  { %13331 = vmatprep.subr.bf16.mxu0 %v17920_v56  ;;  %v17931_v56 = vld [vmem:[#allocation53_spill] sm:$0xff] }
0x4bea   :  { %13333 = vmatpush3.bf16.msra.mxu0 %v17921_v48  ;;  %v17932_v48 = vld [vmem:[#allocation6_spill] sm:$0xff] }
0x4beb   :  { %13335 = vmatprep.subr.bf16.mxu0 %v17922_v46 }
0x4bee   :  { %13337 = vmatpush3.bf16.msra.mxu0 %v17923_v3 }
0x4bef   :  { %13339 = vmatprep.subr.bf16.mxu0 %v17924_v39 }
0x4bf2   :  { %13341 = vmatpush3.bf16.msra.mxu0 %v17925_v13 }
0x4bf3   :  { %13343 = vmatprep.subr.bf16.mxu0 %v17926_v20 }
0x4bf6   :  { %13345 = vmatpush3.bf16.msra.mxu0 %v17927_v33 }
0x4bf7   :  { %13347 = vmatprep.subr.bf16.mxu0 %v17928_v59  ;;  %v16741_v59 = vld [vmem:[%s17131_s11] ss:$0 sm:$0xff] }
0x4bf8   :  { %17933 = vst [vmem:[#allocation60_spill] sm:$0xff] %v16741_v59 }
0x4bfa   :  { %13349 = vmatpush3.bf16.msra.mxu0 %v17929_v63 }
0x4bfb   :  { %13351 = vmatprep.subr.bf16.mxu0 %v17930_v41 }
0x4bfe   :  { %13353 = vmatpush3.bf16.msra.mxu0 %v17931_v56 }
0x4bff   :  { %13387 = vmatprep.subr.bf16.mxu0 %v17932_v48 }
0x4c21   :  { %v8109_v46 = vpop.f32.mrb[82].mxu1 }
0x4c22   :  { %v8111_v3 = vpop.f32.mrb[83].mxu1 }
0x4c94   :  { %v8184_v61 = vpop.f32.mrb[80].mxu0  ;;  %v16736_v39 = vpop.f32.mrb[84].mxu1 }
0x4c95   :  { %v8186_v13 = vpop.f32.mrb[81].mxu0  ;;  %v8257_v27 = vpop.f32.mrb[85].mxu1 }
0x4cb4   :  { %v8333_v20 = vpop.f32.mrb[82].mxu0 }
0x4cb5   :  { %v8334_v63 = vadd.f32 %v16741_v59, %v8333_v20  ;;  %v11692_v41 = vpop.f32.mrb[83].mxu0 }
0x4cb7   :  { %v9812_v33 = vmul.f32 -1.442695, %v8334_v63 }
0x4cb9   :  { %13839 = vpow2.f32 %v9812_v33  ;;  %v9804_v33 = vld [vmem:[%s17377_s4 + $0x50] sm:$0xff] }
0x4cba   :  { %v8466_v19 = vcombine.high %v9804_v33, %v9804_v33 }
0x4cc3   :  { %v13840_v56 = vpop.eup %13839 }
0x4cc4   :  { %v8340_v48 = vadd.f32 1.0, %v13840_v56  ;;  %v17934_v56 = vmov 0  }
0x4cc6   :  { %13841 = vrcp.f32 %v8340_v48  ;;  %v8473_v48 = vrot.slane %v9804_v33, %v17429_v11 }
0x4cc8   :  { %v8481_v60 = vcombine.high %v8473_v48, %v8473_v48 }
0x4cd0   :  { %v16744_v57 = vpop.eup %13841 }
0x4cd1   :  { %8344 = vrot.lane.b32.xlu0 %v16744_v57, %s13915_s30 }
0x4cd5   :  { %8365 = vrot.lane.b32.xlu0 %v16646_v52, %s13917_s13 }
0x4cd9   :  { %8371 = vrot.lane.b32.xlu0 %v16646_v52, %s13919_s27 }
0x4cdd   :  { %8377 = vrot.lane.b32.xlu0 %v16646_v52, %s13920_s20 }
0x4ce1   :  { %8383 = vrot.lane.b32.xlu0 %v16646_v52, %s13918_s24 }
0x4d43   :  { %v8345_v63 = vpop.permute.xlu0 %8344 }
0x4d44   :  { %v8347_v41 = vmul.f32 %v16744_v57, %v8345_v63  ;;  %v8185_v63 = vadd.f32 %v8184_v61, %v17488_v10 }
0x4d46   :  { %8350 = vperm.xlu1 %13647, %v8347_v41   ;;  %v17935_v41 = vld [vmem:[#allocation59_spill] sm:$0xff] }
0x4d47   :  { %v8366_v20 = vpop.permute.xlu0 %8365  ;;  %v8187_v59 = vadd.f32 %v8186_v13, %v17935_v41 }
0x4d48   :  { %v8386_v49 = vsel %vm281_vm4, %v16646_v52, %v8366_v20  ;;  %v8480_v20 = vrot.slane %v8466_v19, %v17429_v11 }
0x4d4a   :  { %8368 = vrot.lane.b32.xlu1 %v16646_v52, %s13921_s21 }
0x4d4b   :  { %13648 = vset.pattern.permute.xlu1 %v17934_v56  ;;  %v8372_v26 = vpop.permute.xlu0 %8371 }
0x4d4e   :  { %8374 = vrot.lane.b32.xlu1 %v16646_v52, %s13912_s2 }
0x4d52   :  { %8380 = vrot.lane.b32.xlu1 %v16646_v52, %s13911_s26 }
0x4dc5   :  { %v8351_v14 = vpop.permute.xlu1 %8350 }
0x4dc6   :  { %v8358_v56 = vmul.f32 %v8351_v14, %v8187_v59  ;;  %v8357_v34 = vmul.f32 %v8351_v14, %v8185_v63  ;;  %v8110_v59 = vadd.f32 %v8109_v46, %v17432_v45  ;;  %v8112_v63 = vadd.f32 %v8111_v3, %v17433_v29 }
0x4dc7   :  { %v8482_v46 = vcombine.high %v8480_v20, %v8480_v20 }
0x4dc8   :  { %v16771_v28 = vadd.f32 %v8358_v56, %v16577_v12  ;;  %v16774_v51 = vadd.f32 %v8357_v34, %v16580_v9  ;;  %v8258_v12 = vadd.f32 %v8257_v27, %v17434_v22  ;;  %v8378_v56 = vpop.permute.xlu0 %8377  ;;  %v8353_v52 = vmul.f32 %v8351_v14, %v8110_v59 }
0x4dc9   :  { %v8369_v35 = vpop.permute.xlu1 %8368 }
0x4dca   :  { %v8387_v61 = vsel %vm421_vm0, %v8386_v49, %v8369_v35  ;;  %v8488_v13 = vmul.f32 %v8481_v60, %v16771_v28  ;;  %v8487_v41 = vmul.f32 %v8473_v48, %v16774_v51  ;;  %v8354_v49 = vmul.f32 %v8351_v14, %v8112_v63  ;;  %v17936_v63 = vld [vmem:[#allocation10_spill] sm:$0xff] }
0x4dcb   :  { %v8388_v34 = vsel %vm1544_vm5, %v8387_v61, %v8372_v26  ;;  %v8360_v60 = vmul.f32 %v8351_v14, %v8258_v12  ;;  %v16792_v26 = vadd.f32 %v8353_v52, %v16598_v17  ;;  %v8256_v17 = vadd.f32 %v16736_v39, %v17546_v4  ;;  %v17937_v39 = vld [vmem:[#allocation11_spill] sm:$0xff]  ;;  %v17938_v12 = vld [vmem:[#allocation13_spill] sm:$0xff] }
0x4dcc   :  { %8555 = vmatprep.mubr.f32.mxu0 %v8488_v13  ;;  %v8384_v33 = vpop.permute.xlu0 %8383  ;;  %v16796_v48 = vadd.f32 %v8354_v49, %v16602_v40 }
0x4dcd   :  { %v8375_v9 = vpop.permute.xlu1 %8374  ;;  %8556 = vmatmul.mubr.f32.vlgmr.msra.gmra.mrb[84].mxu0 %v8487_v41  ;;  %v16799_v41 = vadd.f32 %v8360_v60, %v16605_v50  ;;  %v8359_v40 = vmul.f32 %v8351_v14, %v8256_v17  ;;  %v17939_v14 = vld [vmem:[#allocation14_spill] sm:$0xff] }
0x4dce   :  { %v8389_v35 = vsel %vm674_vm2, %v8388_v34, %v8375_v9  ;;  %13389 = vmatpush1.bf16.msra.mxu0 %v14059_v6  ;;  %8761 = vmatprep.mubr.f32.mxu0 %v17384_v15 }
0x4dcf   :  { %13391 = vmatprep.subr.bf16.mxu0 %v14081_v23  ;;  %v8390_v3 = vsel %vm1547_vm6, %v8389_v35, %v8378_v56  ;;  %v8490_v13 = vmul.f32 %v8482_v46, %v16799_v41  ;;  %v16822_v50 = vadd.f32 %v8359_v40, %v16628_v54 }
0x4dd1   :  { %v8381_v27 = vpop.permute.xlu1 %8380  ;;  %v8489_v59 = vmul.f32 %v8480_v20, %v16822_v50 }
0x4dd2   :  { %v8391_v19 = vsel %vm1549_vm7, %v8390_v3, %v8381_v27 }
0x4dd3   :  { %v8392_v6 = vsel %vm1551_vm8, %v8391_v19, %v8384_v33 }
0x4dd4   :  { %v8393_v23 = vmul.f32 %v8392_v6, %v16792_v26  ;;  %v8394_v61 = vmul.f32 %v8392_v6, %v16796_v48 }
0x4dd6   :  { %8459 = vmatprep.mubr.f32.mxu1 %v8394_v61 }
0x4dd7   :  { %8460 = vmatmul.mubr.f32.vlgmr.msra.gmra.mrb[86].mxu1 %v8393_v23 }
0x4dd8   :  { %13357 = vmatpush3.bf16.msra.mxu1 %v14716_v21  ;;  %8625 = vmatprep.mubr.f32.mxu1 %v8490_v13 }
0x4dd9   :  { %13359 = vmatprep.subr.bf16.mxu1 %v14724_v7 }
0x4ddc   :  { %13361 = vmatpush3.bf16.msra.mxu1 %v14740_v53 }
0x4ddd   :  { %13363 = vmatprep.subr.bf16.mxu1 %v14743_v32 }
0x4de0   :  { %13365 = vmatpush3.bf16.msra.mxu1 %v14761_v44 }
0x4de1   :  { %13367 = vmatprep.subr.bf16.mxu1 %v17435_v43 }
0x4de4   :  { %13369 = vmatpush3.bf16.msra.mxu1 %v17436_v16 }
0x4de5   :  { %13371 = vmatprep.subr.bf16.mxu1 %v17437_v5 }
0x4de8   :  { %13373 = vmatpush3.bf16.msra.mxu1 %v17438_v38 }
0x4de9   :  { %13375 = vmatprep.subr.bf16.mxu1 %v17490_v62 }
0x4dec   :  { %13377 = vmatpush3.bf16.msra.mxu1 %v17602_v24 }
0x4ded   :  { %13379 = vmatprep.subr.bf16.mxu1 %v17658_v8 }
0x4df0   :  { %13381 = vmatpush3.bf16.msra.mxu1 %v17714_v31 }
0x4df1   :  { %13383 = vmatprep.subr.bf16.mxu1 %v17770_v47 }
0x4df4   :  { %13385 = vmatpush3.bf16.msra.mxu1 %v17881_v18 }
0x4df5   :  { %13399 = vmatprep.subr.bf16.mxu1 %v17936_v63 }
0x4df7   :  { %8626 = vmatmul.mubr.f32.vlgmr.msra.gmra.mrb[88].mxu1 %v8489_v59 }
0x4df8   :  { %13401 = vmatpush1.bf16.msra.mxu1 %v17937_v39  ;;  %8942 = vmatprep.mubr.f32.mxu1 %v17384_v15 }
0x4df9   :  { %13403 = vmatprep.subr.bf16.mxu1 %v17938_v12 }
0x4dfc   :  { %13405 = vmatpush1.bf16.msra.mxu1 %v17939_v14 }
0x4dfd   :  { %13414 = vmatprep.subr.bf16.mxu1 %v17397_v36 }
0x4ea0   :  { %v11136_v56 = vpop.f32.mrb[84].mxu0 }
0x4ea1   :  { %v11137_v54 = vpop.f32.mrb[85].mxu0 }
0x4ea2   :  { %v11138_v9 = vadd.f32 %v11137_v54, %v11136_v56 }
0x4eaa   :  { %v11101_v34 = vpop.f32.mrb[86].mxu1 }
0x4eab   :  { %v11102_v52 = vpop.f32.mrb[87].mxu1 }
0x4eac   :  { %v11103_v35 = vadd.f32 %v11102_v52, %v11101_v34 }
0x4eae   :  { %v8631_v33 = vmul.f32 %v16744_v57, %v11103_v35 }
0x4eca   :  { %v11171_v20 = vpop.f32.mrb[88].mxu1 }
0x4ecb   :  { %v11172_v49 = vpop.f32.mrb[89].mxu1 }
0x4ecc   :  { %v11173_v60 = vadd.f32 %v11172_v49, %v11171_v20  ;;  %v17940_v20 = vld [vmem:[#allocation7_spill] sm:$0xff] }
0x4ece   :  { %v8628_v27 = vadd.f32 %v11173_v60, %v11138_v9  ;;  %v16847_v9 = vld [vmem:[%s17136_s16] ss:$0 sm:$0xff]  ;;  %v17941_v60 = vld [vmem:[#allocation8_spill] sm:$0xff] }
0x4ed0   :  { %8633 = vrot.lane.b32.xlu1 %v8628_v27, %s13917_s13  ;;  %v17942_v27 = vld [vmem:[#allocation9_spill] sm:$0xff] }
0x4f42   :  { %v8634_v3 = vpop.permute.xlu1 %8633 }
0x4f43   :  { %v8636_v46 = vmul.f32 %v16744_v57, %v8634_v3  ;;  %v16841_v57 = vld [vmem:[%s17135_s15] ss:$0 sm:$0xff]  ;;  %v17943_v3 = vld [vmem:[#allocation12_spill] sm:$0xff] }
0x4f45   :  { %8638 = vrot.lane.b32.xlu0 %v8636_v46, %s13918_s24  ;;  %v9814_v46 = vld [vmem:[%s17322_s28 + $0x16] sm:$0x3] }
0x4fb7   :  { %v8639_v19 = vpop.permute.xlu0 %8638 }
0x4fb8   :  { %v8641_v6 = vadd.f32 %v8639_v19, %v8631_v33 }
0x4fba   :  { %v8642_v23 = vsel %vm1024_vm3, %v8641_v6, 0.0 }
0x4fbb   :  { %8643 = vadd.xlane.f32.xlu1 %v8642_v23 }
0x5048   :  { %v8644_v61 = vpop.xlane.xlu1 %8643 }
0x5049   :  { %v8645_v13 = vmul.f32 0.0625, %v8644_v61  ;;  %v17944_v61 = vmov 1  }
0x504b   :  { %v8646_v17 = vsub.f32 %v8641_v6, %v8645_v13 }
0x504d   :  { %v8647_v40 = vmul.f32 %v8646_v17, %v8646_v17 }
0x504f   :  { %v8648_v59 = vsel %vm1024_vm3, %v8647_v40, 0.0 }
0x5050   :  { %8649 = vadd.xlane.f32.xlu0 %v8648_v59 }
0x50dd   :  { %v8650_v63 = vpop.xlane.xlu0 %8649 }
0x50de   :  { %v8651_v39 = vmul.f32 0.0625, %v8650_v63 }
0x50e0   :  { %v8652_v12 = vadd.f32 1e-05, %v8651_v39 }
0x50e2   :  { %13843 = vrsqrt.f32 %v8652_v12 }
0x50ec   :  { %v13844_v14 = vpop.eup %13843 }
0x50ed   :  { %v8654_v56 = vmul.f32 %v13844_v14, %v8646_v17 }
0x50ef   :  { %v8655_v54 = vmul.f32 %v16841_v57, %v8654_v56 }
0x50f1   :  { %v16850_v34 = vadd.f32 %v16847_v9, %v8655_v54  ;;  %v17945_v54 = vmov 32  }
0x50f3   :  { %8657 = vst.msk [vmem:[#allocation2 + $0x14] sm:$0x3] %vm1024_vm3, %v16850_v34  ;;  %9817 = vmatmul.mubr.msk.f32.vlgmr.msra.gmra.mrb[86].mxu0 %vm281_vm4, %v16850_v34  ;;  %v8664_v52 = vsel %vm1024_vm3, %v16850_v34, 0.0  ;;  %v8669_v35 = vmul.f32 %v16850_v34, %v16850_v34 }
0x50f4   :  { %8665 = vadd.xlane.f32.xlu0 %v8664_v52  ;;  %13393 = vmatpush1.bf16.msra.mxu0 %v17940_v20  ;;  %v9816_v52 = vld.sshfl [vmem:[%s17332_s3 + $0x2c] sm:$0x33 pattern:$0x76325410] }
0x50f5   :  { %v8670_v49 = vsel %vm1024_vm3, %v8669_v35, 0.0  ;;  %13395 = vmatprep.subr.bf16.mxu0 %v17941_v60  ;;  %8867 = vmatprep.mubr.f32.mxu0 %v17384_v15  ;;  %v8691_v20 = vcombine.high %v9816_v52, %v9816_v52 }
0x50f6   :  { %8671 = vadd.xlane.f32.xlu1 %v8670_v49  ;;  %v17946_v49 = vld [vmem:[#allocation15_spill] sm:$0xff] }
0x50f8   :  { %13397 = vmatpush1.bf16.msra.mxu0 %v17942_v27 }
0x50f9   :  { %13407 = vmatprep.subr.bf16.mxu0 %v17943_v3 }
0x5181   :  { %v8666_v33 = vpop.xlane.xlu0 %8665 }
0x5182   :  { %v8667_v19 = vmul.f32 0.020833334, %v8666_v33 }
0x5183   :  { %v8672_v40 = vpop.xlane.xlu1 %8671 }
0x5184   :  { %v8668_v6 = vadd.f32 %v9814_v46, %v8667_v19  ;;  %v8673_v59 = vmul.f32 0.020833334, %v8672_v40 }
0x5186   :  { %v8675_v23 = vmul.f32 %v8668_v6, %v8668_v6  ;;  %8770 = vperm.xlu1 %13648, %v8668_v6   ;;  %v8674_v63 = vadd.f32 %v9814_v46, %v8673_v59 }
0x5188   :  { %8677 = vrot.lane.b32.xlu0 %v8675_v23, %s13908_s29 }
0x518a   :  { %13649 = vset.pattern.permute.xlu1 %v17944_v61 }
0x51c6   :  { %v8763_v13 = vpop.f32.mrb[86].mxu0 }
0x51c7   :  { %v8765_v17 = vpop.f32.mrb[87].mxu0  ;;  %v8764_v3 = vadd.f32 %v9816_v52, %v8763_v13 }
0x51c8   :  { %v8766_v46 = vadd.f32 %v8765_v17, %v8691_v20  ;;  %v17953_v20 = vld [vmem:[#allocation34_spill] sm:$0xff] }
0x51fa   :  { %v8678_v39 = vpop.permute.xlu0 %8677 }
0x51fb   :  { %v8680_v12 = vsub.f32 %v8674_v63, %v8678_v39 }
0x51fd   :  { %v8681_v14 = vadd.f32 1e-05, %v8680_v12 }
0x51ff   :  { %13845 = vrsqrt.f32 %v8681_v14 }
0x5205   :  { %v8771_v35 = vpop.permute.xlu1 %8770 }
0x5206   :  { %v8773_v60 = vmul.f32 %v8771_v35, %v17946_v49  ;;  %v8774_v27 = vmul.f32 %v8771_v35, %v14172_v55  ;;  %v17951_v35 = vld [vmem:[#allocation17_spill] sm:$0xff]  ;;  %v17954_v49 = vld [vmem:[#allocation18_spill] sm:$0xff] }
0x5208   :  { %v8775_v33 = vsub.f32 %v8764_v3, %v8773_v60  ;;  %v8776_v19 = vsub.f32 %v8766_v46, %v8774_v27  ;;  %v17956_v60 = vld [vmem:[#allocation38_spill] sm:$0xff]  ;;  %v17957_v27 = vld [vmem:[#allocation19_spill] sm:$0xff]  ;;  %v17958_v3 = vld [vmem:[#allocation40_spill] sm:$0xff] }
0x5209   :  { %v13846_v56 = vpop.eup %13845  ;;  %v17959_v46 = vld [vmem:[#allocation42_spill] sm:$0xff] }
0x520a   :  { %8779 = vperm.xlu1 %13649, %v13846_v56  }
0x520e   :  { %13655 = vset.pattern.permute.xlu1 %v17945_v54 }
0x5289   :  { %v8780_v6 = vpop.permute.xlu1 %8779 }
0x528a   :  { %v8782_v23 = vmul.f32 %v8780_v6, %v8775_v33  ;;  %v8783_v61 = vmul.f32 %v8780_v6, %v8776_v19  ;;  %v17960_v33 = vld [vmem:[#allocation20_spill] sm:$0xff]  ;;  %v17962_v6 = vld [vmem:[#allocation46_spill] sm:$0xff] }
0x528b   :  { %v17961_v19 = vld [vmem:[#allocation44_spill] sm:$0xff] }
0x528c   :  { %v8784_v40 = vadd.f32 %v8782_v23, %v14180_v1  ;;  %v8785_v59 = vadd.f32 %v8783_v61, %v14183_v2  ;;  %v17963_v61 = vld [vmem:[#allocation21_spill] sm:$0xff] }
0x528e   :  { %v9818_v63 = vmul.f32 -1.442695, %v8784_v40  ;;  %v9819_v39 = vmul.f32 -1.442695, %v8785_v59 }
0x5290   :  { %13847 = vpow2.f32 %v9818_v63 }
0x5291   :  { %13849 = vpow2.f32 %v9819_v39  ;;  %v17965_v39 = vld [vmem:[#allocation50_spill] sm:$0xff] }
0x529a   :  { %v13848_v12 = vpop.eup %13847 }
0x529b   :  { %v13850_v14 = vpop.eup %13849  ;;  %v8792_v56 = vadd.f32 1.0, %v13848_v12  ;;  %v17966_v12 = vld [vmem:[#allocation22_spill] sm:$0xff] }
0x529c   :  { %v8793_v54 = vadd.f32 1.0, %v13850_v14  ;;  %v17967_v14 = vld [vmem:[#allocation24_spill] sm:$0xff] }
0x529d   :  { %13851 = vrcp.f32 %v8792_v56  ;;  %v17968_v56 = vld [vmem:[#allocation51_spill] sm:$0xff] }
0x529e   :  { %13853 = vrcp.f32 %v8793_v54 }
0x52a7   :  { %v13852_v55 = vpop.eup %13851 }
0x52a8   :  { %v13854_v13 = vpop.eup %13853  ;;  %v8798_v17 = vmul.f32 %v13852_v55, %v8784_v40  ;;  %v17964_v40 = vld [vmem:[#allocation48_spill] sm:$0xff]  ;;  %v17969_v55 = vld [vmem:[#allocation54_spill] sm:$0xff] }
0x52a9   :  { %v8799_v52 = vmul.f32 %v13854_v13, %v8785_v59  ;;  %v17970_v13 = vld [vmem:[#allocation25_spill] sm:$0xff] }
0x52aa   :  { %8874 = vrot.lane.b32.xlu0 %v8798_v17, %s13911_s26  ;;  %9820 = vmatmul.mubr.msk.f32.vlgmr.msra.gmra.mrb[88].mxu0 %vm421_vm0, %v8798_v17 }
0x52ab   :  { %v13650_v1 = vpack.i.bf16 %v8799_v52, %v8798_v17  ;;  %13409 = vmatpush1.bf16.msra.mxu0 %v14199_v25  ;;  %9013 = vmatprep.mubr.f32.mxu0 %v17384_v15  ;;  %v17947_v25 = vld [vmem:[#allocation26_spill] sm:$0xff]  ;;  %v17971_v17 = vld [vmem:[#allocation28_spill] sm:$0xff]  ;;  %v17972_v52 = vld [vmem:[#allocation29_spill] sm:$0xff] }
0x52ac   :  { %13411 = vmatprep.subr.bf16.mxu0 %v14201_v30  ;;  %v17948_v30 = vld [vmem:[#allocation16_spill] sm:$0xff] }
0x52ad   :  { %13651 = vrot.lane.b32.xlu1 %v13650_v1, %s13912_s2  ;;  %v17973_v1 = vld [vmem:[#allocation32_spill] sm:$0xff] }
0x52af   :  { %13413 = vmatpush1.bf16.msra.mxu0 %v14212_v37  ;;  %v17949_v37 = vld [vmem:[#allocation27_spill] sm:$0xff] }
0x52b0   :  { %13439 = vmatprep.subr.bf16.mxu0 %v14331_v58  ;;  %v17950_v58 = vld [vmem:[#allocation30_spill] sm:$0xff] }
0x531c   :  { %v8875_v2 = vpop.permute.xlu0 %8874 }
0x531d   :  { %9821 = vmatmul.mubr.msk.f32.vlgmr.msra.gmra.mrb[90].mxu1 %vm421_vm0, %v8875_v2  ;;  %9822 = vmatmul.mubr.msk.f32.vlgmr.msra.gmra.mrb[90].mxu0 %vm421_vm0, %v8875_v2  ;;  %v17974_v2 = vld [vmem:[#allocation33_spill] sm:$0xff] }
0x531e   :  { %13416 = vmatpush3.bf16.msra.mxu1 %v14224_v42  ;;  %11725 = vmatprep.mubr.msk.f32.mxu1 %vm13913_vm1, %v17384_v15  ;;  %v17952_v42 = vld [vmem:[#allocation31_spill] sm:$0xff] }
0x531f   :  { %13417 = vmatprep.subr.bf16.mxu1 %v17397_v36  ;;  %13441 = vmatpush3.bf16.msra.mxu0 %v14342_v0  ;;  %v17955_v0 = vld [vmem:[#allocation36_spill] sm:$0xff]  ;;  %v13652_v23 = vpop.permute.xlu1 %13651 }
0x5320   :  { %13443 = vmatprep.subr.bf16.mxu0 %v17947_v25  ;;  %v13654_v59 = vunpack.i.h.bf16 %v13652_v23  ;;  %v13653_v63 = vunpack.i.l.bf16 %v13652_v23  ;;  %v17975_v25 = vld [vmem:[#allocation35_spill] sm:$0xff] }
0x5322   :  { %13419 = vmatpush3.bf16.msra.mxu1 %v17948_v30  ;;  %v9025_v54 = vsel %vm674_vm2, %v13653_v63, %v13654_v59  ;;  %v17976_v30 = vld [vmem:[#allocation37_spill] sm:$0xff] }
0x5323   :  { %13420 = vmatprep.subr.bf16.mxu1 %v17397_v36  ;;  %13445 = vmatpush3.bf16.msra.mxu0 %v17949_v37  ;;  %v17977_v37 = vld [vmem:[#allocation39_spill] sm:$0xff] }
0x5324   :  { %13447 = vmatprep.subr.bf16.mxu0 %v17950_v58  ;;  %v17978_v58 = vld [vmem:[#allocation41_spill] sm:$0xff] }
0x5326   :  { %13422 = vmatpush3.bf16.msra.mxu1 %v17951_v35  ;;  %v17979_v35 = vld [vmem:[#allocation43_spill] sm:$0xff] }
0x5327   :  { %13423 = vmatprep.subr.bf16.mxu1 %v17397_v36  ;;  %13449 = vmatpush3.bf16.msra.mxu0 %v17952_v42  ;;  %v17980_v42 = vld [vmem:[#allocation45_spill] sm:$0xff] }
0x5328   :  { %13451 = vmatprep.subr.bf16.mxu0 %v17953_v20  ;;  %v17981_v20 = vld [vmem:[#allocation47_spill] sm:$0xff] }
0x532a   :  { %13425 = vmatpush3.bf16.msra.mxu1 %v17954_v49  ;;  %v17982_v49 = vld [vmem:[#allocation49_spill] sm:$0xff] }
0x532b   :  { %13426 = vmatprep.subr.bf16.mxu1 %v17397_v36  ;;  %13453 = vmatpush3.bf16.msra.mxu0 %v17955_v0  ;;  %v17983_v0 = vld [vmem:[#allocation52_spill] sm:$0xff] }
0x532c   :  { %13455 = vmatprep.subr.bf16.mxu0 %v17956_v60  ;;  %v17984_v60 = vld [vmem:[#allocation53_spill] sm:$0xff] }
0x532e   :  { %13428 = vmatpush3.bf16.msra.mxu1 %v17957_v27 }
0x532f   :  { %13429 = vmatprep.subr.bf16.mxu1 %v17397_v36  ;;  %13457 = vmatpush3.bf16.msra.mxu0 %v17958_v3 }
0x5330   :  { %13459 = vmatprep.subr.bf16.mxu0 %v17959_v46 }
0x5332   :  { %13431 = vmatpush3.bf16.msra.mxu1 %v17960_v33 }
0x5333   :  { %13432 = vmatprep.subr.bf16.mxu1 %v17397_v36  ;;  %13461 = vmatpush3.bf16.msra.mxu0 %v17961_v19 }
0x5334   :  { %13463 = vmatprep.subr.bf16.mxu0 %v17962_v6 }
0x5336   :  { %13434 = vmatpush3.bf16.msra.mxu1 %v17963_v61  ;;  %v17985_v61 = vld [vmem:[#allocation60_spill] sm:$0xff] }
0x5337   :  { %13435 = vmatprep.subr.bf16.mxu1 %v17397_v36  ;;  %13465 = vmatpush3.bf16.msra.mxu0 %v17964_v40 }
0x5338   :  { %13467 = vmatprep.subr.bf16.mxu0 %v17965_v39 }
0x533a   :  { %13437 = vmatpush3.bf16.msra.mxu1 %v17966_v12 }
0x533b   :  { %13471 = vmatprep.subr.bf16.mxu1 %v17967_v14  ;;  %13469 = vmatpush3.bf16.msra.mxu0 %v17968_v56 }
0x533c   :  { %13503 = vmatprep.subr.bf16.mxu0 %v17969_v55 }
0x533d   :  { %11726 = vmatmul.mubr.f32.vlgmr.msra.gmra.mrb[92].mxu1 %v9025_v54 }
0x533e   :  { %13473 = vmatpush3.bf16.msra.mxu1 %v17970_v13  ;;  %v9815_v13 = vld [vmem:[%s17377_s4 + $0x58] sm:$0xff] }
0x533f   :  { %13475 = vmatprep.subr.bf16.mxu1 %v17971_v17  ;;  %v9233_v17 = vrot.slane %v9815_v13, %v17429_v11 }
0x5342   :  { %13477 = vmatpush3.bf16.msra.mxu1 %v17972_v52 }
0x5343   :  { %13479 = vmatprep.subr.bf16.mxu1 %v17973_v1  ;;  %v17986_v1 = vld [vmem:[#allocation59_spill] sm:$0xff] }
0x5346   :  { %13481 = vmatpush3.bf16.msra.mxu1 %v17974_v2 }
0x5347   :  { %13483 = vmatprep.subr.bf16.mxu1 %v17975_v25 }
0x534a   :  { %13485 = vmatpush3.bf16.msra.mxu1 %v17976_v30 }
0x534b   :  { %13487 = vmatprep.subr.bf16.mxu1 %v17977_v37 }
0x534e   :  { %13489 = vmatpush3.bf16.msra.mxu1 %v17978_v58  ;;  %v9241_v58 = vcombine.high %v9233_v17, %v9233_v17 }
0x534f   :  { %13491 = vmatprep.subr.bf16.mxu1 %v17979_v35 }
0x5352   :  { %13493 = vmatpush3.bf16.msra.mxu1 %v17980_v42  ;;  %v9422_v42 = vld [vmem:[%s17134_s14] sm:$0xff] }
0x5353   :  { %13495 = vmatprep.subr.bf16.mxu1 %v17981_v20  ;;  %v9423_v20 = vld [vmem:[%s17134_s14 + $0x8] sm:$0xff] }
0x5356   :  { %13497 = vmatpush3.bf16.msra.mxu1 %v17982_v49 }
0x5357   :  { %13499 = vmatprep.subr.bf16.mxu1 %v17983_v0 }
0x535a   :  { %13501 = vmatpush3.bf16.msra.mxu1 %v17984_v60 }
0x535b   :  { %13534 = vmatprep.subr.bf16.mxu1 %v17397_v36 }
0x537d   :  { %v8869_v27 = vpop.f32.mrb[88].mxu0 }
0x537e   :  { %v8871_v3 = vpop.f32.mrb[89].mxu0 }
0x53f0   :  { %v8944_v46 = vpop.f32.mrb[90].mxu1  ;;  %v16940_v33 = vpop.f32.mrb[90].mxu0 }
0x53f1   :  { %v8946_v19 = vpop.f32.mrb[91].mxu1  ;;  %v9017_v6 = vpop.f32.mrb[91].mxu0  ;;  %v8945_v52 = vadd.f32 %v8944_v46, %v17488_v10  ;;  %v9226_v46 = vcombine.high %v9815_v13, %v9815_v13 }
0x53f2   :  { %v8947_v2 = vadd.f32 %v8946_v19, %v17986_v1 }
0x5410   :  { %v9093_v23 = vpop.f32.mrb[92].mxu1 }
0x5411   :  { %v9094_v40 = vadd.f32 %v17985_v61, %v9093_v23  ;;  %v11727_v59 = vpop.f32.mrb[93].mxu1 }
0x5412   :  { %v8870_v59 = vadd.f32 %v8869_v27, %v17432_v45 }
0x5413   :  { %v9823_v63 = vmul.f32 -1.442695, %v9094_v40  ;;  %v13535_v40 = vpack.c.bf16 %v9423_v20, %v9422_v42 }
0x5415   :  { %13855 = vpow2.f32 %v9823_v63  ;;  %v8872_v63 = vadd.f32 %v8871_v3, %v17433_v29 }
0x541f   :  { %v13856_v39 = vpop.eup %13855 }
0x5420   :  { %v9100_v12 = vadd.f32 1.0, %v13856_v39  ;;  %v9018_v39 = vadd.f32 %v9017_v6, %v17434_v22  ;;  %v9419_v22 = vld [vmem:[#allocation2] sm:$0xff] }
0x5422   :  { %13857 = vrcp.f32 %v9100_v12 }
0x542c   :  { %v16943_v14 = vpop.eup %13857 }
0x542d   :  { %9104 = vrot.lane.b32.xlu0 %v16943_v14, %s13915_s30 }
0x5431   :  { %9125 = vrot.lane.b32.xlu0 %v16850_v34, %s13917_s13 }
0x5435   :  { %9131 = vrot.lane.b32.xlu0 %v16850_v34, %s13919_s27 }
0x5439   :  { %9137 = vrot.lane.b32.xlu0 %v16850_v34, %s13920_s20 }
0x543d   :  { %9143 = vrot.lane.b32.xlu0 %v16850_v34, %s13918_s24 }
0x549f   :  { %v9105_v56 = vpop.permute.xlu0 %9104 }
0x54a0   :  { %v9107_v54 = vmul.f32 %v16943_v14, %v9105_v56  ;;  %v9240_v56 = vrot.slane %v9226_v46, %v17429_v11 }
0x54a2   :  { %9110 = vperm.xlu1 %13655, %v9107_v54   ;;  %v9242_v6 = vcombine.high %v9240_v56, %v9240_v56 }
0x54a3   :  { %v9126_v55 = vpop.permute.xlu0 %9125 }
0x54a4   :  { %v9146_v0 = vsel %vm281_vm4, %v16850_v34, %v9126_v55 }
0x54a6   :  { %9128 = vrot.lane.b32.xlu1 %v16850_v34, %s13921_s21 }
0x54a7   :  { %v9132_v30 = vpop.permute.xlu0 %9131 }
0x54aa   :  { %9134 = vrot.lane.b32.xlu1 %v16850_v34, %s13912_s2 }
0x54ab   :  { %v9138_v12 = vpop.permute.xlu0 %9137 }
0x54ae   :  { %9140 = vrot.lane.b32.xlu1 %v16850_v34, %s13911_s26 }
0x54af   :  { %v9144_v55 = vpop.permute.xlu0 %9143 }
0x5521   :  { %v16968_v25 = vpop.permute.xlu1 %9110 }
0x5522   :  { %v9118_v37 = vmul.f32 %v16968_v25, %v8947_v2  ;;  %v9117_v35 = vmul.f32 %v16968_v25, %v8945_v52  ;;  %v9113_v34 = vmul.f32 %v16968_v25, %v8870_v59  ;;  %v9114_v45 = vmul.f32 %v16968_v25, %v8872_v63 }
0x5523   :  { %v9120_v29 = vmul.f32 %v16968_v25, %v9018_v39 }
0x5524   :  { %v9122_v10 = vadd.f32 %v9118_v37, %v16771_v28  ;;  %v9121_v49 = vadd.f32 %v9117_v35, %v16774_v51  ;;  %v9115_v11 = vadd.f32 %v9113_v34, %v16792_v26 }
0x5525   :  { %v9129_v60 = vpop.permute.xlu1 %9128  ;;  %v9124_v52 = vadd.f32 %v9120_v29, %v16799_v41 }
0x5526   :  { %v9147_v19 = vsel %vm421_vm0, %v9146_v0, %v9129_v60  ;;  %v9248_v23 = vmul.f32 %v9241_v58, %v9122_v10  ;;  %v9247_v61 = vmul.f32 %v9233_v17, %v9121_v49  ;;  %v9116_v17 = vadd.f32 %v9114_v45, %v16796_v48 }
0x5527   :  { %v9148_v51 = vsel %vm1544_vm5, %v9147_v19, %v9132_v30  ;;  %v9420_v30 = vld [vmem:[#allocation2 + $0x8] sm:$0xff]  ;;  %v9250_v58 = vmul.f32 %v9242_v6, %v9124_v52 }
0x5528   :  { %9315 = vmatprep.mubr.f32.mxu1 %v9248_v23 }
0x5529   :  { %v9135_v28 = vpop.permute.xlu1 %9134  ;;  %9316 = vmatmul.mubr.f32.vlgmr.msra.gmra.mrb[94].mxu1 %v9247_v61 }
0x552a   :  { %v9149_v54 = vsel %vm674_vm2, %v9148_v51, %v9135_v28  ;;  %13536 = vmatpush3.bf16.msra.mxu1 %v13535_v40  ;;  %11732 = vmatprep.mubr.msk.f32.mxu1 %vm13913_vm1, %v17384_v15 }
0x552b   :  { %v9150_v3 = vsel %vm1547_vm6, %v9149_v54, %v9138_v12 }
0x552d   :  { %v9141_v27 = vpop.permute.xlu1 %9140  ;;  %11733 = vmatmul.mubr.msk.f32.vlgmr.msra.gmra.mrb[96].mxu1 %vm281_vm4, %v9419_v22 }
0x552e   :  { %v9151_v13 = vsel %vm1549_vm7, %v9150_v3, %v9141_v27  ;;  %11735 = vmatprep.mubr.msk.f32.mxu1 %vm13913_vm1, %v17384_v15 }
0x552f   :  { %v9152_v1 = vsel %vm1551_vm8, %v9151_v13, %v9144_v55 }
0x5530   :  { %v9153_v2 = vmul.f32 %v9152_v1, %v9115_v11  ;;  %v9154_v37 = vmul.f32 %v9152_v1, %v9116_v17 }
0x5531   :  { %11736 = vmatmul.mubr.msk.f32.gmra.mrb[98].mxu1 %vm281_vm4, %v9420_v30 }
0x5532   :  { %9219 = vmatprep.mubr.f32.mxu0 %v9154_v37  ;;  %11738 = vmatprep.mubr.msk.f32.mxu1 %vm13913_vm1, %v17384_v15 }
0x5533   :  { %9220 = vmatmul.mubr.f32.vlgmr.msra.gmra.mrb[92].mxu0 %v9153_v2 }
0x5534   :  { %13505 = vmatpush3.bf16.msra.mxu0 %v14716_v21  ;;  %9385 = vmatprep.mubr.f32.mxu0 %v9250_v58  ;;  %v9016_v21 = vadd.f32 %v16940_v33, %v17546_v4 }
0x5535   :  { %13507 = vmatprep.subr.bf16.mxu0 %v14724_v7 }
0x5536   :  { %v9119_v7 = vmul.f32 %v16968_v25, %v9016_v21 }
0x5538   :  { %13509 = vmatpush3.bf16.msra.mxu0 %v14740_v53  ;;  %v9123_v53 = vadd.f32 %v9119_v7, %v16822_v50 }
0x5539   :  { %13511 = vmatprep.subr.bf16.mxu0 %v14743_v32  ;;  %v9553_v32 = vld [vmem:[%s17137_s17] sm:$0xff] }
0x553c   :  { %13513 = vmatpush3.bf16.msra.mxu0 %v14761_v44  ;;  %v9554_v44 = vld [vmem:[%s17137_s17 + $0x8] sm:$0xff] }
0x553d   :  { %13515 = vmatprep.subr.bf16.mxu0 %v17435_v43  ;;  %v13538_v43 = vpack.c.bf16 %v9554_v44, %v9553_v32  ;;  %v9831_v32 = vld [vmem:[%s17139_s19] ss:$0 sm:$0xff]  ;;  %s13922_s19 = smov [#allocation3]  }
0x553e   :  { %s9683_s0 = sshll.u32 %s13922_s19, 4  ;;  %s9684_s0 = int_to_ptr.vmem [resolvable:$true] %s9683_s0 }
0x553f   :  { %s13882_s25 = scalar_lea.vmem %s9684_s0, 32  ;;  %p13887_p1 = scmp.lt.s32.totalorder %s9684_s0, %s9684_s0 }
0x5540   :  { %13517 = vmatpush3.bf16.msra.mxu0 %v17436_v16  ;;  %v9249_v16 = vmul.f32 %v9240_v56, %v9123_v53  ;;  %p13883_p0 = scmp.ne.s32.totalorder %s9684_s0, %s13882_s25  ;;  %p13888_p2 = scmp.lt.s32.totalorder %s13882_s25, %s13882_s25 }
0x5541   :  { %13519 = vmatprep.subr.bf16.mxu0 %v17437_v5  ;;  %v9555_v5 = vld [vmem:[%s17137_s17 + $0x10] sm:$0xff] }
0x5542   :  { %p13889_p3 = por %p13888_p2, %p13887_p1 }
0x5544   :  { %13521 = vmatpush3.bf16.msra.mxu0 %v17438_v38  ;;  %v9556_v38 = vld [vmem:[%s17137_s17 + $0x18] sm:$0xff]  ;;  %p13890_p4 = pnand %p13889_p3, %p13883_p0 }
0x5545   :  { %13523 = vmatprep.subr.bf16.mxu0 %v17490_v62  ;;  %v13541_v62 = vpack.c.bf16 %v9556_v38, %v9555_v5 }
0x5548   :  { %13525 = vmatpush3.bf16.msra.mxu0 %v17602_v24 }
0x5549   :  { %13527 = vmatprep.subr.bf16.mxu0 %v17658_v8 }
0x554c   :  { %13529 = vmatpush3.bf16.msra.mxu0 %v17714_v31 }
0x554d   :  { %13531 = vmatprep.subr.bf16.mxu0 %v17770_v47 }
0x5550   :  { %13533 = vmatpush3.bf16.msra.mxu0 %v17881_v18 }
0x5551   :  { %13537 = vmatprep.subr.bf16.mxu0 %v17397_v36 }
0x5553   :  { %9386 = vmatmul.mubr.f32.vlgmr.msra.gmra.mrb[94].mxu0 %v9249_v16 }
0x5554   :  { %13539 = vmatpush3.bf16.msra.mxu0 %v13538_v43  ;;  %11749 = vmatprep.mubr.msk.f32.mxu0 %vm13913_vm1, %v17384_v15 }
0x5555   :  { %13540 = vmatprep.subr.bf16.mxu0 %v17397_v36 }
0x5558   :  { %13542 = vmatpush3.bf16.msra.mxu0 %v13541_v62 }
0x55fc   :  { %v11258_v4 = vpop.f32.mrb[94].mxu1 }
0x55fd   :  { %v11259_v24 = vpop.f32.mrb[95].mxu1 }
0x55fe   :  { %v11260_v8 = vadd.f32 %v11259_v24, %v11258_v4 }
0x5600   :  { %v9499_v31 = vpop.f32.mrb[96].mxu1 }
0x5601   :  { %v11734_v47 = vpop.f32.mrb[97].mxu1  ;;  %11750 = vmatmul.mubr.msk.f32.vlgmr.msra.gmra.mrb[96].mxu0 %vm421_vm0, %v9499_v31  ;;  %v9526_v61 = vmul.f32 %v9499_v31, %v9499_v31  ;;  %v9513_v29 = vsel %vm421_vm0, %v9499_v31, 0.0 }
0x5602   :  { %11752 = vmatprep.mubr.msk.f32.mxu0 %vm13913_vm1, %v17384_v15 }
0x5603   :  { %v9529_v59 = vsel %vm421_vm0, %v9526_v61, 0.0 }
0x5604   :  { %v17044_v36 = vpop.f32.mrb[98].mxu1 }
0x5605   :  { %v11737_v18 = vpop.f32.mrb[99].mxu1  ;;  %11753 = vmatmul.mubr.msk.f32.gmra.mrb[98].mxu0 %vm421_vm0, %v17044_v36  ;;  %v9516_v40 = vsel %vm421_vm0, %v17044_v36, 0.0  ;;  %v9527_v16 = vmul.f32 %v17044_v36, %v17044_v36 }
0x5606   :  { %v11223_v26 = vpop.f32.mrb[92].mxu0  ;;  %11755 = vmatprep.mubr.msk.f32.mxu0 %vm13913_vm1, %v17384_v15 }
0x5607   :  { %v11224_v48 = vpop.f32.mrb[93].mxu0  ;;  %v9532_v24 = vsel %vm421_vm0, %v9527_v16, 0.0 }
0x5608   :  { %v11225_v41 = vadd.f32 %v11224_v48, %v11223_v26 }
0x560a   :  { %v9391_v15 = vmul.f32 %v16943_v14, %v11225_v41 }
0x5626   :  { %v11293_v50 = vpop.f32.mrb[94].mxu0 }
0x5627   :  { %v11294_v33 = vpop.f32.mrb[95].mxu0 }
0x5628   :  { %v11295_v25 = vadd.f32 %v11294_v33, %v11293_v50 }
0x562a   :  { %v9388_v35 = vadd.f32 %v11295_v25, %v11260_v8 }
0x562c   :  { %9393 = vrot.lane.b32.xlu1 %v9388_v35, %s13917_s13 }
0x569e   :  { %v9394_v42 = vpop.permute.xlu1 %9393 }
0x569f   :  { %v9396_v20 = vmul.f32 %v16943_v14, %v9394_v42  ;;  %v17063_v14 = vld [vmem:[%s17138_s18] ss:$0 sm:$0xff] }
0x56a1   :  { %9398 = vrot.lane.b32.xlu0 %v9396_v20, %s13918_s24 }
0x56d4   :  { %v9632_v10 = vpop.f32.mrb[96].mxu0 }
0x56d5   :  { %v11751_v49 = vpop.f32.mrb[97].mxu0 }
0x56d8   :  { %v17053_v0 = vpop.f32.mrb[98].mxu0 }
0x56d9   :  { %v11754_v60 = vpop.f32.mrb[99].mxu0 }
0x5713   :  { %v9399_v46 = vpop.permute.xlu0 %9398 }
0x5714   :  { %v9401_v19 = vadd.f32 %v9399_v46, %v9391_v15 }
0x5716   :  { %v9402_v23 = vsel %vm1024_vm3, %v9401_v19, 0.0 }
0x5717   :  { %9403 = vadd.xlane.f32.xlu1 %v9402_v23 }
0x571b   :  { %9517 = vadd.xlane.f32.xlu1 %v9516_v40 }
0x571f   :  { %9530 = vadd.xlane.f32.xlu1 %v9529_v59 }
0x57a4   :  { %v9404_v63 = vpop.xlane.xlu1 %9403 }
0x57a5   :  { %v9405_v39 = vmul.f32 0.0625, %v9404_v63 }
0x57a7   :  { %v9406_v12 = vsub.f32 %v9401_v19, %v9405_v39 }
0x57a8   :  { %v9518_v28 = vpop.xlane.xlu1 %9517 }
0x57a9   :  { %v17065_v51 = vmul.f32 0.03125, %v9518_v28  ;;  %v9407_v34 = vmul.f32 %v9406_v12, %v9406_v12 }
0x57ab   :  { %v17069_v56 = vmul.f32 %v17063_v14, %v17065_v51  ;;  %v9408_v54 = vsel %vm1024_vm3, %v9407_v34, 0.0 }
0x57ac   :  { %9409 = vadd.xlane.f32.xlu0 %v9408_v54  ;;  %v9531_v6 = vpop.xlane.xlu1 %9530 }
0x57ad   :  { %v9657_v45 = vsub.f32 %v17053_v0, %v17069_v56  ;;  %v9538_v13 = vmul.f32 0.03125, %v9531_v6 }
0x57b0   :  { %9514 = vadd.xlane.f32.xlu0 %v9513_v29 }
0x5839   :  { %v9410_v22 = vpop.xlane.xlu0 %9409 }
0x583a   :  { %v9411_v27 = vmul.f32 0.0625, %v9410_v22 }
0x583c   :  { %v9412_v3 = vadd.f32 1e-05, %v9411_v27 }
0x583d   :  { %v9515_v55 = vpop.xlane.xlu0 %9514 }
0x583e   :  { %13859 = vrsqrt.f32 %v9412_v3  ;;  %v9523_v11 = vmul.f32 0.03125, %v9515_v55 }
0x5840   :  { %v9541_v17 = vmul.f32 %v9523_v11, %v9523_v11  ;;  %v9653_v58 = vmul.f32 %v17063_v14, %v9523_v11 }
0x5842   :  { %v9544_v52 = vsub.f32 %v9538_v13, %v9541_v17  ;;  %v9656_v7 = vsub.f32 %v9632_v10, %v9653_v58 }
0x5844   :  { %v9547_v1 = vadd.f32 1e-05, %v9544_v52 }
0x5846   :  { %13861 = vrsqrt.f32 %v9547_v1 }
0x5848   :  { %v13860_v2 = vpop.eup %13859 }
0x5849   :  { %v9414_v30 = vmul.f32 %v13860_v2, %v9406_v12 }
0x584b   :  { %v9415_v37 = vmul.f32 %v16841_v57, %v9414_v30 }
0x584d   :  { %v9416_v21 = vadd.f32 %v16847_v9, %v9415_v37 }
0x584f   :  { %9417 = vst.msk [vmem:[#allocation2 + $0x16] sm:$0x3] %vm1024_vm3, %v9416_v21  ;;  %9418 = vst.msk [vmem:[#allocation3] sm:$0x3] %vm1024_vm3, %v9416_v21 }
0x5850   :  { %v13862_v53 = vpop.eup %13861 }
0x5851   :  { %v9659_v44 = vmul.f32 %v13862_v53, %v9656_v7 }
0x5853   :  { %v9669_v43 = vadd.f32 %v9831_v32, %v9659_v44 }
0x5855   :  { %9672 = vst.msk [vmem:[%s17142_s22] sm:$0xff] %vm674_vm2, %v9669_v43 }
0x5856   :  { %v9421_v57 = vld [vmem:[#allocation2 + $0x10] sm:$0xff] }
0x5857   :  { %11739 = vmatmul.mubr.msk.f32.gmra.mrb[100].mxu1 %vm281_vm4, %v9421_v57 }
0x592a   :  { %v9509_v9 = vpop.f32.mrb[100].mxu1 }
0x592b   :  { %v9528_v5 = vmul.f32 %v9509_v9, %v9509_v9  ;;  %v11740_v38 = vpop.f32.mrb[101].mxu1  ;;  %11756 = vmatmul.mubr.msk.f32.gmra.mrb[100].mxu0 %vm421_vm0, %v9509_v9  ;;  %v9519_v62 = vsel %vm421_vm0, %v9509_v9, 0.0 }
0x592c   :  { %9520 = vadd.xlane.f32.xlu0 %v9519_v62 }
0x592d   :  { %v9535_v4 = vsel %vm421_vm0, %v9528_v5, 0.0 }
0x592e   :  { %9536 = vadd.xlane.f32.xlu1 %v9535_v4 }
0x5930   :  { %9533 = vadd.xlane.f32.xlu0 %v9532_v24 }
0x5931   :  { %13893 = shalt.err (!%p13890_p4)
}
0x5932   :  { %s13894_s15 = scalar_lea.hbm %s17143_s23, 32 }
0x5933   :  { %p13895_p5 = scmp.ne.s32.totalorder %s17143_s23, %s13894_s15  ;;  %p13898_p6 = scmp.lt.u32.totalorder %s13894_s15, %s17143_s23 }
0x5935   :  { %p13900_p7 = pnand %p13898_p6, %p13895_p5 }
0x5937   :  { %13903 = shalt.err (!%p13900_p7)
}
0x5938   :  { %9686 = dma.vmem_to_hbm [thread:$0]  %s9684_s0, 32, %s17143_s23, [#allocation4]   ;;  %v9542_v47 = vmul.f32 %v17065_v51, %v17065_v51 }
0x59b9   :  { %v9521_v8 = vpop.xlane.xlu0 %9520 }
0x59ba   :  { %v9525_v33 = vmul.f32 0.03125, %v9521_v8 }
0x59bb   :  { %v9537_v25 = vpop.xlane.xlu1 %9536 }
0x59bc   :  { %v9543_v35 = vmul.f32 %v9525_v33, %v9525_v33  ;;  %v9540_v42 = vmul.f32 0.03125, %v9537_v25  ;;  %v9655_v49 = vmul.f32 %v17063_v14, %v9525_v33 }
0x59bd   :  { %v9534_v31 = vpop.xlane.xlu0 %9533 }
0x59be   :  { %v9539_v36 = vmul.f32 0.03125, %v9534_v31  ;;  %v9546_v20 = vsub.f32 %v9540_v42, %v9543_v35 }
0x59c0   :  { %v9545_v18 = vsub.f32 %v9539_v36, %v9542_v47  ;;  %v9549_v10 = vadd.f32 1e-05, %v9546_v20 }
0x59c2   :  { %v9548_v26 = vadd.f32 1e-05, %v9545_v18 }
0x59c4   :  { %13863 = vrsqrt.f32 %v9548_v26 }
0x59c5   :  { %13865 = vrsqrt.f32 %v9549_v10 }
0x59ce   :  { %v13864_v48 = vpop.eup %13863 }
0x59cf   :  { %v9660_v41 = vmul.f32 %v13864_v48, %v9657_v45  ;;  %v13866_v0 = vpop.eup %13865 }
0x59d1   :  { %v9670_v50 = vadd.f32 %v9831_v32, %v9660_v41 }
0x59d3   :  { %9673 = vst.msk [vmem:[%s17142_s22 + $0x8] sm:$0xff] %vm674_vm2, %v9670_v50 }
0x59fe   :  { %v9642_v60 = vpop.f32.mrb[100].mxu0 }
0x59ff   :  { %v9658_v15 = vsub.f32 %v9642_v60, %v9655_v49  ;;  %v11757_v46 = vpop.f32.mrb[101].mxu0 }
0x5a01   :  { %v9661_v19 = vmul.f32 %v13866_v0, %v9658_v15 }
0x5a03   :  { %v9671_v23 = vadd.f32 %v9831_v32, %v9661_v19 }
0x5a05   :  { %9674 = vst.msk [vmem:[%s17142_s22 + $0x10] sm:$0xff] %vm674_vm2, %v9671_v23 }
0x5a06   :  { %13904 = dma.done.wait [#allocation4], 32  }
0x5a07   :  { %13905 = vsyncadd [#allocation4], 4294967264 }
0x5a08   :  { %9692 = vsyncpa [#allocation4], 1 }

</bundles_post_ra>
